<compile_context>
chip_gen: v5e
topology: v5e:2x2
jax: 0.10.0
libtpu: 0.0.40
codegen_flags: <defaults>
</compile_context>

<pallas_src>
import functools

import jax
import jax.numpy as jnp
from jax.experimental import pallas as pl
from jax.experimental.pallas import tpu as pltpu

NC = 1
NDF = 64
BN_EPS = 1e-5
LEAKY_SLOPE = 0.2

TM_MAX = 512   # M-tile cap (non-BN layers); bounds VMEM at larger batch
TK_MAX = 512   # K-tile size for large reduction dims


def _round_up(x, m):
    return (x + m - 1) // m * m


# ---------------------------------------------------------------------------
# Fused Pallas kernel: im2col-matmul (+ BN batch-stats + LeakyReLU epilogue)
# ---------------------------------------------------------------------------
def _conv_fused_kernel(mode, m_valid, x_ref, w_ref, g_ref, b_ref, o_ref):
    """Grid = (M tiles, K tiles).  o_ref (f32) is output-resident across the K
    axis and doubles as the accumulator.  On the last K step the epilogue
    optionally computes per-channel batch statistics (training-mode BatchNorm),
    applies the affine, applies LeakyReLU(0.2), and stores the activation."""
    k = pl.program_id(1)

    @pl.when(k == 0)
    def _():
        o_ref[...] = jnp.zeros_like(o_ref)

    o_ref[...] += jnp.dot(x_ref[...], w_ref[...],
                          preferred_element_type=jnp.float32)

    @pl.when(k == pl.num_programs(1) - 1)
    def _():
        acc = o_ref[...]
        if mode == "bn_leaky":
            # Padded rows of the patch matrix are exactly zero, so they add
            # nothing to the sums; divide by the true row count m_valid.
            inv_m = 1.0 / float(m_valid)
            mean = jnp.sum(acc, axis=0, keepdims=True) * inv_m
            mean_sq = jnp.sum(acc * acc, axis=0, keepdims=True) * inv_m
            var = jnp.maximum(mean_sq - mean * mean, 0.0)  # biased (PyTorch)
            scale = g_ref[...] * jax.lax.rsqrt(var + BN_EPS)
            bias = b_ref[...] - mean * scale
            y = acc * scale + bias
        else:
            y = acc
        if mode in ("leaky", "bn_leaky"):
            y = jnp.where(y > 0, y, LEAKY_SLOPE * y)
        o_ref[...] = y


def conv_fused(patches, wmat, gamma, beta, *, mode, m_valid, tm, tk):
    """patches:(Mp,Kp) bf16 @ wmat:(Kp,Np) bf16 -> (Mp,Np) f32 with fused
    epilogue.  gamma/beta:(1,Np) f32.  All dims pre-padded to the tile sizes."""
    Mp, Kp = patches.shape
    _, Np = wmat.shape
    assert Mp % tm == 0 and Kp % tk == 0 and Np % 128 == 0
    kernel = functools.partial(_conv_fused_kernel, mode, m_valid)
    # VMEM footprint per call (double-buffered inputs + resident f32 output):
    #   2*tm*tk*2 + 2*tk*Np*2 + tm*Np*4  <= ~3 MiB for tm=tk=Np=512.
    return pl.pallas_call(
        kernel,
        out_shape=jax.ShapeDtypeStruct((Mp, Np), jnp.float32),
        grid_spec=pltpu.PrefetchScalarGridSpec(
            num_scalar_prefetch=0,
            grid=(Mp // tm, Kp // tk),
            in_specs=[
                pl.BlockSpec((tm, tk), lambda i, k: (i, k)),
                pl.BlockSpec((tk, Np), lambda i, k: (k, 0)),
                pl.BlockSpec((1, Np), lambda i, k: (0, 0)),
                pl.BlockSpec((1, Np), lambda i, k: (0, 0)),
            ],
            out_specs=pl.BlockSpec((tm, Np), lambda i, k: (i, 0)),
        ),
        compiler_params=pltpu.CompilerParams(
            dimension_semantics=("parallel", "arbitrary")),
    )(patches, wmat, gamma, beta)


# ---------------------------------------------------------------------------
# Glue: NHWC im2col, per-layer driver, parameter init
# ---------------------------------------------------------------------------
def _im2col_nhwc(x, kh, kw, stride, pad):
    """x:(B,H,W,C) NHWC -> patch matrix (B*OH*OW, kh*kw*C), tap-major then C,
    matching weight.transpose(2,3,1,0).reshape(kh*kw*Cin, Cout)."""
    B, H, W, C = x.shape
    if pad:
        x = jnp.pad(x, ((0, 0), (pad, pad), (pad, pad), (0, 0)))
    Hp, Wp = H + 2 * pad, W + 2 * pad
    OH = (Hp - kh) // stride + 1
    OW = (Wp - kw) // stride + 1
    taps = []
    for dy in range(kh):
        for dx in range(kw):
            taps.append(x[:, dy:dy + stride * (OH - 1) + 1:stride,
                          dx:dx + stride * (OW - 1) + 1:stride, :])
    patches = jnp.stack(taps, axis=3)                    # (B,OH,OW,kh*kw,C)
    return patches.reshape(B * OH * OW, kh * kw * C), OH, OW


def conv_block(x_nhwc, w, *, stride, pad, bn_params=None):
    """Conv2d(bias=False) [+ BatchNorm2d training-mode] + LeakyReLU(0.2).
    x_nhwc:(B,H,W,Cin), w:(Cout,Cin,kh,kw) -> (B,OH,OW,Cout)."""
    B = x_nhwc.shape[0]
    Cout, Cin, kh, kw = w.shape
    patches, OH, OW = _im2col_nhwc(x_nhwc, kh, kw, stride, pad)
    M, K = patches.shape
    wmat = w.transpose(2, 3, 1, 0).reshape(kh * kw * Cin, Cout)

    mode = "bn_leaky" if bn_params is not None else "leaky"

    # K tiling: single step for small K, else 512-wide steps (pad K up so the
    # tile always divides evenly -- no brittle "% 1024" assertion).
    tk = TK_MAX if K > TK_MAX else _round_up(K, 128)
    Kp = _round_up(K, tk)

    # M tiling: BN needs the full batch in one block for in-kernel statistics;
    # otherwise tile M (parallel axis -> megacore sharding, bounded VMEM).
    m_base = _round_up(max(M, 16), 16)          # 16: bf16 sublane packing
    tm = m_base if mode == "bn_leaky" else min(m_base, TM_MAX)
    Mp = _round_up(m_base, tm)
    Np = _round_up(max(Cout, 128), 128)

    xpad = jnp.pad(patches, ((0, Mp - M), (0, Kp - K))).astype(jnp.bfloat16)
    wpad = jnp.pad(wmat, ((0, Kp - K), (0, Np - Cout))).astype(jnp.bfloat16)

    if bn_params is not None:
        gamma, beta = bn_params
    else:  # unused by the kernel in "leaky" mode
        gamma = jnp.ones((Cout,), jnp.float32)
        beta = jnp.zeros((Cout,), jnp.float32)
    gpad = jnp.pad(gamma, (0, Np - Cout)).reshape(1, Np).astype(jnp.float32)
    bpad = jnp.pad(beta, (0, Np - Cout)).reshape(1, Np).astype(jnp.float32)

    out = conv_fused(xpad, wpad, gpad, bpad,
                     mode=mode, m_valid=M, tm=tm, tk=tk)
    return out[:M, :Cout].reshape(B, OH, OW, Cout)


def feat_forward(x_nhwc, w):
    """feat_layer: Conv2d(ndf*8, 2, 2, 1, 0, bias=False).
    Cout=2 would pad to a 128-lane MXU tile doing 64x wasted work (see perf
    review), so this tiny tail is a plain dot product instead of a pallas_call."""
    B = x_nhwc.shape[0]
    Cout, Cin, kh, kw = w.shape
    patches, OH, OW = _im2col_nhwc(x_nhwc, kh, kw, 1, 0)
    wmat = w.transpose(2, 3, 1, 0).reshape(kh * kw * Cin, Cout)
    out = jnp.dot(patches, wmat)                 # (B*OH*OW, 2), tiny
    return out.reshape(B, OH, OW, Cout)


def init_params(key):
    # (Cout, Cin, kernel, stride, pad, has_bn) -- mirrors `self.main`
    specs = [
        (NDF,     NC,      4, 2, 1, False),
        (NDF * 2, NDF,     4, 2, 1, True),
        (NDF * 4, NDF * 2, 2, 2, 1, True),
        (NDF * 4, NDF * 4, 4, 2, 1, True),
        (NDF * 8, NDF * 4, 2, 2, 1, True),
        (NDF * 8, NDF * 8, 2, 2, 1, True),
    ]
    main = []
    for (co, ci, k, s, p, bn) in specs:
        key, sub = jax.random.split(key)
        w = 0.05 * jax.random.normal(sub, (co, ci, k, k), jnp.float32)
        bnp = (jnp.ones((co,), jnp.float32),
               jnp.zeros((co,), jnp.float32)) if bn else None
        main.append(dict(w=w, stride=s, pad=p, bn=bnp))
    key, sub = jax.random.split(key)
    feat_w = 0.05 * jax.random.normal(sub, (2, NDF * 8, 2, 2), jnp.float32)
    return dict(main=main, feat_w=feat_w)


def model_forward(params, x_nchw):
    # NCHW -> NHWC once at the entry; everything stays NHWC afterwards.
    h = jnp.transpose(x_nchw, (0, 2, 3, 1))
    for layer in params["main"]:
        h = conv_block(h, layer["w"], stride=layer["stride"],
                       pad=layer["pad"], bn_params=layer["bn"])
    feat = feat_forward(h, params["feat_w"])     # (B, 1, 1, 2)
    return jnp.squeeze(feat)                     # -> (B, 2)


if __name__ == "__main__":
    key = jax.random.PRNGKey(0)
    kp, kx = jax.random.split(key)
    params = init_params(kp)
    # smallest input that reaches a 2x2 feature map before feat_layer: 64x64
    x = jax.random.normal(kx, (2, NC, 64, 64), jnp.float32)
    fwd = jax.jit(lambda inp: model_forward(params, inp))
    out = jax.block_until_ready(fwd(x))
    assert out.shape == (2, 2), out.shape
    assert bool(jnp.all(jnp.isfinite(out)))
    print("KERNEL_OK")
</pallas_src>

<mosaic_0001>
module attributes {stable_mosaic.version = 11 : i64} {
  func.func @_conv_fused_kernel(%arg0: i32, %arg1: i32, %arg2: memref<512x128xbf16, #tpu.memory_space<vmem>>, %arg3: memref<128x128xbf16, #tpu.memory_space<vmem>>, %arg4: memref<1x128xf32, #tpu.memory_space<vmem>>, %arg5: memref<1x128xf32, #tpu.memory_space<vmem>>, %arg6: memref<512x128xf32, #tpu.memory_space<vmem>>) attributes {dimension_semantics = [#tpu.dimension_semantics<parallel>, #tpu.dimension_semantics<arbitrary>], iteration_bounds = array<i64: 4, 1>, scalar_prefetch = 0 : i64, scratch_operands = 0 : i64, tpu.core_type = #tpu.core_type<tc>, window_params = [{transform_indices = @transform_0, window_bounds = array<i64: 512, 128>}, {transform_indices = @transform_1, window_bounds = array<i64: 128, 128>}, {pipeline_mode = #tpu.pipeline_mode<synchronous>, transform_indices = @transform_2, window_bounds = array<i64: 1, 128>}, {pipeline_mode = #tpu.pipeline_mode<synchronous>, transform_indices = @transform_3, window_bounds = array<i64: 1, 128>}, {transform_indices = @transform_4, window_bounds = array<i64: 512, 128>}]} {
    %c0_i32 = arith.constant 0 : i32
    %0 = arith.cmpi eq, %arg1, %c0_i32 : i32
    %1 = arith.extui %0 : i1 to i32
    %c0_i32_0 = arith.constant 0 : i32
    %2 = arith.cmpi ne, %1, %c0_i32_0 : i32
    scf.if %2 {
      %cst_10 = arith.constant 0.000000e+00 : f32
      %12 = vector.broadcast %cst_10 : f32 to vector<512x128xf32>
      %c0_11 = arith.constant 0 : index
      %c0_12 = arith.constant 0 : index
      %13 = vector.load %arg6[%c0_11, %c0_12] : memref<512x128xf32, #tpu.memory_space<vmem>>, vector<512x128xf32>
      tpu.vector_store %arg6[%c0_11, %c0_12], %12 {strides = array<i32>} : memref<512x128xf32, #tpu.memory_space<vmem>>, vector<512x128xf32>,
    } else {
    }
    %c0 = arith.constant 0 : index
    %c0_1 = arith.constant 0 : index
    %3 = vector.load %arg6[%c0, %c0_1] : memref<512x128xf32, #tpu.memory_space<vmem>>, vector<512x128xf32>
    %c0_2 = arith.constant 0 : index
    %c0_3 = arith.constant 0 : index
    %4 = vector.load %arg2[%c0_2, %c0_3] : memref<512x128xbf16, #tpu.memory_space<vmem>>, vector<512x128xbf16>
    %c0_4 = arith.constant 0 : index
    %c0_5 = arith.constant 0 : index
    %5 = vector.load %arg3[%c0_4, %c0_5] : memref<128x128xbf16, #tpu.memory_space<vmem>>, vector<128x128xbf16>
    %cst = arith.constant dense<0.000000e+00> : vector<512x128xf32>
    %6 = tpu.matmul %4, %5, %cst {dimension_numbers = #tpu.dot_dimension_numbers<[1], [0], [0], [1], [0, 0, 1, 1], [], []>} : vector<512x128xbf16>, vector<128x128xbf16>, vector<512x128xf32> -> vector<512x128xf32>
    %7 = arith.addf %3, %6 : vector<512x128xf32>
    %c0_6 = arith.constant 0 : index
    %c0_7 = arith.constant 0 : index
    %8 = vector.load %arg6[%c0_6, %c0_7] : memref<512x128xf32, #tpu.memory_space<vmem>>, vector<512x128xf32>
    tpu.vector_store %arg6[%c0_6, %c0_7], %7 {strides = array<i32>} : memref<512x128xf32, #tpu.memory_space<vmem>>, vector<512x128xf32>,
    %c0_i32_8 = arith.constant 0 : i32
    %9 = arith.cmpi eq, %arg1, %c0_i32_8 : i32
    %10 = arith.extui %9 : i1 to i32
    %c0_i32_9 = arith.constant 0 : i32
    %11 = arith.cmpi ne, %10, %c0_i32_9 : i32
    scf.if %11 {
      %c0_10 = arith.constant 0 : index
      %c0_11 = arith.constant 0 : index
      %12 = vector.load %arg6[%c0_10, %c0_11] : memref<512x128xf32, #tpu.memory_space<vmem>>, vector<512x128xf32>
      %cst_12 = arith.constant 0.000000e+00 : f32
      %13 = vector.broadcast %cst_12 : f32 to vector<512x128xf32>
      %14 = arith.cmpf ogt, %12, %13 : vector<512x128xf32>
      %cst_13 = arith.constant 2.000000e-01 : f32
      %15 = vector.broadcast %cst_13 : f32 to vector<512x128xf32>
      %16 = arith.mulf %15, %12 : vector<512x128xf32>
      %17 = arith.select %14, %12, %16 : vector<512x128xi1>, vector<512x128xf32>
      %c0_14 = arith.constant 0 : index
      %c0_15 = arith.constant 0 : index
      %18 = vector.load %arg6[%c0_14, %c0_15] : memref<512x128xf32, #tpu.memory_space<vmem>>, vector<512x128xf32>
      tpu.vector_store %arg6[%c0_14, %c0_15], %17 {strides = array<i32>} : memref<512x128xf32, #tpu.memory_space<vmem>>, vector<512x128xf32>,
    } else {
    }
    return
  }
  func.func @transform_0(%arg0: i32, %arg1: i32) -> (i32, i32) {
    %c0_i32 = arith.constant 0 : i32
    return %arg0, %arg1 : i32, i32
  }
  func.func @transform_1(%arg0: i32, %arg1: i32) -> (i32, i32) {
    %c0_i32 = arith.constant 0 : i32
    %c0_i32_0 = arith.constant 0 : i32
    return %arg1, %c0_i32 : i32, i32
  }
  func.func @transform_2(%arg0: i32, %arg1: i32) -> (i32, i32) {
    %c0_i32 = arith.constant 0 : i32
    %c0_i32_0 = arith.constant 0 : i32
    %c0_i32_1 = arith.constant 0 : i32
    return %c0_i32, %c0_i32_0 : i32, i32
  }
  func.func @transform_3(%arg0: i32, %arg1: i32) -> (i32, i32) {
    %c0_i32 = arith.constant 0 : i32
    %c0_i32_0 = arith.constant 0 : i32
    %c0_i32_1 = arith.constant 0 : i32
    return %c0_i32, %c0_i32_0 : i32, i32
  }
  func.func @transform_4(%arg0: i32, %arg1: i32) -> (i32, i32) {
    %c0_i32 = arith.constant 0 : i32
    %c0_i32_0 = arith.constant 0 : i32
    return %arg0, %c0_i32 : i32, i32
  }
}

module attributes {stable_mosaic.version = 11 : i64} {
  func.func @_conv_fused_kernel(%arg0: i32, %arg1: i32, %arg2: memref<512x512xbf16, #tpu.memory_space<vmem>>, %arg3: memref<512x128xbf16, #tpu.memory_space<vmem>>, %arg4: memref<1x128xf32, #tpu.memory_space<vmem>>, %arg5: memref<1x128xf32, #tpu.memory_space<vmem>>, %arg6: memref<512x128xf32, #tpu.memory_space<vmem>>) attributes {dimension_semantics = [#tpu.dimension_semantics<parallel>, #tpu.dimension_semantics<arbitrary>], iteration_bounds = array<i64: 1, 2>, scalar_prefetch = 0 : i64, scratch_operands = 0 : i64, tpu.core_type = #tpu.core_type<tc>, window_params = [{transform_indices = @transform_0, window_bounds = array<i64: 512, 512>}, {transform_indices = @transform_1, window_bounds = array<i64: 512, 128>}, {pipeline_mode = #tpu.pipeline_mode<synchronous>, transform_indices = @transform_2, window_bounds = array<i64: 1, 128>}, {pipeline_mode = #tpu.pipeline_mode<synchronous>, transform_indices = @transform_3, window_bounds = array<i64: 1, 128>}, {transform_indices = @transform_4, window_bounds = array<i64: 512, 128>}]} {
    %c0_i32 = arith.constant 0 : i32
    %0 = arith.cmpi eq, %arg1, %c0_i32 : i32
    %1 = arith.extui %0 : i1 to i32
    %c0_i32_0 = arith.constant 0 : i32
    %2 = arith.cmpi ne, %1, %c0_i32_0 : i32
    scf.if %2 {
      %cst_9 = arith.constant 0.000000e+00 : f32
      %12 = vector.broadcast %cst_9 : f32 to vector<512x128xf32>
      %c0_10 = arith.constant 0 : index
      %c0_11 = arith.constant 0 : index
      %13 = vector.load %arg6[%c0_10, %c0_11] : memref<512x128xf32, #tpu.memory_space<vmem>>, vector<512x128xf32>
      tpu.vector_store %arg6[%c0_10, %c0_11], %12 {strides = array<i32>} : memref<512x128xf32, #tpu.memory_space<vmem>>, vector<512x128xf32>,
    } else {
    }
    %c0 = arith.constant 0 : index
    %c0_1 = arith.constant 0 : index
    %3 = vector.load %arg6[%c0, %c0_1] : memref<512x128xf32, #tpu.memory_space<vmem>>, vector<512x128xf32>
    %c0_2 = arith.constant 0 : index
    %c0_3 = arith.constant 0 : index
    %4 = vector.load %arg2[%c0_2, %c0_3] : memref<512x512xbf16, #tpu.memory_space<vmem>>, vector<512x512xbf16>
    %c0_4 = arith.constant 0 : index
    %c0_5 = arith.constant 0 : index
    %5 = vector.load %arg3[%c0_4, %c0_5] : memref<512x128xbf16, #tpu.memory_space<vmem>>, vector<512x128xbf16>
    %cst = arith.constant dense<0.000000e+00> : vector<512x128xf32>
    %6 = tpu.matmul %4, %5, %cst {dimension_numbers = #tpu.dot_dimension_numbers<[1], [0], [0], [1], [0, 0, 1, 1], [], []>} : vector<512x512xbf16>, vector<512x128xbf16>, vector<512x128xf32> -> vector<512x128xf32>
    %7 = arith.addf %3, %6 : vector<512x128xf32>
    %c0_6 = arith.constant 0 : index
    %c0_7 = arith.constant 0 : index
    %8 = vector.load %arg6[%c0_6, %c0_7] : memref<512x128xf32, #tpu.memory_space<vmem>>, vector<512x128xf32>
    tpu.vector_store %arg6[%c0_6, %c0_7], %7 {strides = array<i32>} : memref<512x128xf32, #tpu.memory_space<vmem>>, vector<512x128xf32>,
    %c1_i32 = arith.constant 1 : i32
    %9 = arith.cmpi eq, %arg1, %c1_i32 : i32
    %10 = arith.extui %9 : i1 to i32
    %c0_i32_8 = arith.constant 0 : i32
    %11 = arith.cmpi ne, %10, %c0_i32_8 : i32
    scf.if %11 {
      %c0_9 = arith.constant 0 : index
      %c0_10 = arith.constant 0 : index
      %12 = vector.load %arg6[%c0_9, %c0_10] : memref<512x128xf32, #tpu.memory_space<vmem>>, vector<512x128xf32>
      %cst_11 = arith.constant dense<0.000000e+00> : vector<128xf32>
      %13 = vector.multi_reduction <add>, %12, %cst_11 [0] : vector<512x128xf32> to vector<128xf32>
      %14 = vector.shape_cast %13 : vector<128xf32> to vector<1x128xf32>
      %cst_12 = arith.constant 0.001953125 : f32
      %15 = vector.broadcast %cst_12 : f32 to vector<1x128xf32>
      %16 = arith.mulf %14, %15 : vector<1x128xf32>
      %17 = arith.mulf %12, %12 : vector<512x128xf32>
      %cst_13 = arith.constant dense<0.000000e+00> : vector<128xf32>
      %18 = vector.multi_reduction <add>, %17, %cst_13 [0] : vector<512x128xf32> to vector<128xf32>
      %19 = vector.shape_cast %18 : vector<128xf32> to vector<1x128xf32>
      %cst_14 = arith.constant 0.001953125 : f32
      %20 = vector.broadcast %cst_14 : f32 to vector<1x128xf32>
      %21 = arith.mulf %19, %20 : vector<1x128xf32>
      %22 = arith.mulf %16, %16 : vector<1x128xf32>
      %23 = arith.subf %21, %22 : vector<1x128xf32>
      %cst_15 = arith.constant 0.000000e+00 : f32
      %24 = vector.broadcast %cst_15 : f32 to vector<1x128xf32>
      %25 = arith.maximumf %23, %24 : vector<1x128xf32>
      %c0_16 = arith.constant 0 : index
      %c0_17 = arith.constant 0 : index
      %26 = vector.load %arg4[%c0_16, %c0_17] : memref<1x128xf32, #tpu.memory_space<vmem>>, vector<1x128xf32>
      %cst_18 = arith.constant 9.99999974E-6 : f32
      %27 = vector.broadcast %cst_18 : f32 to vector<1x128xf32>
      %28 = arith.addf %25, %27 : vector<1x128xf32>
      %29 = math.rsqrt %28 : vector<1x128xf32>
      %30 = arith.mulf %26, %29 : vector<1x128xf32>
      %c0_19 = arith.constant 0 : index
      %c0_20 = arith.constant 0 : index
      %31 = vector.load %arg5[%c0_19, %c0_20] : memref<1x128xf32, #tpu.memory_space<vmem>>, vector<1x128xf32>
      %32 = arith.mulf %16, %30 : vector<1x128xf32>
      %33 = arith.subf %31, %32 : vector<1x128xf32>
      %34 = vector.broadcast %30 : vector<1x128xf32> to vector<512x128xf32>
      %35 = arith.mulf %12, %34 : vector<512x128xf32>
      %36 = vector.broadcast %33 : vector<1x128xf32> to vector<512x128xf32>
      %37 = arith.addf %35, %36 : vector<512x128xf32>
      %cst_21 = arith.constant 0.000000e+00 : f32
      %38 = vector.broadcast %cst_21 : f32 to vector<512x128xf32>
      %39 = arith.cmpf ogt, %37, %38 : vector<512x128xf32>
      %cst_22 = arith.constant 2.000000e-01 : f32
      %40 = vector.broadcast %cst_22 : f32 to vector<512x128xf32>
      %41 = arith.mulf %40, %37 : vector<512x128xf32>
      %42 = arith.select %39, %37, %41 : vector<512x128xi1>, vector<512x128xf32>
      %c0_23 = arith.constant 0 : index
      %c0_24 = arith.constant 0 : index
      %43 = vector.load %arg6[%c0_23, %c0_24] : memref<512x128xf32, #tpu.memory_space<vmem>>, vector<512x128xf32>
      tpu.vector_store %arg6[%c0_23, %c0_24], %42 {strides = array<i32>} : memref<512x128xf32, #tpu.memory_space<vmem>>, vector<512x128xf32>,
    } else {
    }
    return
  }
  func.func @transform_0(%arg0: i32, %arg1: i32) -> (i32, i32) {
    %c0_i32 = arith.constant 0 : i32
    return %arg0, %arg1 : i32, i32
  }
  func.func @transform_1(%arg0: i32, %arg1: i32) -> (i32, i32) {
    %c0_i32 = arith.constant 0 : i32
    %c0_i32_0 = arith.constant 0 : i32
    return %arg1, %c0_i32 : i32, i32
  }
  func.func @transform_2(%arg0: i32, %arg1: i32) -> (i32, i32) {
    %c0_i32 = arith.constant 0 : i32
    %c0_i32_0 = arith.constant 0 : i32
    %c0_i32_1 = arith.constant 0 : i32
    return %c0_i32, %c0_i32_0 : i32, i32
  }
  func.func @transform_3(%arg0: i32, %arg1: i32) -> (i32, i32) {
    %c0_i32 = arith.constant 0 : i32
    %c0_i32_0 = arith.constant 0 : i32
    %c0_i32_1 = arith.constant 0 : i32
    return %c0_i32, %c0_i32_0 : i32, i32
  }
  func.func @transform_4(%arg0: i32, %arg1: i32) -> (i32, i32) {
    %c0_i32 = arith.constant 0 : i32
    %c0_i32_0 = arith.constant 0 : i32
    return %arg0, %c0_i32 : i32, i32
  }
}

module attributes {stable_mosaic.version = 11 : i64} {
  func.func @_conv_fused_kernel(%arg0: i32, %arg1: i32, %arg2: memref<176x512xbf16, #tpu.memory_space<vmem>>, %arg3: memref<512x256xbf16, #tpu.memory_space<vmem>>, %arg4: memref<1x256xf32, #tpu.memory_space<vmem>>, %arg5: memref<1x256xf32, #tpu.memory_space<vmem>>, %arg6: memref<176x256xf32, #tpu.memory_space<vmem>>) attributes {dimension_semantics = [#tpu.dimension_semantics<parallel>, #tpu.dimension_semantics<arbitrary>], iteration_bounds = array<i64: 1, 1>, scalar_prefetch = 0 : i64, scratch_operands = 0 : i64, tpu.core_type = #tpu.core_type<tc>, window_params = [{transform_indices = @transform_0, window_bounds = array<i64: 176, 512>}, {transform_indices = @transform_1, window_bounds = array<i64: 512, 256>}, {pipeline_mode = #tpu.pipeline_mode<synchronous>, transform_indices = @transform_2, window_bounds = array<i64: 1, 256>}, {pipeline_mode = #tpu.pipeline_mode<synchronous>, transform_indices = @transform_3, window_bounds = array<i64: 1, 256>}, {transform_indices = @transform_4, window_bounds = array<i64: 176, 256>}]} {
    %c0_i32 = arith.constant 0 : i32
    %0 = arith.cmpi eq, %arg1, %c0_i32 : i32
    %1 = arith.extui %0 : i1 to i32
    %c0_i32_0 = arith.constant 0 : i32
    %2 = arith.cmpi ne, %1, %c0_i32_0 : i32
    scf.if %2 {
      %cst_10 = arith.constant 0.000000e+00 : f32
      %12 = vector.broadcast %cst_10 : f32 to vector<176x256xf32>
      %c0_11 = arith.constant 0 : index
      %c0_12 = arith.constant 0 : index
      %13 = vector.load %arg6[%c0_11, %c0_12] : memref<176x256xf32, #tpu.memory_space<vmem>>, vector<176x256xf32>
      tpu.vector_store %arg6[%c0_11, %c0_12], %12 {strides = array<i32>} : memref<176x256xf32, #tpu.memory_space<vmem>>, vector<176x256xf32>,
    } else {
    }
    %c0 = arith.constant 0 : index
    %c0_1 = arith.constant 0 : index
    %3 = vector.load %arg6[%c0, %c0_1] : memref<176x256xf32, #tpu.memory_space<vmem>>, vector<176x256xf32>
    %c0_2 = arith.constant 0 : index
    %c0_3 = arith.constant 0 : index
    %4 = vector.load %arg2[%c0_2, %c0_3] : memref<176x512xbf16, #tpu.memory_space<vmem>>, vector<176x512xbf16>
    %c0_4 = arith.constant 0 : index
    %c0_5 = arith.constant 0 : index
    %5 = vector.load %arg3[%c0_4, %c0_5] : memref<512x256xbf16, #tpu.memory_space<vmem>>, vector<512x256xbf16>
    %cst = arith.constant dense<0.000000e+00> : vector<176x256xf32>
    %6 = tpu.matmul %4, %5, %cst {dimension_numbers = #tpu.dot_dimension_numbers<[1], [0], [0], [1], [0, 0, 1, 1], [], []>} : vector<176x512xbf16>, vector<512x256xbf16>, vector<176x256xf32> -> vector<176x256xf32>
    %7 = arith.addf %3, %6 : vector<176x256xf32>
    %c0_6 = arith.constant 0 : index
    %c0_7 = arith.constant 0 : index
    %8 = vector.load %arg6[%c0_6, %c0_7] : memref<176x256xf32, #tpu.memory_space<vmem>>, vector<176x256xf32>
    tpu.vector_store %arg6[%c0_6, %c0_7], %7 {strides = array<i32>} : memref<176x256xf32, #tpu.memory_space<vmem>>, vector<176x256xf32>,
    %c0_i32_8 = arith.constant 0 : i32
    %9 = arith.cmpi eq, %arg1, %c0_i32_8 : i32
    %10 = arith.extui %9 : i1 to i32
    %c0_i32_9 = arith.constant 0 : i32
    %11 = arith.cmpi ne, %10, %c0_i32_9 : i32
    scf.if %11 {
      %c0_10 = arith.constant 0 : index
      %c0_11 = arith.constant 0 : index
      %12 = vector.load %arg6[%c0_10, %c0_11] : memref<176x256xf32, #tpu.memory_space<vmem>>, vector<176x256xf32>
      %cst_12 = arith.constant dense<0.000000e+00> : vector<256xf32>
      %13 = vector.multi_reduction <add>, %12, %cst_12 [0] : vector<176x256xf32> to vector<256xf32>
      %14 = vector.shape_cast %13 : vector<256xf32> to vector<1x256xf32>
      %cst_13 = arith.constant 0.00617283955 : f32
      %15 = vector.broadcast %cst_13 : f32 to vector<1x256xf32>
      %16 = arith.mulf %14, %15 : vector<1x256xf32>
      %17 = arith.mulf %12, %12 : vector<176x256xf32>
      %cst_14 = arith.constant dense<0.000000e+00> : vector<256xf32>
      %18 = vector.multi_reduction <add>, %17, %cst_14 [0] : vector<176x256xf32> to vector<256xf32>
      %19 = vector.shape_cast %18 : vector<256xf32> to vector<1x256xf32>
      %cst_15 = arith.constant 0.00617283955 : f32
      %20 = vector.broadcast %cst_15 : f32 to vector<1x256xf32>
      %21 = arith.mulf %19, %20 : vector<1x256xf32>
      %22 = arith.mulf %16, %16 : vector<1x256xf32>
      %23 = arith.subf %21, %22 : vector<1x256xf32>
      %cst_16 = arith.constant 0.000000e+00 : f32
      %24 = vector.broadcast %cst_16 : f32 to vector<1x256xf32>
      %25 = arith.maximumf %23, %24 : vector<1x256xf32>
      %c0_17 = arith.constant 0 : index
      %c0_18 = arith.constant 0 : index
      %26 = vector.load %arg4[%c0_17, %c0_18] : memref<1x256xf32, #tpu.memory_space<vmem>>, vector<1x256xf32>
      %cst_19 = arith.constant 9.99999974E-6 : f32
      %27 = vector.broadcast %cst_19 : f32 to vector<1x256xf32>
      %28 = arith.addf %25, %27 : vector<1x256xf32>
      %29 = math.rsqrt %28 : vector<1x256xf32>
      %30 = arith.mulf %26, %29 : vector<1x256xf32>
      %c0_20 = arith.constant 0 : index
      %c0_21 = arith.constant 0 : index
      %31 = vector.load %arg5[%c0_20, %c0_21] : memref<1x256xf32, #tpu.memory_space<vmem>>, vector<1x256xf32>
      %32 = arith.mulf %16, %30 : vector<1x256xf32>
      %33 = arith.subf %31, %32 : vector<1x256xf32>
      %34 = vector.broadcast %30 : vector<1x256xf32> to vector<176x256xf32>
      %35 = arith.mulf %12, %34 : vector<176x256xf32>
      %36 = vector.broadcast %33 : vector<1x256xf32> to vector<176x256xf32>
      %37 = arith.addf %35, %36 : vector<176x256xf32>
      %cst_22 = arith.constant 0.000000e+00 : f32
      %38 = vector.broadcast %cst_22 : f32 to vector<176x256xf32>
      %39 = arith.cmpf ogt, %37, %38 : vector<176x256xf32>
      %cst_23 = arith.constant 2.000000e-01 : f32
      %40 = vector.broadcast %cst_23 : f32 to vector<176x256xf32>
      %41 = arith.mulf %40, %37 : vector<176x256xf32>
      %42 = arith.select %39, %37, %41 : vector<176x256xi1>, vector<176x256xf32>
      %c0_24 = arith.constant 0 : index
      %c0_25 = arith.constant 0 : index
      %43 = vector.load %arg6[%c0_24, %c0_25] : memref<176x256xf32, #tpu.memory_space<vmem>>, vector<176x256xf32>
      tpu.vector_store %arg6[%c0_24, %c0_25], %42 {strides = array<i32>} : memref<176x256xf32, #tpu.memory_space<vmem>>, vector<176x256xf32>,
    } else {
    }
    return
  }
  func.func @transform_0(%arg0: i32, %arg1: i32) -> (i32, i32) {
    %c0_i32 = arith.constant 0 : i32
    return %arg0, %arg1 : i32, i32
  }
  func.func @transform_1(%arg0: i32, %arg1: i32) -> (i32, i32) {
    %c0_i32 = arith.constant 0 : i32
    %c0_i32_0 = arith.constant 0 : i32
    return %arg1, %c0_i32 : i32, i32
  }
  func.func @transform_2(%arg0: i32, %arg1: i32) -> (i32, i32) {
    %c0_i32 = arith.constant 0 : i32
    %c0_i32_0 = arith.constant 0 : i32
    %c0_i32_1 = arith.constant 0 : i32
    return %c0_i32, %c0_i32_0 : i32, i32
  }
  func.func @transform_3(%arg0: i32, %arg1: i32) -> (i32, i32) {
    %c0_i32 = arith.constant 0 : i32
    %c0_i32_0 = arith.constant 0 : i32
    %c0_i32_1 = arith.constant 0 : i32
    return %c0_i32, %c0_i32_0 : i32, i32
  }
  func.func @transform_4(%arg0: i32, %arg1: i32) -> (i32, i32) {
    %c0_i32 = arith.constant 0 : i32
    %c0_i32_0 = arith.constant 0 : i32
    return %arg0, %c0_i32 : i32, i32
  }
}

module attributes {stable_mosaic.version = 11 : i64} {
  func.func @_conv_fused_kernel(%arg0: i32, %arg1: i32, %arg2: memref<32x512xbf16, #tpu.memory_space<vmem>>, %arg3: memref<512x256xbf16, #tpu.memory_space<vmem>>, %arg4: memref<1x256xf32, #tpu.memory_space<vmem>>, %arg5: memref<1x256xf32, #tpu.memory_space<vmem>>, %arg6: memref<32x256xf32, #tpu.memory_space<vmem>>) attributes {dimension_semantics = [#tpu.dimension_semantics<parallel>, #tpu.dimension_semantics<arbitrary>], iteration_bounds = array<i64: 1, 8>, scalar_prefetch = 0 : i64, scratch_operands = 0 : i64, tpu.core_type = #tpu.core_type<tc>, window_params = [{transform_indices = @transform_0, window_bounds = array<i64: 32, 512>}, {transform_indices = @transform_1, window_bounds = array<i64: 512, 256>}, {pipeline_mode = #tpu.pipeline_mode<synchronous>, transform_indices = @transform_2, window_bounds = array<i64: 1, 256>}, {pipeline_mode = #tpu.pipeline_mode<synchronous>, transform_indices = @transform_3, window_bounds = array<i64: 1, 256>}, {transform_indices = @transform_4, window_bounds = array<i64: 32, 256>}]} {
    %c0_i32 = arith.constant 0 : i32
    %0 = arith.cmpi eq, %arg1, %c0_i32 : i32
    %1 = arith.extui %0 : i1 to i32
    %c0_i32_0 = arith.constant 0 : i32
    %2 = arith.cmpi ne, %1, %c0_i32_0 : i32
    scf.if %2 {
      %cst_9 = arith.constant 0.000000e+00 : f32
      %12 = vector.broadcast %cst_9 : f32 to vector<32x256xf32>
      %c0_10 = arith.constant 0 : index
      %c0_11 = arith.constant 0 : index
      %13 = vector.load %arg6[%c0_10, %c0_11] : memref<32x256xf32, #tpu.memory_space<vmem>>, vector<32x256xf32>
      tpu.vector_store %arg6[%c0_10, %c0_11], %12 {strides = array<i32>} : memref<32x256xf32, #tpu.memory_space<vmem>>, vector<32x256xf32>,
    } else {
    }
    %c0 = arith.constant 0 : index
    %c0_1 = arith.constant 0 : index
    %3 = vector.load %arg6[%c0, %c0_1] : memref<32x256xf32, #tpu.memory_space<vmem>>, vector<32x256xf32>
    %c0_2 = arith.constant 0 : index
    %c0_3 = arith.constant 0 : index
    %4 = vector.load %arg2[%c0_2, %c0_3] : memref<32x512xbf16, #tpu.memory_space<vmem>>, vector<32x512xbf16>
    %c0_4 = arith.constant 0 : index
    %c0_5 = arith.constant 0 : index
    %5 = vector.load %arg3[%c0_4, %c0_5] : memref<512x256xbf16, #tpu.memory_space<vmem>>, vector<512x256xbf16>
    %cst = arith.constant dense<0.000000e+00> : vector<32x256xf32>
    %6 = tpu.matmul %4, %5, %cst {dimension_numbers = #tpu.dot_dimension_numbers<[1], [0], [0], [1], [0, 0, 1, 1], [], []>} : vector<32x512xbf16>, vector<512x256xbf16>, vector<32x256xf32> -> vector<32x256xf32>
    %7 = arith.addf %3, %6 : vector<32x256xf32>
    %c0_6 = arith.constant 0 : index
    %c0_7 = arith.constant 0 : index
    %8 = vector.load %arg6[%c0_6, %c0_7] : memref<32x256xf32, #tpu.memory_space<vmem>>, vector<32x256xf32>
    tpu.vector_store %arg6[%c0_6, %c0_7], %7 {strides = array<i32>} : memref<32x256xf32, #tpu.memory_space<vmem>>, vector<32x256xf32>,
    %c7_i32 = arith.constant 7 : i32
    %9 = arith.cmpi eq, %arg1, %c7_i32 : i32
    %10 = arith.extui %9 : i1 to i32
    %c0_i32_8 = arith.constant 0 : i32
    %11 = arith.cmpi ne, %10, %c0_i32_8 : i32
    scf.if %11 {
      %c0_9 = arith.constant 0 : index
      %c0_10 = arith.constant 0 : index
      %12 = vector.load %arg6[%c0_9, %c0_10] : memref<32x256xf32, #tpu.memory_space<vmem>>, vector<32x256xf32>
      %cst_11 = arith.constant dense<0.000000e+00> : vector<256xf32>
      %13 = vector.multi_reduction <add>, %12, %cst_11 [0] : vector<32x256xf32> to vector<256xf32>
      %14 = vector.shape_cast %13 : vector<256xf32> to vector<1x256xf32>
      %cst_12 = arith.constant 3.125000e-02 : f32
      %15 = vector.broadcast %cst_12 : f32 to vector<1x256xf32>
      %16 = arith.mulf %14, %15 : vector<1x256xf32>
      %17 = arith.mulf %12, %12 : vector<32x256xf32>
      %cst_13 = arith.constant dense<0.000000e+00> : vector<256xf32>
      %18 = vector.multi_reduction <add>, %17, %cst_13 [0] : vector<32x256xf32> to vector<256xf32>
      %19 = vector.shape_cast %18 : vector<256xf32> to vector<1x256xf32>
      %cst_14 = arith.constant 3.125000e-02 : f32
      %20 = vector.broadcast %cst_14 : f32 to vector<1x256xf32>
      %21 = arith.mulf %19, %20 : vector<1x256xf32>
      %22 = arith.mulf %16, %16 : vector<1x256xf32>
      %23 = arith.subf %21, %22 : vector<1x256xf32>
      %cst_15 = arith.constant 0.000000e+00 : f32
      %24 = vector.broadcast %cst_15 : f32 to vector<1x256xf32>
      %25 = arith.maximumf %23, %24 : vector<1x256xf32>
      %c0_16 = arith.constant 0 : index
      %c0_17 = arith.constant 0 : index
      %26 = vector.load %arg4[%c0_16, %c0_17] : memref<1x256xf32, #tpu.memory_space<vmem>>, vector<1x256xf32>
      %cst_18 = arith.constant 9.99999974E-6 : f32
      %27 = vector.broadcast %cst_18 : f32 to vector<1x256xf32>
      %28 = arith.addf %25, %27 : vector<1x256xf32>
      %29 = math.rsqrt %28 : vector<1x256xf32>
      %30 = arith.mulf %26, %29 : vector<1x256xf32>
      %c0_19 = arith.constant 0 : index
      %c0_20 = arith.constant 0 : index
      %31 = vector.load %arg5[%c0_19, %c0_20] : memref<1x256xf32, #tpu.memory_space<vmem>>, vector<1x256xf32>
      %32 = arith.mulf %16, %30 : vector<1x256xf32>
      %33 = arith.subf %31, %32 : vector<1x256xf32>
      %34 = vector.broadcast %30 : vector<1x256xf32> to vector<32x256xf32>
      %35 = arith.mulf %12, %34 : vector<32x256xf32>
      %36 = vector.broadcast %33 : vector<1x256xf32> to vector<32x256xf32>
      %37 = arith.addf %35, %36 : vector<32x256xf32>
      %cst_21 = arith.constant 0.000000e+00 : f32
      %38 = vector.broadcast %cst_21 : f32 to vector<32x256xf32>
      %39 = arith.cmpf ogt, %37, %38 : vector<32x256xf32>
      %cst_22 = arith.constant 2.000000e-01 : f32
      %40 = vector.broadcast %cst_22 : f32 to vector<32x256xf32>
      %41 = arith.mulf %40, %37 : vector<32x256xf32>
      %42 = arith.select %39, %37, %41 : vector<32x256xi1>, vector<32x256xf32>
      %c0_23 = arith.constant 0 : index
      %c0_24 = arith.constant 0 : index
      %43 = vector.load %arg6[%c0_23, %c0_24] : memref<32x256xf32, #tpu.memory_space<vmem>>, vector<32x256xf32>
      tpu.vector_store %arg6[%c0_23, %c0_24], %42 {strides = array<i32>} : memref<32x256xf32, #tpu.memory_space<vmem>>, vector<32x256xf32>,
    } else {
    }
    return
  }
  func.func @transform_0(%arg0: i32, %arg1: i32) -> (i32, i32) {
    %c0_i32 = arith.constant 0 : i32
    return %arg0, %arg1 : i32, i32
  }
  func.func @transform_1(%arg0: i32, %arg1: i32) -> (i32, i32) {
    %c0_i32 = arith.constant 0 : i32
    %c0_i32_0 = arith.constant 0 : i32
    return %arg1, %c0_i32 : i32, i32
  }
  func.func @transform_2(%arg0: i32, %arg1: i32) -> (i32, i32) {
    %c0_i32 = arith.constant 0 : i32
    %c0_i32_0 = arith.constant 0 : i32
    %c0_i32_1 = arith.constant 0 : i32
    return %c0_i32, %c0_i32_0 : i32, i32
  }
  func.func @transform_3(%arg0: i32, %arg1: i32) -> (i32, i32) {
    %c0_i32 = arith.constant 0 : i32
    %c0_i32_0 = arith.constant 0 : i32
    %c0_i32_1 = arith.constant 0 : i32
    return %c0_i32, %c0_i32_0 : i32, i32
  }
  func.func @transform_4(%arg0: i32, %arg1: i32) -> (i32, i32) {
    %c0_i32 = arith.constant 0 : i32
    %c0_i32_0 = arith.constant 0 : i32
    return %arg0, %c0_i32 : i32, i32
  }
}

module attributes {stable_mosaic.version = 11 : i64} {
  func.func @_conv_fused_kernel(%arg0: i32, %arg1: i32, %arg2: memref<32x512xbf16, #tpu.memory_space<vmem>>, %arg3: memref<512x512xbf16, #tpu.memory_space<vmem>>, %arg4: memref<1x512xf32, #tpu.memory_space<vmem>>, %arg5: memref<1x512xf32, #tpu.memory_space<vmem>>, %arg6: memref<32x512xf32, #tpu.memory_space<vmem>>) attributes {dimension_semantics = [#tpu.dimension_semantics<parallel>, #tpu.dimension_semantics<arbitrary>], iteration_bounds = array<i64: 1, 2>, scalar_prefetch = 0 : i64, scratch_operands = 0 : i64, tpu.core_type = #tpu.core_type<tc>, window_params = [{transform_indices = @transform_0, window_bounds = array<i64: 32, 512>}, {transform_indices = @transform_1, window_bounds = array<i64: 512, 512>}, {pipeline_mode = #tpu.pipeline_mode<synchronous>, transform_indices = @transform_2, window_bounds = array<i64: 1, 512>}, {pipeline_mode = #tpu.pipeline_mode<synchronous>, transform_indices = @transform_3, window_bounds = array<i64: 1, 512>}, {transform_indices = @transform_4, window_bounds = array<i64: 32, 512>}]} {
    %c0_i32 = arith.constant 0 : i32
    %0 = arith.cmpi eq, %arg1, %c0_i32 : i32
    %1 = arith.extui %0 : i1 to i32
    %c0_i32_0 = arith.constant 0 : i32
    %2 = arith.cmpi ne, %1, %c0_i32_0 : i32
    scf.if %2 {
      %cst_9 = arith.constant 0.000000e+00 : f32
      %12 = vector.broadcast %cst_9 : f32 to vector<32x512xf32>
      %c0_10 = arith.constant 0 : index
      %c0_11 = arith.constant 0 : index
      %13 = vector.load %arg6[%c0_10, %c0_11] : memref<32x512xf32, #tpu.memory_space<vmem>>, vector<32x512xf32>
      tpu.vector_store %arg6[%c0_10, %c0_11], %12 {strides = array<i32>} : memref<32x512xf32, #tpu.memory_space<vmem>>, vector<32x512xf32>,
    } else {
    }
    %c0 = arith.constant 0 : index
    %c0_1 = arith.constant 0 : index
    %3 = vector.load %arg6[%c0, %c0_1] : memref<32x512xf32, #tpu.memory_space<vmem>>, vector<32x512xf32>
    %c0_2 = arith.constant 0 : index
    %c0_3 = arith.constant 0 : index
    %4 = vector.load %arg2[%c0_2, %c0_3] : memref<32x512xbf16, #tpu.memory_space<vmem>>, vector<32x512xbf16>
    %c0_4 = arith.constant 0 : index
    %c0_5 = arith.constant 0 : index
    %5 = vector.load %arg3[%c0_4, %c0_5] : memref<512x512xbf16, #tpu.memory_space<vmem>>, vector<512x512xbf16>
    %cst = arith.constant dense<0.000000e+00> : vector<32x512xf32>
    %6 = tpu.matmul %4, %5, %cst {dimension_numbers = #tpu.dot_dimension_numbers<[1], [0], [0], [1], [0, 0, 1, 1], [], []>} : vector<32x512xbf16>, vector<512x512xbf16>, vector<32x512xf32> -> vector<32x512xf32>
    %7 = arith.addf %3, %6 : vector<32x512xf32>
    %c0_6 = arith.constant 0 : index
    %c0_7 = arith.constant 0 : index
    %8 = vector.load %arg6[%c0_6, %c0_7] : memref<32x512xf32, #tpu.memory_space<vmem>>, vector<32x512xf32>
    tpu.vector_store %arg6[%c0_6, %c0_7], %7 {strides = array<i32>} : memref<32x512xf32, #tpu.memory_space<vmem>>, vector<32x512xf32>,
    %c1_i32 = arith.constant 1 : i32
    %9 = arith.cmpi eq, %arg1, %c1_i32 : i32
    %10 = arith.extui %9 : i1 to i32
    %c0_i32_8 = arith.constant 0 : i32
    %11 = arith.cmpi ne, %10, %c0_i32_8 : i32
    scf.if %11 {
      %c0_9 = arith.constant 0 : index
      %c0_10 = arith.constant 0 : index
      %12 = vector.load %arg6[%c0_9, %c0_10] : memref<32x512xf32, #tpu.memory_space<vmem>>, vector<32x512xf32>
      %cst_11 = arith.constant dense<0.000000e+00> : vector<512xf32>
      %13 = vector.multi_reduction <add>, %12, %cst_11 [0] : vector<32x512xf32> to vector<512xf32>
      %14 = vector.shape_cast %13 : vector<512xf32> to vector<1x512xf32>
      %cst_12 = arith.constant 0.055555556 : f32
      %15 = vector.broadcast %cst_12 : f32 to vector<1x512xf32>
      %16 = arith.mulf %14, %15 : vector<1x512xf32>
      %17 = arith.mulf %12, %12 : vector<32x512xf32>
      %cst_13 = arith.constant dense<0.000000e+00> : vector<512xf32>
      %18 = vector.multi_reduction <add>, %17, %cst_13 [0] : vector<32x512xf32> to vector<512xf32>
      %19 = vector.shape_cast %18 : vector<512xf32> to vector<1x512xf32>
      %cst_14 = arith.constant 0.055555556 : f32
      %20 = vector.broadcast %cst_14 : f32 to vector<1x512xf32>
      %21 = arith.mulf %19, %20 : vector<1x512xf32>
      %22 = arith.mulf %16, %16 : vector<1x512xf32>
      %23 = arith.subf %21, %22 : vector<1x512xf32>
      %cst_15 = arith.constant 0.000000e+00 : f32
      %24 = vector.broadcast %cst_15 : f32 to vector<1x512xf32>
      %25 = arith.maximumf %23, %24 : vector<1x512xf32>
      %c0_16 = arith.constant 0 : index
      %c0_17 = arith.constant 0 : index
      %26 = vector.load %arg4[%c0_16, %c0_17] : memref<1x512xf32, #tpu.memory_space<vmem>>, vector<1x512xf32>
      %cst_18 = arith.constant 9.99999974E-6 : f32
      %27 = vector.broadcast %cst_18 : f32 to vector<1x512xf32>
      %28 = arith.addf %25, %27 : vector<1x512xf32>
      %29 = math.rsqrt %28 : vector<1x512xf32>
      %30 = arith.mulf %26, %29 : vector<1x512xf32>
      %c0_19 = arith.constant 0 : index
      %c0_20 = arith.constant 0 : index
      %31 = vector.load %arg5[%c0_19, %c0_20] : memref<1x512xf32, #tpu.memory_space<vmem>>, vector<1x512xf32>
      %32 = arith.mulf %16, %30 : vector<1x512xf32>
      %33 = arith.subf %31, %32 : vector<1x512xf32>
      %34 = vector.broadcast %30 : vector<1x512xf32> to vector<32x512xf32>
      %35 = arith.mulf %12, %34 : vector<32x512xf32>
      %36 = vector.broadcast %33 : vector<1x512xf32> to vector<32x512xf32>
      %37 = arith.addf %35, %36 : vector<32x512xf32>
      %cst_21 = arith.constant 0.000000e+00 : f32
      %38 = vector.broadcast %cst_21 : f32 to vector<32x512xf32>
      %39 = arith.cmpf ogt, %37, %38 : vector<32x512xf32>
      %cst_22 = arith.constant 2.000000e-01 : f32
      %40 = vector.broadcast %cst_22 : f32 to vector<32x512xf32>
      %41 = arith.mulf %40, %37 : vector<32x512xf32>
      %42 = arith.select %39, %37, %41 : vector<32x512xi1>, vector<32x512xf32>
      %c0_23 = arith.constant 0 : index
      %c0_24 = arith.constant 0 : index
      %43 = vector.load %arg6[%c0_23, %c0_24] : memref<32x512xf32, #tpu.memory_space<vmem>>, vector<32x512xf32>
      tpu.vector_store %arg6[%c0_23, %c0_24], %42 {strides = array<i32>} : memref<32x512xf32, #tpu.memory_space<vmem>>, vector<32x512xf32>,
    } else {
    }
    return
  }
  func.func @transform_0(%arg0: i32, %arg1: i32) -> (i32, i32) {
    %c0_i32 = arith.constant 0 : i32
    return %arg0, %arg1 : i32, i32
  }
  func.func @transform_1(%arg0: i32, %arg1: i32) -> (i32, i32) {
    %c0_i32 = arith.constant 0 : i32
    %c0_i32_0 = arith.constant 0 : i32
    return %arg1, %c0_i32 : i32, i32
  }
  func.func @transform_2(%arg0: i32, %arg1: i32) -> (i32, i32) {
    %c0_i32 = arith.constant 0 : i32
    %c0_i32_0 = arith.constant 0 : i32
    %c0_i32_1 = arith.constant 0 : i32
    return %c0_i32, %c0_i32_0 : i32, i32
  }
  func.func @transform_3(%arg0: i32, %arg1: i32) -> (i32, i32) {
    %c0_i32 = arith.constant 0 : i32
    %c0_i32_0 = arith.constant 0 : i32
    %c0_i32_1 = arith.constant 0 : i32
    return %c0_i32, %c0_i32_0 : i32, i32
  }
  func.func @transform_4(%arg0: i32, %arg1: i32) -> (i32, i32) {
    %c0_i32 = arith.constant 0 : i32
    %c0_i32_0 = arith.constant 0 : i32
    return %arg0, %c0_i32 : i32, i32
  }
}

module attributes {stable_mosaic.version = 11 : i64} {
  func.func @_conv_fused_kernel(%arg0: i32, %arg1: i32, %arg2: memref<16x512xbf16, #tpu.memory_space<vmem>>, %arg3: memref<512x512xbf16, #tpu.memory_space<vmem>>, %arg4: memref<1x512xf32, #tpu.memory_space<vmem>>, %arg5: memref<1x512xf32, #tpu.memory_space<vmem>>, %arg6: memref<16x512xf32, #tpu.memory_space<vmem>>) attributes {dimension_semantics = [#tpu.dimension_semantics<parallel>, #tpu.dimension_semantics<arbitrary>], iteration_bounds = array<i64: 1, 4>, scalar_prefetch = 0 : i64, scratch_operands = 0 : i64, tpu.core_type = #tpu.core_type<tc>, window_params = [{transform_indices = @transform_0, window_bounds = array<i64: 16, 512>}, {transform_indices = @transform_1, window_bounds = array<i64: 512, 512>}, {pipeline_mode = #tpu.pipeline_mode<synchronous>, transform_indices = @transform_2, window_bounds = array<i64: 1, 512>}, {pipeline_mode = #tpu.pipeline_mode<synchronous>, transform_indices = @transform_3, window_bounds = array<i64: 1, 512>}, {transform_indices = @transform_4, window_bounds = array<i64: 16, 512>}]} {
    %c0_i32 = arith.constant 0 : i32
    %0 = arith.cmpi eq, %arg1, %c0_i32 : i32
    %1 = arith.extui %0 : i1 to i32
    %c0_i32_0 = arith.constant 0 : i32
    %2 = arith.cmpi ne, %1, %c0_i32_0 : i32
    scf.if %2 {
      %cst_9 = arith.constant 0.000000e+00 : f32
      %12 = vector.broadcast %cst_9 : f32 to vector<16x512xf32>
      %c0_10 = arith.constant 0 : index
      %c0_11 = arith.constant 0 : index
      %13 = vector.load %arg6[%c0_10, %c0_11] : memref<16x512xf32, #tpu.memory_space<vmem>>, vector<16x512xf32>
      tpu.vector_store %arg6[%c0_10, %c0_11], %12 {strides = array<i32>} : memref<16x512xf32, #tpu.memory_space<vmem>>, vector<16x512xf32>,
    } else {
    }
    %c0 = arith.constant 0 : index
    %c0_1 = arith.constant 0 : index
    %3 = vector.load %arg6[%c0, %c0_1] : memref<16x512xf32, #tpu.memory_space<vmem>>, vector<16x512xf32>
    %c0_2 = arith.constant 0 : index
    %c0_3 = arith.constant 0 : index
    %4 = vector.load %arg2[%c0_2, %c0_3] : memref<16x512xbf16, #tpu.memory_space<vmem>>, vector<16x512xbf16>
    %c0_4 = arith.constant 0 : index
    %c0_5 = arith.constant 0 : index
    %5 = vector.load %arg3[%c0_4, %c0_5] : memref<512x512xbf16, #tpu.memory_space<vmem>>, vector<512x512xbf16>
    %cst = arith.constant dense<0.000000e+00> : vector<16x512xf32>
    %6 = tpu.matmul %4, %5, %cst {dimension_numbers = #tpu.dot_dimension_numbers<[1], [0], [0], [1], [0, 0, 1, 1], [], []>} : vector<16x512xbf16>, vector<512x512xbf16>, vector<16x512xf32> -> vector<16x512xf32>
    %7 = arith.addf %3, %6 : vector<16x512xf32>
    %c0_6 = arith.constant 0 : index
    %c0_7 = arith.constant 0 : index
    %8 = vector.load %arg6[%c0_6, %c0_7] : memref<16x512xf32, #tpu.memory_space<vmem>>, vector<16x512xf32>
    tpu.vector_store %arg6[%c0_6, %c0_7], %7 {strides = array<i32>} : memref<16x512xf32, #tpu.memory_space<vmem>>, vector<16x512xf32>,
    %c3_i32 = arith.constant 3 : i32
    %9 = arith.cmpi eq, %arg1, %c3_i32 : i32
    %10 = arith.extui %9 : i1 to i32
    %c0_i32_8 = arith.constant 0 : i32
    %11 = arith.cmpi ne, %10, %c0_i32_8 : i32
    scf.if %11 {
      %c0_9 = arith.constant 0 : index
      %c0_10 = arith.constant 0 : index
      %12 = vector.load %arg6[%c0_9, %c0_10] : memref<16x512xf32, #tpu.memory_space<vmem>>, vector<16x512xf32>
      %cst_11 = arith.constant dense<0.000000e+00> : vector<512xf32>
      %13 = vector.multi_reduction <add>, %12, %cst_11 [0] : vector<16x512xf32> to vector<512xf32>
      %14 = vector.shape_cast %13 : vector<512xf32> to vector<1x512xf32>
      %cst_12 = arith.constant 1.250000e-01 : f32
      %15 = vector.broadcast %cst_12 : f32 to vector<1x512xf32>
      %16 = arith.mulf %14, %15 : vector<1x512xf32>
      %17 = arith.mulf %12, %12 : vector<16x512xf32>
      %cst_13 = arith.constant dense<0.000000e+00> : vector<512xf32>
      %18 = vector.multi_reduction <add>, %17, %cst_13 [0] : vector<16x512xf32> to vector<512xf32>
      %19 = vector.shape_cast %18 : vector<512xf32> to vector<1x512xf32>
      %cst_14 = arith.constant 1.250000e-01 : f32
      %20 = vector.broadcast %cst_14 : f32 to vector<1x512xf32>
      %21 = arith.mulf %19, %20 : vector<1x512xf32>
      %22 = arith.mulf %16, %16 : vector<1x512xf32>
      %23 = arith.subf %21, %22 : vector<1x512xf32>
      %cst_15 = arith.constant 0.000000e+00 : f32
      %24 = vector.broadcast %cst_15 : f32 to vector<1x512xf32>
      %25 = arith.maximumf %23, %24 : vector<1x512xf32>
      %c0_16 = arith.constant 0 : index
      %c0_17 = arith.constant 0 : index
      %26 = vector.load %arg4[%c0_16, %c0_17] : memref<1x512xf32, #tpu.memory_space<vmem>>, vector<1x512xf32>
      %cst_18 = arith.constant 9.99999974E-6 : f32
      %27 = vector.broadcast %cst_18 : f32 to vector<1x512xf32>
      %28 = arith.addf %25, %27 : vector<1x512xf32>
      %29 = math.rsqrt %28 : vector<1x512xf32>
      %30 = arith.mulf %26, %29 : vector<1x512xf32>
      %c0_19 = arith.constant 0 : index
      %c0_20 = arith.constant 0 : index
      %31 = vector.load %arg5[%c0_19, %c0_20] : memref<1x512xf32, #tpu.memory_space<vmem>>, vector<1x512xf32>
      %32 = arith.mulf %16, %30 : vector<1x512xf32>
      %33 = arith.subf %31, %32 : vector<1x512xf32>
      %34 = vector.broadcast %30 : vector<1x512xf32> to vector<16x512xf32>
      %35 = arith.mulf %12, %34 : vector<16x512xf32>
      %36 = vector.broadcast %33 : vector<1x512xf32> to vector<16x512xf32>
      %37 = arith.addf %35, %36 : vector<16x512xf32>
      %cst_21 = arith.constant 0.000000e+00 : f32
      %38 = vector.broadcast %cst_21 : f32 to vector<16x512xf32>
      %39 = arith.cmpf ogt, %37, %38 : vector<16x512xf32>
      %cst_22 = arith.constant 2.000000e-01 : f32
      %40 = vector.broadcast %cst_22 : f32 to vector<16x512xf32>
      %41 = arith.mulf %40, %37 : vector<16x512xf32>
      %42 = arith.select %39, %37, %41 : vector<16x512xi1>, vector<16x512xf32>
      %c0_23 = arith.constant 0 : index
      %c0_24 = arith.constant 0 : index
      %43 = vector.load %arg6[%c0_23, %c0_24] : memref<16x512xf32, #tpu.memory_space<vmem>>, vector<16x512xf32>
      tpu.vector_store %arg6[%c0_23, %c0_24], %42 {strides = array<i32>} : memref<16x512xf32, #tpu.memory_space<vmem>>, vector<16x512xf32>,
    } else {
    }
    return
  }
  func.func @transform_0(%arg0: i32, %arg1: i32) -> (i32, i32) {
    %c0_i32 = arith.constant 0 : i32
    return %arg0, %arg1 : i32, i32
  }
  func.func @transform_1(%arg0: i32, %arg1: i32) -> (i32, i32) {
    %c0_i32 = arith.constant 0 : i32
    %c0_i32_0 = arith.constant 0 : i32
    return %arg1, %c0_i32 : i32, i32
  }
  func.func @transform_2(%arg0: i32, %arg1: i32) -> (i32, i32) {
    %c0_i32 = arith.constant 0 : i32
    %c0_i32_0 = arith.constant 0 : i32
    %c0_i32_1 = arith.constant 0 : i32
    return %c0_i32, %c0_i32_0 : i32, i32
  }
  func.func @transform_3(%arg0: i32, %arg1: i32) -> (i32, i32) {
    %c0_i32 = arith.constant 0 : i32
    %c0_i32_0 = arith.constant 0 : i32
    %c0_i32_1 = arith.constant 0 : i32
    return %c0_i32, %c0_i32_0 : i32, i32
  }
  func.func @transform_4(%arg0: i32, %arg1: i32) -> (i32, i32) {
    %c0_i32 = arith.constant 0 : i32
    %c0_i32_0 = arith.constant 0 : i32
    return %arg0, %c0_i32 : i32, i32
  }
}

</mosaic_0001>

<bundles_post_ra>
// kernel: _lambda_.6
= control target key start
LH: loop header
LB: loop body
LE: loop exit
PB: predicated region body
PF: predicated region fallthrough
CT: control target
= control target key end

     0   :  { %s1711_s15 = smov 0   ;;  %s1713_s16 = smov 0   ;;  %s1875_s0 = inlined_call_operand.vmem [shape: bf16[2048,128], index: 0, kind: input, shape index: {}]   ;;  %s1876_s1 = inlined_call_operand.vmem [shape: bf16[128,128], index: 1, kind: input, shape index: {}]   ;;  %s1877_s2 = inlined_call_operand.vmem [shape: f32[1,128], index: 2, kind: input, shape index: {}]   ;;  %s1878_s3 = inlined_call_operand.vmem [shape: f32[1,128], index: 3, kind: input, shape index: {}]   ;;  %s1879_s4 = inlined_call_operand.vmem [shape: f32[2048,128], index: 4, kind: output, shape index: {}]  }
   0x1   :  { %s1715_s17 = smov 0  }
   0x2 LB: > { %s26_s2 = sadd.s32 1, %s1680_s16  ;;  %p1406_p0 = scmp.ge.s32.totalorder %s1684_s17, 1  ;;  %s1684_s17 = sphi %s1715_s17, %s14_s17   ;;  %s1680_s16 = sphi %s1713_s16, %s1881_s16   ;;  %s1676_s15 = sphi %s1711_s15, %s1880_s15  }
   0x3   : > { %p28_p1 = scmp.ge.s32.totalorder %s26_s2, 4  ;;  %p191_p2 = scmp.lt.s32.totalorder %s1684_s17, 5 }
   0x5   : > { %s1883_s2 = smov (%p28_p1, %s26_s2), 0  ;;  %p192_p3 = pnand %p1406_p0, %p191_p2 }
   0x6   : > { %s1407_s25 = sshll.u32 (!%p192_p3), %s1676_s15, 6 }
   0x7   : > { %195 = sbr.rel (%p192_p3) target bundleno = 302 (0x12e), region = 36  ;;  %p226_p4 = scmp.lt.s32.totalorder (!%p192_p3), %s1407_s25, 255 }
   0xc   : > { %v1612_v0 = vld [vmem:[%s1876_s1 + $0x38] sm:$0xff]  ;;  %v1611_v1 = vld [vmem:[%s1876_s1 + $0x30] sm:$0xff]  ;;  %v1610_v2 = vld [vmem:[%s1876_s1 + $0x28] sm:$0xff]  ;;  %s1885_s25 = smov (!%p226_p4, %s1407_s25), 255 }
   0xd   : > { %698 = vmatpush.bf16.msra.mxu0 %v1612_v0  ;;  %1613 = vmatpush.bf16.msra.mxu1 %v1612_v0  ;;  %v1609_v3 = vld [vmem:[%s1876_s1 + $0x20] sm:$0xff]  ;;  %v1608_v4 = vld [vmem:[%s1876_s1 + $0x18] sm:$0xff]  ;;  %v1607_v5 = vld [vmem:[%s1876_s1 + $0x10] sm:$0xff]  ;;  %s1408_s6 = sshll.u32 %s1885_s25, 2  ;;  %s1410_s12 = sshll.u32 %s1885_s25, 3 }
   0xe   : > { %1614 = vmatpush.bf16.msra.mxu2 %v1612_v0  ;;  %1615 = vmatpush.bf16.msra.mxu3 %v1612_v0  ;;  %v1606_v6 = vld [vmem:[%s1876_s1 + $0x8] sm:$0xff]  ;;  %v1605_v7 = vld [vmem:[%s1876_s1] sm:$0xff]  ;;  %s1762_s11 = scalar_lea.vmem %s1875_s0, %s1408_s6  ;;  %s1800_s15 = scalar_lea.vmem %s1879_s4, %s1410_s12 }
   0xf   : > { %v1573_v8 = vld [vmem:[%s1762_s11] sm:$0xff]  ;;  %v1574_v12 = vld [vmem:[%s1762_s11 + $0x8] sm:$0xff]  ;;  %v1575_v16 = vld [vmem:[%s1762_s11 + $0x10] sm:$0xff] }
  0x10   : > { %v1581_v9 = vld [vmem:[%s1762_s11 + $0x40] sm:$0xff]  ;;  %v1582_v13 = vld [vmem:[%s1762_s11 + $0x48] sm:$0xff]  ;;  %v1583_v17 = vld [vmem:[%s1762_s11 + $0x50] sm:$0xff] }
  0x11   : > { %699 = vmatpush.bf16.msra.mxu0 %v1611_v1  ;;  %1616 = vmatpush.bf16.msra.mxu1 %v1611_v1  ;;  %v1589_v10 = vld [vmem:[%s1762_s11 + $0x80] sm:$0xff]  ;;  %v1590_v14 = vld [vmem:[%s1762_s11 + $0x88] sm:$0xff]  ;;  %v1591_v18 = vld [vmem:[%s1762_s11 + $0x90] sm:$0xff] }
  0x12   : > { %1617 = vmatpush.bf16.msra.mxu2 %v1611_v1  ;;  %1618 = vmatpush.bf16.msra.mxu3 %v1611_v1  ;;  %v1597_v11 = vld [vmem:[%s1762_s11 + $0xc0] sm:$0xff]  ;;  %v1598_v15 = vld [vmem:[%s1762_s11 + $0xc8] sm:$0xff]  ;;  %v1599_v19 = vld [vmem:[%s1762_s11 + $0xd0] sm:$0xff] }
  0x13   : > { %v1576_v20 = vld [vmem:[%s1762_s11 + $0x18] sm:$0xff]  ;;  %v1577_v24 = vld [vmem:[%s1762_s11 + $0x20] sm:$0xff]  ;;  %v1578_v28 = vld [vmem:[%s1762_s11 + $0x28] sm:$0xff] }
  0x14   : > { %v1584_v21 = vld [vmem:[%s1762_s11 + $0x58] sm:$0xff]  ;;  %v1585_v25 = vld [vmem:[%s1762_s11 + $0x60] sm:$0xff]  ;;  %v1586_v29 = vld [vmem:[%s1762_s11 + $0x68] sm:$0xff] }
  0x15   : > { %700 = vmatpush.bf16.msra.mxu0 %v1610_v2  ;;  %1619 = vmatpush.bf16.msra.mxu1 %v1610_v2  ;;  %v1592_v22 = vld [vmem:[%s1762_s11 + $0x98] sm:$0xff]  ;;  %v1593_v26 = vld [vmem:[%s1762_s11 + $0xa0] sm:$0xff]  ;;  %v1594_v30 = vld [vmem:[%s1762_s11 + $0xa8] sm:$0xff] }
  0x16   : > { %1620 = vmatpush.bf16.msra.mxu2 %v1610_v2  ;;  %1621 = vmatpush.bf16.msra.mxu3 %v1610_v2  ;;  %v1600_v23 = vld [vmem:[%s1762_s11 + $0xd8] sm:$0xff]  ;;  %v1601_v27 = vld [vmem:[%s1762_s11 + $0xe0] sm:$0xff]  ;;  %v1602_v31 = vld [vmem:[%s1762_s11 + $0xe8] sm:$0xff] }
  0x17   : > { %v1579_v32 = vld [vmem:[%s1762_s11 + $0x30] sm:$0xff]  ;;  %v1580_v36 = vld [vmem:[%s1762_s11 + $0x38] sm:$0xff] }
  0x18   : > { %v1587_v33 = vld [vmem:[%s1762_s11 + $0x70] sm:$0xff]  ;;  %v1588_v37 = vld [vmem:[%s1762_s11 + $0x78] sm:$0xff] }
  0x19   : > { %701 = vmatpush.bf16.msra.mxu0 %v1609_v3  ;;  %1622 = vmatpush.bf16.msra.mxu1 %v1609_v3  ;;  %v1595_v34 = vld [vmem:[%s1762_s11 + $0xb0] sm:$0xff]  ;;  %v1596_v38 = vld [vmem:[%s1762_s11 + $0xb8] sm:$0xff] }
  0x1a   : > { %1623 = vmatpush.bf16.msra.mxu2 %v1609_v3  ;;  %1624 = vmatpush.bf16.msra.mxu3 %v1609_v3  ;;  %v1603_v35 = vld [vmem:[%s1762_s11 + $0xf0] sm:$0xff]  ;;  %v1604_v39 = vld [vmem:[%s1762_s11 + $0xf8] sm:$0xff] }
  0x1d   : > { %702 = vmatpush.bf16.msra.mxu0 %v1608_v4  ;;  %1625 = vmatpush.bf16.msra.mxu1 %v1608_v4 }
  0x1e   : > { %1626 = vmatpush.bf16.msra.mxu2 %v1608_v4  ;;  %1627 = vmatpush.bf16.msra.mxu3 %v1608_v4 }
  0x21   : > { %703 = vmatpush.bf16.msra.mxu0 %v1607_v5  ;;  %1628 = vmatpush.bf16.msra.mxu1 %v1607_v5 }
  0x22   : > { %1629 = vmatpush.bf16.msra.mxu2 %v1607_v5  ;;  %1630 = vmatpush.bf16.msra.mxu3 %v1607_v5 }
  0x25   : > { %704 = vmatpush.bf16.msra.mxu0 %v1606_v6  ;;  %1631 = vmatpush.bf16.msra.mxu1 %v1606_v6 }
  0x26   : > { %1632 = vmatpush.bf16.msra.mxu2 %v1606_v6  ;;  %1633 = vmatpush.bf16.msra.mxu3 %v1606_v6 }
  0x29   : > { %705 = vmatpush.bf16.msra.mxu0 %v1605_v7  ;;  %1634 = vmatpush.bf16.msra.mxu1 %v1605_v7 }
  0x2a   : > { %1635 = vmatpush.bf16.msra.mxu2 %v1605_v7  ;;  %1636 = vmatpush.bf16.msra.mxu3 %v1605_v7 }
  0x2c   : > { %706 = vmatmul.bf16.vlgmr.msra.gmra.mxu0 %v1573_v8  ;;  %746 = vmatmul.bf16.vlgmr.msra.gmra.mxu1 %v1581_v9 }
  0x2d   : > { %786 = vmatmul.bf16.vlgmr.msra.gmra.mxu2 %v1589_v10  ;;  %826 = vmatmul.bf16.vlgmr.msra.gmra.mxu3 %v1597_v11 }
  0x3c   : > { %711 = vmatmul.bf16.gmra.mxu0 %v1574_v12  ;;  %751 = vmatmul.bf16.gmra.mxu1 %v1582_v13 }
  0x3d   : > { %791 = vmatmul.bf16.gmra.mxu2 %v1590_v14  ;;  %831 = vmatmul.bf16.gmra.mxu3 %v1598_v15 }
  0x4c   : > { %716 = vmatmul.bf16.gmra.mxu0 %v1575_v16  ;;  %756 = vmatmul.bf16.gmra.mxu1 %v1583_v17 }
  0x4d   : > { %796 = vmatmul.bf16.gmra.mxu2 %v1591_v18  ;;  %836 = vmatmul.bf16.gmra.mxu3 %v1599_v19 }
  0x5c   : > { %721 = vmatmul.bf16.gmra.mxu0 %v1576_v20  ;;  %761 = vmatmul.bf16.gmra.mxu1 %v1584_v21 }
  0x5d   : > { %801 = vmatmul.bf16.gmra.mxu2 %v1592_v22  ;;  %841 = vmatmul.bf16.gmra.mxu3 %v1600_v23 }
  0x6c   : > { %726 = vmatmul.bf16.gmra.mxu0 %v1577_v24  ;;  %766 = vmatmul.bf16.gmra.mxu1 %v1585_v25 }
  0x6d   : > { %806 = vmatmul.bf16.gmra.mxu2 %v1593_v26  ;;  %846 = vmatmul.bf16.gmra.mxu3 %v1601_v27 }
  0x7c   : > { %731 = vmatmul.bf16.gmra.mxu0 %v1578_v28  ;;  %771 = vmatmul.bf16.gmra.mxu1 %v1586_v29 }
  0x7d   : > { %811 = vmatmul.bf16.gmra.mxu2 %v1594_v30  ;;  %851 = vmatmul.bf16.gmra.mxu3 %v1602_v31 }
  0x8c   : > { %736 = vmatmul.bf16.gmra.mxu0 %v1579_v32  ;;  %776 = vmatmul.bf16.gmra.mxu1 %v1587_v33 }
  0x8d   : > { %816 = vmatmul.bf16.gmra.mxu2 %v1595_v34  ;;  %856 = vmatmul.bf16.gmra.mxu3 %v1603_v35 }
  0x9c   : > { %741 = vmatmul.bf16.gmra.mxu0 %v1580_v36  ;;  %781 = vmatmul.bf16.gmra.mxu1 %v1588_v37 }
  0x9d   : > { %821 = vmatmul.bf16.gmra.mxu2 %v1596_v38  ;;  %861 = vmatmul.bf16.gmra.mxu3 %v1604_v39 }
  0xa9   : > { %v707_v40 = vpop.f32.mrf.mxu0  ;;  %v747_v41 = vpop.f32.mrf.mxu1 }
  0xaa   : > { %vm1062_vm0 = vcmp.gt.f32.partialorder %v707_v40, 0.0  ;;  %v1126_v42 = vmul.f32 0.2, %v707_v40  ;;  %vm1078_vm1 = vcmp.gt.f32.partialorder %v747_v41, 0.0  ;;  %v1142_v43 = vmul.f32 0.2, %v747_v41 }
  0xac   : > { %v1190_v44 = vsel %vm1062_vm0, %v707_v40, %v1126_v42  ;;  %v1206_v45 = vsel %vm1078_vm1, %v747_v41, %v1142_v43 }
  0xad   : > { %1254 = vst [vmem:[%s1800_s15] sm:$0xff] %v1190_v44 }
  0xae   : > { %1270 = vst [vmem:[%s1800_s15 + $0x80] sm:$0xff] %v1206_v45 }
  0xb0   : > { %v787_v46 = vpop.f32.mrf.mxu2  ;;  %v827_v47 = vpop.f32.mrf.mxu3 }
  0xb1   : > { %v709_v48 = vpop.f32.mrf.mxu0  ;;  %v749_v49 = vpop.f32.mrf.mxu1  ;;  %vm1094_vm2 = vcmp.gt.f32.partialorder %v787_v46, 0.0  ;;  %v1158_v50 = vmul.f32 0.2, %v787_v46  ;;  %vm1110_vm3 = vcmp.gt.f32.partialorder %v827_v47, 0.0  ;;  %v1174_v51 = vmul.f32 0.2, %v827_v47 }
  0xb2   : > { %vm1063_vm4 = vcmp.gt.f32.partialorder %v709_v48, 0.0  ;;  %v1127_v52 = vmul.f32 0.2, %v709_v48  ;;  %vm1079_vm5 = vcmp.gt.f32.partialorder %v749_v49, 0.0  ;;  %v1143_v53 = vmul.f32 0.2, %v749_v49 }
  0xb3   : > { %v1222_v54 = vsel %vm1094_vm2, %v787_v46, %v1158_v50  ;;  %v1238_v55 = vsel %vm1110_vm3, %v827_v47, %v1174_v51 }
  0xb4   : > { %1286 = vst [vmem:[%s1800_s15 + $0x100] sm:$0xff] %v1222_v54  ;;  %v1191_v56 = vsel %vm1063_vm4, %v709_v48, %v1127_v52  ;;  %v1207_v57 = vsel %vm1079_vm5, %v749_v49, %v1143_v53 }
  0xb5   : > { %1302 = vst [vmem:[%s1800_s15 + $0x180] sm:$0xff] %v1238_v55 }
  0xb6   : > { %1255 = vst [vmem:[%s1800_s15 + $0x8] sm:$0xff] %v1191_v56 }
  0xb7   : > { %1271 = vst [vmem:[%s1800_s15 + $0x88] sm:$0xff] %v1207_v57 }
  0xb8   : > { %v789_v58 = vpop.f32.mrf.mxu2  ;;  %v829_v59 = vpop.f32.mrf.mxu3 }
  0xb9   : > { %v712_v60 = vpop.f32.mrf.mxu0  ;;  %v752_v61 = vpop.f32.mrf.mxu1  ;;  %vm1095_vm6 = vcmp.gt.f32.partialorder %v789_v58, 0.0  ;;  %v1159_v62 = vmul.f32 0.2, %v789_v58  ;;  %vm1111_vm7 = vcmp.gt.f32.partialorder %v829_v59, 0.0  ;;  %v1175_v63 = vmul.f32 0.2, %v829_v59 }
  0xba   : > { %vm1064_vm8 = vcmp.gt.f32.partialorder %v712_v60, 0.0  ;;  %v1128_v0 = vmul.f32 0.2, %v712_v60  ;;  %vm1080_vm9 = vcmp.gt.f32.partialorder %v752_v61, 0.0  ;;  %v1144_v1 = vmul.f32 0.2, %v752_v61 }
  0xbb   : > { %v1223_v2 = vsel %vm1095_vm6, %v789_v58, %v1159_v62  ;;  %v1239_v3 = vsel %vm1111_vm7, %v829_v59, %v1175_v63 }
  0xbc   : > { %1287 = vst [vmem:[%s1800_s15 + $0x108] sm:$0xff] %v1223_v2  ;;  %v1192_v4 = vsel %vm1064_vm8, %v712_v60, %v1128_v0  ;;  %v1208_v5 = vsel %vm1080_vm9, %v752_v61, %v1144_v1 }
  0xbd   : > { %1303 = vst [vmem:[%s1800_s15 + $0x188] sm:$0xff] %v1239_v3 }
  0xbe   : > { %1256 = vst [vmem:[%s1800_s15 + $0x10] sm:$0xff] %v1192_v4 }
  0xbf   : > { %1272 = vst [vmem:[%s1800_s15 + $0x90] sm:$0xff] %v1208_v5 }
  0xc0   : > { %v792_v6 = vpop.f32.mrf.mxu2  ;;  %v832_v7 = vpop.f32.mrf.mxu3 }
  0xc1   : > { %v714_v8 = vpop.f32.mrf.mxu0  ;;  %v754_v9 = vpop.f32.mrf.mxu1  ;;  %vm1096_vm10 = vcmp.gt.f32.partialorder %v792_v6, 0.0  ;;  %v1160_v10 = vmul.f32 0.2, %v792_v6  ;;  %vm1112_vm11 = vcmp.gt.f32.partialorder %v832_v7, 0.0  ;;  %v1176_v11 = vmul.f32 0.2, %v832_v7 }
  0xc2   : > { %vm1065_vm12 = vcmp.gt.f32.partialorder %v714_v8, 0.0  ;;  %v1129_v12 = vmul.f32 0.2, %v714_v8  ;;  %vm1081_vm13 = vcmp.gt.f32.partialorder %v754_v9, 0.0  ;;  %v1145_v13 = vmul.f32 0.2, %v754_v9 }
  0xc3   : > { %v1224_v14 = vsel %vm1096_vm10, %v792_v6, %v1160_v10  ;;  %v1240_v15 = vsel %vm1112_vm11, %v832_v7, %v1176_v11 }
  0xc4   : > { %1288 = vst [vmem:[%s1800_s15 + $0x110] sm:$0xff] %v1224_v14  ;;  %v1193_v16 = vsel %vm1065_vm12, %v714_v8, %v1129_v12  ;;  %v1209_v17 = vsel %vm1081_vm13, %v754_v9, %v1145_v13 }
  0xc5   : > { %1304 = vst [vmem:[%s1800_s15 + $0x190] sm:$0xff] %v1240_v15 }
  0xc6   : > { %1257 = vst [vmem:[%s1800_s15 + $0x18] sm:$0xff] %v1193_v16 }
  0xc7   : > { %1273 = vst [vmem:[%s1800_s15 + $0x98] sm:$0xff] %v1209_v17 }
  0xc8   : > { %v794_v18 = vpop.f32.mrf.mxu2  ;;  %v834_v19 = vpop.f32.mrf.mxu3 }
  0xc9   : > { %v717_v20 = vpop.f32.mrf.mxu0  ;;  %v757_v21 = vpop.f32.mrf.mxu1  ;;  %vm1097_vm14 = vcmp.gt.f32.partialorder %v794_v18, 0.0  ;;  %v1161_v22 = vmul.f32 0.2, %v794_v18  ;;  %vm1113_vm15 = vcmp.gt.f32.partialorder %v834_v19, 0.0  ;;  %v1177_v23 = vmul.f32 0.2, %v834_v19 }
  0xca   : > { %vm1066_vm0 = vcmp.gt.f32.partialorder %v717_v20, 0.0  ;;  %v1130_v24 = vmul.f32 0.2, %v717_v20  ;;  %vm1082_vm1 = vcmp.gt.f32.partialorder %v757_v21, 0.0  ;;  %v1146_v25 = vmul.f32 0.2, %v757_v21 }
  0xcb   : > { %v1225_v26 = vsel %vm1097_vm14, %v794_v18, %v1161_v22  ;;  %v1241_v27 = vsel %vm1113_vm15, %v834_v19, %v1177_v23 }
  0xcc   : > { %1289 = vst [vmem:[%s1800_s15 + $0x118] sm:$0xff] %v1225_v26  ;;  %v1194_v28 = vsel %vm1066_vm0, %v717_v20, %v1130_v24  ;;  %v1210_v29 = vsel %vm1082_vm1, %v757_v21, %v1146_v25 }
  0xcd   : > { %1305 = vst [vmem:[%s1800_s15 + $0x198] sm:$0xff] %v1241_v27 }
  0xce   : > { %1258 = vst [vmem:[%s1800_s15 + $0x20] sm:$0xff] %v1194_v28 }
  0xcf   : > { %1274 = vst [vmem:[%s1800_s15 + $0xa0] sm:$0xff] %v1210_v29 }
  0xd0   : > { %v797_v30 = vpop.f32.mrf.mxu2  ;;  %v837_v31 = vpop.f32.mrf.mxu3 }
  0xd1   : > { %v719_v32 = vpop.f32.mrf.mxu0  ;;  %v759_v33 = vpop.f32.mrf.mxu1  ;;  %vm1098_vm2 = vcmp.gt.f32.partialorder %v797_v30, 0.0  ;;  %v1162_v34 = vmul.f32 0.2, %v797_v30  ;;  %vm1114_vm3 = vcmp.gt.f32.partialorder %v837_v31, 0.0  ;;  %v1178_v35 = vmul.f32 0.2, %v837_v31 }
  0xd2   : > { %vm1067_vm4 = vcmp.gt.f32.partialorder %v719_v32, 0.0  ;;  %v1131_v36 = vmul.f32 0.2, %v719_v32  ;;  %vm1083_vm5 = vcmp.gt.f32.partialorder %v759_v33, 0.0  ;;  %v1147_v37 = vmul.f32 0.2, %v759_v33 }
  0xd3   : > { %v1226_v38 = vsel %vm1098_vm2, %v797_v30, %v1162_v34  ;;  %v1242_v39 = vsel %vm1114_vm3, %v837_v31, %v1178_v35 }
  0xd4   : > { %1290 = vst [vmem:[%s1800_s15 + $0x120] sm:$0xff] %v1226_v38  ;;  %v1195_v40 = vsel %vm1067_vm4, %v719_v32, %v1131_v36  ;;  %v1211_v41 = vsel %vm1083_vm5, %v759_v33, %v1147_v37 }
  0xd5   : > { %1306 = vst [vmem:[%s1800_s15 + $0x1a0] sm:$0xff] %v1242_v39 }
  0xd6   : > { %1259 = vst [vmem:[%s1800_s15 + $0x28] sm:$0xff] %v1195_v40 }
  0xd7   : > { %1275 = vst [vmem:[%s1800_s15 + $0xa8] sm:$0xff] %v1211_v41 }
  0xd8   : > { %v799_v42 = vpop.f32.mrf.mxu2  ;;  %v839_v43 = vpop.f32.mrf.mxu3 }
  0xd9   : > { %v722_v44 = vpop.f32.mrf.mxu0  ;;  %v762_v45 = vpop.f32.mrf.mxu1  ;;  %vm1099_vm6 = vcmp.gt.f32.partialorder %v799_v42, 0.0  ;;  %v1163_v46 = vmul.f32 0.2, %v799_v42  ;;  %vm1115_vm7 = vcmp.gt.f32.partialorder %v839_v43, 0.0  ;;  %v1179_v47 = vmul.f32 0.2, %v839_v43 }
  0xda   : > { %vm1068_vm8 = vcmp.gt.f32.partialorder %v722_v44, 0.0  ;;  %v1132_v48 = vmul.f32 0.2, %v722_v44  ;;  %vm1084_vm9 = vcmp.gt.f32.partialorder %v762_v45, 0.0  ;;  %v1148_v49 = vmul.f32 0.2, %v762_v45 }
  0xdb   : > { %v1227_v50 = vsel %vm1099_vm6, %v799_v42, %v1163_v46  ;;  %v1243_v51 = vsel %vm1115_vm7, %v839_v43, %v1179_v47 }
  0xdc   : > { %1291 = vst [vmem:[%s1800_s15 + $0x128] sm:$0xff] %v1227_v50  ;;  %v1196_v52 = vsel %vm1068_vm8, %v722_v44, %v1132_v48  ;;  %v1212_v53 = vsel %vm1084_vm9, %v762_v45, %v1148_v49 }
  0xdd   : > { %1307 = vst [vmem:[%s1800_s15 + $0x1a8] sm:$0xff] %v1243_v51 }
  0xde   : > { %1260 = vst [vmem:[%s1800_s15 + $0x30] sm:$0xff] %v1196_v52 }
  0xdf   : > { %1276 = vst [vmem:[%s1800_s15 + $0xb0] sm:$0xff] %v1212_v53 }
  0xe0   : > { %v802_v54 = vpop.f32.mrf.mxu2  ;;  %v842_v55 = vpop.f32.mrf.mxu3 }
  0xe1   : > { %v724_v56 = vpop.f32.mrf.mxu0  ;;  %v764_v57 = vpop.f32.mrf.mxu1  ;;  %vm1100_vm10 = vcmp.gt.f32.partialorder %v802_v54, 0.0  ;;  %v1164_v58 = vmul.f32 0.2, %v802_v54  ;;  %vm1116_vm11 = vcmp.gt.f32.partialorder %v842_v55, 0.0  ;;  %v1180_v59 = vmul.f32 0.2, %v842_v55 }
  0xe2   : > { %vm1069_vm12 = vcmp.gt.f32.partialorder %v724_v56, 0.0  ;;  %v1133_v60 = vmul.f32 0.2, %v724_v56  ;;  %vm1085_vm13 = vcmp.gt.f32.partialorder %v764_v57, 0.0  ;;  %v1149_v61 = vmul.f32 0.2, %v764_v57 }
  0xe3   : > { %v1228_v62 = vsel %vm1100_vm10, %v802_v54, %v1164_v58  ;;  %v1244_v63 = vsel %vm1116_vm11, %v842_v55, %v1180_v59 }
  0xe4   : > { %1292 = vst [vmem:[%s1800_s15 + $0x130] sm:$0xff] %v1228_v62  ;;  %v1197_v0 = vsel %vm1069_vm12, %v724_v56, %v1133_v60  ;;  %v1213_v1 = vsel %vm1085_vm13, %v764_v57, %v1149_v61 }
  0xe5   : > { %1308 = vst [vmem:[%s1800_s15 + $0x1b0] sm:$0xff] %v1244_v63 }
  0xe6   : > { %1261 = vst [vmem:[%s1800_s15 + $0x38] sm:$0xff] %v1197_v0 }
  0xe7   : > { %1277 = vst [vmem:[%s1800_s15 + $0xb8] sm:$0xff] %v1213_v1 }
  0xe8   : > { %v804_v2 = vpop.f32.mrf.mxu2  ;;  %v844_v3 = vpop.f32.mrf.mxu3 }
  0xe9   : > { %v727_v4 = vpop.f32.mrf.mxu0  ;;  %v767_v5 = vpop.f32.mrf.mxu1  ;;  %vm1101_vm14 = vcmp.gt.f32.partialorder %v804_v2, 0.0  ;;  %v1165_v6 = vmul.f32 0.2, %v804_v2  ;;  %vm1117_vm15 = vcmp.gt.f32.partialorder %v844_v3, 0.0  ;;  %v1181_v7 = vmul.f32 0.2, %v844_v3 }
  0xea   : > { %vm1070_vm0 = vcmp.gt.f32.partialorder %v727_v4, 0.0  ;;  %v1134_v8 = vmul.f32 0.2, %v727_v4  ;;  %vm1086_vm1 = vcmp.gt.f32.partialorder %v767_v5, 0.0  ;;  %v1150_v9 = vmul.f32 0.2, %v767_v5 }
  0xeb   : > { %v1229_v10 = vsel %vm1101_vm14, %v804_v2, %v1165_v6  ;;  %v1245_v11 = vsel %vm1117_vm15, %v844_v3, %v1181_v7 }
  0xec   : > { %1293 = vst [vmem:[%s1800_s15 + $0x138] sm:$0xff] %v1229_v10  ;;  %v1198_v12 = vsel %vm1070_vm0, %v727_v4, %v1134_v8  ;;  %v1214_v13 = vsel %vm1086_vm1, %v767_v5, %v1150_v9 }
  0xed   : > { %1309 = vst [vmem:[%s1800_s15 + $0x1b8] sm:$0xff] %v1245_v11 }
  0xee   : > { %1262 = vst [vmem:[%s1800_s15 + $0x40] sm:$0xff] %v1198_v12 }
  0xef   : > { %1278 = vst [vmem:[%s1800_s15 + $0xc0] sm:$0xff] %v1214_v13 }
  0xf0   : > { %v807_v14 = vpop.f32.mrf.mxu2  ;;  %v847_v15 = vpop.f32.mrf.mxu3 }
  0xf1   : > { %v729_v16 = vpop.f32.mrf.mxu0  ;;  %v769_v17 = vpop.f32.mrf.mxu1  ;;  %vm1102_vm2 = vcmp.gt.f32.partialorder %v807_v14, 0.0  ;;  %v1166_v18 = vmul.f32 0.2, %v807_v14  ;;  %vm1118_vm3 = vcmp.gt.f32.partialorder %v847_v15, 0.0  ;;  %v1182_v19 = vmul.f32 0.2, %v847_v15 }
  0xf2   : > { %vm1071_vm4 = vcmp.gt.f32.partialorder %v729_v16, 0.0  ;;  %v1135_v20 = vmul.f32 0.2, %v729_v16  ;;  %vm1087_vm5 = vcmp.gt.f32.partialorder %v769_v17, 0.0  ;;  %v1151_v21 = vmul.f32 0.2, %v769_v17 }
  0xf3   : > { %v1230_v22 = vsel %vm1102_vm2, %v807_v14, %v1166_v18  ;;  %v1246_v23 = vsel %vm1118_vm3, %v847_v15, %v1182_v19 }
  0xf4   : > { %1294 = vst [vmem:[%s1800_s15 + $0x140] sm:$0xff] %v1230_v22  ;;  %v1199_v24 = vsel %vm1071_vm4, %v729_v16, %v1135_v20  ;;  %v1215_v25 = vsel %vm1087_vm5, %v769_v17, %v1151_v21 }
  0xf5   : > { %1310 = vst [vmem:[%s1800_s15 + $0x1c0] sm:$0xff] %v1246_v23 }
  0xf6   : > { %1263 = vst [vmem:[%s1800_s15 + $0x48] sm:$0xff] %v1199_v24 }
  0xf7   : > { %1279 = vst [vmem:[%s1800_s15 + $0xc8] sm:$0xff] %v1215_v25 }
  0xf8   : > { %v809_v26 = vpop.f32.mrf.mxu2  ;;  %v849_v27 = vpop.f32.mrf.mxu3 }
  0xf9   : > { %v732_v28 = vpop.f32.mrf.mxu0  ;;  %v772_v29 = vpop.f32.mrf.mxu1  ;;  %vm1103_vm6 = vcmp.gt.f32.partialorder %v809_v26, 0.0  ;;  %v1167_v30 = vmul.f32 0.2, %v809_v26  ;;  %vm1119_vm7 = vcmp.gt.f32.partialorder %v849_v27, 0.0  ;;  %v1183_v31 = vmul.f32 0.2, %v849_v27 }
  0xfa   : > { %vm1072_vm8 = vcmp.gt.f32.partialorder %v732_v28, 0.0  ;;  %v1136_v32 = vmul.f32 0.2, %v732_v28  ;;  %vm1088_vm9 = vcmp.gt.f32.partialorder %v772_v29, 0.0  ;;  %v1152_v33 = vmul.f32 0.2, %v772_v29 }
  0xfb   : > { %v1231_v34 = vsel %vm1103_vm6, %v809_v26, %v1167_v30  ;;  %v1247_v35 = vsel %vm1119_vm7, %v849_v27, %v1183_v31 }
  0xfc   : > { %1295 = vst [vmem:[%s1800_s15 + $0x148] sm:$0xff] %v1231_v34  ;;  %v1200_v36 = vsel %vm1072_vm8, %v732_v28, %v1136_v32  ;;  %v1216_v37 = vsel %vm1088_vm9, %v772_v29, %v1152_v33 }
  0xfd   : > { %1311 = vst [vmem:[%s1800_s15 + $0x1c8] sm:$0xff] %v1247_v35 }
  0xfe   : > { %1264 = vst [vmem:[%s1800_s15 + $0x50] sm:$0xff] %v1200_v36 }
  0xff   : > { %1280 = vst [vmem:[%s1800_s15 + $0xd0] sm:$0xff] %v1216_v37 }
 0x100   : > { %v812_v38 = vpop.f32.mrf.mxu2  ;;  %v852_v39 = vpop.f32.mrf.mxu3 }
 0x101   : > { %v734_v40 = vpop.f32.mrf.mxu0  ;;  %v774_v41 = vpop.f32.mrf.mxu1  ;;  %vm1104_vm10 = vcmp.gt.f32.partialorder %v812_v38, 0.0  ;;  %v1168_v42 = vmul.f32 0.2, %v812_v38  ;;  %vm1120_vm11 = vcmp.gt.f32.partialorder %v852_v39, 0.0  ;;  %v1184_v43 = vmul.f32 0.2, %v852_v39 }
 0x102   : > { %vm1073_vm12 = vcmp.gt.f32.partialorder %v734_v40, 0.0  ;;  %v1137_v44 = vmul.f32 0.2, %v734_v40  ;;  %vm1089_vm13 = vcmp.gt.f32.partialorder %v774_v41, 0.0  ;;  %v1153_v45 = vmul.f32 0.2, %v774_v41 }
 0x103   : > { %v1232_v46 = vsel %vm1104_vm10, %v812_v38, %v1168_v42  ;;  %v1248_v47 = vsel %vm1120_vm11, %v852_v39, %v1184_v43 }
 0x104   : > { %1296 = vst [vmem:[%s1800_s15 + $0x150] sm:$0xff] %v1232_v46  ;;  %v1201_v48 = vsel %vm1073_vm12, %v734_v40, %v1137_v44  ;;  %v1217_v49 = vsel %vm1089_vm13, %v774_v41, %v1153_v45 }
 0x105   : > { %1312 = vst [vmem:[%s1800_s15 + $0x1d0] sm:$0xff] %v1248_v47 }
 0x106   : > { %1265 = vst [vmem:[%s1800_s15 + $0x58] sm:$0xff] %v1201_v48 }
 0x107   : > { %1281 = vst [vmem:[%s1800_s15 + $0xd8] sm:$0xff] %v1217_v49 }
 0x108   : > { %v814_v50 = vpop.f32.mrf.mxu2  ;;  %v854_v51 = vpop.f32.mrf.mxu3 }
 0x109   : > { %v737_v52 = vpop.f32.mrf.mxu0  ;;  %v777_v53 = vpop.f32.mrf.mxu1  ;;  %vm1105_vm14 = vcmp.gt.f32.partialorder %v814_v50, 0.0  ;;  %v1169_v54 = vmul.f32 0.2, %v814_v50  ;;  %vm1121_vm15 = vcmp.gt.f32.partialorder %v854_v51, 0.0  ;;  %v1185_v55 = vmul.f32 0.2, %v854_v51 }
 0x10a   : > { %vm1074_vm0 = vcmp.gt.f32.partialorder %v737_v52, 0.0  ;;  %v1138_v56 = vmul.f32 0.2, %v737_v52  ;;  %vm1090_vm1 = vcmp.gt.f32.partialorder %v777_v53, 0.0  ;;  %v1154_v57 = vmul.f32 0.2, %v777_v53 }
 0x10b   : > { %v1233_v58 = vsel %vm1105_vm14, %v814_v50, %v1169_v54  ;;  %v1249_v59 = vsel %vm1121_vm15, %v854_v51, %v1185_v55 }
 0x10c   : > { %1297 = vst [vmem:[%s1800_s15 + $0x158] sm:$0xff] %v1233_v58  ;;  %v1202_v60 = vsel %vm1074_vm0, %v737_v52, %v1138_v56  ;;  %v1218_v61 = vsel %vm1090_vm1, %v777_v53, %v1154_v57 }
 0x10d   : > { %1313 = vst [vmem:[%s1800_s15 + $0x1d8] sm:$0xff] %v1249_v59 }
 0x10e   : > { %1266 = vst [vmem:[%s1800_s15 + $0x60] sm:$0xff] %v1202_v60 }
 0x10f   : > { %1282 = vst [vmem:[%s1800_s15 + $0xe0] sm:$0xff] %v1218_v61 }
 0x110   : > { %v817_v62 = vpop.f32.mrf.mxu2  ;;  %v857_v63 = vpop.f32.mrf.mxu3 }
 0x111   : > { %v739_v0 = vpop.f32.mrf.mxu0  ;;  %v779_v1 = vpop.f32.mrf.mxu1  ;;  %vm1106_vm2 = vcmp.gt.f32.partialorder %v817_v62, 0.0  ;;  %v1170_v2 = vmul.f32 0.2, %v817_v62  ;;  %vm1122_vm3 = vcmp.gt.f32.partialorder %v857_v63, 0.0  ;;  %v1186_v3 = vmul.f32 0.2, %v857_v63 }
 0x112   : > { %vm1075_vm4 = vcmp.gt.f32.partialorder %v739_v0, 0.0  ;;  %v1139_v4 = vmul.f32 0.2, %v739_v0  ;;  %vm1091_vm5 = vcmp.gt.f32.partialorder %v779_v1, 0.0  ;;  %v1155_v5 = vmul.f32 0.2, %v779_v1 }
 0x113   : > { %v1234_v6 = vsel %vm1106_vm2, %v817_v62, %v1170_v2  ;;  %v1250_v7 = vsel %vm1122_vm3, %v857_v63, %v1186_v3 }
 0x114   : > { %1298 = vst [vmem:[%s1800_s15 + $0x160] sm:$0xff] %v1234_v6  ;;  %v1203_v8 = vsel %vm1075_vm4, %v739_v0, %v1139_v4  ;;  %v1219_v9 = vsel %vm1091_vm5, %v779_v1, %v1155_v5 }
 0x115   : > { %1314 = vst [vmem:[%s1800_s15 + $0x1e0] sm:$0xff] %v1250_v7 }
 0x116   : > { %1267 = vst [vmem:[%s1800_s15 + $0x68] sm:$0xff] %v1203_v8 }
 0x117   : > { %1283 = vst [vmem:[%s1800_s15 + $0xe8] sm:$0xff] %v1219_v9 }
 0x118   : > { %v819_v10 = vpop.f32.mrf.mxu2  ;;  %v859_v11 = vpop.f32.mrf.mxu3 }
 0x119   : > { %v742_v12 = vpop.f32.mrf.mxu0  ;;  %v782_v13 = vpop.f32.mrf.mxu1  ;;  %vm1107_vm6 = vcmp.gt.f32.partialorder %v819_v10, 0.0  ;;  %v1171_v14 = vmul.f32 0.2, %v819_v10  ;;  %vm1123_vm7 = vcmp.gt.f32.partialorder %v859_v11, 0.0  ;;  %v1187_v15 = vmul.f32 0.2, %v859_v11 }
 0x11a   : > { %vm1076_vm8 = vcmp.gt.f32.partialorder %v742_v12, 0.0  ;;  %v1140_v16 = vmul.f32 0.2, %v742_v12  ;;  %vm1092_vm9 = vcmp.gt.f32.partialorder %v782_v13, 0.0  ;;  %v1156_v17 = vmul.f32 0.2, %v782_v13 }
 0x11b   : > { %v1235_v18 = vsel %vm1107_vm6, %v819_v10, %v1171_v14  ;;  %v1251_v19 = vsel %vm1123_vm7, %v859_v11, %v1187_v15 }
 0x11c   : > { %1299 = vst [vmem:[%s1800_s15 + $0x168] sm:$0xff] %v1235_v18  ;;  %v1204_v20 = vsel %vm1076_vm8, %v742_v12, %v1140_v16  ;;  %v1220_v21 = vsel %vm1092_vm9, %v782_v13, %v1156_v17 }
 0x11d   : > { %1315 = vst [vmem:[%s1800_s15 + $0x1e8] sm:$0xff] %v1251_v19 }
 0x11e   : > { %1268 = vst [vmem:[%s1800_s15 + $0x70] sm:$0xff] %v1204_v20 }
 0x11f   : > { %1284 = vst [vmem:[%s1800_s15 + $0xf0] sm:$0xff] %v1220_v21 }
 0x120   : > { %v822_v22 = vpop.f32.mrf.mxu2  ;;  %v862_v23 = vpop.f32.mrf.mxu3 }
 0x121   : > { %v744_v24 = vpop.f32.mrf.mxu0  ;;  %v784_v25 = vpop.f32.mrf.mxu1  ;;  %vm1108_vm10 = vcmp.gt.f32.partialorder %v822_v22, 0.0  ;;  %v1172_v26 = vmul.f32 0.2, %v822_v22  ;;  %vm1124_vm11 = vcmp.gt.f32.partialorder %v862_v23, 0.0  ;;  %v1188_v27 = vmul.f32 0.2, %v862_v23 }
 0x122   : > { %vm1077_vm12 = vcmp.gt.f32.partialorder %v744_v24, 0.0  ;;  %v1141_v28 = vmul.f32 0.2, %v744_v24  ;;  %vm1093_vm13 = vcmp.gt.f32.partialorder %v784_v25, 0.0  ;;  %v1157_v29 = vmul.f32 0.2, %v784_v25 }
 0x123   : > { %v1236_v30 = vsel %vm1108_vm10, %v822_v22, %v1172_v26  ;;  %v1252_v31 = vsel %vm1124_vm11, %v862_v23, %v1188_v27 }
 0x124   : > { %1300 = vst [vmem:[%s1800_s15 + $0x170] sm:$0xff] %v1236_v30  ;;  %v1205_v32 = vsel %vm1077_vm12, %v744_v24, %v1141_v28  ;;  %v1221_v33 = vsel %vm1093_vm13, %v784_v25, %v1157_v29 }
 0x125   : > { %1316 = vst [vmem:[%s1800_s15 + $0x1f0] sm:$0xff] %v1252_v31 }
 0x126   : > { %1269 = vst [vmem:[%s1800_s15 + $0x78] sm:$0xff] %v1205_v32 }
 0x127   : > { %1285 = vst [vmem:[%s1800_s15 + $0xf8] sm:$0xff] %v1221_v33 }
 0x128   : > { %v824_v34 = vpop.f32.mrf.mxu2  ;;  %v864_v35 = vpop.f32.mrf.mxu3 }
 0x129   : > { %vm1109_vm14 = vcmp.gt.f32.partialorder %v824_v34, 0.0  ;;  %v1173_v36 = vmul.f32 0.2, %v824_v34  ;;  %vm1125_vm15 = vcmp.gt.f32.partialorder %v864_v35, 0.0  ;;  %v1189_v37 = vmul.f32 0.2, %v864_v35 }
 0x12b   : > { %v1237_v38 = vsel %vm1109_vm14, %v824_v34, %v1173_v36  ;;  %v1253_v39 = vsel %vm1125_vm15, %v864_v35, %v1189_v37 }
 0x12c   : > { %1301 = vst [vmem:[%s1800_s15 + $0x178] sm:$0xff] %v1237_v38 }
 0x12d   : > { %1317 = vst [vmem:[%s1800_s15 + $0x1f8] sm:$0xff] %v1253_v39 }
 0x12e PF: > { %s14_s17 = sadd.s32 1, %s1684_s17   ;;  %s1880_s15 = smov %s1680_s16 }
 0x12f   : > { %p11_p5 = scmp.ge.s32.totalorder %s14_s17, 6   ;;  %s1881_s16 = smov %s1883_s2 }
 0x131   :  { %13 = sbr.rel (!%p11_p5) target bundleno = 2 (0x2), region = 77 }

// kernel: _lambda_.7
= control target key start
LH: loop header
LB: loop body
LE: loop exit
PB: predicated region body
PF: predicated region fallthrough
CT: control target
= control target key end

     0   :  { %s4164_s15 = smov 0   ;;  %s4166_s16 = smov 0   ;;  %s6329_s0 = inlined_call_operand.vmem [shape: bf16[512,1024], index: 0, kind: input, shape index: {}]   ;;  %s6330_s1 = inlined_call_operand.vmem [shape: bf16[1024,128], index: 1, kind: input, shape index: {}]   ;;  %s6331_s2 = inlined_call_operand.vmem [shape: f32[1,128], index: 2, kind: input, shape index: {}]   ;;  %s6332_s3 = inlined_call_operand.vmem [shape: f32[1,128], index: 3, kind: input, shape index: {}]   ;;  %s6333_s4 = inlined_call_operand.vmem [shape: f32[512,128], index: 4, kind: output, shape index: {}]  }
   0x1   :  { %s4168_s17 = smov 0   ;;  %s4170_s18 = smov 0  }
   0x2   :  { %s4172_s19 = smov 0  }
   0x3 LB: > { %s23_s20 = sadd.s32 1, %s4132_s18  ;;  %p42_p1 = scmp.ne.s32.totalorder %s4124_s16, %s4120_s15  ;;  %s4136_s19 = sphi %s4172_s19, %s14_s19   ;;  %s4132_s18 = sphi %s4170_s18, %s6409_s18   ;;  %s4128_s17 = sphi %s4168_s17, %s6408_s17   ;;  %s4124_s16 = sphi %s4166_s16, %s6407_s16   ;;  %s4120_s15 = sphi %s4164_s15, %s6406_s15  }
   0x4   : > { %p24_p0 = scmp.ge.s32.totalorder %s23_s20, 2  ;;  %p43_p2 = scmp.eq.s32.totalorder %s4136_s19, 0 }
   0x5   : > { %s35_s22 = sadd.s32 1, %s4124_s16  ;;  %p3240_p5 = scmp.ge.s32.totalorder %s4136_s19, 2 }
   0x6   : > { %s6411_s20 = smov (%p24_p0, %s23_s20), 0  ;;  %p44_p3 = por %p43_p2, %p42_p1 }
   0x7   : > { %s31_s21 = ssub.s32 %s4132_s18, %s6411_s20  ;;  %168 = sbr.rel (%p3240_p5) target bundleno = 144 (0x90), region = 24 }
   0x8   : > { %p33_p4 = scmp.eq.s32.totalorder %s31_s21, 0 }
   0xa   : > { %s4199_s23 = scalar_select %p33_p4, %s4124_s16, %s35_s22  }
   0xc   : > { %171 = sbr.rel (!%p44_p3) target bundleno = 144 (0x90), region = 28  ;;  %s173_s24 = sand.u32 (%p44_p3), 1, %s4124_s16  }
   0xd   : > { %s3894_s25 = sshll.u32 (%p44_p3), %s4132_s18, 4  ;;  %s3241_s26 = sshll.u32 (%p44_p3), %s173_s24, 10 }
   0xe   : > { %s4207_s29 = scalar_lea.vmem (%p44_p3), %s6329_s0, %s3894_s25  ;;  %s4212_s30 = scalar_lea.vmem (%p44_p3), [#allocation2], %s3241_s26 }
   0xf   : > { %v194_v0 = vld [vmem:[%s4207_s29] sm:$0xff] (%p44_p3)  ;;  %v196_v1 = vld [vmem:[%s4207_s29 + $0x8] sm:$0xff] (%p44_p3) }
  0x10   : > { %v198_v2 = vld [vmem:[%s4207_s29 + $0x20] sm:$0xff] (%p44_p3)  ;;  %195 = vst [vmem:[%s4212_s30] sm:$0xff] (%p44_p3), %v194_v0  ;;  %v200_v3 = vld [vmem:[%s4207_s29 + $0x28] sm:$0xff] (%p44_p3) }
  0x11   : > { %197 = vst [vmem:[%s4212_s30 + $0x8] sm:$0xff] %v196_v1  ;;  %v202_v4 = vld [vmem:[%s4207_s29 + $0x40] sm:$0xff]  ;;  %v204_v5 = vld [vmem:[%s4207_s29 + $0x48] sm:$0xff] }
  0x12   : > { %199 = vst [vmem:[%s4212_s30 + $0x10] sm:$0xff] %v198_v2  ;;  %v206_v6 = vld [vmem:[%s4207_s29 + $0x60] sm:$0xff]  ;;  %v208_v7 = vld [vmem:[%s4207_s29 + $0x68] sm:$0xff] }
  0x13   : > { %201 = vst [vmem:[%s4212_s30 + $0x18] sm:$0xff] %v200_v3  ;;  %v210_v8 = vld [vmem:[%s4207_s29 + $0x80] sm:$0xff]  ;;  %v212_v9 = vld [vmem:[%s4207_s29 + $0x88] sm:$0xff] }
  0x14   : > { %203 = vst [vmem:[%s4212_s30 + $0x20] sm:$0xff] %v202_v4  ;;  %v214_v10 = vld [vmem:[%s4207_s29 + $0xa0] sm:$0xff]  ;;  %v216_v11 = vld [vmem:[%s4207_s29 + $0xa8] sm:$0xff] }
  0x15   : > { %205 = vst [vmem:[%s4212_s30 + $0x28] sm:$0xff] %v204_v5  ;;  %v218_v12 = vld [vmem:[%s4207_s29 + $0xc0] sm:$0xff]  ;;  %v220_v13 = vld [vmem:[%s4207_s29 + $0xc8] sm:$0xff] }
  0x16   : > { %207 = vst [vmem:[%s4212_s30 + $0x30] sm:$0xff] %v206_v6  ;;  %v222_v14 = vld [vmem:[%s4207_s29 + $0xe0] sm:$0xff]  ;;  %v224_v15 = vld [vmem:[%s4207_s29 + $0xe8] sm:$0xff] }
  0x17   : > { %209 = vst [vmem:[%s4212_s30 + $0x38] sm:$0xff] %v208_v7  ;;  %v226_v16 = vld [vmem:[%s4207_s29 + $0x100] sm:$0xff]  ;;  %v228_v17 = vld [vmem:[%s4207_s29 + $0x108] sm:$0xff] }
  0x18   : > { %211 = vst [vmem:[%s4212_s30 + $0x40] sm:$0xff] %v210_v8  ;;  %v230_v18 = vld [vmem:[%s4207_s29 + $0x120] sm:$0xff]  ;;  %v232_v19 = vld [vmem:[%s4207_s29 + $0x128] sm:$0xff] }
  0x19   : > { %213 = vst [vmem:[%s4212_s30 + $0x48] sm:$0xff] %v212_v9  ;;  %v234_v20 = vld [vmem:[%s4207_s29 + $0x140] sm:$0xff]  ;;  %v236_v21 = vld [vmem:[%s4207_s29 + $0x148] sm:$0xff] }
  0x1a   : > { %215 = vst [vmem:[%s4212_s30 + $0x50] sm:$0xff] %v214_v10  ;;  %v238_v22 = vld [vmem:[%s4207_s29 + $0x160] sm:$0xff]  ;;  %v240_v23 = vld [vmem:[%s4207_s29 + $0x168] sm:$0xff] }
  0x1b   : > { %217 = vst [vmem:[%s4212_s30 + $0x58] sm:$0xff] %v216_v11  ;;  %v242_v24 = vld [vmem:[%s4207_s29 + $0x180] sm:$0xff]  ;;  %v244_v25 = vld [vmem:[%s4207_s29 + $0x188] sm:$0xff] }
  0x1c   : > { %219 = vst [vmem:[%s4212_s30 + $0x60] sm:$0xff] %v218_v12  ;;  %v246_v26 = vld [vmem:[%s4207_s29 + $0x1a0] sm:$0xff]  ;;  %v248_v27 = vld [vmem:[%s4207_s29 + $0x1a8] sm:$0xff] }
  0x1d   : > { %221 = vst [vmem:[%s4212_s30 + $0x68] sm:$0xff] %v220_v13  ;;  %v250_v28 = vld [vmem:[%s4207_s29 + $0x1c0] sm:$0xff]  ;;  %v252_v29 = vld [vmem:[%s4207_s29 + $0x1c8] sm:$0xff] }
  0x1e   : > { %223 = vst [vmem:[%s4212_s30 + $0x70] sm:$0xff] %v222_v14  ;;  %v254_v30 = vld [vmem:[%s4207_s29 + $0x1e0] sm:$0xff]  ;;  %v256_v31 = vld [vmem:[%s4207_s29 + $0x1e8] sm:$0xff] }
  0x1f   : > { %225 = vst [vmem:[%s4212_s30 + $0x78] sm:$0xff] %v224_v15  ;;  %v258_v32 = vld [vmem:[%s4207_s29 + $0x200] sm:$0xff]  ;;  %v260_v33 = vld [vmem:[%s4207_s29 + $0x208] sm:$0xff] }
  0x20   : > { %227 = vst [vmem:[%s4212_s30 + $0x80] sm:$0xff] %v226_v16  ;;  %v262_v34 = vld [vmem:[%s4207_s29 + $0x220] sm:$0xff]  ;;  %v264_v35 = vld [vmem:[%s4207_s29 + $0x228] sm:$0xff] }
  0x21   : > { %229 = vst [vmem:[%s4212_s30 + $0x88] sm:$0xff] %v228_v17  ;;  %v266_v36 = vld [vmem:[%s4207_s29 + $0x240] sm:$0xff]  ;;  %v268_v37 = vld [vmem:[%s4207_s29 + $0x248] sm:$0xff] }
  0x22   : > { %231 = vst [vmem:[%s4212_s30 + $0x90] sm:$0xff] %v230_v18  ;;  %v270_v38 = vld [vmem:[%s4207_s29 + $0x260] sm:$0xff]  ;;  %v272_v39 = vld [vmem:[%s4207_s29 + $0x268] sm:$0xff] }
  0x23   : > { %233 = vst [vmem:[%s4212_s30 + $0x98] sm:$0xff] %v232_v19  ;;  %v274_v40 = vld [vmem:[%s4207_s29 + $0x280] sm:$0xff]  ;;  %v276_v41 = vld [vmem:[%s4207_s29 + $0x288] sm:$0xff] }
  0x24   : > { %235 = vst [vmem:[%s4212_s30 + $0xa0] sm:$0xff] %v234_v20  ;;  %v278_v42 = vld [vmem:[%s4207_s29 + $0x2a0] sm:$0xff]  ;;  %v280_v43 = vld [vmem:[%s4207_s29 + $0x2a8] sm:$0xff] }
  0x25   : > { %237 = vst [vmem:[%s4212_s30 + $0xa8] sm:$0xff] %v236_v21  ;;  %v282_v44 = vld [vmem:[%s4207_s29 + $0x2c0] sm:$0xff]  ;;  %v284_v45 = vld [vmem:[%s4207_s29 + $0x2c8] sm:$0xff] }
  0x26   : > { %239 = vst [vmem:[%s4212_s30 + $0xb0] sm:$0xff] %v238_v22  ;;  %v286_v46 = vld [vmem:[%s4207_s29 + $0x2e0] sm:$0xff]  ;;  %v288_v47 = vld [vmem:[%s4207_s29 + $0x2e8] sm:$0xff] }
  0x27   : > { %241 = vst [vmem:[%s4212_s30 + $0xb8] sm:$0xff] %v240_v23  ;;  %v290_v48 = vld [vmem:[%s4207_s29 + $0x300] sm:$0xff]  ;;  %v292_v49 = vld [vmem:[%s4207_s29 + $0x308] sm:$0xff] }
  0x28   : > { %243 = vst [vmem:[%s4212_s30 + $0xc0] sm:$0xff] %v242_v24  ;;  %v294_v50 = vld [vmem:[%s4207_s29 + $0x320] sm:$0xff]  ;;  %v296_v51 = vld [vmem:[%s4207_s29 + $0x328] sm:$0xff] }
  0x29   : > { %245 = vst [vmem:[%s4212_s30 + $0xc8] sm:$0xff] %v244_v25  ;;  %v298_v52 = vld [vmem:[%s4207_s29 + $0x340] sm:$0xff]  ;;  %v300_v53 = vld [vmem:[%s4207_s29 + $0x348] sm:$0xff] }
  0x2a   : > { %247 = vst [vmem:[%s4212_s30 + $0xd0] sm:$0xff] %v246_v26  ;;  %v302_v54 = vld [vmem:[%s4207_s29 + $0x360] sm:$0xff]  ;;  %v304_v55 = vld [vmem:[%s4207_s29 + $0x368] sm:$0xff] }
  0x2b   : > { %249 = vst [vmem:[%s4212_s30 + $0xd8] sm:$0xff] %v248_v27  ;;  %v306_v56 = vld [vmem:[%s4207_s29 + $0x380] sm:$0xff]  ;;  %v308_v57 = vld [vmem:[%s4207_s29 + $0x388] sm:$0xff] }
  0x2c   : > { %251 = vst [vmem:[%s4212_s30 + $0xe0] sm:$0xff] %v250_v28  ;;  %v310_v58 = vld [vmem:[%s4207_s29 + $0x3a0] sm:$0xff]  ;;  %v312_v59 = vld [vmem:[%s4207_s29 + $0x3a8] sm:$0xff] }
  0x2d   : > { %253 = vst [vmem:[%s4212_s30 + $0xe8] sm:$0xff] %v252_v29  ;;  %v314_v60 = vld [vmem:[%s4207_s29 + $0x3c0] sm:$0xff]  ;;  %v316_v61 = vld [vmem:[%s4207_s29 + $0x3c8] sm:$0xff] }
  0x2e   : > { %255 = vst [vmem:[%s4212_s30 + $0xf0] sm:$0xff] %v254_v30  ;;  %v318_v62 = vld [vmem:[%s4207_s29 + $0x3e0] sm:$0xff]  ;;  %v320_v63 = vld [vmem:[%s4207_s29 + $0x3e8] sm:$0xff] }
  0x2f   : > { %257 = vst [vmem:[%s4212_s30 + $0xf8] sm:$0xff] %v256_v31  ;;  %v322_v0 = vld [vmem:[%s4207_s29 + $0x400] sm:$0xff]  ;;  %v324_v1 = vld [vmem:[%s4207_s29 + $0x408] sm:$0xff] }
  0x30   : > { %259 = vst [vmem:[%s4212_s30 + $0x100] sm:$0xff] %v258_v32  ;;  %v326_v2 = vld [vmem:[%s4207_s29 + $0x420] sm:$0xff]  ;;  %v328_v3 = vld [vmem:[%s4207_s29 + $0x428] sm:$0xff] }
  0x31   : > { %261 = vst [vmem:[%s4212_s30 + $0x108] sm:$0xff] %v260_v33  ;;  %v330_v4 = vld [vmem:[%s4207_s29 + $0x440] sm:$0xff]  ;;  %v332_v5 = vld [vmem:[%s4207_s29 + $0x448] sm:$0xff] }
  0x32   : > { %263 = vst [vmem:[%s4212_s30 + $0x110] sm:$0xff] %v262_v34  ;;  %v334_v6 = vld [vmem:[%s4207_s29 + $0x460] sm:$0xff]  ;;  %v336_v7 = vld [vmem:[%s4207_s29 + $0x468] sm:$0xff] }
  0x33   : > { %265 = vst [vmem:[%s4212_s30 + $0x118] sm:$0xff] %v264_v35  ;;  %v338_v8 = vld [vmem:[%s4207_s29 + $0x480] sm:$0xff]  ;;  %v340_v9 = vld [vmem:[%s4207_s29 + $0x488] sm:$0xff] }
  0x34   : > { %267 = vst [vmem:[%s4212_s30 + $0x120] sm:$0xff] %v266_v36  ;;  %v342_v10 = vld [vmem:[%s4207_s29 + $0x4a0] sm:$0xff]  ;;  %v344_v11 = vld [vmem:[%s4207_s29 + $0x4a8] sm:$0xff] }
  0x35   : > { %269 = vst [vmem:[%s4212_s30 + $0x128] sm:$0xff] %v268_v37  ;;  %v346_v12 = vld [vmem:[%s4207_s29 + $0x4c0] sm:$0xff]  ;;  %v348_v13 = vld [vmem:[%s4207_s29 + $0x4c8] sm:$0xff] }
  0x36   : > { %271 = vst [vmem:[%s4212_s30 + $0x130] sm:$0xff] %v270_v38  ;;  %v350_v14 = vld [vmem:[%s4207_s29 + $0x4e0] sm:$0xff]  ;;  %v352_v15 = vld [vmem:[%s4207_s29 + $0x4e8] sm:$0xff] }
  0x37   : > { %273 = vst [vmem:[%s4212_s30 + $0x138] sm:$0xff] %v272_v39  ;;  %v354_v16 = vld [vmem:[%s4207_s29 + $0x500] sm:$0xff]  ;;  %v356_v17 = vld [vmem:[%s4207_s29 + $0x508] sm:$0xff] }
  0x38   : > { %275 = vst [vmem:[%s4212_s30 + $0x140] sm:$0xff] %v274_v40  ;;  %v358_v18 = vld [vmem:[%s4207_s29 + $0x520] sm:$0xff]  ;;  %v360_v19 = vld [vmem:[%s4207_s29 + $0x528] sm:$0xff] }
  0x39   : > { %277 = vst [vmem:[%s4212_s30 + $0x148] sm:$0xff] %v276_v41  ;;  %v362_v20 = vld [vmem:[%s4207_s29 + $0x540] sm:$0xff]  ;;  %v364_v21 = vld [vmem:[%s4207_s29 + $0x548] sm:$0xff] }
  0x3a   : > { %279 = vst [vmem:[%s4212_s30 + $0x150] sm:$0xff] %v278_v42  ;;  %v366_v22 = vld [vmem:[%s4207_s29 + $0x560] sm:$0xff]  ;;  %v368_v23 = vld [vmem:[%s4207_s29 + $0x568] sm:$0xff] }
  0x3b   : > { %281 = vst [vmem:[%s4212_s30 + $0x158] sm:$0xff] %v280_v43  ;;  %v370_v24 = vld [vmem:[%s4207_s29 + $0x580] sm:$0xff]  ;;  %v372_v25 = vld [vmem:[%s4207_s29 + $0x588] sm:$0xff] }
  0x3c   : > { %283 = vst [vmem:[%s4212_s30 + $0x160] sm:$0xff] %v282_v44  ;;  %v374_v26 = vld [vmem:[%s4207_s29 + $0x5a0] sm:$0xff]  ;;  %v376_v27 = vld [vmem:[%s4207_s29 + $0x5a8] sm:$0xff] }
  0x3d   : > { %285 = vst [vmem:[%s4212_s30 + $0x168] sm:$0xff] %v284_v45  ;;  %v378_v28 = vld [vmem:[%s4207_s29 + $0x5c0] sm:$0xff]  ;;  %v380_v29 = vld [vmem:[%s4207_s29 + $0x5c8] sm:$0xff] }
  0x3e   : > { %287 = vst [vmem:[%s4212_s30 + $0x170] sm:$0xff] %v286_v46  ;;  %v382_v30 = vld [vmem:[%s4207_s29 + $0x5e0] sm:$0xff]  ;;  %v384_v31 = vld [vmem:[%s4207_s29 + $0x5e8] sm:$0xff] }
  0x3f   : > { %289 = vst [vmem:[%s4212_s30 + $0x178] sm:$0xff] %v288_v47  ;;  %v386_v32 = vld [vmem:[%s4207_s29 + $0x600] sm:$0xff]  ;;  %v388_v33 = vld [vmem:[%s4207_s29 + $0x608] sm:$0xff] }
  0x40   : > { %291 = vst [vmem:[%s4212_s30 + $0x180] sm:$0xff] %v290_v48  ;;  %v390_v34 = vld [vmem:[%s4207_s29 + $0x620] sm:$0xff]  ;;  %v392_v35 = vld [vmem:[%s4207_s29 + $0x628] sm:$0xff] }
  0x41   : > { %293 = vst [vmem:[%s4212_s30 + $0x188] sm:$0xff] %v292_v49  ;;  %v394_v36 = vld [vmem:[%s4207_s29 + $0x640] sm:$0xff]  ;;  %v396_v37 = vld [vmem:[%s4207_s29 + $0x648] sm:$0xff] }
  0x42   : > { %295 = vst [vmem:[%s4212_s30 + $0x190] sm:$0xff] %v294_v50  ;;  %v398_v38 = vld [vmem:[%s4207_s29 + $0x660] sm:$0xff]  ;;  %v400_v39 = vld [vmem:[%s4207_s29 + $0x668] sm:$0xff] }
  0x43   : > { %297 = vst [vmem:[%s4212_s30 + $0x198] sm:$0xff] %v296_v51  ;;  %v402_v40 = vld [vmem:[%s4207_s29 + $0x680] sm:$0xff]  ;;  %v404_v41 = vld [vmem:[%s4207_s29 + $0x688] sm:$0xff] }
  0x44   : > { %299 = vst [vmem:[%s4212_s30 + $0x1a0] sm:$0xff] %v298_v52  ;;  %v406_v42 = vld [vmem:[%s4207_s29 + $0x6a0] sm:$0xff]  ;;  %v408_v43 = vld [vmem:[%s4207_s29 + $0x6a8] sm:$0xff] }
  0x45   : > { %301 = vst [vmem:[%s4212_s30 + $0x1a8] sm:$0xff] %v300_v53  ;;  %v410_v44 = vld [vmem:[%s4207_s29 + $0x6c0] sm:$0xff]  ;;  %v412_v45 = vld [vmem:[%s4207_s29 + $0x6c8] sm:$0xff] }
  0x46   : > { %303 = vst [vmem:[%s4212_s30 + $0x1b0] sm:$0xff] %v302_v54  ;;  %v414_v46 = vld [vmem:[%s4207_s29 + $0x6e0] sm:$0xff]  ;;  %v416_v47 = vld [vmem:[%s4207_s29 + $0x6e8] sm:$0xff] }
  0x47   : > { %305 = vst [vmem:[%s4212_s30 + $0x1b8] sm:$0xff] %v304_v55  ;;  %v418_v48 = vld [vmem:[%s4207_s29 + $0x700] sm:$0xff]  ;;  %v420_v49 = vld [vmem:[%s4207_s29 + $0x708] sm:$0xff] }
  0x48   : > { %307 = vst [vmem:[%s4212_s30 + $0x1c0] sm:$0xff] %v306_v56  ;;  %v422_v50 = vld [vmem:[%s4207_s29 + $0x720] sm:$0xff]  ;;  %v424_v51 = vld [vmem:[%s4207_s29 + $0x728] sm:$0xff] }
  0x49   : > { %309 = vst [vmem:[%s4212_s30 + $0x1c8] sm:$0xff] %v308_v57  ;;  %v426_v52 = vld [vmem:[%s4207_s29 + $0x740] sm:$0xff]  ;;  %v428_v53 = vld [vmem:[%s4207_s29 + $0x748] sm:$0xff] }
  0x4a   : > { %311 = vst [vmem:[%s4212_s30 + $0x1d0] sm:$0xff] %v310_v58  ;;  %v430_v54 = vld [vmem:[%s4207_s29 + $0x760] sm:$0xff]  ;;  %v432_v55 = vld [vmem:[%s4207_s29 + $0x768] sm:$0xff] }
  0x4b   : > { %313 = vst [vmem:[%s4212_s30 + $0x1d8] sm:$0xff] %v312_v59  ;;  %v434_v56 = vld [vmem:[%s4207_s29 + $0x780] sm:$0xff]  ;;  %v436_v57 = vld [vmem:[%s4207_s29 + $0x788] sm:$0xff] }
  0x4c   : > { %315 = vst [vmem:[%s4212_s30 + $0x1e0] sm:$0xff] %v314_v60  ;;  %v438_v58 = vld [vmem:[%s4207_s29 + $0x7a0] sm:$0xff]  ;;  %v440_v59 = vld [vmem:[%s4207_s29 + $0x7a8] sm:$0xff] }
  0x4d   : > { %317 = vst [vmem:[%s4212_s30 + $0x1e8] sm:$0xff] %v316_v61  ;;  %v442_v60 = vld [vmem:[%s4207_s29 + $0x7c0] sm:$0xff]  ;;  %v444_v61 = vld [vmem:[%s4207_s29 + $0x7c8] sm:$0xff] }
  0x4e   : > { %319 = vst [vmem:[%s4212_s30 + $0x1f0] sm:$0xff] %v318_v62  ;;  %v446_v62 = vld [vmem:[%s4207_s29 + $0x7e0] sm:$0xff] }
  0x4f   : > { %321 = vst [vmem:[%s4212_s30 + $0x1f8] sm:$0xff] %v320_v63  ;;  %v448_v63 = vld [vmem:[%s4207_s29 + $0x7e8] sm:$0xff] }
  0x50   : > { %323 = vst [vmem:[%s4212_s30 + $0x200] sm:$0xff] %v322_v0 }
  0x51   : > { %325 = vst [vmem:[%s4212_s30 + $0x208] sm:$0xff] %v324_v1 }
  0x52   : > { %327 = vst [vmem:[%s4212_s30 + $0x210] sm:$0xff] %v326_v2 }
  0x53   : > { %329 = vst [vmem:[%s4212_s30 + $0x218] sm:$0xff] %v328_v3 }
  0x54   : > { %331 = vst [vmem:[%s4212_s30 + $0x220] sm:$0xff] %v330_v4 }
  0x55   : > { %333 = vst [vmem:[%s4212_s30 + $0x228] sm:$0xff] %v332_v5 }
  0x56   : > { %335 = vst [vmem:[%s4212_s30 + $0x230] sm:$0xff] %v334_v6 }
  0x57   : > { %337 = vst [vmem:[%s4212_s30 + $0x238] sm:$0xff] %v336_v7 }
  0x58   : > { %339 = vst [vmem:[%s4212_s30 + $0x240] sm:$0xff] %v338_v8 }
  0x59   : > { %341 = vst [vmem:[%s4212_s30 + $0x248] sm:$0xff] %v340_v9 }
  0x5a   : > { %343 = vst [vmem:[%s4212_s30 + $0x250] sm:$0xff] %v342_v10 }
  0x5b   : > { %345 = vst [vmem:[%s4212_s30 + $0x258] sm:$0xff] %v344_v11 }
  0x5c   : > { %347 = vst [vmem:[%s4212_s30 + $0x260] sm:$0xff] %v346_v12 }
  0x5d   : > { %349 = vst [vmem:[%s4212_s30 + $0x268] sm:$0xff] %v348_v13 }
  0x5e   : > { %351 = vst [vmem:[%s4212_s30 + $0x270] sm:$0xff] %v350_v14 }
  0x5f   : > { %353 = vst [vmem:[%s4212_s30 + $0x278] sm:$0xff] %v352_v15 }
  0x60   : > { %355 = vst [vmem:[%s4212_s30 + $0x280] sm:$0xff] %v354_v16 }
  0x61   : > { %357 = vst [vmem:[%s4212_s30 + $0x288] sm:$0xff] %v356_v17 }
  0x62   : > { %359 = vst [vmem:[%s4212_s30 + $0x290] sm:$0xff] %v358_v18 }
  0x63   : > { %361 = vst [vmem:[%s4212_s30 + $0x298] sm:$0xff] %v360_v19 }
  0x64   : > { %363 = vst [vmem:[%s4212_s30 + $0x2a0] sm:$0xff] %v362_v20 }
  0x65   : > { %365 = vst [vmem:[%s4212_s30 + $0x2a8] sm:$0xff] %v364_v21 }
  0x66   : > { %367 = vst [vmem:[%s4212_s30 + $0x2b0] sm:$0xff] %v366_v22 }
  0x67   : > { %369 = vst [vmem:[%s4212_s30 + $0x2b8] sm:$0xff] %v368_v23 }
  0x68   : > { %371 = vst [vmem:[%s4212_s30 + $0x2c0] sm:$0xff] %v370_v24 }
  0x69   : > { %373 = vst [vmem:[%s4212_s30 + $0x2c8] sm:$0xff] %v372_v25 }
  0x6a   : > { %375 = vst [vmem:[%s4212_s30 + $0x2d0] sm:$0xff] %v374_v26 }
  0x6b   : > { %377 = vst [vmem:[%s4212_s30 + $0x2d8] sm:$0xff] %v376_v27 }
  0x6c   : > { %379 = vst [vmem:[%s4212_s30 + $0x2e0] sm:$0xff] %v378_v28 }
  0x6d   : > { %381 = vst [vmem:[%s4212_s30 + $0x2e8] sm:$0xff] %v380_v29 }
  0x6e   : > { %383 = vst [vmem:[%s4212_s30 + $0x2f0] sm:$0xff] %v382_v30 }
  0x6f   : > { %385 = vst [vmem:[%s4212_s30 + $0x2f8] sm:$0xff] %v384_v31 }
  0x70   : > { %387 = vst [vmem:[%s4212_s30 + $0x300] sm:$0xff] %v386_v32 }
  0x71   : > { %389 = vst [vmem:[%s4212_s30 + $0x308] sm:$0xff] %v388_v33 }
  0x72   : > { %391 = vst [vmem:[%s4212_s30 + $0x310] sm:$0xff] %v390_v34 }
  0x73   : > { %393 = vst [vmem:[%s4212_s30 + $0x318] sm:$0xff] %v392_v35 }
  0x74   : > { %395 = vst [vmem:[%s4212_s30 + $0x320] sm:$0xff] %v394_v36 }
  0x75   : > { %397 = vst [vmem:[%s4212_s30 + $0x328] sm:$0xff] %v396_v37 }
  0x76   : > { %399 = vst [vmem:[%s4212_s30 + $0x330] sm:$0xff] %v398_v38 }
  0x77   : > { %401 = vst [vmem:[%s4212_s30 + $0x338] sm:$0xff] %v400_v39 }
  0x78   : > { %403 = vst [vmem:[%s4212_s30 + $0x340] sm:$0xff] %v402_v40 }
  0x79   : > { %405 = vst [vmem:[%s4212_s30 + $0x348] sm:$0xff] %v404_v41 }
  0x7a   : > { %407 = vst [vmem:[%s4212_s30 + $0x350] sm:$0xff] %v406_v42 }
  0x7b   : > { %409 = vst [vmem:[%s4212_s30 + $0x358] sm:$0xff] %v408_v43 }
  0x7c   : > { %411 = vst [vmem:[%s4212_s30 + $0x360] sm:$0xff] %v410_v44 }
  0x7d   : > { %413 = vst [vmem:[%s4212_s30 + $0x368] sm:$0xff] %v412_v45 }
  0x7e   : > { %415 = vst [vmem:[%s4212_s30 + $0x370] sm:$0xff] %v414_v46 }
  0x7f   : > { %417 = vst [vmem:[%s4212_s30 + $0x378] sm:$0xff] %v416_v47 }
  0x80   : > { %419 = vst [vmem:[%s4212_s30 + $0x380] sm:$0xff] %v418_v48 }
  0x81   : > { %421 = vst [vmem:[%s4212_s30 + $0x388] sm:$0xff] %v420_v49 }
  0x82   : > { %423 = vst [vmem:[%s4212_s30 + $0x390] sm:$0xff] %v422_v50 }
  0x83   : > { %425 = vst [vmem:[%s4212_s30 + $0x398] sm:$0xff] %v424_v51 }
  0x84   : > { %427 = vst [vmem:[%s4212_s30 + $0x3a0] sm:$0xff] %v426_v52 }
  0x85   : > { %429 = vst [vmem:[%s4212_s30 + $0x3a8] sm:$0xff] %v428_v53 }
  0x86   : > { %431 = vst [vmem:[%s4212_s30 + $0x3b0] sm:$0xff] %v430_v54 }
  0x87   : > { %433 = vst [vmem:[%s4212_s30 + $0x3b8] sm:$0xff] %v432_v55 }
  0x88   : > { %435 = vst [vmem:[%s4212_s30 + $0x3c0] sm:$0xff] %v434_v56 }
  0x89   : > { %437 = vst [vmem:[%s4212_s30 + $0x3c8] sm:$0xff] %v436_v57 }
  0x8a   : > { %439 = vst [vmem:[%s4212_s30 + $0x3d0] sm:$0xff] %v438_v58 }
  0x8b   : > { %441 = vst [vmem:[%s4212_s30 + $0x3d8] sm:$0xff] %v440_v59 }
  0x8c   : > { %443 = vst [vmem:[%s4212_s30 + $0x3e0] sm:$0xff] %v442_v60 }
  0x8d   : > { %445 = vst [vmem:[%s4212_s30 + $0x3e8] sm:$0xff] %v444_v61 }
  0x8e   : > { %447 = vst [vmem:[%s4212_s30 + $0x3f0] sm:$0xff] %v446_v62 }
  0x8f   : > { %449 = vst [vmem:[%s4212_s30 + $0x3f8] sm:$0xff] %v448_v63 }
  0x90 PF: > { %p3244_p6 = scmp.ge.s32.totalorder %s4136_s19, 1  ;;  %p463_p7 = scmp.lt.s32.totalorder %s4136_s19, 3 }
  0x92   : > { %p464_p8 = pnand %p3244_p6, %p463_p7 }
  0x93   : > { %s470_s5 = sand.u32 (!%p464_p8), 1, %s4120_s15   ;;  %s3246_s6 = sshll.u32 (!%p464_p8), %s4128_s17, 6 }
  0x94   : > { %467 = sbr.rel (%p464_p8) target bundleno = 1157 (0x485), region = 55  ;;  %s3245_s7 = sshll.u32 (!%p464_p8), %s470_s5, 10 }
  0x95   : > { %p503_p9 = scmp.lt.s32.totalorder (!%p464_p8), %s3246_s6, 127  ;;  %s4476_s12 = scalar_lea.vmem (!%p464_p8), [#allocation2], %s3245_s7 }
  0x96   : > { %p3248_p10 = scmp.ne.s32.totalorder (!%p464_p8), %s4128_s17, 0 }
  0x99   : > { %s6413_s6 = smov (!%p503_p9, %s3246_s6), 127  ;;  %517 = sbr.rel (%p3248_p10) target bundleno = 223 (0xdf), region = 63 }
  0x9a   : > { %s3247_s8 = sshll.u32 %s6413_s6, 2 }
  0x9b   : > { %s4474_s11 = scalar_lea.vmem %s6330_s1, %s3247_s8 }
  0x9e   : > { %v4138_v0 = vmov 0.0  }
  0x9f   : > { %518 = vst [vmem:[%s6333_s4] sm:$0xff] %v4138_v0 }
  0xa0   : > { %519 = vst [vmem:[%s6333_s4 + $0x8] sm:$0xff] %v4138_v0 }
  0xa1   : > { %520 = vst [vmem:[%s6333_s4 + $0x10] sm:$0xff] %v4138_v0 }
  0xa2   : > { %521 = vst [vmem:[%s6333_s4 + $0x18] sm:$0xff] %v4138_v0 }
  0xa3   : > { %522 = vst [vmem:[%s6333_s4 + $0x20] sm:$0xff] %v4138_v0 }
  0xa4   : > { %523 = vst [vmem:[%s6333_s4 + $0x28] sm:$0xff] %v4138_v0 }
  0xa5   : > { %524 = vst [vmem:[%s6333_s4 + $0x30] sm:$0xff] %v4138_v0 }
  0xa6   : > { %525 = vst [vmem:[%s6333_s4 + $0x38] sm:$0xff] %v4138_v0 }
  0xa7   : > { %526 = vst [vmem:[%s6333_s4 + $0x40] sm:$0xff] %v4138_v0 }
  0xa8   : > { %527 = vst [vmem:[%s6333_s4 + $0x48] sm:$0xff] %v4138_v0 }
  0xa9   : > { %528 = vst [vmem:[%s6333_s4 + $0x50] sm:$0xff] %v4138_v0 }
  0xaa   : > { %529 = vst [vmem:[%s6333_s4 + $0x58] sm:$0xff] %v4138_v0 }
  0xab   : > { %530 = vst [vmem:[%s6333_s4 + $0x60] sm:$0xff] %v4138_v0 }
  0xac   : > { %531 = vst [vmem:[%s6333_s4 + $0x68] sm:$0xff] %v4138_v0 }
  0xad   : > { %532 = vst [vmem:[%s6333_s4 + $0x70] sm:$0xff] %v4138_v0 }
  0xae   : > { %533 = vst [vmem:[%s6333_s4 + $0x78] sm:$0xff] %v4138_v0 }
  0xaf   : > { %534 = vst [vmem:[%s6333_s4 + $0x80] sm:$0xff] %v4138_v0 }
  0xb0   : > { %535 = vst [vmem:[%s6333_s4 + $0x88] sm:$0xff] %v4138_v0 }
  0xb1   : > { %536 = vst [vmem:[%s6333_s4 + $0x90] sm:$0xff] %v4138_v0 }
  0xb2   : > { %537 = vst [vmem:[%s6333_s4 + $0x98] sm:$0xff] %v4138_v0 }
  0xb3   : > { %538 = vst [vmem:[%s6333_s4 + $0xa0] sm:$0xff] %v4138_v0 }
  0xb4   : > { %539 = vst [vmem:[%s6333_s4 + $0xa8] sm:$0xff] %v4138_v0 }
  0xb5   : > { %540 = vst [vmem:[%s6333_s4 + $0xb0] sm:$0xff] %v4138_v0 }
  0xb6   : > { %541 = vst [vmem:[%s6333_s4 + $0xb8] sm:$0xff] %v4138_v0 }
  0xb7   : > { %542 = vst [vmem:[%s6333_s4 + $0xc0] sm:$0xff] %v4138_v0 }
  0xb8   : > { %543 = vst [vmem:[%s6333_s4 + $0xc8] sm:$0xff] %v4138_v0 }
  0xb9   : > { %544 = vst [vmem:[%s6333_s4 + $0xd0] sm:$0xff] %v4138_v0 }
  0xba   : > { %545 = vst [vmem:[%s6333_s4 + $0xd8] sm:$0xff] %v4138_v0 }
  0xbb   : > { %546 = vst [vmem:[%s6333_s4 + $0xe0] sm:$0xff] %v4138_v0 }
  0xbc   : > { %547 = vst [vmem:[%s6333_s4 + $0xe8] sm:$0xff] %v4138_v0 }
  0xbd   : > { %548 = vst [vmem:[%s6333_s4 + $0xf0] sm:$0xff] %v4138_v0 }
  0xbe   : > { %549 = vst [vmem:[%s6333_s4 + $0xf8] sm:$0xff] %v4138_v0 }
  0xbf   : > { %550 = vst [vmem:[%s6333_s4 + $0x100] sm:$0xff] %v4138_v0 }
  0xc0   : > { %551 = vst [vmem:[%s6333_s4 + $0x108] sm:$0xff] %v4138_v0 }
  0xc1   : > { %552 = vst [vmem:[%s6333_s4 + $0x110] sm:$0xff] %v4138_v0 }
  0xc2   : > { %553 = vst [vmem:[%s6333_s4 + $0x118] sm:$0xff] %v4138_v0 }
  0xc3   : > { %554 = vst [vmem:[%s6333_s4 + $0x120] sm:$0xff] %v4138_v0 }
  0xc4   : > { %555 = vst [vmem:[%s6333_s4 + $0x128] sm:$0xff] %v4138_v0 }
  0xc5   : > { %556 = vst [vmem:[%s6333_s4 + $0x130] sm:$0xff] %v4138_v0 }
  0xc6   : > { %557 = vst [vmem:[%s6333_s4 + $0x138] sm:$0xff] %v4138_v0 }
  0xc7   : > { %558 = vst [vmem:[%s6333_s4 + $0x140] sm:$0xff] %v4138_v0 }
  0xc8   : > { %559 = vst [vmem:[%s6333_s4 + $0x148] sm:$0xff] %v4138_v0 }
  0xc9   : > { %560 = vst [vmem:[%s6333_s4 + $0x150] sm:$0xff] %v4138_v0 }
  0xca   : > { %561 = vst [vmem:[%s6333_s4 + $0x158] sm:$0xff] %v4138_v0 }
  0xcb   : > { %562 = vst [vmem:[%s6333_s4 + $0x160] sm:$0xff] %v4138_v0 }
  0xcc   : > { %563 = vst [vmem:[%s6333_s4 + $0x168] sm:$0xff] %v4138_v0 }
  0xcd   : > { %564 = vst [vmem:[%s6333_s4 + $0x170] sm:$0xff] %v4138_v0 }
  0xce   : > { %565 = vst [vmem:[%s6333_s4 + $0x178] sm:$0xff] %v4138_v0 }
  0xcf   : > { %566 = vst [vmem:[%s6333_s4 + $0x180] sm:$0xff] %v4138_v0 }
  0xd0   : > { %567 = vst [vmem:[%s6333_s4 + $0x188] sm:$0xff] %v4138_v0 }
  0xd1   : > { %568 = vst [vmem:[%s6333_s4 + $0x190] sm:$0xff] %v4138_v0 }
  0xd2   : > { %569 = vst [vmem:[%s6333_s4 + $0x198] sm:$0xff] %v4138_v0 }
  0xd3   : > { %570 = vst [vmem:[%s6333_s4 + $0x1a0] sm:$0xff] %v4138_v0 }
  0xd4   : > { %571 = vst [vmem:[%s6333_s4 + $0x1a8] sm:$0xff] %v4138_v0 }
  0xd5   : > { %572 = vst [vmem:[%s6333_s4 + $0x1b0] sm:$0xff] %v4138_v0 }
  0xd6   : > { %573 = vst [vmem:[%s6333_s4 + $0x1b8] sm:$0xff] %v4138_v0 }
  0xd7   : > { %574 = vst [vmem:[%s6333_s4 + $0x1c0] sm:$0xff] %v4138_v0 }
  0xd8   : > { %575 = vst [vmem:[%s6333_s4 + $0x1c8] sm:$0xff] %v4138_v0 }
  0xd9   : > { %576 = vst [vmem:[%s6333_s4 + $0x1d0] sm:$0xff] %v4138_v0 }
  0xda   : > { %577 = vst [vmem:[%s6333_s4 + $0x1d8] sm:$0xff] %v4138_v0 }
  0xdb   : > { %578 = vst [vmem:[%s6333_s4 + $0x1e0] sm:$0xff] %v4138_v0 }
  0xdc   : > { %579 = vst [vmem:[%s6333_s4 + $0x1e8] sm:$0xff] %v4138_v0 }
  0xdd   : > { %580 = vst [vmem:[%s6333_s4 + $0x1f0] sm:$0xff] %v4138_v0 }
  0xde   : > { %581 = vst [vmem:[%s6333_s4 + $0x1f8] sm:$0xff] %v4138_v0 }
  0xdf PF: > { %v4030_v1 = vld [vmem:[%s4474_s11 + $0x38] sm:$0xff]  ;;  %v4029_v5 = vld [vmem:[%s4474_s11 + $0x30] sm:$0xff]  ;;  %v4028_v9 = vld [vmem:[%s4474_s11 + $0x28] sm:$0xff]  ;;  %p3889_p11 = scmp.ne.s32.totalorder %s4128_s17, 1 }
  0xe0   : > { %v4038_v2 = vld [vmem:[%s4474_s11 + $0x78] sm:$0xff]  ;;  %1670 = vmatpush.bf16.msra.mxu0 %v4030_v1  ;;  %v4037_v6 = vld [vmem:[%s4474_s11 + $0x70] sm:$0xff]  ;;  %v4036_v10 = vld [vmem:[%s4474_s11 + $0x68] sm:$0xff] }
  0xe1   : > { %v4046_v3 = vld [vmem:[%s4474_s11 + $0xb8] sm:$0xff]  ;;  %1839 = vmatpush.bf16.msra.mxu1 %v4038_v2  ;;  %v4045_v7 = vld [vmem:[%s4474_s11 + $0xb0] sm:$0xff]  ;;  %v4044_v11 = vld [vmem:[%s4474_s11 + $0xa8] sm:$0xff] }
  0xe2   : > { %v4054_v4 = vld [vmem:[%s4474_s11 + $0xf8] sm:$0xff]  ;;  %2008 = vmatpush.bf16.msra.mxu2 %v4046_v3  ;;  %v4053_v8 = vld [vmem:[%s4474_s11 + $0xf0] sm:$0xff]  ;;  %v4052_v12 = vld [vmem:[%s4474_s11 + $0xe8] sm:$0xff] }
  0xe3   : > { %2177 = vmatpush.bf16.msra.mxu3 %v4054_v4  ;;  %v4027_v13 = vld [vmem:[%s4474_s11 + $0x20] sm:$0xff]  ;;  %v4026_v17 = vld [vmem:[%s4474_s11 + $0x18] sm:$0xff]  ;;  %v4025_v21 = vld [vmem:[%s4474_s11 + $0x10] sm:$0xff] }
  0xe4   : > { %1671 = vmatpush.bf16.msra.mxu0 %v4029_v5  ;;  %v4035_v14 = vld [vmem:[%s4474_s11 + $0x60] sm:$0xff]  ;;  %v4034_v18 = vld [vmem:[%s4474_s11 + $0x58] sm:$0xff]  ;;  %v4033_v22 = vld [vmem:[%s4474_s11 + $0x50] sm:$0xff] }
  0xe5   : > { %1840 = vmatpush.bf16.msra.mxu1 %v4037_v6  ;;  %v4043_v15 = vld [vmem:[%s4474_s11 + $0xa0] sm:$0xff]  ;;  %v4042_v19 = vld [vmem:[%s4474_s11 + $0x98] sm:$0xff]  ;;  %v4041_v23 = vld [vmem:[%s4474_s11 + $0x90] sm:$0xff] }
  0xe6   : > { %2009 = vmatpush.bf16.msra.mxu2 %v4045_v7  ;;  %v4051_v16 = vld [vmem:[%s4474_s11 + $0xe0] sm:$0xff]  ;;  %v4050_v20 = vld [vmem:[%s4474_s11 + $0xd8] sm:$0xff]  ;;  %v4049_v24 = vld [vmem:[%s4474_s11 + $0xd0] sm:$0xff] }
  0xe7   : > { %2178 = vmatpush.bf16.msra.mxu3 %v4053_v8  ;;  %v4024_v25 = vld [vmem:[%s4474_s11 + $0x8] sm:$0xff]  ;;  %v4023_v29 = vld [vmem:[%s4474_s11] sm:$0xff]  ;;  %v3897_v34 = vld [vmem:[%s4476_s12 + $0xc] sm:$0xf0] }
  0xe8   : > { %1672 = vmatpush.bf16.msra.mxu0 %v4028_v9  ;;  %v4032_v26 = vld [vmem:[%s4474_s11 + $0x48] sm:$0xff]  ;;  %v4031_v30 = vld [vmem:[%s4474_s11 + $0x40] sm:$0xff]  ;;  %v3253_v36 = vld [vmem:[%s4476_s12 + $0x10] sm:$0xf0] }
  0xe9   : > { %1841 = vmatpush.bf16.msra.mxu1 %v4036_v10  ;;  %v4040_v27 = vld [vmem:[%s4474_s11 + $0x88] sm:$0xff]  ;;  %v4039_v31 = vld [vmem:[%s4474_s11 + $0x80] sm:$0xff]  ;;  %v3898_v38 = vld [vmem:[%s4476_s12 + $0x14] sm:$0xf0] }
  0xea   : > { %2010 = vmatpush.bf16.msra.mxu2 %v4044_v11  ;;  %v4048_v28 = vld [vmem:[%s4474_s11 + $0xc8] sm:$0xff]  ;;  %v4047_v32 = vld [vmem:[%s4474_s11 + $0xc0] sm:$0xff]  ;;  %v3261_v40 = vld [vmem:[%s4476_s12 + $0x18] sm:$0xf0] }
  0xeb   : > { %2179 = vmatpush.bf16.msra.mxu3 %v4052_v12  ;;  %v3251_v33 = vld [vmem:[%s4476_s12] sm:$0xf]  ;;  %v3895_v35 = vld [vmem:[%s4476_s12 + $0x4] sm:$0xf]  ;;  %v3259_v37 = vld [vmem:[%s4476_s12 + $0x8] sm:$0xf] }
  0xec   : > { %1673 = vmatpush.bf16.msra.mxu0 %v4027_v13  ;;  %v3896_v39 = vld [vmem:[%s4476_s12 + $0xc] sm:$0xf]  ;;  %v3252_v41 = vor.u32 %v3897_v34, %v3251_v33  ;;  %v3256_v42 = vor.u32 %v3895_v35, %v3253_v36  ;;  %v3260_v43 = vor.u32 %v3898_v38, %v3259_v37  ;;  %v3267_v45 = vld [vmem:[%s4476_s12 + $0x20] sm:$0xf]  ;;  %v3901_v46 = vld [vmem:[%s4476_s12 + $0x2c] sm:$0xf0] }
  0xed   : > { %1842 = vmatpush.bf16.msra.mxu1 %v4035_v14  ;;  %v3264_v44 = vor.u32 %v3896_v39, %v3261_v40  ;;  %v3899_v47 = vld [vmem:[%s4476_s12 + $0x24] sm:$0xf]  ;;  %v3269_v48 = vld [vmem:[%s4476_s12 + $0x30] sm:$0xf0]  ;;  %v3275_v49 = vld [vmem:[%s4476_s12 + $0x28] sm:$0xf]  ;;  %v3268_v53 = vor.u32 %v3901_v46, %v3267_v45 }
  0xee   : > { %2011 = vmatpush.bf16.msra.mxu2 %v4043_v15  ;;  %v3902_v50 = vld [vmem:[%s4476_s12 + $0x34] sm:$0xf0]  ;;  %v3900_v51 = vld [vmem:[%s4476_s12 + $0x2c] sm:$0xf]  ;;  %v3277_v52 = vld [vmem:[%s4476_s12 + $0x38] sm:$0xf0]  ;;  %v3272_v54 = vor.u32 %v3899_v47, %v3269_v48 }
  0xef   : > { %2180 = vmatpush.bf16.msra.mxu3 %v4051_v16  ;;  %v3276_v55 = vor.u32 %v3902_v50, %v3275_v49  ;;  %v3280_v56 = vor.u32 %v3900_v51, %v3277_v52  ;;  %v3283_v57 = vld [vmem:[%s4476_s12 + $0x40] sm:$0xf]  ;;  %v3905_v58 = vld [vmem:[%s4476_s12 + $0x4c] sm:$0xf0]  ;;  %v3903_v59 = vld [vmem:[%s4476_s12 + $0x44] sm:$0xf] }
  0xf0   : > { %1674 = vmatpush.bf16.msra.mxu0 %v4026_v17  ;;  %v3285_v60 = vld [vmem:[%s4476_s12 + $0x50] sm:$0xf0]  ;;  %v3291_v61 = vld [vmem:[%s4476_s12 + $0x48] sm:$0xf]  ;;  %v3906_v62 = vld [vmem:[%s4476_s12 + $0x54] sm:$0xf0]  ;;  %v3284_v1 = vor.u32 %v3905_v58, %v3283_v57 }
  0xf1   : > { %1843 = vmatpush.bf16.msra.mxu1 %v4034_v18  ;;  %v3904_v63 = vld [vmem:[%s4476_s12 + $0x4c] sm:$0xf]  ;;  %v3293_v0 = vld [vmem:[%s4476_s12 + $0x58] sm:$0xf0]  ;;  %v3288_v2 = vor.u32 %v3903_v59, %v3285_v60  ;;  %v3292_v3 = vor.u32 %v3906_v62, %v3291_v61  ;;  %v3299_v5 = vld [vmem:[%s4476_s12 + $0x60] sm:$0xf] }
  0xf2   : > { %2012 = vmatpush.bf16.msra.mxu2 %v4042_v19  ;;  %v3296_v4 = vor.u32 %v3904_v63, %v3293_v0  ;;  %v3909_v6 = vld [vmem:[%s4476_s12 + $0x6c] sm:$0xf0]  ;;  %v3907_v7 = vld [vmem:[%s4476_s12 + $0x64] sm:$0xf]  ;;  %v3301_v8 = vld [vmem:[%s4476_s12 + $0x70] sm:$0xf0] }
  0xf3   : > { %2181 = vmatpush.bf16.msra.mxu3 %v4050_v20  ;;  %v3307_v9 = vld [vmem:[%s4476_s12 + $0x68] sm:$0xf]  ;;  %v3910_v10 = vld [vmem:[%s4476_s12 + $0x74] sm:$0xf0]  ;;  %v3908_v11 = vld [vmem:[%s4476_s12 + $0x6c] sm:$0xf]  ;;  %v3300_v13 = vor.u32 %v3909_v6, %v3299_v5  ;;  %v3304_v14 = vor.u32 %v3907_v7, %v3301_v8 }
  0xf4   : > { %1675 = vmatpush.bf16.msra.mxu0 %v4025_v21  ;;  %v3309_v12 = vld [vmem:[%s4476_s12 + $0x78] sm:$0xf0]  ;;  %v3308_v15 = vor.u32 %v3910_v10, %v3307_v9  ;;  %v3315_v17 = vld [vmem:[%s4476_s12 + $0x80] sm:$0xf]  ;;  %v3913_v18 = vld [vmem:[%s4476_s12 + $0x8c] sm:$0xf0] }
  0xf5   : > { %1844 = vmatpush.bf16.msra.mxu1 %v4033_v22  ;;  %v3312_v16 = vor.u32 %v3908_v11, %v3309_v12  ;;  %v3911_v19 = vld [vmem:[%s4476_s12 + $0x84] sm:$0xf]  ;;  %v3317_v20 = vld [vmem:[%s4476_s12 + $0x90] sm:$0xf0]  ;;  %v3323_v21 = vld [vmem:[%s4476_s12 + $0x88] sm:$0xf] }
  0xf6   : > { %2013 = vmatpush.bf16.msra.mxu2 %v4041_v23  ;;  %v3914_v22 = vld [vmem:[%s4476_s12 + $0x94] sm:$0xf0]  ;;  %v3912_v23 = vld [vmem:[%s4476_s12 + $0x8c] sm:$0xf]  ;;  %v3339_v33 = vld [vmem:[%s4476_s12 + $0xa8] sm:$0xf] }
  0xf7   : > { %2182 = vmatpush.bf16.msra.mxu3 %v4049_v24  ;;  %v3325_v24 = vld [vmem:[%s4476_s12 + $0x98] sm:$0xf0]  ;;  %v3918_v34 = vld [vmem:[%s4476_s12 + $0xb4] sm:$0xf0]  ;;  %v3916_v35 = vld [vmem:[%s4476_s12 + $0xac] sm:$0xf] }
  0xf8   : > { %1676 = vmatpush.bf16.msra.mxu0 %v4024_v25  ;;  %v3316_v25 = vor.u32 %v3913_v18, %v3315_v17  ;;  %v3341_v36 = vld [vmem:[%s4476_s12 + $0xb8] sm:$0xf0]  ;;  %v3340_v39 = vor.u32 %v3918_v34, %v3339_v33  ;;  %v3355_v45 = vld [vmem:[%s4476_s12 + $0xc8] sm:$0xf]  ;;  %v3922_v46 = vld [vmem:[%s4476_s12 + $0xd4] sm:$0xf0] }
  0xf9   : > { %1845 = vmatpush.bf16.msra.mxu1 %v4032_v26  ;;  %v3320_v26 = vor.u32 %v3911_v19, %v3317_v20  ;;  %v3344_v40 = vor.u32 %v3916_v35, %v3341_v36  ;;  %v3920_v47 = vld [vmem:[%s4476_s12 + $0xcc] sm:$0xf]  ;;  %v3357_v48 = vld [vmem:[%s4476_s12 + $0xd8] sm:$0xf0]  ;;  %v3356_v51 = vor.u32 %v3922_v46, %v3355_v45  ;;  %v3371_v57 = vld [vmem:[%s4476_s12 + $0xe8] sm:$0xf] }
  0xfa   : > { %2014 = vmatpush.bf16.msra.mxu2 %v4040_v27  ;;  %v3324_v27 = vor.u32 %v3914_v22, %v3323_v21  ;;  %v3360_v52 = vor.u32 %v3920_v47, %v3357_v48  ;;  %v3926_v58 = vld [vmem:[%s4476_s12 + $0xf4] sm:$0xf0]  ;;  %v3924_v59 = vld [vmem:[%s4476_s12 + $0xec] sm:$0xf]  ;;  %v3373_v60 = vld [vmem:[%s4476_s12 + $0xf8] sm:$0xf0] }
  0xfb   : > { %2183 = vmatpush.bf16.msra.mxu3 %v4048_v28  ;;  %v3328_v28 = vor.u32 %v3912_v23, %v3325_v24  ;;  %v3372_v63 = vor.u32 %v3926_v58, %v3371_v57  ;;  %v3376_v0 = vor.u32 %v3924_v59, %v3373_v60  ;;  %v3387_v5 = vld [vmem:[%s4476_s12 + $0x108] sm:$0xf]  ;;  %v3930_v6 = vld [vmem:[%s4476_s12 + $0x114] sm:$0xf0]  ;;  %v3928_v7 = vld [vmem:[%s4476_s12 + $0x10c] sm:$0xf] }
  0xfc   : > { %1677 = vmatpush.bf16.msra.mxu0 %v4023_v29  ;;  %v3331_v29 = vld [vmem:[%s4476_s12 + $0xa0] sm:$0xf]  ;;  %v3389_v8 = vld [vmem:[%s4476_s12 + $0x118] sm:$0xf0]  ;;  %v3933_v24 = vld [vmem:[%s4476_s12 + $0x12c] sm:$0xf0] }
  0xfd   : > { %1846 = vmatpush.bf16.msra.mxu1 %v4031_v30  ;;  %v3917_v30 = vld [vmem:[%s4476_s12 + $0xac] sm:$0xf0]  ;;  %v582_v21 = vld [vmem:[%s6333_s4] sm:$0xff]  ;;  %v3413_v57 = vld [vmem:[%s4476_s12 + $0x150] sm:$0xf0] }
  0xfe   : > { %2015 = vmatpush.bf16.msra.mxu2 %v4039_v31  ;;  %v3915_v31 = vld [vmem:[%s4476_s12 + $0xa4] sm:$0xf]  ;;  %v3332_v37 = vor.u32 %v3917_v30, %v3331_v29  ;;  %v3395_v23 = vld [vmem:[%s4476_s12 + $0x120] sm:$0xf]  ;;  %v3934_v29 = vld [vmem:[%s4476_s12 + $0x134] sm:$0xf0] }
  0xff   : > { %2184 = vmatpush.bf16.msra.mxu3 %v4047_v32  ;;  %1678 = vmatmul.bf16.vlgmr.msra.gmra.mxu0 %v3252_v41  ;;  %v3333_v32 = vld [vmem:[%s4476_s12 + $0xb0] sm:$0xf0]  ;;  %v3347_v41 = vld [vmem:[%s4476_s12 + $0xc0] sm:$0xf]  ;;  %v3932_v30 = vld [vmem:[%s4476_s12 + $0x12c] sm:$0xf]  ;;  %v3396_v35 = vor.u32 %v3933_v24, %v3395_v23 }
 0x100   : > { %1847 = vmatmul.bf16.vlgmr.msra.gmra.mxu1 %v3256_v42  ;;  %v3336_v38 = vor.u32 %v3915_v31, %v3333_v32  ;;  %v3921_v42 = vld [vmem:[%s4476_s12 + $0xcc] sm:$0xf0]  ;;  %v3405_v31 = vld [vmem:[%s4476_s12 + $0x138] sm:$0xf0]  ;;  %v3419_v58 = vld [vmem:[%s4476_s12 + $0x148] sm:$0xf] }
 0x101   : > { %2016 = vmatmul.bf16.vlgmr.msra.gmra.mxu2 %v3260_v43  ;;  %v3919_v43 = vld [vmem:[%s4476_s12 + $0xc4] sm:$0xf]  ;;  %v3348_v49 = vor.u32 %v3921_v42, %v3347_v41  ;;  %v3408_v41 = vor.u32 %v3932_v30, %v3405_v31  ;;  %v583_v42 = vld [vmem:[%s6333_s4 + $0x8] sm:$0xff]  ;;  %v3938_v59 = vld [vmem:[%s4476_s12 + $0x154] sm:$0xf0] }
 0x102   : > { %2185 = vmatmul.bf16.vlgmr.msra.gmra.mxu3 %v3264_v44  ;;  %v3349_v44 = vld [vmem:[%s4476_s12 + $0xd0] sm:$0xf0]  ;;  %v3936_v60 = vld [vmem:[%s4476_s12 + $0x14c] sm:$0xf]  ;;  %v3435_v24 = vld [vmem:[%s4476_s12 + $0x168] sm:$0xf] }
 0x103   : > { %v3352_v50 = vor.u32 %v3919_v43, %v3349_v44  ;;  %v3429_v23 = vld [vmem:[%s4476_s12 + $0x170] sm:$0xf0] }
 0x10f   : > { %1683 = vmatmul.bf16.gmra.mxu0 %v3268_v53  ;;  %v3363_v53 = vld [vmem:[%s4476_s12 + $0xe0] sm:$0xf] }
 0x110   : > { %1852 = vmatmul.bf16.gmra.mxu1 %v3272_v54  ;;  %v3925_v54 = vld [vmem:[%s4476_s12 + $0xec] sm:$0xf0] }
 0x111   : > { %2021 = vmatmul.bf16.gmra.mxu2 %v3276_v55  ;;  %v3923_v55 = vld [vmem:[%s4476_s12 + $0xe4] sm:$0xf]  ;;  %v3364_v61 = vor.u32 %v3925_v54, %v3363_v53  ;;  %v3411_v53 = vld [vmem:[%s4476_s12 + $0x140] sm:$0xf]  ;;  %v3937_v54 = vld [vmem:[%s4476_s12 + $0x14c] sm:$0xf0] }
 0x112   : > { %2190 = vmatmul.bf16.gmra.mxu3 %v3280_v56  ;;  %v3365_v56 = vld [vmem:[%s4476_s12 + $0xf0] sm:$0xf0] }
 0x113   : > { %v3368_v62 = vor.u32 %v3923_v55, %v3365_v56  ;;  %v3935_v56 = vld [vmem:[%s4476_s12 + $0x144] sm:$0xf] }
 0x11f   : > { %1688 = vmatmul.bf16.gmra.mxu0 %v3284_v1  ;;  %v3379_v1 = vld [vmem:[%s4476_s12 + $0x100] sm:$0xf] }
 0x120   : > { %1857 = vmatmul.bf16.gmra.mxu1 %v3288_v2  ;;  %v3929_v2 = vld [vmem:[%s4476_s12 + $0x10c] sm:$0xf0] }
 0x121   : > { %2026 = vmatmul.bf16.gmra.mxu2 %v3292_v3  ;;  %v3927_v3 = vld [vmem:[%s4476_s12 + $0x104] sm:$0xf]  ;;  %v3380_v9 = vor.u32 %v3929_v2, %v3379_v1  ;;  %v3412_v1 = vor.u32 %v3937_v54, %v3411_v53  ;;  %v3416_v2 = vor.u32 %v3935_v56, %v3413_v57  ;;  %v3445_v53 = vld [vmem:[%s4476_s12 + $0x190] sm:$0xf0]  ;;  %v3451_v54 = vld [vmem:[%s4476_s12 + $0x188] sm:$0xf] }
 0x122   : > { %2195 = vmatmul.bf16.gmra.mxu3 %v3296_v4  ;;  %v3381_v4 = vld [vmem:[%s4476_s12 + $0x110] sm:$0xf0]  ;;  %v3944_v56 = vld [vmem:[%s4476_s12 + $0x18c] sm:$0xf]  ;;  %v3453_v57 = vld [vmem:[%s4476_s12 + $0x198] sm:$0xf0] }
 0x123   : > { %v3384_v10 = vor.u32 %v3927_v3, %v3381_v4 }
 0x12f   : > { %1693 = vmatmul.bf16.gmra.mxu0 %v3300_v13  ;;  %v3388_v13 = vor.u32 %v3930_v6, %v3387_v5  ;;  %v3420_v6 = vor.u32 %v3938_v59, %v3419_v58 }
 0x130   : > { %1862 = vmatmul.bf16.gmra.mxu1 %v3304_v14  ;;  %v3392_v14 = vor.u32 %v3928_v7, %v3389_v8  ;;  %v585_v8 = vld [vmem:[%s6333_s4 + $0x18] sm:$0xff] }
 0x131   : > { %2031 = vmatmul.bf16.gmra.mxu2 %v3308_v15 }
 0x132   : > { %2200 = vmatmul.bf16.gmra.mxu3 %v3312_v16 }
 0x13f   : > { %1698 = vmatmul.bf16.gmra.mxu0 %v3316_v25 }
 0x140   : > { %1867 = vmatmul.bf16.gmra.mxu1 %v3320_v26  ;;  %v3931_v26 = vld [vmem:[%s4476_s12 + $0x124] sm:$0xf] }
 0x141   : > { %2036 = vmatmul.bf16.gmra.mxu2 %v3324_v27  ;;  %v3397_v27 = vld [vmem:[%s4476_s12 + $0x130] sm:$0xf0] }
 0x142   : > { %2205 = vmatmul.bf16.gmra.mxu3 %v3328_v28  ;;  %v3403_v28 = vld [vmem:[%s4476_s12 + $0x128] sm:$0xf]  ;;  %v3400_v36 = vor.u32 %v3931_v26, %v3397_v27  ;;  %v3940_v26 = vld [vmem:[%s4476_s12 + $0x16c] sm:$0xf]  ;;  %v3437_v27 = vld [vmem:[%s4476_s12 + $0x178] sm:$0xf0] }
 0x14f   : > { %1703 = vmatmul.bf16.gmra.mxu0 %v3332_v37 }
 0x150   : > { %1872 = vmatmul.bf16.gmra.mxu1 %v3336_v38 }
 0x151   : > { %2041 = vmatmul.bf16.gmra.mxu2 %v3340_v39 }
 0x152   : > { %2210 = vmatmul.bf16.gmra.mxu3 %v3344_v40  ;;  %v3404_v40 = vor.u32 %v3934_v29, %v3403_v28 }
 0x15f   : > { %1708 = vmatmul.bf16.gmra.mxu0 %v3348_v49 }
 0x160   : > { %1877 = vmatmul.bf16.gmra.mxu1 %v3352_v50 }
 0x161   : > { %2046 = vmatmul.bf16.gmra.mxu2 %v3356_v51  ;;  %v584_v51 = vld [vmem:[%s6333_s4 + $0x10] sm:$0xff] }
 0x162   : > { %2215 = vmatmul.bf16.gmra.mxu3 %v3360_v52 }
 0x16f   : > { %1713 = vmatmul.bf16.gmra.mxu0 %v3364_v61  ;;  %v3421_v61 = vld [vmem:[%s4476_s12 + $0x158] sm:$0xf0] }
 0x170   : > { %1882 = vmatmul.bf16.gmra.mxu1 %v3368_v62  ;;  %v3424_v7 = vor.u32 %v3936_v60, %v3421_v61 }
 0x171   : > { %2051 = vmatmul.bf16.gmra.mxu2 %v3372_v63 }
 0x172   : > { %2220 = vmatmul.bf16.gmra.mxu3 %v3376_v0 }
 0x17c   : > { %v1679_v11 = vpop.f32.mrf.mxu0 }
 0x17d   : > { %v1848_v12 = vpop.f32.mrf.mxu1 }
 0x17e   : > { %v1849_v15 = vadd.f32 %v1848_v12, %v1679_v11 }
 0x17f   : > { %1718 = vmatmul.bf16.gmra.mxu0 %v3380_v9 }
 0x180   : > { %1887 = vmatmul.bf16.gmra.mxu1 %v3384_v10 }
 0x181   : > { %2056 = vmatmul.bf16.gmra.mxu2 %v3388_v13 }
 0x182   : > { %2225 = vmatmul.bf16.gmra.mxu3 %v3392_v14 }
 0x184   : > { %v2017_v16 = vpop.f32.mrf.mxu2  ;;  %v1681_v19 = vpop.f32.mrf.mxu0 }
 0x185   : > { %v2186_v17 = vpop.f32.mrf.mxu3  ;;  %v2018_v18 = vadd.f32 %v2017_v16, %v1849_v15  ;;  %v1850_v20 = vpop.f32.mrf.mxu1 }
 0x186   : > { %v1851_v32 = vadd.f32 %v1850_v20, %v1681_v19  ;;  %v3427_v19 = vld [vmem:[%s4476_s12 + $0x160] sm:$0xf]  ;;  %v3941_v20 = vld [vmem:[%s4476_s12 + $0x16c] sm:$0xf0] }
 0x187   : > { %v2187_v22 = vadd.f32 %v2186_v17, %v2018_v18  ;;  %v586_v17 = vld [vmem:[%s6333_s4 + $0x20] sm:$0xff]  ;;  %v3428_v31 = vor.u32 %v3941_v20, %v3427_v19  ;;  %v3461_v19 = vld [vmem:[%s4476_s12 + $0x1b0] sm:$0xf0]  ;;  %v3467_v20 = vld [vmem:[%s4476_s12 + $0x1a8] sm:$0xf] }
 0x189   : > { %v2346_v25 = vadd.f32 %v2187_v22, %v582_v21  ;;  %v3939_v22 = vld [vmem:[%s4476_s12 + $0x164] sm:$0xf] }
 0x18b   : > { %2410 = vst [vmem:[%s6333_s4] sm:$0xff] %v2346_v25  ;;  %v3942_v25 = vld [vmem:[%s4476_s12 + $0x174] sm:$0xf0] }
 0x18c   : > { %v2019_v33 = vpop.f32.mrf.mxu2  ;;  %v1684_v38 = vpop.f32.mrf.mxu0 }
 0x18d   : > { %v2188_v34 = vpop.f32.mrf.mxu3  ;;  %v2020_v37 = vadd.f32 %v2019_v33, %v1851_v32  ;;  %v1853_v39 = vpop.f32.mrf.mxu1  ;;  %v3432_v32 = vor.u32 %v3939_v22, %v3429_v23  ;;  %v3948_v22 = vld [vmem:[%s4476_s12 + $0x1ac] sm:$0xf]  ;;  %v3469_v23 = vld [vmem:[%s4476_s12 + $0x1b8] sm:$0xf0] }
 0x18e   : > { %v1854_v45 = vadd.f32 %v1853_v39, %v1684_v38  ;;  %v587_v38 = vld [vmem:[%s6333_s4 + $0x28] sm:$0xff] }
 0x18f   : > { %v2189_v43 = vadd.f32 %v2188_v34, %v2020_v37  ;;  %1723 = vmatmul.bf16.gmra.mxu0 %v3396_v35  ;;  %v3440_v37 = vor.u32 %v3940_v26, %v3437_v27 }
 0x190   : > { %1892 = vmatmul.bf16.gmra.mxu1 %v3400_v36  ;;  %v3436_v36 = vor.u32 %v3942_v25, %v3435_v24 }
 0x191   : > { %v2347_v44 = vadd.f32 %v2189_v43, %v583_v42  ;;  %2061 = vmatmul.bf16.gmra.mxu2 %v3404_v40 }
 0x192   : > { %2230 = vmatmul.bf16.gmra.mxu3 %v3408_v41 }
 0x193   : > { %2411 = vst [vmem:[%s6333_s4 + $0x8] sm:$0xff] %v2347_v44 }
 0x194   : > { %v2022_v46 = vpop.f32.mrf.mxu2  ;;  %v1686_v49 = vpop.f32.mrf.mxu0 }
 0x195   : > { %v2191_v47 = vpop.f32.mrf.mxu3  ;;  %v2023_v48 = vadd.f32 %v2022_v46, %v1854_v45  ;;  %v1855_v50 = vpop.f32.mrf.mxu1 }
 0x196   : > { %v1856_v62 = vadd.f32 %v1855_v50, %v1686_v49  ;;  %v3443_v49 = vld [vmem:[%s4476_s12 + $0x180] sm:$0xf]  ;;  %v3945_v50 = vld [vmem:[%s4476_s12 + $0x18c] sm:$0xf0] }
 0x197   : > { %v2192_v52 = vadd.f32 %v2191_v47, %v2023_v48  ;;  %v588_v47 = vld [vmem:[%s6333_s4 + $0x30] sm:$0xff]  ;;  %v3444_v61 = vor.u32 %v3945_v50, %v3443_v49  ;;  %v3483_v50 = vld [vmem:[%s4476_s12 + $0x1c8] sm:$0xf] }
 0x198   : > { %v3477_v49 = vld [vmem:[%s4476_s12 + $0x1d0] sm:$0xf0] }
 0x199   : > { %v2348_v55 = vadd.f32 %v2192_v52, %v584_v51  ;;  %v3943_v52 = vld [vmem:[%s4476_s12 + $0x184] sm:$0xf] }
 0x19b   : > { %2412 = vst [vmem:[%s6333_s4 + $0x10] sm:$0xff] %v2348_v55  ;;  %v3946_v55 = vld [vmem:[%s4476_s12 + $0x194] sm:$0xf0] }
 0x19c   : > { %v2024_v63 = vpop.f32.mrf.mxu2  ;;  %v1689_v4 = vpop.f32.mrf.mxu0 }
 0x19d   : > { %v2193_v0 = vpop.f32.mrf.mxu3  ;;  %v2025_v3 = vadd.f32 %v2024_v63, %v1856_v62  ;;  %v1858_v5 = vpop.f32.mrf.mxu1  ;;  %v3448_v62 = vor.u32 %v3943_v52, %v3445_v53  ;;  %v3952_v52 = vld [vmem:[%s4476_s12 + $0x1cc] sm:$0xf]  ;;  %v3485_v53 = vld [vmem:[%s4476_s12 + $0x1d8] sm:$0xf0] }
 0x19e   : > { %v1859_v11 = vadd.f32 %v1858_v5, %v1689_v4  ;;  %v589_v4 = vld [vmem:[%s6333_s4 + $0x38] sm:$0xff] }
 0x19f   : > { %v2194_v9 = vadd.f32 %v2193_v0, %v2025_v3  ;;  %1728 = vmatmul.bf16.gmra.mxu0 %v3412_v1  ;;  %v3456_v3 = vor.u32 %v3944_v56, %v3453_v57 }
 0x1a0   : > { %1897 = vmatmul.bf16.gmra.mxu1 %v3416_v2  ;;  %v3452_v2 = vor.u32 %v3946_v55, %v3451_v54 }
 0x1a1   : > { %v2349_v10 = vadd.f32 %v2194_v9, %v585_v8  ;;  %2066 = vmatmul.bf16.gmra.mxu2 %v3420_v6 }
 0x1a2   : > { %2235 = vmatmul.bf16.gmra.mxu3 %v3424_v7 }
 0x1a3   : > { %2413 = vst [vmem:[%s6333_s4 + $0x18] sm:$0xff] %v2349_v10 }
 0x1a4   : > { %v2027_v12 = vpop.f32.mrf.mxu2  ;;  %v1691_v15 = vpop.f32.mrf.mxu0 }
 0x1a5   : > { %v2196_v13 = vpop.f32.mrf.mxu3  ;;  %v2028_v14 = vadd.f32 %v2027_v12, %v1859_v11  ;;  %v1860_v16 = vpop.f32.mrf.mxu1 }
 0x1a6   : > { %v1861_v28 = vadd.f32 %v1860_v16, %v1691_v15  ;;  %v3459_v15 = vld [vmem:[%s4476_s12 + $0x1a0] sm:$0xf]  ;;  %v3949_v16 = vld [vmem:[%s4476_s12 + $0x1ac] sm:$0xf0] }
 0x1a7   : > { %v2197_v18 = vadd.f32 %v2196_v13, %v2028_v14  ;;  %v590_v13 = vld [vmem:[%s6333_s4 + $0x40] sm:$0xff]  ;;  %v3460_v27 = vor.u32 %v3949_v16, %v3459_v15  ;;  %v3493_v15 = vld [vmem:[%s4476_s12 + $0x1f0] sm:$0xf0]  ;;  %v3499_v16 = vld [vmem:[%s4476_s12 + $0x1e8] sm:$0xf] }
 0x1a9   : > { %v2350_v21 = vadd.f32 %v2197_v18, %v586_v17  ;;  %v3947_v18 = vld [vmem:[%s4476_s12 + $0x1a4] sm:$0xf] }
 0x1ab   : > { %2414 = vst [vmem:[%s6333_s4 + $0x20] sm:$0xff] %v2350_v21  ;;  %v3950_v21 = vld [vmem:[%s4476_s12 + $0x1b4] sm:$0xf0] }
 0x1ac   : > { %v2029_v29 = vpop.f32.mrf.mxu2  ;;  %v1694_v34 = vpop.f32.mrf.mxu0 }
 0x1ad   : > { %v2198_v30 = vpop.f32.mrf.mxu3  ;;  %v2030_v33 = vadd.f32 %v2029_v29, %v1861_v28  ;;  %v1863_v35 = vpop.f32.mrf.mxu1  ;;  %v3464_v28 = vor.u32 %v3947_v18, %v3461_v19  ;;  %v3956_v18 = vld [vmem:[%s4476_s12 + $0x1ec] sm:$0xf]  ;;  %v3501_v19 = vld [vmem:[%s4476_s12 + $0x1f8] sm:$0xf0] }
 0x1ae   : > { %v1864_v41 = vadd.f32 %v1863_v35, %v1694_v34  ;;  %v591_v34 = vld [vmem:[%s6333_s4 + $0x48] sm:$0xff] }
 0x1af   : > { %v2199_v39 = vadd.f32 %v2198_v30, %v2030_v33  ;;  %1733 = vmatmul.bf16.gmra.mxu0 %v3428_v31  ;;  %v3472_v33 = vor.u32 %v3948_v22, %v3469_v23 }
 0x1b0   : > { %1902 = vmatmul.bf16.gmra.mxu1 %v3432_v32  ;;  %v3468_v32 = vor.u32 %v3950_v21, %v3467_v20 }
 0x1b1   : > { %v2351_v40 = vadd.f32 %v2199_v39, %v587_v38  ;;  %2071 = vmatmul.bf16.gmra.mxu2 %v3436_v36 }
 0x1b2   : > { %2240 = vmatmul.bf16.gmra.mxu3 %v3440_v37 }
 0x1b3   : > { %2415 = vst [vmem:[%s6333_s4 + $0x28] sm:$0xff] %v2351_v40 }
 0x1b4   : > { %v2032_v42 = vpop.f32.mrf.mxu2  ;;  %v1696_v45 = vpop.f32.mrf.mxu0 }
 0x1b5   : > { %v2201_v43 = vpop.f32.mrf.mxu3  ;;  %v2033_v44 = vadd.f32 %v2032_v42, %v1864_v41  ;;  %v1865_v46 = vpop.f32.mrf.mxu1 }
 0x1b6   : > { %v1866_v58 = vadd.f32 %v1865_v46, %v1696_v45  ;;  %v3475_v45 = vld [vmem:[%s4476_s12 + $0x1c0] sm:$0xf]  ;;  %v3953_v46 = vld [vmem:[%s4476_s12 + $0x1cc] sm:$0xf0] }
 0x1b7   : > { %v2202_v48 = vadd.f32 %v2201_v43, %v2033_v44  ;;  %v592_v43 = vld [vmem:[%s6333_s4 + $0x50] sm:$0xff]  ;;  %v3476_v57 = vor.u32 %v3953_v46, %v3475_v45  ;;  %v3515_v46 = vld [vmem:[%s4476_s12 + $0x208] sm:$0xf] }
 0x1b8   : > { %v3509_v45 = vld [vmem:[%s4476_s12 + $0x210] sm:$0xf0] }
 0x1b9   : > { %v2352_v51 = vadd.f32 %v2202_v48, %v588_v47  ;;  %v3951_v48 = vld [vmem:[%s4476_s12 + $0x1c4] sm:$0xf] }
 0x1bb   : > { %2416 = vst [vmem:[%s6333_s4 + $0x30] sm:$0xff] %v2352_v51  ;;  %v3954_v51 = vld [vmem:[%s4476_s12 + $0x1d4] sm:$0xf0] }
 0x1bc   : > { %v2034_v59 = vpop.f32.mrf.mxu2  ;;  %v1699_v0 = vpop.f32.mrf.mxu0 }
 0x1bd   : > { %v2203_v60 = vpop.f32.mrf.mxu3  ;;  %v2035_v63 = vadd.f32 %v2034_v59, %v1866_v58  ;;  %v1868_v1 = vpop.f32.mrf.mxu1  ;;  %v3480_v58 = vor.u32 %v3951_v48, %v3477_v49  ;;  %v3960_v48 = vld [vmem:[%s4476_s12 + $0x20c] sm:$0xf]  ;;  %v3517_v49 = vld [vmem:[%s4476_s12 + $0x218] sm:$0xf0] }
 0x1be   : > { %v1869_v7 = vadd.f32 %v1868_v1, %v1699_v0  ;;  %v593_v0 = vld [vmem:[%s6333_s4 + $0x58] sm:$0xff] }
 0x1bf   : > { %v2204_v5 = vadd.f32 %v2203_v60, %v2035_v63  ;;  %1738 = vmatmul.bf16.gmra.mxu0 %v3444_v61  ;;  %v3488_v63 = vor.u32 %v3952_v52, %v3485_v53 }
 0x1c0   : > { %1907 = vmatmul.bf16.gmra.mxu1 %v3448_v62  ;;  %v3484_v62 = vor.u32 %v3954_v51, %v3483_v50 }
 0x1c1   : > { %v2353_v6 = vadd.f32 %v2204_v5, %v589_v4  ;;  %2076 = vmatmul.bf16.gmra.mxu2 %v3452_v2 }
 0x1c2   : > { %2245 = vmatmul.bf16.gmra.mxu3 %v3456_v3 }
 0x1c3   : > { %2417 = vst [vmem:[%s6333_s4 + $0x38] sm:$0xff] %v2353_v6 }
 0x1c4   : > { %v2037_v8 = vpop.f32.mrf.mxu2  ;;  %v1701_v11 = vpop.f32.mrf.mxu0 }
 0x1c5   : > { %v2206_v9 = vpop.f32.mrf.mxu3  ;;  %v2038_v10 = vadd.f32 %v2037_v8, %v1869_v7  ;;  %v1870_v12 = vpop.f32.mrf.mxu1 }
 0x1c6   : > { %v1871_v24 = vadd.f32 %v1870_v12, %v1701_v11  ;;  %v3491_v11 = vld [vmem:[%s4476_s12 + $0x1e0] sm:$0xf]  ;;  %v3957_v12 = vld [vmem:[%s4476_s12 + $0x1ec] sm:$0xf0] }
 0x1c7   : > { %v2207_v14 = vadd.f32 %v2206_v9, %v2038_v10  ;;  %v594_v9 = vld [vmem:[%s6333_s4 + $0x60] sm:$0xff]  ;;  %v3492_v23 = vor.u32 %v3957_v12, %v3491_v11  ;;  %v3525_v11 = vld [vmem:[%s4476_s12 + $0x230] sm:$0xf0]  ;;  %v3531_v12 = vld [vmem:[%s4476_s12 + $0x228] sm:$0xf] }
 0x1c9   : > { %v2354_v17 = vadd.f32 %v2207_v14, %v590_v13  ;;  %v3955_v14 = vld [vmem:[%s4476_s12 + $0x1e4] sm:$0xf] }
 0x1cb   : > { %2418 = vst [vmem:[%s6333_s4 + $0x40] sm:$0xff] %v2354_v17  ;;  %v3958_v17 = vld [vmem:[%s4476_s12 + $0x1f4] sm:$0xf0] }
 0x1cc   : > { %v2039_v25 = vpop.f32.mrf.mxu2  ;;  %v1704_v30 = vpop.f32.mrf.mxu0 }
 0x1cd   : > { %v2208_v26 = vpop.f32.mrf.mxu3  ;;  %v2040_v29 = vadd.f32 %v2039_v25, %v1871_v24  ;;  %v1873_v31 = vpop.f32.mrf.mxu1  ;;  %v3496_v24 = vor.u32 %v3955_v14, %v3493_v15  ;;  %v3964_v14 = vld [vmem:[%s4476_s12 + $0x22c] sm:$0xf]  ;;  %v3533_v15 = vld [vmem:[%s4476_s12 + $0x238] sm:$0xf0] }
 0x1ce   : > { %v1874_v37 = vadd.f32 %v1873_v31, %v1704_v30  ;;  %v595_v30 = vld [vmem:[%s6333_s4 + $0x68] sm:$0xff] }
 0x1cf   : > { %v2209_v35 = vadd.f32 %v2208_v26, %v2040_v29  ;;  %1743 = vmatmul.bf16.gmra.mxu0 %v3460_v27  ;;  %v3504_v29 = vor.u32 %v3956_v18, %v3501_v19 }
 0x1d0   : > { %1912 = vmatmul.bf16.gmra.mxu1 %v3464_v28  ;;  %v3500_v28 = vor.u32 %v3958_v17, %v3499_v16 }
 0x1d1   : > { %v2355_v36 = vadd.f32 %v2209_v35, %v591_v34  ;;  %2081 = vmatmul.bf16.gmra.mxu2 %v3468_v32 }
 0x1d2   : > { %2250 = vmatmul.bf16.gmra.mxu3 %v3472_v33 }
 0x1d3   : > { %2419 = vst [vmem:[%s6333_s4 + $0x48] sm:$0xff] %v2355_v36 }
 0x1d4   : > { %v2042_v38 = vpop.f32.mrf.mxu2  ;;  %v1706_v41 = vpop.f32.mrf.mxu0 }
 0x1d5   : > { %v2211_v39 = vpop.f32.mrf.mxu3  ;;  %v2043_v40 = vadd.f32 %v2042_v38, %v1874_v37  ;;  %v1875_v42 = vpop.f32.mrf.mxu1 }
 0x1d6   : > { %v1876_v54 = vadd.f32 %v1875_v42, %v1706_v41  ;;  %v3507_v41 = vld [vmem:[%s4476_s12 + $0x200] sm:$0xf]  ;;  %v3961_v42 = vld [vmem:[%s4476_s12 + $0x20c] sm:$0xf0] }
 0x1d7   : > { %v2212_v44 = vadd.f32 %v2211_v39, %v2043_v40  ;;  %v596_v39 = vld [vmem:[%s6333_s4 + $0x70] sm:$0xff]  ;;  %v3508_v53 = vor.u32 %v3961_v42, %v3507_v41  ;;  %v3547_v42 = vld [vmem:[%s4476_s12 + $0x248] sm:$0xf] }
 0x1d8   : > { %v3541_v41 = vld [vmem:[%s4476_s12 + $0x250] sm:$0xf0] }
 0x1d9   : > { %v2356_v47 = vadd.f32 %v2212_v44, %v592_v43  ;;  %v3959_v44 = vld [vmem:[%s4476_s12 + $0x204] sm:$0xf] }
 0x1db   : > { %2420 = vst [vmem:[%s6333_s4 + $0x50] sm:$0xff] %v2356_v47  ;;  %v3962_v47 = vld [vmem:[%s4476_s12 + $0x214] sm:$0xf0] }
 0x1dc   : > { %v2044_v55 = vpop.f32.mrf.mxu2  ;;  %v1709_v60 = vpop.f32.mrf.mxu0 }
 0x1dd   : > { %v2213_v56 = vpop.f32.mrf.mxu3  ;;  %v2045_v59 = vadd.f32 %v2044_v55, %v1876_v54  ;;  %v1878_v61 = vpop.f32.mrf.mxu1  ;;  %v3512_v54 = vor.u32 %v3959_v44, %v3509_v45  ;;  %v3968_v44 = vld [vmem:[%s4476_s12 + $0x24c] sm:$0xf]  ;;  %v3549_v45 = vld [vmem:[%s4476_s12 + $0x258] sm:$0xf0] }
 0x1de   : > { %v1879_v3 = vadd.f32 %v1878_v61, %v1709_v60  ;;  %v597_v60 = vld [vmem:[%s6333_s4 + $0x78] sm:$0xff] }
 0x1df   : > { %v2214_v1 = vadd.f32 %v2213_v56, %v2045_v59  ;;  %1748 = vmatmul.bf16.gmra.mxu0 %v3476_v57  ;;  %v3520_v59 = vor.u32 %v3960_v48, %v3517_v49 }
 0x1e0   : > { %1917 = vmatmul.bf16.gmra.mxu1 %v3480_v58  ;;  %v3516_v58 = vor.u32 %v3962_v47, %v3515_v46 }
 0x1e1   : > { %v2357_v2 = vadd.f32 %v2214_v1, %v593_v0  ;;  %2086 = vmatmul.bf16.gmra.mxu2 %v3484_v62 }
 0x1e2   : > { %2255 = vmatmul.bf16.gmra.mxu3 %v3488_v63 }
 0x1e3   : > { %2421 = vst [vmem:[%s6333_s4 + $0x58] sm:$0xff] %v2357_v2 }
 0x1e4   : > { %v2047_v4 = vpop.f32.mrf.mxu2  ;;  %v1711_v7 = vpop.f32.mrf.mxu0 }
 0x1e5   : > { %v2216_v5 = vpop.f32.mrf.mxu3  ;;  %v2048_v6 = vadd.f32 %v2047_v4, %v1879_v3  ;;  %v1880_v8 = vpop.f32.mrf.mxu1 }
 0x1e6   : > { %v1881_v20 = vadd.f32 %v1880_v8, %v1711_v7  ;;  %v3523_v7 = vld [vmem:[%s4476_s12 + $0x220] sm:$0xf]  ;;  %v3965_v8 = vld [vmem:[%s4476_s12 + $0x22c] sm:$0xf0] }
 0x1e7   : > { %v2217_v10 = vadd.f32 %v2216_v5, %v2048_v6  ;;  %v598_v5 = vld [vmem:[%s6333_s4 + $0x80] sm:$0xff]  ;;  %v3524_v19 = vor.u32 %v3965_v8, %v3523_v7  ;;  %v3557_v7 = vld [vmem:[%s4476_s12 + $0x270] sm:$0xf0]  ;;  %v3563_v8 = vld [vmem:[%s4476_s12 + $0x268] sm:$0xf] }
 0x1e9   : > { %v2358_v13 = vadd.f32 %v2217_v10, %v594_v9  ;;  %v3963_v10 = vld [vmem:[%s4476_s12 + $0x224] sm:$0xf] }
 0x1eb   : > { %2422 = vst [vmem:[%s6333_s4 + $0x60] sm:$0xff] %v2358_v13  ;;  %v3966_v13 = vld [vmem:[%s4476_s12 + $0x234] sm:$0xf0] }
 0x1ec   : > { %v2049_v21 = vpop.f32.mrf.mxu2  ;;  %v1714_v26 = vpop.f32.mrf.mxu0 }
 0x1ed   : > { %v2218_v22 = vpop.f32.mrf.mxu3  ;;  %v2050_v25 = vadd.f32 %v2049_v21, %v1881_v20  ;;  %v1883_v27 = vpop.f32.mrf.mxu1  ;;  %v3528_v20 = vor.u32 %v3963_v10, %v3525_v11  ;;  %v3972_v10 = vld [vmem:[%s4476_s12 + $0x26c] sm:$0xf]  ;;  %v3565_v11 = vld [vmem:[%s4476_s12 + $0x278] sm:$0xf0] }
 0x1ee   : > { %v1884_v33 = vadd.f32 %v1883_v27, %v1714_v26  ;;  %v599_v26 = vld [vmem:[%s6333_s4 + $0x88] sm:$0xff] }
 0x1ef   : > { %v2219_v31 = vadd.f32 %v2218_v22, %v2050_v25  ;;  %1753 = vmatmul.bf16.gmra.mxu0 %v3492_v23  ;;  %v3536_v25 = vor.u32 %v3964_v14, %v3533_v15 }
 0x1f0   : > { %1922 = vmatmul.bf16.gmra.mxu1 %v3496_v24  ;;  %v3532_v24 = vor.u32 %v3966_v13, %v3531_v12 }
 0x1f1   : > { %v2359_v32 = vadd.f32 %v2219_v31, %v595_v30  ;;  %2091 = vmatmul.bf16.gmra.mxu2 %v3500_v28 }
 0x1f2   : > { %2260 = vmatmul.bf16.gmra.mxu3 %v3504_v29 }
 0x1f3   : > { %2423 = vst [vmem:[%s6333_s4 + $0x68] sm:$0xff] %v2359_v32 }
 0x1f4   : > { %v2052_v34 = vpop.f32.mrf.mxu2  ;;  %v1716_v37 = vpop.f32.mrf.mxu0 }
 0x1f5   : > { %v2221_v35 = vpop.f32.mrf.mxu3  ;;  %v2053_v36 = vadd.f32 %v2052_v34, %v1884_v33  ;;  %v1885_v38 = vpop.f32.mrf.mxu1 }
 0x1f6   : > { %v1886_v50 = vadd.f32 %v1885_v38, %v1716_v37  ;;  %v3539_v37 = vld [vmem:[%s4476_s12 + $0x240] sm:$0xf]  ;;  %v3969_v38 = vld [vmem:[%s4476_s12 + $0x24c] sm:$0xf0] }
 0x1f7   : > { %v2222_v40 = vadd.f32 %v2221_v35, %v2053_v36  ;;  %v600_v35 = vld [vmem:[%s6333_s4 + $0x90] sm:$0xff]  ;;  %v3540_v49 = vor.u32 %v3969_v38, %v3539_v37  ;;  %v3579_v38 = vld [vmem:[%s4476_s12 + $0x288] sm:$0xf] }
 0x1f8   : > { %v3573_v37 = vld [vmem:[%s4476_s12 + $0x290] sm:$0xf0] }
 0x1f9   : > { %v2360_v43 = vadd.f32 %v2222_v40, %v596_v39  ;;  %v3967_v40 = vld [vmem:[%s4476_s12 + $0x244] sm:$0xf] }
 0x1fb   : > { %2424 = vst [vmem:[%s6333_s4 + $0x70] sm:$0xff] %v2360_v43  ;;  %v3970_v43 = vld [vmem:[%s4476_s12 + $0x254] sm:$0xf0] }
 0x1fc   : > { %v2054_v51 = vpop.f32.mrf.mxu2  ;;  %v1719_v56 = vpop.f32.mrf.mxu0 }
 0x1fd   : > { %v2223_v52 = vpop.f32.mrf.mxu3  ;;  %v2055_v55 = vadd.f32 %v2054_v51, %v1886_v50  ;;  %v1888_v57 = vpop.f32.mrf.mxu1  ;;  %v3544_v50 = vor.u32 %v3967_v40, %v3541_v41  ;;  %v3976_v40 = vld [vmem:[%s4476_s12 + $0x28c] sm:$0xf]  ;;  %v3581_v41 = vld [vmem:[%s4476_s12 + $0x298] sm:$0xf0] }
 0x1fe   : > { %v1889_v63 = vadd.f32 %v1888_v57, %v1719_v56  ;;  %v601_v56 = vld [vmem:[%s6333_s4 + $0x98] sm:$0xff] }
 0x1ff   : > { %v2224_v61 = vadd.f32 %v2223_v52, %v2055_v55  ;;  %1758 = vmatmul.bf16.gmra.mxu0 %v3508_v53  ;;  %v3552_v55 = vor.u32 %v3968_v44, %v3549_v45 }
 0x200   : > { %1927 = vmatmul.bf16.gmra.mxu1 %v3512_v54  ;;  %v3548_v54 = vor.u32 %v3970_v43, %v3547_v42 }
 0x201   : > { %v2361_v62 = vadd.f32 %v2224_v61, %v597_v60  ;;  %2096 = vmatmul.bf16.gmra.mxu2 %v3516_v58 }
 0x202   : > { %2265 = vmatmul.bf16.gmra.mxu3 %v3520_v59 }
 0x203   : > { %2425 = vst [vmem:[%s6333_s4 + $0x78] sm:$0xff] %v2361_v62 }
 0x204   : > { %v2057_v0 = vpop.f32.mrf.mxu2  ;;  %v1721_v3 = vpop.f32.mrf.mxu0 }
 0x205   : > { %v2226_v1 = vpop.f32.mrf.mxu3  ;;  %v2058_v2 = vadd.f32 %v2057_v0, %v1889_v63  ;;  %v1890_v4 = vpop.f32.mrf.mxu1 }
 0x206   : > { %v1891_v16 = vadd.f32 %v1890_v4, %v1721_v3  ;;  %v3555_v3 = vld [vmem:[%s4476_s12 + $0x260] sm:$0xf]  ;;  %v3973_v4 = vld [vmem:[%s4476_s12 + $0x26c] sm:$0xf0] }
 0x207   : > { %v2227_v6 = vadd.f32 %v2226_v1, %v2058_v2  ;;  %v602_v1 = vld [vmem:[%s6333_s4 + $0xa0] sm:$0xff]  ;;  %v3556_v15 = vor.u32 %v3973_v4, %v3555_v3  ;;  %v3589_v3 = vld [vmem:[%s4476_s12 + $0x2b0] sm:$0xf0]  ;;  %v3595_v4 = vld [vmem:[%s4476_s12 + $0x2a8] sm:$0xf] }
 0x209   : > { %v2362_v9 = vadd.f32 %v2227_v6, %v598_v5  ;;  %v3971_v6 = vld [vmem:[%s4476_s12 + $0x264] sm:$0xf] }
 0x20b   : > { %2426 = vst [vmem:[%s6333_s4 + $0x80] sm:$0xff] %v2362_v9  ;;  %v3974_v9 = vld [vmem:[%s4476_s12 + $0x274] sm:$0xf0] }
 0x20c   : > { %v2059_v17 = vpop.f32.mrf.mxu2  ;;  %v1724_v22 = vpop.f32.mrf.mxu0 }
 0x20d   : > { %v2228_v18 = vpop.f32.mrf.mxu3  ;;  %v2060_v21 = vadd.f32 %v2059_v17, %v1891_v16  ;;  %v1893_v23 = vpop.f32.mrf.mxu1  ;;  %v3560_v16 = vor.u32 %v3971_v6, %v3557_v7  ;;  %v3980_v6 = vld [vmem:[%s4476_s12 + $0x2ac] sm:$0xf]  ;;  %v3597_v7 = vld [vmem:[%s4476_s12 + $0x2b8] sm:$0xf0] }
 0x20e   : > { %v1894_v29 = vadd.f32 %v1893_v23, %v1724_v22  ;;  %v603_v22 = vld [vmem:[%s6333_s4 + $0xa8] sm:$0xff] }
 0x20f   : > { %v2229_v27 = vadd.f32 %v2228_v18, %v2060_v21  ;;  %1763 = vmatmul.bf16.gmra.mxu0 %v3524_v19  ;;  %v3568_v21 = vor.u32 %v3972_v10, %v3565_v11 }
 0x210   : > { %1932 = vmatmul.bf16.gmra.mxu1 %v3528_v20  ;;  %v3564_v20 = vor.u32 %v3974_v9, %v3563_v8 }
 0x211   : > { %v2363_v28 = vadd.f32 %v2229_v27, %v599_v26  ;;  %2101 = vmatmul.bf16.gmra.mxu2 %v3532_v24 }
 0x212   : > { %2270 = vmatmul.bf16.gmra.mxu3 %v3536_v25 }
 0x213   : > { %2427 = vst [vmem:[%s6333_s4 + $0x88] sm:$0xff] %v2363_v28 }
 0x214   : > { %v2062_v30 = vpop.f32.mrf.mxu2  ;;  %v1726_v33 = vpop.f32.mrf.mxu0 }
 0x215   : > { %v2231_v31 = vpop.f32.mrf.mxu3  ;;  %v2063_v32 = vadd.f32 %v2062_v30, %v1894_v29  ;;  %v1895_v34 = vpop.f32.mrf.mxu1 }
 0x216   : > { %v1896_v46 = vadd.f32 %v1895_v34, %v1726_v33  ;;  %v3571_v33 = vld [vmem:[%s4476_s12 + $0x280] sm:$0xf]  ;;  %v3977_v34 = vld [vmem:[%s4476_s12 + $0x28c] sm:$0xf0] }
 0x217   : > { %v2232_v36 = vadd.f32 %v2231_v31, %v2063_v32  ;;  %v604_v31 = vld [vmem:[%s6333_s4 + $0xb0] sm:$0xff]  ;;  %v3572_v45 = vor.u32 %v3977_v34, %v3571_v33  ;;  %v3611_v34 = vld [vmem:[%s4476_s12 + $0x2c8] sm:$0xf] }
 0x218   : > { %v3605_v33 = vld [vmem:[%s4476_s12 + $0x2d0] sm:$0xf0] }
 0x219   : > { %v2364_v39 = vadd.f32 %v2232_v36, %v600_v35  ;;  %v3975_v36 = vld [vmem:[%s4476_s12 + $0x284] sm:$0xf] }
 0x21b   : > { %2428 = vst [vmem:[%s6333_s4 + $0x90] sm:$0xff] %v2364_v39  ;;  %v3978_v39 = vld [vmem:[%s4476_s12 + $0x294] sm:$0xf0] }
 0x21c   : > { %v2064_v47 = vpop.f32.mrf.mxu2  ;;  %v1729_v52 = vpop.f32.mrf.mxu0 }
 0x21d   : > { %v2233_v48 = vpop.f32.mrf.mxu3  ;;  %v2065_v51 = vadd.f32 %v2064_v47, %v1896_v46  ;;  %v1898_v53 = vpop.f32.mrf.mxu1  ;;  %v3576_v46 = vor.u32 %v3975_v36, %v3573_v37  ;;  %v3984_v36 = vld [vmem:[%s4476_s12 + $0x2cc] sm:$0xf]  ;;  %v3613_v37 = vld [vmem:[%s4476_s12 + $0x2d8] sm:$0xf0] }
 0x21e   : > { %v1899_v59 = vadd.f32 %v1898_v53, %v1729_v52  ;;  %v605_v52 = vld [vmem:[%s6333_s4 + $0xb8] sm:$0xff] }
 0x21f   : > { %v2234_v57 = vadd.f32 %v2233_v48, %v2065_v51  ;;  %1768 = vmatmul.bf16.gmra.mxu0 %v3540_v49  ;;  %v3584_v51 = vor.u32 %v3976_v40, %v3581_v41 }
 0x220   : > { %1937 = vmatmul.bf16.gmra.mxu1 %v3544_v50  ;;  %v3580_v50 = vor.u32 %v3978_v39, %v3579_v38 }
 0x221   : > { %v2365_v58 = vadd.f32 %v2234_v57, %v601_v56  ;;  %2106 = vmatmul.bf16.gmra.mxu2 %v3548_v54 }
 0x222   : > { %2275 = vmatmul.bf16.gmra.mxu3 %v3552_v55 }
 0x223   : > { %2429 = vst [vmem:[%s6333_s4 + $0x98] sm:$0xff] %v2365_v58 }
 0x224   : > { %v2067_v60 = vpop.f32.mrf.mxu2  ;;  %v1731_v63 = vpop.f32.mrf.mxu0 }
 0x225   : > { %v2236_v61 = vpop.f32.mrf.mxu3  ;;  %v2068_v62 = vadd.f32 %v2067_v60, %v1899_v59  ;;  %v1900_v0 = vpop.f32.mrf.mxu1 }
 0x226   : > { %v1901_v12 = vadd.f32 %v1900_v0, %v1731_v63  ;;  %v3587_v63 = vld [vmem:[%s4476_s12 + $0x2a0] sm:$0xf]  ;;  %v3981_v0 = vld [vmem:[%s4476_s12 + $0x2ac] sm:$0xf0] }
 0x227   : > { %v2237_v2 = vadd.f32 %v2236_v61, %v2068_v62  ;;  %v606_v61 = vld [vmem:[%s6333_s4 + $0xc0] sm:$0xff]  ;;  %v3588_v11 = vor.u32 %v3981_v0, %v3587_v63  ;;  %v3621_v63 = vld [vmem:[%s4476_s12 + $0x2f0] sm:$0xf0]  ;;  %v3627_v0 = vld [vmem:[%s4476_s12 + $0x2e8] sm:$0xf] }
 0x229   : > { %v2366_v5 = vadd.f32 %v2237_v2, %v602_v1  ;;  %v3979_v2 = vld [vmem:[%s4476_s12 + $0x2a4] sm:$0xf] }
 0x22b   : > { %2430 = vst [vmem:[%s6333_s4 + $0xa0] sm:$0xff] %v2366_v5  ;;  %v3982_v5 = vld [vmem:[%s4476_s12 + $0x2b4] sm:$0xf0] }
 0x22c   : > { %v2069_v13 = vpop.f32.mrf.mxu2  ;;  %v1734_v18 = vpop.f32.mrf.mxu0 }
 0x22d   : > { %v2238_v14 = vpop.f32.mrf.mxu3  ;;  %v2070_v17 = vadd.f32 %v2069_v13, %v1901_v12  ;;  %v1903_v19 = vpop.f32.mrf.mxu1  ;;  %v3592_v12 = vor.u32 %v3979_v2, %v3589_v3  ;;  %v3988_v2 = vld [vmem:[%s4476_s12 + $0x2ec] sm:$0xf]  ;;  %v3629_v3 = vld [vmem:[%s4476_s12 + $0x2f8] sm:$0xf0] }
 0x22e   : > { %v1904_v25 = vadd.f32 %v1903_v19, %v1734_v18  ;;  %v607_v18 = vld [vmem:[%s6333_s4 + $0xc8] sm:$0xff] }
 0x22f   : > { %v2239_v23 = vadd.f32 %v2238_v14, %v2070_v17  ;;  %1773 = vmatmul.bf16.gmra.mxu0 %v3556_v15  ;;  %v3600_v17 = vor.u32 %v3980_v6, %v3597_v7 }
 0x230   : > { %1942 = vmatmul.bf16.gmra.mxu1 %v3560_v16  ;;  %v3596_v16 = vor.u32 %v3982_v5, %v3595_v4 }
 0x231   : > { %v2367_v24 = vadd.f32 %v2239_v23, %v603_v22  ;;  %2111 = vmatmul.bf16.gmra.mxu2 %v3564_v20 }
 0x232   : > { %2280 = vmatmul.bf16.gmra.mxu3 %v3568_v21 }
 0x233   : > { %2431 = vst [vmem:[%s6333_s4 + $0xa8] sm:$0xff] %v2367_v24 }
 0x234   : > { %v2072_v26 = vpop.f32.mrf.mxu2  ;;  %v1736_v29 = vpop.f32.mrf.mxu0 }
 0x235   : > { %v2241_v27 = vpop.f32.mrf.mxu3  ;;  %v2073_v28 = vadd.f32 %v2072_v26, %v1904_v25  ;;  %v1905_v30 = vpop.f32.mrf.mxu1 }
 0x236   : > { %v1906_v42 = vadd.f32 %v1905_v30, %v1736_v29  ;;  %v3603_v29 = vld [vmem:[%s4476_s12 + $0x2c0] sm:$0xf]  ;;  %v3985_v30 = vld [vmem:[%s4476_s12 + $0x2cc] sm:$0xf0] }
 0x237   : > { %v2242_v32 = vadd.f32 %v2241_v27, %v2073_v28  ;;  %v608_v27 = vld [vmem:[%s6333_s4 + $0xd0] sm:$0xff]  ;;  %v3604_v41 = vor.u32 %v3985_v30, %v3603_v29  ;;  %v3643_v30 = vld [vmem:[%s4476_s12 + $0x308] sm:$0xf] }
 0x238   : > { %v3637_v29 = vld [vmem:[%s4476_s12 + $0x310] sm:$0xf0] }
 0x239   : > { %v2368_v35 = vadd.f32 %v2242_v32, %v604_v31  ;;  %v3983_v32 = vld [vmem:[%s4476_s12 + $0x2c4] sm:$0xf] }
 0x23b   : > { %2432 = vst [vmem:[%s6333_s4 + $0xb0] sm:$0xff] %v2368_v35  ;;  %v3986_v35 = vld [vmem:[%s4476_s12 + $0x2d4] sm:$0xf0] }
 0x23c   : > { %v2074_v43 = vpop.f32.mrf.mxu2  ;;  %v1739_v48 = vpop.f32.mrf.mxu0 }
 0x23d   : > { %v2243_v44 = vpop.f32.mrf.mxu3  ;;  %v2075_v47 = vadd.f32 %v2074_v43, %v1906_v42  ;;  %v1908_v49 = vpop.f32.mrf.mxu1  ;;  %v3608_v42 = vor.u32 %v3983_v32, %v3605_v33  ;;  %v3992_v32 = vld [vmem:[%s4476_s12 + $0x30c] sm:$0xf]  ;;  %v3645_v33 = vld [vmem:[%s4476_s12 + $0x318] sm:$0xf0] }
 0x23e   : > { %v1909_v55 = vadd.f32 %v1908_v49, %v1739_v48  ;;  %v609_v48 = vld [vmem:[%s6333_s4 + $0xd8] sm:$0xff] }
 0x23f   : > { %v2244_v53 = vadd.f32 %v2243_v44, %v2075_v47  ;;  %1778 = vmatmul.bf16.gmra.mxu0 %v3572_v45  ;;  %v3616_v47 = vor.u32 %v3984_v36, %v3613_v37 }
 0x240   : > { %1947 = vmatmul.bf16.gmra.mxu1 %v3576_v46  ;;  %v3612_v46 = vor.u32 %v3986_v35, %v3611_v34 }
 0x241   : > { %v2369_v54 = vadd.f32 %v2244_v53, %v605_v52  ;;  %2116 = vmatmul.bf16.gmra.mxu2 %v3580_v50 }
 0x242   : > { %2285 = vmatmul.bf16.gmra.mxu3 %v3584_v51 }
 0x243   : > { %2433 = vst [vmem:[%s6333_s4 + $0xb8] sm:$0xff] %v2369_v54 }
 0x244   : > { %v2077_v56 = vpop.f32.mrf.mxu2  ;;  %v1741_v59 = vpop.f32.mrf.mxu0 }
 0x245   : > { %v2246_v57 = vpop.f32.mrf.mxu3  ;;  %v2078_v58 = vadd.f32 %v2077_v56, %v1909_v55  ;;  %v1910_v60 = vpop.f32.mrf.mxu1 }
 0x246   : > { %v1911_v8 = vadd.f32 %v1910_v60, %v1741_v59  ;;  %v3619_v59 = vld [vmem:[%s4476_s12 + $0x2e0] sm:$0xf]  ;;  %v3989_v60 = vld [vmem:[%s4476_s12 + $0x2ec] sm:$0xf0] }
 0x247   : > { %v2247_v62 = vadd.f32 %v2246_v57, %v2078_v58  ;;  %v610_v57 = vld [vmem:[%s6333_s4 + $0xe0] sm:$0xff]  ;;  %v3620_v7 = vor.u32 %v3989_v60, %v3619_v59  ;;  %v3653_v59 = vld [vmem:[%s4476_s12 + $0x330] sm:$0xf0]  ;;  %v3659_v60 = vld [vmem:[%s4476_s12 + $0x328] sm:$0xf] }
 0x249   : > { %v2370_v1 = vadd.f32 %v2247_v62, %v606_v61  ;;  %v3987_v62 = vld [vmem:[%s4476_s12 + $0x2e4] sm:$0xf] }
 0x24b   : > { %2434 = vst [vmem:[%s6333_s4 + $0xc0] sm:$0xff] %v2370_v1  ;;  %v3990_v1 = vld [vmem:[%s4476_s12 + $0x2f4] sm:$0xf0] }
 0x24c   : > { %v2079_v9 = vpop.f32.mrf.mxu2  ;;  %v1744_v14 = vpop.f32.mrf.mxu0 }
 0x24d   : > { %v2248_v10 = vpop.f32.mrf.mxu3  ;;  %v2080_v13 = vadd.f32 %v2079_v9, %v1911_v8  ;;  %v1913_v15 = vpop.f32.mrf.mxu1  ;;  %v3624_v8 = vor.u32 %v3987_v62, %v3621_v63  ;;  %v3996_v62 = vld [vmem:[%s4476_s12 + $0x32c] sm:$0xf]  ;;  %v3661_v63 = vld [vmem:[%s4476_s12 + $0x338] sm:$0xf0] }
 0x24e   : > { %v1914_v21 = vadd.f32 %v1913_v15, %v1744_v14  ;;  %v611_v14 = vld [vmem:[%s6333_s4 + $0xe8] sm:$0xff] }
 0x24f   : > { %v2249_v19 = vadd.f32 %v2248_v10, %v2080_v13  ;;  %1783 = vmatmul.bf16.gmra.mxu0 %v3588_v11  ;;  %v3632_v13 = vor.u32 %v3988_v2, %v3629_v3 }
 0x250   : > { %1952 = vmatmul.bf16.gmra.mxu1 %v3592_v12  ;;  %v3628_v12 = vor.u32 %v3990_v1, %v3627_v0 }
 0x251   : > { %v2371_v20 = vadd.f32 %v2249_v19, %v607_v18  ;;  %2121 = vmatmul.bf16.gmra.mxu2 %v3596_v16 }
 0x252   : > { %2290 = vmatmul.bf16.gmra.mxu3 %v3600_v17 }
 0x253   : > { %2435 = vst [vmem:[%s6333_s4 + $0xc8] sm:$0xff] %v2371_v20 }
 0x254   : > { %v2082_v22 = vpop.f32.mrf.mxu2  ;;  %v1746_v25 = vpop.f32.mrf.mxu0 }
 0x255   : > { %v2251_v23 = vpop.f32.mrf.mxu3  ;;  %v2083_v24 = vadd.f32 %v2082_v22, %v1914_v21  ;;  %v1915_v26 = vpop.f32.mrf.mxu1 }
 0x256   : > { %v1916_v38 = vadd.f32 %v1915_v26, %v1746_v25  ;;  %v3635_v25 = vld [vmem:[%s4476_s12 + $0x300] sm:$0xf]  ;;  %v3993_v26 = vld [vmem:[%s4476_s12 + $0x30c] sm:$0xf0] }
 0x257   : > { %v2252_v28 = vadd.f32 %v2251_v23, %v2083_v24  ;;  %v612_v23 = vld [vmem:[%s6333_s4 + $0xf0] sm:$0xff]  ;;  %v3636_v37 = vor.u32 %v3993_v26, %v3635_v25  ;;  %v3675_v26 = vld [vmem:[%s4476_s12 + $0x348] sm:$0xf] }
 0x258   : > { %v3669_v25 = vld [vmem:[%s4476_s12 + $0x350] sm:$0xf0] }
 0x259   : > { %v2372_v31 = vadd.f32 %v2252_v28, %v608_v27  ;;  %v3991_v28 = vld [vmem:[%s4476_s12 + $0x304] sm:$0xf] }
 0x25b   : > { %2436 = vst [vmem:[%s6333_s4 + $0xd0] sm:$0xff] %v2372_v31  ;;  %v3994_v31 = vld [vmem:[%s4476_s12 + $0x314] sm:$0xf0] }
 0x25c   : > { %v2084_v39 = vpop.f32.mrf.mxu2  ;;  %v1749_v44 = vpop.f32.mrf.mxu0 }
 0x25d   : > { %v2253_v40 = vpop.f32.mrf.mxu3  ;;  %v2085_v43 = vadd.f32 %v2084_v39, %v1916_v38  ;;  %v1918_v45 = vpop.f32.mrf.mxu1  ;;  %v3640_v38 = vor.u32 %v3991_v28, %v3637_v29  ;;  %v4000_v28 = vld [vmem:[%s4476_s12 + $0x34c] sm:$0xf]  ;;  %v3677_v29 = vld [vmem:[%s4476_s12 + $0x358] sm:$0xf0] }
 0x25e   : > { %v1919_v51 = vadd.f32 %v1918_v45, %v1749_v44  ;;  %v613_v44 = vld [vmem:[%s6333_s4 + $0xf8] sm:$0xff] }
 0x25f   : > { %v2254_v49 = vadd.f32 %v2253_v40, %v2085_v43  ;;  %1788 = vmatmul.bf16.gmra.mxu0 %v3604_v41  ;;  %v3648_v43 = vor.u32 %v3992_v32, %v3645_v33 }
 0x260   : > { %1957 = vmatmul.bf16.gmra.mxu1 %v3608_v42  ;;  %v3644_v42 = vor.u32 %v3994_v31, %v3643_v30 }
 0x261   : > { %v2373_v50 = vadd.f32 %v2254_v49, %v609_v48  ;;  %2126 = vmatmul.bf16.gmra.mxu2 %v3612_v46 }
 0x262   : > { %2295 = vmatmul.bf16.gmra.mxu3 %v3616_v47 }
 0x263   : > { %2437 = vst [vmem:[%s6333_s4 + $0xd8] sm:$0xff] %v2373_v50 }
 0x264   : > { %v2087_v52 = vpop.f32.mrf.mxu2  ;;  %v1751_v55 = vpop.f32.mrf.mxu0 }
 0x265   : > { %v2256_v53 = vpop.f32.mrf.mxu3  ;;  %v2088_v54 = vadd.f32 %v2087_v52, %v1919_v51  ;;  %v1920_v56 = vpop.f32.mrf.mxu1 }
 0x266   : > { %v1921_v4 = vadd.f32 %v1920_v56, %v1751_v55  ;;  %v3651_v55 = vld [vmem:[%s4476_s12 + $0x320] sm:$0xf]  ;;  %v3997_v56 = vld [vmem:[%s4476_s12 + $0x32c] sm:$0xf0] }
 0x267   : > { %v2257_v58 = vadd.f32 %v2256_v53, %v2088_v54  ;;  %v614_v53 = vld [vmem:[%s6333_s4 + $0x100] sm:$0xff]  ;;  %v3652_v3 = vor.u32 %v3997_v56, %v3651_v55  ;;  %v3685_v55 = vld [vmem:[%s4476_s12 + $0x370] sm:$0xf0]  ;;  %v3691_v56 = vld [vmem:[%s4476_s12 + $0x368] sm:$0xf] }
 0x269   : > { %v2374_v61 = vadd.f32 %v2257_v58, %v610_v57  ;;  %v3995_v58 = vld [vmem:[%s4476_s12 + $0x324] sm:$0xf] }
 0x26b   : > { %2438 = vst [vmem:[%s6333_s4 + $0xe0] sm:$0xff] %v2374_v61  ;;  %v3998_v61 = vld [vmem:[%s4476_s12 + $0x334] sm:$0xf0] }
 0x26c   : > { %v2089_v5 = vpop.f32.mrf.mxu2  ;;  %v1754_v10 = vpop.f32.mrf.mxu0 }
 0x26d   : > { %v2258_v6 = vpop.f32.mrf.mxu3  ;;  %v2090_v9 = vadd.f32 %v2089_v5, %v1921_v4  ;;  %v1923_v11 = vpop.f32.mrf.mxu1  ;;  %v3656_v4 = vor.u32 %v3995_v58, %v3653_v59  ;;  %v4004_v58 = vld [vmem:[%s4476_s12 + $0x36c] sm:$0xf]  ;;  %v3693_v59 = vld [vmem:[%s4476_s12 + $0x378] sm:$0xf0] }
 0x26e   : > { %v1924_v17 = vadd.f32 %v1923_v11, %v1754_v10  ;;  %v615_v10 = vld [vmem:[%s6333_s4 + $0x108] sm:$0xff] }
 0x26f   : > { %v2259_v15 = vadd.f32 %v2258_v6, %v2090_v9  ;;  %1793 = vmatmul.bf16.gmra.mxu0 %v3620_v7  ;;  %v3664_v9 = vor.u32 %v3996_v62, %v3661_v63 }
 0x270   : > { %1962 = vmatmul.bf16.gmra.mxu1 %v3624_v8  ;;  %v3660_v8 = vor.u32 %v3998_v61, %v3659_v60 }
 0x271   : > { %v2375_v16 = vadd.f32 %v2259_v15, %v611_v14  ;;  %2131 = vmatmul.bf16.gmra.mxu2 %v3628_v12 }
 0x272   : > { %2300 = vmatmul.bf16.gmra.mxu3 %v3632_v13 }
 0x273   : > { %2439 = vst [vmem:[%s6333_s4 + $0xe8] sm:$0xff] %v2375_v16 }
 0x274   : > { %v2092_v18 = vpop.f32.mrf.mxu2  ;;  %v1756_v21 = vpop.f32.mrf.mxu0 }
 0x275   : > { %v2261_v19 = vpop.f32.mrf.mxu3  ;;  %v2093_v20 = vadd.f32 %v2092_v18, %v1924_v17  ;;  %v1925_v22 = vpop.f32.mrf.mxu1 }
 0x276   : > { %v1926_v34 = vadd.f32 %v1925_v22, %v1756_v21  ;;  %v3667_v21 = vld [vmem:[%s4476_s12 + $0x340] sm:$0xf]  ;;  %v4001_v22 = vld [vmem:[%s4476_s12 + $0x34c] sm:$0xf0] }
 0x277   : > { %v2262_v24 = vadd.f32 %v2261_v19, %v2093_v20  ;;  %v616_v19 = vld [vmem:[%s6333_s4 + $0x110] sm:$0xff]  ;;  %v3668_v33 = vor.u32 %v4001_v22, %v3667_v21  ;;  %v3707_v22 = vld [vmem:[%s4476_s12 + $0x388] sm:$0xf] }
 0x278   : > { %v3701_v21 = vld [vmem:[%s4476_s12 + $0x390] sm:$0xf0] }
 0x279   : > { %v2376_v27 = vadd.f32 %v2262_v24, %v612_v23  ;;  %v3999_v24 = vld [vmem:[%s4476_s12 + $0x344] sm:$0xf] }
 0x27b   : > { %2440 = vst [vmem:[%s6333_s4 + $0xf0] sm:$0xff] %v2376_v27  ;;  %v4002_v27 = vld [vmem:[%s4476_s12 + $0x354] sm:$0xf0] }
 0x27c   : > { %v2094_v35 = vpop.f32.mrf.mxu2  ;;  %v1759_v40 = vpop.f32.mrf.mxu0 }
 0x27d   : > { %v2263_v36 = vpop.f32.mrf.mxu3  ;;  %v2095_v39 = vadd.f32 %v2094_v35, %v1926_v34  ;;  %v1928_v41 = vpop.f32.mrf.mxu1  ;;  %v3672_v34 = vor.u32 %v3999_v24, %v3669_v25  ;;  %v4008_v24 = vld [vmem:[%s4476_s12 + $0x38c] sm:$0xf]  ;;  %v3709_v25 = vld [vmem:[%s4476_s12 + $0x398] sm:$0xf0] }
 0x27e   : > { %v1929_v47 = vadd.f32 %v1928_v41, %v1759_v40  ;;  %v617_v40 = vld [vmem:[%s6333_s4 + $0x118] sm:$0xff] }
 0x27f   : > { %v2264_v45 = vadd.f32 %v2263_v36, %v2095_v39  ;;  %1798 = vmatmul.bf16.gmra.mxu0 %v3636_v37  ;;  %v3680_v39 = vor.u32 %v4000_v28, %v3677_v29 }
 0x280   : > { %1967 = vmatmul.bf16.gmra.mxu1 %v3640_v38  ;;  %v3676_v38 = vor.u32 %v4002_v27, %v3675_v26 }
 0x281   : > { %v2377_v46 = vadd.f32 %v2264_v45, %v613_v44  ;;  %2136 = vmatmul.bf16.gmra.mxu2 %v3644_v42 }
 0x282   : > { %2305 = vmatmul.bf16.gmra.mxu3 %v3648_v43 }
 0x283   : > { %2441 = vst [vmem:[%s6333_s4 + $0xf8] sm:$0xff] %v2377_v46 }
 0x284   : > { %v2097_v48 = vpop.f32.mrf.mxu2  ;;  %v1761_v51 = vpop.f32.mrf.mxu0 }
 0x285   : > { %v2266_v49 = vpop.f32.mrf.mxu3  ;;  %v2098_v50 = vadd.f32 %v2097_v48, %v1929_v47  ;;  %v1930_v52 = vpop.f32.mrf.mxu1 }
 0x286   : > { %v1931_v0 = vadd.f32 %v1930_v52, %v1761_v51  ;;  %v3683_v51 = vld [vmem:[%s4476_s12 + $0x360] sm:$0xf]  ;;  %v4005_v52 = vld [vmem:[%s4476_s12 + $0x36c] sm:$0xf0] }
 0x287   : > { %v2267_v54 = vadd.f32 %v2266_v49, %v2098_v50  ;;  %v618_v49 = vld [vmem:[%s6333_s4 + $0x120] sm:$0xff]  ;;  %v3684_v63 = vor.u32 %v4005_v52, %v3683_v51  ;;  %v3717_v51 = vld [vmem:[%s4476_s12 + $0x3b0] sm:$0xf0]  ;;  %v3723_v52 = vld [vmem:[%s4476_s12 + $0x3a8] sm:$0xf] }
 0x289   : > { %v2378_v57 = vadd.f32 %v2267_v54, %v614_v53  ;;  %v4003_v54 = vld [vmem:[%s4476_s12 + $0x364] sm:$0xf] }
 0x28b   : > { %2442 = vst [vmem:[%s6333_s4 + $0x100] sm:$0xff] %v2378_v57  ;;  %v4006_v57 = vld [vmem:[%s4476_s12 + $0x374] sm:$0xf0] }
 0x28c   : > { %v2099_v1 = vpop.f32.mrf.mxu2  ;;  %v1764_v6 = vpop.f32.mrf.mxu0 }
 0x28d   : > { %v2268_v2 = vpop.f32.mrf.mxu3  ;;  %v2100_v5 = vadd.f32 %v2099_v1, %v1931_v0  ;;  %v1933_v7 = vpop.f32.mrf.mxu1  ;;  %v3688_v0 = vor.u32 %v4003_v54, %v3685_v55  ;;  %v4012_v54 = vld [vmem:[%s4476_s12 + $0x3ac] sm:$0xf]  ;;  %v3725_v55 = vld [vmem:[%s4476_s12 + $0x3b8] sm:$0xf0] }
 0x28e   : > { %v1934_v13 = vadd.f32 %v1933_v7, %v1764_v6  ;;  %v619_v6 = vld [vmem:[%s6333_s4 + $0x128] sm:$0xff] }
 0x28f   : > { %v2269_v11 = vadd.f32 %v2268_v2, %v2100_v5  ;;  %1803 = vmatmul.bf16.gmra.mxu0 %v3652_v3  ;;  %v3696_v5 = vor.u32 %v4004_v58, %v3693_v59 }
 0x290   : > { %1972 = vmatmul.bf16.gmra.mxu1 %v3656_v4  ;;  %v3692_v4 = vor.u32 %v4006_v57, %v3691_v56 }
 0x291   : > { %v2379_v12 = vadd.f32 %v2269_v11, %v615_v10  ;;  %2141 = vmatmul.bf16.gmra.mxu2 %v3660_v8 }
 0x292   : > { %2310 = vmatmul.bf16.gmra.mxu3 %v3664_v9 }
 0x293   : > { %2443 = vst [vmem:[%s6333_s4 + $0x108] sm:$0xff] %v2379_v12 }
 0x294   : > { %v2102_v14 = vpop.f32.mrf.mxu2  ;;  %v1766_v17 = vpop.f32.mrf.mxu0 }
 0x295   : > { %v2271_v15 = vpop.f32.mrf.mxu3  ;;  %v2103_v16 = vadd.f32 %v2102_v14, %v1934_v13  ;;  %v1935_v18 = vpop.f32.mrf.mxu1 }
 0x296   : > { %v1936_v30 = vadd.f32 %v1935_v18, %v1766_v17  ;;  %v3699_v17 = vld [vmem:[%s4476_s12 + $0x380] sm:$0xf]  ;;  %v4009_v18 = vld [vmem:[%s4476_s12 + $0x38c] sm:$0xf0] }
 0x297   : > { %v2272_v20 = vadd.f32 %v2271_v15, %v2103_v16  ;;  %v620_v15 = vld [vmem:[%s6333_s4 + $0x130] sm:$0xff]  ;;  %v3700_v29 = vor.u32 %v4009_v18, %v3699_v17  ;;  %v3739_v18 = vld [vmem:[%s4476_s12 + $0x3c8] sm:$0xf] }
 0x298   : > { %v3733_v17 = vld [vmem:[%s4476_s12 + $0x3d0] sm:$0xf0] }
 0x299   : > { %v2380_v23 = vadd.f32 %v2272_v20, %v616_v19  ;;  %v4007_v20 = vld [vmem:[%s4476_s12 + $0x384] sm:$0xf] }
 0x29b   : > { %2444 = vst [vmem:[%s6333_s4 + $0x110] sm:$0xff] %v2380_v23  ;;  %v4010_v23 = vld [vmem:[%s4476_s12 + $0x394] sm:$0xf0] }
 0x29c   : > { %v2104_v31 = vpop.f32.mrf.mxu2  ;;  %v1769_v36 = vpop.f32.mrf.mxu0 }
 0x29d   : > { %v2273_v32 = vpop.f32.mrf.mxu3  ;;  %v2105_v35 = vadd.f32 %v2104_v31, %v1936_v30  ;;  %v1938_v37 = vpop.f32.mrf.mxu1  ;;  %v3704_v30 = vor.u32 %v4007_v20, %v3701_v21  ;;  %v4016_v20 = vld [vmem:[%s4476_s12 + $0x3cc] sm:$0xf]  ;;  %v3741_v21 = vld [vmem:[%s4476_s12 + $0x3d8] sm:$0xf0] }
 0x29e   : > { %v1939_v43 = vadd.f32 %v1938_v37, %v1769_v36  ;;  %v621_v36 = vld [vmem:[%s6333_s4 + $0x138] sm:$0xff] }
 0x29f   : > { %v2274_v41 = vadd.f32 %v2273_v32, %v2105_v35  ;;  %1808 = vmatmul.bf16.gmra.mxu0 %v3668_v33  ;;  %v3712_v35 = vor.u32 %v4008_v24, %v3709_v25 }
 0x2a0   : > { %1977 = vmatmul.bf16.gmra.mxu1 %v3672_v34  ;;  %v3708_v34 = vor.u32 %v4010_v23, %v3707_v22 }
 0x2a1   : > { %v2381_v42 = vadd.f32 %v2274_v41, %v617_v40  ;;  %2146 = vmatmul.bf16.gmra.mxu2 %v3676_v38 }
 0x2a2   : > { %2315 = vmatmul.bf16.gmra.mxu3 %v3680_v39 }
 0x2a3   : > { %2445 = vst [vmem:[%s6333_s4 + $0x118] sm:$0xff] %v2381_v42 }
 0x2a4   : > { %v2107_v44 = vpop.f32.mrf.mxu2  ;;  %v1771_v47 = vpop.f32.mrf.mxu0 }
 0x2a5   : > { %v2276_v45 = vpop.f32.mrf.mxu3  ;;  %v2108_v46 = vadd.f32 %v2107_v44, %v1939_v43  ;;  %v1940_v48 = vpop.f32.mrf.mxu1 }
 0x2a6   : > { %v1941_v60 = vadd.f32 %v1940_v48, %v1771_v47  ;;  %v3715_v47 = vld [vmem:[%s4476_s12 + $0x3a0] sm:$0xf]  ;;  %v4013_v48 = vld [vmem:[%s4476_s12 + $0x3ac] sm:$0xf0] }
 0x2a7   : > { %v2277_v50 = vadd.f32 %v2276_v45, %v2108_v46  ;;  %v622_v45 = vld [vmem:[%s6333_s4 + $0x140] sm:$0xff]  ;;  %v3716_v59 = vor.u32 %v4013_v48, %v3715_v47  ;;  %v3749_v47 = vld [vmem:[%s4476_s12 + $0x3f0] sm:$0xf0]  ;;  %v3755_v48 = vld [vmem:[%s4476_s12 + $0x3e8] sm:$0xf] }
 0x2a9   : > { %v2382_v53 = vadd.f32 %v2277_v50, %v618_v49  ;;  %v4011_v50 = vld [vmem:[%s4476_s12 + $0x3a4] sm:$0xf] }
 0x2ab   : > { %2446 = vst [vmem:[%s6333_s4 + $0x120] sm:$0xff] %v2382_v53  ;;  %v4014_v53 = vld [vmem:[%s4476_s12 + $0x3b4] sm:$0xf0] }
 0x2ac   : > { %v2109_v61 = vpop.f32.mrf.mxu2  ;;  %v1774_v2 = vpop.f32.mrf.mxu0 }
 0x2ad   : > { %v2278_v62 = vpop.f32.mrf.mxu3  ;;  %v2110_v1 = vadd.f32 %v2109_v61, %v1941_v60  ;;  %v1943_v3 = vpop.f32.mrf.mxu1  ;;  %v3720_v60 = vor.u32 %v4011_v50, %v3717_v51  ;;  %v4020_v50 = vld [vmem:[%s4476_s12 + $0x3ec] sm:$0xf]  ;;  %v3757_v51 = vld [vmem:[%s4476_s12 + $0x3f8] sm:$0xf0] }
 0x2ae   : > { %v1944_v9 = vadd.f32 %v1943_v3, %v1774_v2  ;;  %v623_v2 = vld [vmem:[%s6333_s4 + $0x148] sm:$0xff] }
 0x2af   : > { %v2279_v7 = vadd.f32 %v2278_v62, %v2110_v1  ;;  %1813 = vmatmul.bf16.gmra.mxu0 %v3684_v63  ;;  %v3728_v1 = vor.u32 %v4012_v54, %v3725_v55 }
 0x2b0   : > { %1982 = vmatmul.bf16.gmra.mxu1 %v3688_v0  ;;  %v3724_v0 = vor.u32 %v4014_v53, %v3723_v52 }
 0x2b1   : > { %v2383_v8 = vadd.f32 %v2279_v7, %v619_v6  ;;  %2151 = vmatmul.bf16.gmra.mxu2 %v3692_v4 }
 0x2b2   : > { %2320 = vmatmul.bf16.gmra.mxu3 %v3696_v5 }
 0x2b3   : > { %2447 = vst [vmem:[%s6333_s4 + $0x128] sm:$0xff] %v2383_v8 }
 0x2b4   : > { %v2112_v10 = vpop.f32.mrf.mxu2  ;;  %v1776_v13 = vpop.f32.mrf.mxu0 }
 0x2b5   : > { %v2281_v11 = vpop.f32.mrf.mxu3  ;;  %v2113_v12 = vadd.f32 %v2112_v10, %v1944_v9  ;;  %v1945_v14 = vpop.f32.mrf.mxu1 }
 0x2b6   : > { %v1946_v26 = vadd.f32 %v1945_v14, %v1776_v13  ;;  %v3731_v13 = vld [vmem:[%s4476_s12 + $0x3c0] sm:$0xf]  ;;  %v4017_v14 = vld [vmem:[%s4476_s12 + $0x3cc] sm:$0xf0] }
 0x2b7   : > { %v2282_v16 = vadd.f32 %v2281_v11, %v2113_v12  ;;  %v624_v11 = vld [vmem:[%s6333_s4 + $0x150] sm:$0xff]  ;;  %v3732_v25 = vor.u32 %v4017_v14, %v3731_v13 }
 0x2b9   : > { %v2384_v19 = vadd.f32 %v2282_v16, %v620_v15  ;;  %v4015_v16 = vld [vmem:[%s4476_s12 + $0x3c4] sm:$0xf] }
 0x2bb   : > { %2448 = vst [vmem:[%s6333_s4 + $0x130] sm:$0xff] %v2384_v19  ;;  %v4018_v19 = vld [vmem:[%s4476_s12 + $0x3d4] sm:$0xf0] }
 0x2bc   : > { %v2114_v27 = vpop.f32.mrf.mxu2  ;;  %v1779_v32 = vpop.f32.mrf.mxu0 }
 0x2bd   : > { %v2283_v28 = vpop.f32.mrf.mxu3  ;;  %v2115_v31 = vadd.f32 %v2114_v27, %v1946_v26  ;;  %v1948_v33 = vpop.f32.mrf.mxu1  ;;  %v3736_v26 = vor.u32 %v4015_v16, %v3733_v17  ;;  %v629_v16 = vld [vmem:[%s6333_s4 + $0x178] sm:$0xff] }
 0x2be   : > { %v1949_v39 = vadd.f32 %v1948_v33, %v1779_v32  ;;  %v625_v32 = vld [vmem:[%s6333_s4 + $0x158] sm:$0xff] }
 0x2bf   : > { %v2284_v37 = vadd.f32 %v2283_v28, %v2115_v31  ;;  %1818 = vmatmul.bf16.gmra.mxu0 %v3700_v29  ;;  %v3744_v31 = vor.u32 %v4016_v20, %v3741_v21 }
 0x2c0   : > { %1987 = vmatmul.bf16.gmra.mxu1 %v3704_v30  ;;  %v3740_v30 = vor.u32 %v4018_v19, %v3739_v18 }
 0x2c1   : > { %v2385_v38 = vadd.f32 %v2284_v37, %v621_v36  ;;  %2156 = vmatmul.bf16.gmra.mxu2 %v3708_v34 }
 0x2c2   : > { %2325 = vmatmul.bf16.gmra.mxu3 %v3712_v35 }
 0x2c3   : > { %2449 = vst [vmem:[%s6333_s4 + $0x138] sm:$0xff] %v2385_v38 }
 0x2c4   : > { %v2117_v40 = vpop.f32.mrf.mxu2  ;;  %v1781_v43 = vpop.f32.mrf.mxu0 }
 0x2c5   : > { %v2286_v41 = vpop.f32.mrf.mxu3  ;;  %v2118_v42 = vadd.f32 %v2117_v40, %v1949_v39  ;;  %v1950_v44 = vpop.f32.mrf.mxu1 }
 0x2c6   : > { %v1951_v56 = vadd.f32 %v1950_v44, %v1781_v43  ;;  %v3747_v43 = vld [vmem:[%s4476_s12 + $0x3e0] sm:$0xf]  ;;  %v4021_v44 = vld [vmem:[%s4476_s12 + $0x3ec] sm:$0xf0] }
 0x2c7   : > { %v2287_v46 = vadd.f32 %v2286_v41, %v2118_v42  ;;  %v626_v41 = vld [vmem:[%s6333_s4 + $0x160] sm:$0xff]  ;;  %v3748_v55 = vor.u32 %v4021_v44, %v3747_v43  ;;  %v632_v43 = vld [vmem:[%s6333_s4 + $0x190] sm:$0xff] }
 0x2c9   : > { %v2386_v49 = vadd.f32 %v2287_v46, %v622_v45  ;;  %v4019_v46 = vld [vmem:[%s4476_s12 + $0x3e4] sm:$0xf] }
 0x2cb   : > { %2450 = vst [vmem:[%s6333_s4 + $0x140] sm:$0xff] %v2386_v49  ;;  %v4022_v49 = vld [vmem:[%s4476_s12 + $0x3f4] sm:$0xf0] }
 0x2cc   : > { %v2119_v57 = vpop.f32.mrf.mxu2  ;;  %v1784_v62 = vpop.f32.mrf.mxu0 }
 0x2cd   : > { %v2288_v58 = vpop.f32.mrf.mxu3  ;;  %v2120_v61 = vadd.f32 %v2119_v57, %v1951_v56  ;;  %v1953_v63 = vpop.f32.mrf.mxu1  ;;  %v3752_v56 = vor.u32 %v4019_v46, %v3749_v47 }
 0x2ce   : > { %v1954_v5 = vadd.f32 %v1953_v63, %v1784_v62  ;;  %v627_v62 = vld [vmem:[%s6333_s4 + $0x168] sm:$0xff] }
 0x2cf   : > { %v2289_v3 = vadd.f32 %v2288_v58, %v2120_v61  ;;  %1823 = vmatmul.bf16.gmra.mxu0 %v3716_v59  ;;  %v3760_v61 = vor.u32 %v4020_v50, %v3757_v51 }
 0x2d0   : > { %1992 = vmatmul.bf16.gmra.mxu1 %v3720_v60  ;;  %v3756_v60 = vor.u32 %v4022_v49, %v3755_v48 }
 0x2d1   : > { %v2387_v4 = vadd.f32 %v2289_v3, %v623_v2  ;;  %2161 = vmatmul.bf16.gmra.mxu2 %v3724_v0 }
 0x2d2   : > { %2330 = vmatmul.bf16.gmra.mxu3 %v3728_v1 }
 0x2d3   : > { %2451 = vst [vmem:[%s6333_s4 + $0x148] sm:$0xff] %v2387_v4 }
 0x2d4   : > { %v2122_v6 = vpop.f32.mrf.mxu2  ;;  %v1786_v9 = vpop.f32.mrf.mxu0 }
 0x2d5   : > { %v2291_v7 = vpop.f32.mrf.mxu3  ;;  %v2123_v8 = vadd.f32 %v2122_v6, %v1954_v5  ;;  %v1955_v10 = vpop.f32.mrf.mxu1 }
 0x2d6   : > { %v1956_v22 = vadd.f32 %v1955_v10, %v1786_v9 }
 0x2d7   : > { %v2292_v12 = vadd.f32 %v2291_v7, %v2123_v8  ;;  %v628_v7 = vld [vmem:[%s6333_s4 + $0x170] sm:$0xff] }
 0x2d9   : > { %v2388_v15 = vadd.f32 %v2292_v12, %v624_v11 }
 0x2db   : > { %2452 = vst [vmem:[%s6333_s4 + $0x150] sm:$0xff] %v2388_v15 }
 0x2dc   : > { %v2124_v23 = vpop.f32.mrf.mxu2  ;;  %v1789_v28 = vpop.f32.mrf.mxu0 }
 0x2dd   : > { %v2293_v24 = vpop.f32.mrf.mxu3  ;;  %v2125_v27 = vadd.f32 %v2124_v23, %v1956_v22  ;;  %v1958_v29 = vpop.f32.mrf.mxu1 }
 0x2de   : > { %v1959_v35 = vadd.f32 %v1958_v29, %v1789_v28 }
 0x2df   : > { %v2294_v33 = vadd.f32 %v2293_v24, %v2125_v27  ;;  %1828 = vmatmul.bf16.gmra.mxu0 %v3732_v25  ;;  %v630_v25 = vld [vmem:[%s6333_s4 + $0x180] sm:$0xff] }
 0x2e0   : > { %1997 = vmatmul.bf16.gmra.mxu1 %v3736_v26 }
 0x2e1   : > { %v2389_v34 = vadd.f32 %v2294_v33, %v625_v32  ;;  %2166 = vmatmul.bf16.gmra.mxu2 %v3740_v30 }
 0x2e2   : > { %2335 = vmatmul.bf16.gmra.mxu3 %v3744_v31 }
 0x2e3   : > { %2453 = vst [vmem:[%s6333_s4 + $0x158] sm:$0xff] %v2389_v34  ;;  %v631_v34 = vld [vmem:[%s6333_s4 + $0x188] sm:$0xff] }
 0x2e4   : > { %v2127_v36 = vpop.f32.mrf.mxu2  ;;  %v1791_v39 = vpop.f32.mrf.mxu0 }
 0x2e5   : > { %v2296_v37 = vpop.f32.mrf.mxu3  ;;  %v2128_v38 = vadd.f32 %v2127_v36, %v1959_v35  ;;  %v1960_v40 = vpop.f32.mrf.mxu1 }
 0x2e6   : > { %v1961_v52 = vadd.f32 %v1960_v40, %v1791_v39 }
 0x2e7   : > { %v2297_v42 = vadd.f32 %v2296_v37, %v2128_v38 }
 0x2e9   : > { %v2390_v45 = vadd.f32 %v2297_v42, %v626_v41 }
 0x2eb   : > { %2454 = vst [vmem:[%s6333_s4 + $0x160] sm:$0xff] %v2390_v45 }
 0x2ec   : > { %v2129_v53 = vpop.f32.mrf.mxu2  ;;  %v1794_v58 = vpop.f32.mrf.mxu0 }
 0x2ed   : > { %v2298_v54 = vpop.f32.mrf.mxu3  ;;  %v2130_v57 = vadd.f32 %v2129_v53, %v1961_v52  ;;  %v1963_v59 = vpop.f32.mrf.mxu1  ;;  %v633_v52 = vld [vmem:[%s6333_s4 + $0x198] sm:$0xff] }
 0x2ee   : > { %v1964_v1 = vadd.f32 %v1963_v59, %v1794_v58 }
 0x2ef   : > { %v2299_v63 = vadd.f32 %v2298_v54, %v2130_v57  ;;  %1833 = vmatmul.bf16.gmra.mxu0 %v3748_v55 }
 0x2f0   : > { %2002 = vmatmul.bf16.gmra.mxu1 %v3752_v56 }
 0x2f1   : > { %v2391_v0 = vadd.f32 %v2299_v63, %v627_v62  ;;  %2171 = vmatmul.bf16.gmra.mxu2 %v3756_v60 }
 0x2f2   : > { %2340 = vmatmul.bf16.gmra.mxu3 %v3760_v61  ;;  %v634_v61 = vld [vmem:[%s6333_s4 + $0x1a0] sm:$0xff] }
 0x2f3   : > { %2455 = vst [vmem:[%s6333_s4 + $0x168] sm:$0xff] %v2391_v0 }
 0x2f4   : > { %v2132_v2 = vpop.f32.mrf.mxu2  ;;  %v1796_v5 = vpop.f32.mrf.mxu0 }
 0x2f5   : > { %v2301_v3 = vpop.f32.mrf.mxu3  ;;  %v2133_v4 = vadd.f32 %v2132_v2, %v1964_v1  ;;  %v1965_v6 = vpop.f32.mrf.mxu1 }
 0x2f6   : > { %v1966_v10 = vadd.f32 %v1965_v6, %v1796_v5  ;;  %v635_v6 = vld [vmem:[%s6333_s4 + $0x1a8] sm:$0xff] }
 0x2f7   : > { %v2302_v8 = vadd.f32 %v2301_v3, %v2133_v4 }
 0x2f9   : > { %v2392_v9 = vadd.f32 %v2302_v8, %v628_v7 }
 0x2fb   : > { %2456 = vst [vmem:[%s6333_s4 + $0x170] sm:$0xff] %v2392_v9 }
 0x2fc   : > { %v2134_v11 = vpop.f32.mrf.mxu2  ;;  %v1799_v14 = vpop.f32.mrf.mxu0 }
 0x2fd   : > { %v2303_v12 = vpop.f32.mrf.mxu3  ;;  %v2135_v13 = vadd.f32 %v2134_v11, %v1966_v10  ;;  %v1968_v15 = vpop.f32.mrf.mxu1 }
 0x2fe   : > { %v1969_v19 = vadd.f32 %v1968_v15, %v1799_v14  ;;  %v636_v15 = vld [vmem:[%s6333_s4 + $0x1b0] sm:$0xff] }
 0x2ff   : > { %v2304_v17 = vadd.f32 %v2303_v12, %v2135_v13 }
 0x301   : > { %v2393_v18 = vadd.f32 %v2304_v17, %v629_v16 }
 0x303   : > { %2457 = vst [vmem:[%s6333_s4 + $0x178] sm:$0xff] %v2393_v18 }
 0x304   : > { %v2137_v20 = vpop.f32.mrf.mxu2  ;;  %v1801_v23 = vpop.f32.mrf.mxu0 }
 0x305   : > { %v2306_v21 = vpop.f32.mrf.mxu3  ;;  %v2138_v22 = vadd.f32 %v2137_v20, %v1969_v19  ;;  %v1970_v24 = vpop.f32.mrf.mxu1 }
 0x306   : > { %v1971_v28 = vadd.f32 %v1970_v24, %v1801_v23  ;;  %v637_v24 = vld [vmem:[%s6333_s4 + $0x1b8] sm:$0xff] }
 0x307   : > { %v2307_v26 = vadd.f32 %v2306_v21, %v2138_v22 }
 0x309   : > { %v2394_v27 = vadd.f32 %v2307_v26, %v630_v25 }
 0x30b   : > { %2458 = vst [vmem:[%s6333_s4 + $0x180] sm:$0xff] %v2394_v27 }
 0x30c   : > { %v2139_v29 = vpop.f32.mrf.mxu2  ;;  %v1804_v32 = vpop.f32.mrf.mxu0 }
 0x30d   : > { %v2308_v30 = vpop.f32.mrf.mxu3  ;;  %v2140_v31 = vadd.f32 %v2139_v29, %v1971_v28  ;;  %v1973_v33 = vpop.f32.mrf.mxu1 }
 0x30e   : > { %v1974_v37 = vadd.f32 %v1973_v33, %v1804_v32  ;;  %v638_v33 = vld [vmem:[%s6333_s4 + $0x1c0] sm:$0xff] }
 0x30f   : > { %v2309_v35 = vadd.f32 %v2308_v30, %v2140_v31 }
 0x311   : > { %v2395_v36 = vadd.f32 %v2309_v35, %v631_v34 }
 0x313   : > { %2459 = vst [vmem:[%s6333_s4 + $0x188] sm:$0xff] %v2395_v36 }
 0x314   : > { %v2142_v38 = vpop.f32.mrf.mxu2  ;;  %v1806_v41 = vpop.f32.mrf.mxu0 }
 0x315   : > { %v2311_v39 = vpop.f32.mrf.mxu3  ;;  %v2143_v40 = vadd.f32 %v2142_v38, %v1974_v37  ;;  %v1975_v42 = vpop.f32.mrf.mxu1 }
 0x316   : > { %v1976_v46 = vadd.f32 %v1975_v42, %v1806_v41  ;;  %v639_v42 = vld [vmem:[%s6333_s4 + $0x1c8] sm:$0xff] }
 0x317   : > { %v2312_v44 = vadd.f32 %v2311_v39, %v2143_v40 }
 0x319   : > { %v2396_v45 = vadd.f32 %v2312_v44, %v632_v43 }
 0x31b   : > { %2460 = vst [vmem:[%s6333_s4 + $0x190] sm:$0xff] %v2396_v45 }
 0x31c   : > { %v2144_v47 = vpop.f32.mrf.mxu2  ;;  %v1809_v50 = vpop.f32.mrf.mxu0 }
 0x31d   : > { %v2313_v48 = vpop.f32.mrf.mxu3  ;;  %v2145_v49 = vadd.f32 %v2144_v47, %v1976_v46  ;;  %v1978_v51 = vpop.f32.mrf.mxu1 }
 0x31e   : > { %v1979_v55 = vadd.f32 %v1978_v51, %v1809_v50  ;;  %v640_v51 = vld [vmem:[%s6333_s4 + $0x1d0] sm:$0xff] }
 0x31f   : > { %v2314_v53 = vadd.f32 %v2313_v48, %v2145_v49 }
 0x321   : > { %v2397_v54 = vadd.f32 %v2314_v53, %v633_v52 }
 0x323   : > { %2461 = vst [vmem:[%s6333_s4 + $0x198] sm:$0xff] %v2397_v54 }
 0x324   : > { %v2147_v56 = vpop.f32.mrf.mxu2  ;;  %v1811_v59 = vpop.f32.mrf.mxu0 }
 0x325   : > { %v2316_v57 = vpop.f32.mrf.mxu3  ;;  %v2148_v58 = vadd.f32 %v2147_v56, %v1979_v55  ;;  %v1980_v60 = vpop.f32.mrf.mxu1 }
 0x326   : > { %v1981_v0 = vadd.f32 %v1980_v60, %v1811_v59  ;;  %v641_v60 = vld [vmem:[%s6333_s4 + $0x1d8] sm:$0xff] }
 0x327   : > { %v2317_v62 = vadd.f32 %v2316_v57, %v2148_v58 }
 0x329   : > { %v2398_v63 = vadd.f32 %v2317_v62, %v634_v61 }
 0x32b   : > { %2462 = vst [vmem:[%s6333_s4 + $0x1a0] sm:$0xff] %v2398_v63 }
 0x32c   : > { %v2149_v1 = vpop.f32.mrf.mxu2  ;;  %v1814_v4 = vpop.f32.mrf.mxu0 }
 0x32d   : > { %v2318_v2 = vpop.f32.mrf.mxu3  ;;  %v2150_v3 = vadd.f32 %v2149_v1, %v1981_v0  ;;  %v1983_v5 = vpop.f32.mrf.mxu1 }
 0x32e   : > { %v1984_v9 = vadd.f32 %v1983_v5, %v1814_v4  ;;  %v642_v5 = vld [vmem:[%s6333_s4 + $0x1e0] sm:$0xff] }
 0x32f   : > { %v2319_v7 = vadd.f32 %v2318_v2, %v2150_v3 }
 0x331   : > { %v2399_v8 = vadd.f32 %v2319_v7, %v635_v6 }
 0x333   : > { %2463 = vst [vmem:[%s6333_s4 + $0x1a8] sm:$0xff] %v2399_v8 }
 0x334   : > { %v2152_v10 = vpop.f32.mrf.mxu2  ;;  %v1816_v13 = vpop.f32.mrf.mxu0 }
 0x335   : > { %v2321_v11 = vpop.f32.mrf.mxu3  ;;  %v2153_v12 = vadd.f32 %v2152_v10, %v1984_v9  ;;  %v1985_v14 = vpop.f32.mrf.mxu1 }
 0x336   : > { %v1986_v18 = vadd.f32 %v1985_v14, %v1816_v13 }
 0x337   : > { %v2322_v16 = vadd.f32 %v2321_v11, %v2153_v12  ;;  %v643_v12 = vld [vmem:[%s6333_s4 + $0x1e8] sm:$0xff] }
 0x339   : > { %v2400_v17 = vadd.f32 %v2322_v16, %v636_v15 }
 0x33b   : > { %2464 = vst [vmem:[%s6333_s4 + $0x1b0] sm:$0xff] %v2400_v17 }
 0x33c   : > { %v2154_v19 = vpop.f32.mrf.mxu2  ;;  %v1819_v22 = vpop.f32.mrf.mxu0 }
 0x33d   : > { %v2323_v20 = vpop.f32.mrf.mxu3  ;;  %v2155_v21 = vadd.f32 %v2154_v19, %v1986_v18  ;;  %v1988_v23 = vpop.f32.mrf.mxu1 }
 0x33e   : > { %v1989_v27 = vadd.f32 %v1988_v23, %v1819_v22 }
 0x33f   : > { %v2324_v25 = vadd.f32 %v2323_v20, %v2155_v21  ;;  %v644_v21 = vld [vmem:[%s6333_s4 + $0x1f0] sm:$0xff] }
 0x341   : > { %v2401_v26 = vadd.f32 %v2324_v25, %v637_v24 }
 0x343   : > { %2465 = vst [vmem:[%s6333_s4 + $0x1b8] sm:$0xff] %v2401_v26 }
 0x344   : > { %v2157_v28 = vpop.f32.mrf.mxu2  ;;  %v1821_v31 = vpop.f32.mrf.mxu0 }
 0x345   : > { %v2326_v29 = vpop.f32.mrf.mxu3  ;;  %v2158_v30 = vadd.f32 %v2157_v28, %v1989_v27  ;;  %v1990_v32 = vpop.f32.mrf.mxu1 }
 0x346   : > { %v1991_v36 = vadd.f32 %v1990_v32, %v1821_v31 }
 0x347   : > { %v2327_v34 = vadd.f32 %v2326_v29, %v2158_v30  ;;  %v645_v29 = vld [vmem:[%s6333_s4 + $0x1f8] sm:$0xff] }
 0x349   : > { %v2402_v35 = vadd.f32 %v2327_v34, %v638_v33 }
 0x34b   : > { %2466 = vst [vmem:[%s6333_s4 + $0x1c0] sm:$0xff] %v2402_v35 }
 0x34c   : > { %v2159_v37 = vpop.f32.mrf.mxu2  ;;  %v1824_v40 = vpop.f32.mrf.mxu0 }
 0x34d   : > { %v2328_v38 = vpop.f32.mrf.mxu3  ;;  %v2160_v39 = vadd.f32 %v2159_v37, %v1991_v36  ;;  %v1993_v41 = vpop.f32.mrf.mxu1 }
 0x34e   : > { %v1994_v45 = vadd.f32 %v1993_v41, %v1824_v40 }
 0x34f   : > { %v2329_v43 = vadd.f32 %v2328_v38, %v2160_v39 }
 0x351   : > { %v2403_v44 = vadd.f32 %v2329_v43, %v639_v42 }
 0x353   : > { %2467 = vst [vmem:[%s6333_s4 + $0x1c8] sm:$0xff] %v2403_v44 }
 0x354   : > { %v2162_v46 = vpop.f32.mrf.mxu2  ;;  %v1826_v49 = vpop.f32.mrf.mxu0 }
 0x355   : > { %v2331_v47 = vpop.f32.mrf.mxu3  ;;  %v2163_v48 = vadd.f32 %v2162_v46, %v1994_v45  ;;  %v1995_v50 = vpop.f32.mrf.mxu1 }
 0x356   : > { %v1996_v54 = vadd.f32 %v1995_v50, %v1826_v49 }
 0x357   : > { %v2332_v52 = vadd.f32 %v2331_v47, %v2163_v48 }
 0x359   : > { %v2404_v53 = vadd.f32 %v2332_v52, %v640_v51 }
 0x35b   : > { %2468 = vst [vmem:[%s6333_s4 + $0x1d0] sm:$0xff] %v2404_v53 }
 0x35c   : > { %v2164_v55 = vpop.f32.mrf.mxu2  ;;  %v1829_v58 = vpop.f32.mrf.mxu0 }
 0x35d   : > { %v2333_v56 = vpop.f32.mrf.mxu3  ;;  %v2165_v57 = vadd.f32 %v2164_v55, %v1996_v54  ;;  %v1998_v59 = vpop.f32.mrf.mxu1 }
 0x35e   : > { %v1999_v63 = vadd.f32 %v1998_v59, %v1829_v58 }
 0x35f   : > { %v2334_v61 = vadd.f32 %v2333_v56, %v2165_v57 }
 0x361   : > { %v2405_v62 = vadd.f32 %v2334_v61, %v641_v60 }
 0x363   : > { %2469 = vst [vmem:[%s6333_s4 + $0x1d8] sm:$0xff] %v2405_v62 }
 0x364   : > { %v2167_v0 = vpop.f32.mrf.mxu2  ;;  %v1831_v3 = vpop.f32.mrf.mxu0 }
 0x365   : > { %v2336_v1 = vpop.f32.mrf.mxu3  ;;  %v2168_v2 = vadd.f32 %v2167_v0, %v1999_v63  ;;  %v2000_v4 = vpop.f32.mrf.mxu1 }
 0x366   : > { %v2001_v8 = vadd.f32 %v2000_v4, %v1831_v3 }
 0x367   : > { %v2337_v6 = vadd.f32 %v2336_v1, %v2168_v2 }
 0x369   : > { %v2406_v7 = vadd.f32 %v2337_v6, %v642_v5 }
 0x36b   : > { %2470 = vst [vmem:[%s6333_s4 + $0x1e0] sm:$0xff] %v2406_v7 }
 0x36c   : > { %v2169_v9 = vpop.f32.mrf.mxu2  ;;  %v1834_v13 = vpop.f32.mrf.mxu0 }
 0x36d   : > { %v2338_v10 = vpop.f32.mrf.mxu3  ;;  %v2170_v11 = vadd.f32 %v2169_v9, %v2001_v8  ;;  %v2003_v14 = vpop.f32.mrf.mxu1 }
 0x36e   : > { %v2004_v17 = vadd.f32 %v2003_v14, %v1834_v13 }
 0x36f   : > { %v2339_v15 = vadd.f32 %v2338_v10, %v2170_v11 }
 0x371   : > { %v2407_v16 = vadd.f32 %v2339_v15, %v643_v12 }
 0x373   : > { %2471 = vst [vmem:[%s6333_s4 + $0x1e8] sm:$0xff] %v2407_v16 }
 0x374   : > { %v2172_v18 = vpop.f32.mrf.mxu2  ;;  %v1836_v23 = vpop.f32.mrf.mxu0 }
 0x375   : > { %v2341_v19 = vpop.f32.mrf.mxu3  ;;  %v2173_v20 = vadd.f32 %v2172_v18, %v2004_v17  ;;  %v2005_v24 = vpop.f32.mrf.mxu1 }
 0x376   : > { %v2006_v26 = vadd.f32 %v2005_v24, %v1836_v23 }
 0x377   : > { %v2342_v22 = vadd.f32 %v2341_v19, %v2173_v20 }
 0x379   : > { %v2408_v25 = vadd.f32 %v2342_v22, %v644_v21 }
 0x37b   : > { %2472 = vst [vmem:[%s6333_s4 + $0x1f0] sm:$0xff] %v2408_v25 }
 0x37c   : > { %v2174_v27 = vpop.f32.mrf.mxu2 }
 0x37d   : > { %v2175_v28 = vadd.f32 %v2174_v27, %v2006_v26  ;;  %v2343_v30 = vpop.f32.mrf.mxu3 }
 0x37f   : > { %v2344_v31 = vadd.f32 %v2343_v30, %v2175_v28  ;;  %2477 = sbr.rel (%p3889_p11) target bundleno = 1157 (0x485), region = 67 }
 0x381   : > { %v2409_v32 = vadd.f32 %v2344_v31, %v645_v29 }
 0x383   : > { %2473 = vst [vmem:[%s6333_s4 + $0x1f8] sm:$0xff] %v2409_v32 }
 0x384   : > { %v5411_v33 = vld [vmem:[%s6333_s4] sm:$0xff]  ;;  %v5416_v34 = vld [vmem:[%s6333_s4 + $0x8] sm:$0xff]  ;;  %v5421_v35 = vld [vmem:[%s6333_s4 + $0x10] sm:$0xff] }
 0x385   : > { %v5426_v36 = vld [vmem:[%s6333_s4 + $0x18] sm:$0xff]  ;;  %v2542_v37 = vadd.f32 %v5416_v34, %v5411_v33  ;;  %v2612_v38 = vmul.f32 %v5411_v33, %v5411_v33  ;;  %v2613_v39 = vmul.f32 %v5416_v34, %v5416_v34  ;;  %v2614_v40 = vmul.f32 %v5421_v35, %v5421_v35  ;;  %v5439_v41 = vld [vmem:[%s6333_s4 + $0x20] sm:$0xff]  ;;  %v5447_v45 = vld [vmem:[%s6333_s4 + $0x28] sm:$0xff] }
 0x386   : > { %v2615_v43 = vmul.f32 %v5426_v36, %v5426_v36  ;;  %v2616_v47 = vmul.f32 %v5439_v41, %v5439_v41  ;;  %v5455_v49 = vld [vmem:[%s6333_s4 + $0x30] sm:$0xff]  ;;  %v2617_v51 = vmul.f32 %v5447_v45, %v5447_v45  ;;  %v5463_v53 = vld [vmem:[%s6333_s4 + $0x38] sm:$0xff]  ;;  %v5471_v57 = vld [vmem:[%s6333_s4 + $0x40] sm:$0xff] }
 0x387   : > { %v2543_v42 = vadd.f32 %v2542_v37, %v5421_v35  ;;  %v2676_v44 = vadd.f32 %v2613_v39, %v2612_v38  ;;  %v2618_v55 = vmul.f32 %v5455_v49, %v5455_v49  ;;  %v2619_v59 = vmul.f32 %v5463_v53, %v5463_v53  ;;  %v5479_v61 = vld [vmem:[%s6333_s4 + $0x48] sm:$0xff]  ;;  %v5487_v1 = vld [vmem:[%s6333_s4 + $0x50] sm:$0xff]  ;;  %v5495_v5 = vld [vmem:[%s6333_s4 + $0x58] sm:$0xff] }
 0x388   : > { %v2620_v63 = vmul.f32 %v5471_v57, %v5471_v57  ;;  %v2621_v3 = vmul.f32 %v5479_v61, %v5479_v61  ;;  %v2622_v7 = vmul.f32 %v5487_v1, %v5487_v1  ;;  %v5503_v9 = vld [vmem:[%s6333_s4 + $0x60] sm:$0xff]  ;;  %v2623_v11 = vmul.f32 %v5495_v5, %v5495_v5  ;;  %v5511_v13 = vld [vmem:[%s6333_s4 + $0x68] sm:$0xff]  ;;  %v5519_v17 = vld [vmem:[%s6333_s4 + $0x70] sm:$0xff] }
 0x389   : > { %v2544_v46 = vadd.f32 %v2543_v42, %v5426_v36  ;;  %v2677_v48 = vadd.f32 %v2676_v44, %v2614_v40  ;;  %v2624_v15 = vmul.f32 %v5503_v9, %v5503_v9  ;;  %v2625_v19 = vmul.f32 %v5511_v13, %v5511_v13  ;;  %v5527_v21 = vld [vmem:[%s6333_s4 + $0x78] sm:$0xff]  ;;  %v5535_v25 = vld [vmem:[%s6333_s4 + $0x80] sm:$0xff]  ;;  %v5543_v29 = vld [vmem:[%s6333_s4 + $0x88] sm:$0xff] }
 0x38a   : > { %v2626_v23 = vmul.f32 %v5519_v17, %v5519_v17  ;;  %v2627_v27 = vmul.f32 %v5527_v21, %v5527_v21  ;;  %v2628_v31 = vmul.f32 %v5535_v25, %v5535_v25  ;;  %v5551_v37 = vld [vmem:[%s6333_s4 + $0x90] sm:$0xff]  ;;  %v2629_v39 = vmul.f32 %v5543_v29, %v5543_v29  ;;  %v5559_v42 = vld [vmem:[%s6333_s4 + $0x98] sm:$0xff] }
 0x38b   : > { %v2545_v50 = vadd.f32 %v2544_v46, %v5439_v41  ;;  %v2678_v52 = vadd.f32 %v2677_v48, %v2615_v43  ;;  %v2630_v44 = vmul.f32 %v5551_v37, %v5551_v37 }
 0x38d   : > { %v2546_v54 = vadd.f32 %v2545_v50, %v5447_v45  ;;  %v2679_v56 = vadd.f32 %v2678_v52, %v2616_v47  ;;  %v5567_v47 = vld [vmem:[%s6333_s4 + $0xa0] sm:$0xff]  ;;  %v2631_v50 = vmul.f32 %v5559_v42, %v5559_v42  ;;  %v5575_v52 = vld [vmem:[%s6333_s4 + $0xa8] sm:$0xff] }
 0x38f   : > { %v2547_v58 = vadd.f32 %v2546_v54, %v5455_v49  ;;  %v2680_v60 = vadd.f32 %v2679_v56, %v2617_v51 }
 0x391   : > { %v2548_v62 = vadd.f32 %v2547_v58, %v5463_v53  ;;  %v2681_v0 = vadd.f32 %v2680_v60, %v2618_v55  ;;  %v2632_v55 = vmul.f32 %v5567_v47, %v5567_v47  ;;  %v5583_v58 = vld [vmem:[%s6333_s4 + $0xb0] sm:$0xff]  ;;  %v2633_v60 = vmul.f32 %v5575_v52, %v5575_v52 }
 0x393   : > { %v2549_v2 = vadd.f32 %v2548_v62, %v5471_v57  ;;  %v2682_v4 = vadd.f32 %v2681_v0, %v2619_v59 }
 0x395   : > { %v2550_v6 = vadd.f32 %v2549_v2, %v5479_v61  ;;  %v2683_v8 = vadd.f32 %v2682_v4, %v2620_v63  ;;  %v5591_v63 = vld [vmem:[%s6333_s4 + $0xb8] sm:$0xff]  ;;  %v2634_v2 = vmul.f32 %v5583_v58, %v5583_v58  ;;  %v5599_v4 = vld [vmem:[%s6333_s4 + $0xc0] sm:$0xff] }
 0x397   : > { %v2551_v10 = vadd.f32 %v2550_v6, %v5487_v1  ;;  %v2684_v12 = vadd.f32 %v2683_v8, %v2621_v3 }
 0x399   : > { %v2552_v14 = vadd.f32 %v2551_v10, %v5495_v5  ;;  %v2685_v16 = vadd.f32 %v2684_v12, %v2622_v7  ;;  %v2635_v7 = vmul.f32 %v5591_v63, %v5591_v63  ;;  %v5607_v10 = vld [vmem:[%s6333_s4 + $0xc8] sm:$0xff]  ;;  %v2636_v12 = vmul.f32 %v5599_v4, %v5599_v4 }
 0x39b   : > { %v2553_v18 = vadd.f32 %v2552_v14, %v5503_v9  ;;  %v2686_v20 = vadd.f32 %v2685_v16, %v2623_v11 }
 0x39d   : > { %v2554_v22 = vadd.f32 %v2553_v18, %v5511_v13  ;;  %v2687_v24 = vadd.f32 %v2686_v20, %v2624_v15  ;;  %v5615_v15 = vld [vmem:[%s6333_s4 + $0xd0] sm:$0xff]  ;;  %v2637_v18 = vmul.f32 %v5607_v10, %v5607_v10  ;;  %v5623_v20 = vld [vmem:[%s6333_s4 + $0xd8] sm:$0xff] }
 0x39f   : > { %v2555_v26 = vadd.f32 %v2554_v22, %v5519_v17  ;;  %v2688_v28 = vadd.f32 %v2687_v24, %v2625_v19 }
 0x3a1   : > { %v2556_v30 = vadd.f32 %v2555_v26, %v5527_v21  ;;  %v2689_v32 = vadd.f32 %v2688_v28, %v2626_v23  ;;  %v2638_v23 = vmul.f32 %v5615_v15, %v5615_v15  ;;  %v5631_v26 = vld [vmem:[%s6333_s4 + $0xe0] sm:$0xff]  ;;  %v2639_v28 = vmul.f32 %v5623_v20, %v5623_v20 }
 0x3a3   : > { %v2557_v38 = vadd.f32 %v2556_v30, %v5535_v25  ;;  %v2690_v40 = vadd.f32 %v2689_v32, %v2627_v27 }
 0x3a5   : > { %v2558_v43 = vadd.f32 %v2557_v38, %v5543_v29  ;;  %v2691_v46 = vadd.f32 %v2690_v40, %v2628_v31  ;;  %v5639_v31 = vld [vmem:[%s6333_s4 + $0xe8] sm:$0xff]  ;;  %v2640_v38 = vmul.f32 %v5631_v26, %v5631_v26  ;;  %v5647_v40 = vld [vmem:[%s6333_s4 + $0xf0] sm:$0xff] }
 0x3a7   : > { %v2559_v48 = vadd.f32 %v2558_v43, %v5551_v37  ;;  %v2692_v51 = vadd.f32 %v2691_v46, %v2629_v39 }
 0x3a9   : > { %v2560_v54 = vadd.f32 %v2559_v48, %v5559_v42  ;;  %v2693_v56 = vadd.f32 %v2692_v51, %v2630_v44  ;;  %v2641_v44 = vmul.f32 %v5639_v31, %v5639_v31  ;;  %v5655_v48 = vld [vmem:[%s6333_s4 + $0xf8] sm:$0xff]  ;;  %v2642_v51 = vmul.f32 %v5647_v40, %v5647_v40 }
 0x3ab   : > { %v2561_v59 = vadd.f32 %v2560_v54, %v5567_v47  ;;  %v2694_v62 = vadd.f32 %v2693_v56, %v2631_v50 }
 0x3ad   : > { %v2562_v0 = vadd.f32 %v2561_v59, %v5575_v52  ;;  %v2695_v3 = vadd.f32 %v2694_v62, %v2632_v55  ;;  %v5663_v55 = vld [vmem:[%s6333_s4 + $0x100] sm:$0xff]  ;;  %v2643_v59 = vmul.f32 %v5655_v48, %v5655_v48  ;;  %v5671_v62 = vld [vmem:[%s6333_s4 + $0x108] sm:$0xff] }
 0x3af   : > { %v2563_v6 = vadd.f32 %v2562_v0, %v5583_v58  ;;  %v2696_v8 = vadd.f32 %v2695_v3, %v2633_v60 }
 0x3b1   : > { %v2564_v11 = vadd.f32 %v2563_v6, %v5591_v63  ;;  %v2697_v14 = vadd.f32 %v2696_v8, %v2634_v2  ;;  %v2644_v2 = vmul.f32 %v5663_v55, %v5663_v55  ;;  %v5679_v6 = vld [vmem:[%s6333_s4 + $0x110] sm:$0xff]  ;;  %v2645_v8 = vmul.f32 %v5671_v62, %v5671_v62 }
 0x3b3   : > { %v2565_v16 = vadd.f32 %v2564_v11, %v5599_v4  ;;  %v2698_v19 = vadd.f32 %v2697_v14, %v2635_v7 }
 0x3b5   : > { %v2566_v22 = vadd.f32 %v2565_v16, %v5607_v10  ;;  %v2699_v24 = vadd.f32 %v2698_v19, %v2636_v12  ;;  %v5687_v12 = vld [vmem:[%s6333_s4 + $0x118] sm:$0xff]  ;;  %v2646_v16 = vmul.f32 %v5679_v6, %v5679_v6  ;;  %v5695_v19 = vld [vmem:[%s6333_s4 + $0x120] sm:$0xff] }
 0x3b7   : > { %v2567_v27 = vadd.f32 %v2566_v22, %v5615_v15  ;;  %v2700_v30 = vadd.f32 %v2699_v24, %v2637_v18 }
 0x3b9   : > { %v2568_v32 = vadd.f32 %v2567_v27, %v5623_v20  ;;  %v2701_v39 = vadd.f32 %v2700_v30, %v2638_v23  ;;  %v2647_v23 = vmul.f32 %v5687_v12, %v5687_v12  ;;  %v5703_v27 = vld [vmem:[%s6333_s4 + $0x128] sm:$0xff]  ;;  %v2648_v30 = vmul.f32 %v5695_v19, %v5695_v19 }
 0x3bb   : > { %v2569_v43 = vadd.f32 %v2568_v32, %v5631_v26  ;;  %v2702_v46 = vadd.f32 %v2701_v39, %v2639_v28 }
 0x3bd   : > { %v2570_v50 = vadd.f32 %v2569_v43, %v5639_v31  ;;  %v2703_v54 = vadd.f32 %v2702_v46, %v2640_v38  ;;  %v5711_v38 = vld [vmem:[%s6333_s4 + $0x130] sm:$0xff]  ;;  %v2649_v43 = vmul.f32 %v5703_v27, %v5703_v27  ;;  %v5719_v46 = vld [vmem:[%s6333_s4 + $0x138] sm:$0xff] }
 0x3be   : > { %6358 = vst [vmem:[#allocation3_spill] sm:$0xff] %v5719_v46 }
 0x3bf   : > { %v2571_v56 = vadd.f32 %v2570_v50, %v5647_v40  ;;  %v2704_v60 = vadd.f32 %v2703_v54, %v2641_v44 }
 0x3c1   : > { %v2572_v0 = vadd.f32 %v2571_v56, %v5655_v48  ;;  %v2705_v3 = vadd.f32 %v2704_v60, %v2642_v51  ;;  %v2650_v51 = vmul.f32 %v5711_v38, %v5711_v38  ;;  %v5727_v56 = vld [vmem:[%s6333_s4 + $0x140] sm:$0xff]  ;;  %v2651_v60 = vmul.f32 %v5719_v46, %v5719_v46 }
 0x3c2   : > { %6359 = vst [vmem:[#allocation4_spill] sm:$0xff] %v5727_v56 }
 0x3c3   : > { %v2573_v7 = vadd.f32 %v2572_v0, %v5663_v55  ;;  %v2706_v11 = vadd.f32 %v2705_v3, %v2643_v59 }
 0x3c5   : > { %v2574_v14 = vadd.f32 %v2573_v7, %v5671_v62  ;;  %v2707_v18 = vadd.f32 %v2706_v11, %v2644_v2  ;;  %v5735_v2 = vld [vmem:[%s6333_s4 + $0x148] sm:$0xff]  ;;  %v2652_v7 = vmul.f32 %v5727_v56, %v5727_v56  ;;  %v5743_v11 = vld [vmem:[%s6333_s4 + $0x150] sm:$0xff] }
 0x3c6   : > { %6360 = vst [vmem:[#allocation5_spill] sm:$0xff] %v5735_v2 }
 0x3c7   : > { %v2575_v22 = vadd.f32 %v2574_v14, %v5679_v6  ;;  %v2708_v24 = vadd.f32 %v2707_v18, %v2645_v8  ;;  %6361 = vst [vmem:[#allocation6_spill] sm:$0xff] %v5743_v11 }
 0x3c9   : > { %v2576_v28 = vadd.f32 %v2575_v22, %v5687_v12  ;;  %v2709_v32 = vadd.f32 %v2708_v24, %v2646_v16  ;;  %v2653_v16 = vmul.f32 %v5735_v2, %v5735_v2  ;;  %v5751_v22 = vld [vmem:[%s6333_s4 + $0x158] sm:$0xff]  ;;  %v2654_v24 = vmul.f32 %v5743_v11, %v5743_v11 }
 0x3ca   : > { %6362 = vst [vmem:[#allocation7_spill] sm:$0xff] %v5751_v22 }
 0x3cb   : > { %v2577_v39 = vadd.f32 %v2576_v28, %v5695_v19  ;;  %v2710_v44 = vadd.f32 %v2709_v32, %v2647_v23 }
 0x3cd   : > { %v2578_v50 = vadd.f32 %v2577_v39, %v5703_v27  ;;  %v2711_v54 = vadd.f32 %v2710_v44, %v2648_v30  ;;  %v5759_v30 = vld [vmem:[%s6333_s4 + $0x160] sm:$0xff]  ;;  %v2655_v39 = vmul.f32 %v5751_v22, %v5751_v22  ;;  %v5767_v44 = vld [vmem:[%s6333_s4 + $0x168] sm:$0xff] }
 0x3ce   : > { %6363 = vst [vmem:[#allocation8_spill] sm:$0xff] %v5759_v30 }
 0x3cf   : > { %v2579_v59 = vadd.f32 %v2578_v50, %v5711_v38  ;;  %v2712_v0 = vadd.f32 %v2711_v54, %v2649_v43  ;;  %6364 = vst [vmem:[#allocation9_spill] sm:$0xff] %v5767_v44 }
 0x3d1   : > { %v2580_v3 = vadd.f32 %v2579_v59, %v5719_v46  ;;  %v2713_v8 = vadd.f32 %v2712_v0, %v2650_v51  ;;  %v2656_v51 = vmul.f32 %v5759_v30, %v5759_v30  ;;  %v5775_v59 = vld [vmem:[%s6333_s4 + $0x170] sm:$0xff]  ;;  %v2657_v0 = vmul.f32 %v5767_v44, %v5767_v44 }
 0x3d2   : > { %6365 = vst [vmem:[#allocation10_spill] sm:$0xff] %v5775_v59 }
 0x3d3   : > { %v2581_v14 = vadd.f32 %v2580_v3, %v5727_v56  ;;  %v2714_v18 = vadd.f32 %v2713_v8, %v2651_v60 }
 0x3d5   : > { %v2582_v23 = vadd.f32 %v2581_v14, %v5735_v2  ;;  %v2715_v28 = vadd.f32 %v2714_v18, %v2652_v7  ;;  %v5783_v7 = vld [vmem:[%s6333_s4 + $0x178] sm:$0xff]  ;;  %v2658_v14 = vmul.f32 %v5775_v59, %v5775_v59  ;;  %v5791_v18 = vld [vmem:[%s6333_s4 + $0x180] sm:$0xff] }
 0x3d6   : > { %6366 = vst [vmem:[#allocation11_spill] sm:$0xff] %v5783_v7 }
 0x3d7   : > { %v2583_v32 = vadd.f32 %v2582_v23, %v5743_v11  ;;  %v2716_v43 = vadd.f32 %v2715_v28, %v2653_v16  ;;  %6367 = vst [vmem:[#allocation12_spill] sm:$0xff] %v5791_v18 }
 0x3d9   : > { %v2584_v50 = vadd.f32 %v2583_v32, %v5751_v22  ;;  %v2717_v54 = vadd.f32 %v2716_v43, %v2654_v24  ;;  %v2659_v24 = vmul.f32 %v5783_v7, %v5783_v7  ;;  %v5799_v32 = vld [vmem:[%s6333_s4 + $0x188] sm:$0xff]  ;;  %v2660_v43 = vmul.f32 %v5791_v18, %v5791_v18 }
 0x3da   : > { %6368 = vst [vmem:[#allocation13_spill] sm:$0xff] %v5799_v32 }
 0x3db   : > { %v2585_v60 = vadd.f32 %v2584_v50, %v5759_v30  ;;  %v2718_v3 = vadd.f32 %v2717_v54, %v2655_v39 }
 0x3dd   : > { %v2586_v8 = vadd.f32 %v2585_v60, %v5767_v44  ;;  %v2719_v16 = vadd.f32 %v2718_v3, %v2656_v51  ;;  %v5807_v51 = vld [vmem:[%s6333_s4 + $0x190] sm:$0xff]  ;;  %v2661_v60 = vmul.f32 %v5799_v32, %v5799_v32  ;;  %v5815_v3 = vld [vmem:[%s6333_s4 + $0x198] sm:$0xff] }
 0x3de   : > { %6369 = vst [vmem:[#allocation14_spill] sm:$0xff] %v5807_v51 }
 0x3df   : > { %v2587_v23 = vadd.f32 %v2586_v8, %v5775_v59  ;;  %v2720_v28 = vadd.f32 %v2719_v16, %v2657_v0  ;;  %6370 = vst [vmem:[#allocation15_spill] sm:$0xff] %v5815_v3 }
 0x3e1   : > { %v2588_v39 = vadd.f32 %v2587_v23, %v5783_v7  ;;  %v2721_v50 = vadd.f32 %v2720_v28, %v2658_v14  ;;  %v2662_v14 = vmul.f32 %v5807_v51, %v5807_v51  ;;  %v5823_v23 = vld [vmem:[%s6333_s4 + $0x1a0] sm:$0xff] }
 0x3e2   : > { %6371 = vst [vmem:[#allocation16_spill] sm:$0xff] %v5823_v23 }
 0x3e3   : > { %v2589_v54 = vadd.f32 %v2588_v39, %v5791_v18  ;;  %v2722_v0 = vadd.f32 %v2721_v50, %v2659_v24  ;;  %v2663_v24 = vmul.f32 %v5815_v3, %v5815_v3  ;;  %v5831_v50 = vld [vmem:[%s6333_s4 + $0x1a8] sm:$0xff] }
 0x3e4   : > { %6372 = vst [vmem:[#allocation17_spill] sm:$0xff] %v5831_v50 }
 0x3e5   : > { %v2590_v8 = vadd.f32 %v2589_v54, %v5799_v32  ;;  %v2723_v16 = vadd.f32 %v2722_v0, %v2660_v43  ;;  %v2664_v43 = vmul.f32 %v5823_v23, %v5823_v23  ;;  %v5839_v32 = vld [vmem:[%s6333_s4 + $0x1b0] sm:$0xff] }
 0x3e6   : > { %6373 = vst [vmem:[#allocation18_spill] sm:$0xff] %v5839_v32 }
 0x3e7   : > { %v2591_v28 = vadd.f32 %v2590_v8, %v5807_v51  ;;  %v2724_v39 = vadd.f32 %v2723_v16, %v2661_v60  ;;  %v2665_v60 = vmul.f32 %v5831_v50, %v5831_v50  ;;  %v5847_v51 = vld [vmem:[%s6333_s4 + $0x1b8] sm:$0xff] }
 0x3e8   : > { %6374 = vst [vmem:[#allocation19_spill] sm:$0xff] %v5847_v51 }
 0x3e9   : > { %v2592_v54 = vadd.f32 %v2591_v28, %v5815_v3  ;;  %v2725_v0 = vadd.f32 %v2724_v39, %v2662_v14  ;;  %v2666_v14 = vmul.f32 %v5839_v32, %v5839_v32  ;;  %v5855_v3 = vld [vmem:[%s6333_s4 + $0x1c0] sm:$0xff] }
 0x3ea   : > { %6375 = vst [vmem:[#allocation20_spill] sm:$0xff] %v5855_v3 }
 0x3eb   : > { %v2593_v8 = vadd.f32 %v2592_v54, %v5823_v23  ;;  %v2726_v16 = vadd.f32 %v2725_v0, %v2663_v24  ;;  %v2667_v24 = vmul.f32 %v5847_v51, %v5847_v51  ;;  %v5863_v23 = vld [vmem:[%s6333_s4 + $0x1c8] sm:$0xff] }
 0x3ec   : > { %6376 = vst [vmem:[#allocation21_spill] sm:$0xff] %v5863_v23 }
 0x3ed   : > { %v2594_v28 = vadd.f32 %v2593_v8, %v5831_v50  ;;  %v2727_v39 = vadd.f32 %v2726_v16, %v2664_v43  ;;  %v2668_v43 = vmul.f32 %v5855_v3, %v5855_v3  ;;  %v5871_v50 = vld [vmem:[%s6333_s4 + $0x1d0] sm:$0xff] }
 0x3ee   : > { %6377 = vst [vmem:[#allocation22_spill] sm:$0xff] %v5871_v50 }
 0x3ef   : > { %v2595_v54 = vadd.f32 %v2594_v28, %v5839_v32  ;;  %v2728_v0 = vadd.f32 %v2727_v39, %v2665_v60  ;;  %v2669_v60 = vmul.f32 %v5863_v23, %v5863_v23  ;;  %v5879_v32 = vld [vmem:[%s6333_s4 + $0x1d8] sm:$0xff] }
 0x3f0   : > { %6378 = vst [vmem:[#allocation23_spill] sm:$0xff] %v5879_v32 }
 0x3f1   : > { %v2596_v8 = vadd.f32 %v2595_v54, %v5847_v51  ;;  %v2729_v16 = vadd.f32 %v2728_v0, %v2666_v14  ;;  %v2670_v14 = vmul.f32 %v5871_v50, %v5871_v50  ;;  %v5887_v51 = vld [vmem:[%s6333_s4 + $0x1e0] sm:$0xff] }
 0x3f2   : > { %6379 = vst [vmem:[#allocation24_spill] sm:$0xff] %v5887_v51 }
 0x3f3   : > { %v2597_v28 = vadd.f32 %v2596_v8, %v5855_v3  ;;  %v2730_v39 = vadd.f32 %v2729_v16, %v2667_v24  ;;  %v2671_v24 = vmul.f32 %v5879_v32, %v5879_v32  ;;  %v5895_v3 = vld [vmem:[%s6333_s4 + $0x1e8] sm:$0xff] }
 0x3f4   : > { %6380 = vst [vmem:[#allocation25_spill] sm:$0xff] %v5895_v3 }
 0x3f5   : > { %v2598_v54 = vadd.f32 %v2597_v28, %v5863_v23  ;;  %v2731_v0 = vadd.f32 %v2730_v39, %v2668_v43  ;;  %v2672_v43 = vmul.f32 %v5887_v51, %v5887_v51  ;;  %v5903_v23 = vld [vmem:[%s6333_s4 + $0x1f0] sm:$0xff] }
 0x3f6   : > { %6381 = vst [vmem:[#allocation26_spill] sm:$0xff] %v5903_v23 }
 0x3f7   : > { %v2599_v8 = vadd.f32 %v2598_v54, %v5871_v50  ;;  %v2732_v16 = vadd.f32 %v2731_v0, %v2669_v60  ;;  %v2673_v60 = vmul.f32 %v5895_v3, %v5895_v3  ;;  %v5911_v50 = vld [vmem:[%s6333_s4 + $0x1f8] sm:$0xff] }
 0x3f9   : > { %v2600_v28 = vadd.f32 %v2599_v8, %v5879_v32  ;;  %v2733_v39 = vadd.f32 %v2732_v16, %v2670_v14  ;;  %v2674_v14 = vmul.f32 %v5903_v23, %v5903_v23 }
 0x3fb   : > { %v2601_v54 = vadd.f32 %v2600_v28, %v5887_v51  ;;  %v2734_v0 = vadd.f32 %v2733_v39, %v2671_v24  ;;  %v2675_v28 = vmul.f32 %v5911_v50, %v5911_v50 }
 0x3fd   : > { %v2602_v8 = vadd.f32 %v2601_v54, %v5895_v3  ;;  %v2735_v16 = vadd.f32 %v2734_v0, %v2672_v43 }
 0x3ff   : > { %v2603_v32 = vadd.f32 %v2602_v8, %v5903_v23  ;;  %v2736_v51 = vadd.f32 %v2735_v16, %v2673_v60 }
 0x401   : > { %v2604_v18 = vadd.f32 %v2603_v32, %v5911_v50  ;;  %v2737_v24 = vadd.f32 %v2736_v51, %v2674_v14 }
 0x403   : > { %v2605_v39 = vrot.slane %v2604_v18, 4  ;;  %v2738_v7 = vadd.f32 %v2737_v24, %v2675_v28 }
 0x405   : > { %v2606_v59 = vadd.f32 %v2605_v39, %v2604_v18  ;;  %v2739_v44 = vrot.slane %v2738_v7, 4 }
 0x407   : > { %v2607_v30 = vrot.slane %v2606_v59, 2  ;;  %v2740_v22 = vadd.f32 %v2739_v44, %v2738_v7 }
 0x409   : > { %v2608_v54 = vadd.f32 %v2607_v30, %v2606_v59  ;;  %v2741_v3 = vrot.slane %v2740_v22, 2 }
 0x40b   : > { %v2609_v11 = vrot.slane %v2608_v54, 1  ;;  %v2742_v2 = vadd.f32 %v2741_v3, %v2740_v22 }
 0x40d   : > { %v2610_v43 = vadd.f32 %v2609_v11, %v2608_v54  ;;  %v2743_v0 = vrot.slane %v2742_v2, 1  ;;  %v2749_v11 = vld [vmem:[%s6331_s2] sm:$0x1] }
 0x40f   : > { %v2611_v8 = vmul.f32 0.001953125, %v2610_v43  ;;  %v2744_v23 = vadd.f32 %v2743_v0, %v2742_v2 }
 0x411   : > { %v2746_v56 = vmul.f32 %v2611_v8, %v2611_v8  ;;  %v2745_v46 = vmul.f32 0.001953125, %v2744_v23 }
 0x413   : > { %v2747_v60 = vsub.f32 %v2745_v46, %v2746_v56  ;;  %v2762_v46 = vld [vmem:[%s6332_s3] sm:$0x1] }
 0x415   : > { %v2748_v16 = vmax.f32 %v2747_v60, 0.0 }
 0x417   : > { %v2750_v32 = vadd.f32 1e-05, %v2748_v16 }
 0x419   : > { %4096 = vrsqrt.f32 %v2750_v32  ;;  %vm2757_vm0 = vweird.f32 %v2750_v32 }
 0x41f   : > { %v4097_v51 = vpop.eup %4096 }
 0x420   : > { %v2752_v14 = vmul.f32 %v4097_v51, %v2750_v32  ;;  %vm2758_vm1 = vweird.f32 %v4097_v51 }
 0x421   : > { %vm2759_vm2 = vmor %vm2757_vm0, %vm2758_vm1 }
 0x422   : > { %v2753_v18 = vmul.f32 %v4097_v51, %v2752_v14 }
 0x424   : > { %v2754_v28 = vmul.f32 0.5, %v2753_v18 }
 0x426   : > { %v2755_v30 = vsub.f32 1.5, %v2754_v28 }
 0x428   : > { %v2756_v22 = vmul.f32 %v4097_v51, %v2755_v30 }
 0x42a   : > { %v2760_v2 = vsel %vm2759_vm2, %v4097_v51, %v2756_v22 }
 0x42b   : > { %v2761_v44 = vmul.f32 %v2760_v2, %v2749_v11 }
 0x42d   : > { %v2763_v56 = vmul.f32 %v2761_v44, %v2611_v8  ;;  %v5926_v59 = vperm.slane %v2761_v44, 0 }
 0x42f   : > { %v2764_v7 = vsub.f32 %v2762_v46, %v2763_v56  ;;  %v2768_v3 = vmul.f32 %v5926_v59, %v5411_v33  ;;  %v2769_v23 = vmul.f32 %v5926_v59, %v5416_v34  ;;  %v2770_v24 = vmul.f32 %v5926_v59, %v5421_v35 }
 0x430   : > { %v2771_v39 = vmul.f32 %v5926_v59, %v5426_v36  ;;  %v2772_v54 = vmul.f32 %v5926_v59, %v5439_v41  ;;  %v2773_v43 = vmul.f32 %v5926_v59, %v5447_v45  ;;  %v2774_v0 = vmul.f32 %v5926_v59, %v5455_v49 }
 0x431   : > { %v5942_v8 = vperm.slane %v2764_v7, 0  ;;  %v2775_v33 = vmul.f32 %v5926_v59, %v5463_v53  ;;  %v2776_v34 = vmul.f32 %v5926_v59, %v5471_v57  ;;  %v2777_v35 = vmul.f32 %v5926_v59, %v5479_v61 }
 0x432   : > { %v2778_v36 = vmul.f32 %v5926_v59, %v5487_v1  ;;  %v2779_v41 = vmul.f32 %v5926_v59, %v5495_v5  ;;  %v2780_v45 = vmul.f32 %v5926_v59, %v5503_v9  ;;  %v2781_v49 = vmul.f32 %v5926_v59, %v5511_v13 }
 0x433   : > { %v2835_v53 = vadd.f32 %v5942_v8, %v2768_v3  ;;  %v2836_v60 = vadd.f32 %v5942_v8, %v2769_v23  ;;  %v2837_v57 = vadd.f32 %v5942_v8, %v2770_v24  ;;  %v2838_v61 = vadd.f32 %v5942_v8, %v2771_v39 }
 0x434   : > { %v2839_v16 = vadd.f32 %v5942_v8, %v2772_v54  ;;  %v2840_v1 = vadd.f32 %v5942_v8, %v2773_v43  ;;  %v2841_v5 = vadd.f32 %v5942_v8, %v2774_v0  ;;  %v2842_v32 = vadd.f32 %v5942_v8, %v2775_v33 }
 0x435   : > { %vm2899_vm3 = vcmp.gt.f32.partialorder %v2835_v53, 0.0  ;;  %v2963_v9 = vmul.f32 0.2, %v2835_v53  ;;  %vm2900_vm4 = vcmp.gt.f32.partialorder %v2836_v60, 0.0  ;;  %v2964_v13 = vmul.f32 0.2, %v2836_v60 }
 0x436   : > { %vm2901_vm5 = vcmp.gt.f32.partialorder %v2837_v57, 0.0  ;;  %v2965_v51 = vmul.f32 0.2, %v2837_v57  ;;  %vm2902_vm6 = vcmp.gt.f32.partialorder %v2838_v61, 0.0  ;;  %v2966_v14 = vmul.f32 0.2, %v2838_v61 }
 0x437   : > { %v3027_v18 = vsel %vm2899_vm3, %v2835_v53, %v2963_v9  ;;  %v3028_v28 = vsel %vm2900_vm4, %v2836_v60, %v2964_v13  ;;  %vm2903_vm7 = vcmp.gt.f32.partialorder %v2839_v16, 0.0  ;;  %v2967_v30 = vmul.f32 0.2, %v2839_v16 }
 0x438   : > { %3091 = vst [vmem:[%s6333_s4] sm:$0xff] %v3027_v18  ;;  %v3029_v11 = vsel %vm2901_vm5, %v2837_v57, %v2965_v51  ;;  %v3030_v22 = vsel %vm2902_vm6, %v2838_v61, %v2966_v14  ;;  %vm2904_vm8 = vcmp.gt.f32.partialorder %v2840_v1, 0.0  ;;  %v2968_v2 = vmul.f32 0.2, %v2840_v1 }
 0x439   : > { %3092 = vst [vmem:[%s6333_s4 + $0x8] sm:$0xff] %v3028_v28  ;;  %v3031_v44 = vsel %vm2903_vm7, %v2839_v16, %v2967_v30  ;;  %vm2905_vm9 = vcmp.gt.f32.partialorder %v2841_v5, 0.0  ;;  %v2969_v46 = vmul.f32 0.2, %v2841_v5  ;;  %vm2906_vm10 = vcmp.gt.f32.partialorder %v2842_v32, 0.0 }
 0x43a   : > { %3093 = vst [vmem:[%s6333_s4 + $0x10] sm:$0xff] %v3029_v11  ;;  %v3032_v56 = vsel %vm2904_vm8, %v2840_v1, %v2968_v2  ;;  %v2970_v7 = vmul.f32 0.2, %v2842_v32  ;;  %v2843_v3 = vadd.f32 %v5942_v8, %v2776_v34  ;;  %v2844_v23 = vadd.f32 %v5942_v8, %v2777_v35 }
 0x43b   : > { %3094 = vst [vmem:[%s6333_s4 + $0x18] sm:$0xff] %v3030_v22  ;;  %v3033_v24 = vsel %vm2905_vm9, %v2841_v5, %v2969_v46  ;;  %v2845_v39 = vadd.f32 %v5942_v8, %v2778_v36  ;;  %v2846_v54 = vadd.f32 %v5942_v8, %v2779_v41  ;;  %v2847_v43 = vadd.f32 %v5942_v8, %v2780_v45 }
 0x43c   : > { %3095 = vst [vmem:[%s6333_s4 + $0x20] sm:$0xff] %v3031_v44  ;;  %v3034_v0 = vsel %vm2906_vm10, %v2842_v32, %v2970_v7  ;;  %vm2907_vm11 = vcmp.gt.f32.partialorder %v2843_v3, 0.0  ;;  %v2971_v33 = vmul.f32 0.2, %v2843_v3  ;;  %vm2908_vm12 = vcmp.gt.f32.partialorder %v2844_v23, 0.0 }
 0x43d   : > { %3096 = vst [vmem:[%s6333_s4 + $0x28] sm:$0xff] %v3032_v56  ;;  %v2972_v34 = vmul.f32 0.2, %v2844_v23  ;;  %vm2909_vm13 = vcmp.gt.f32.partialorder %v2845_v39, 0.0  ;;  %v2973_v35 = vmul.f32 0.2, %v2845_v39  ;;  %v2848_v36 = vadd.f32 %v5942_v8, %v2781_v49 }
 0x43e   : > { %3097 = vst [vmem:[%s6333_s4 + $0x30] sm:$0xff] %v3033_v24  ;;  %v3035_v41 = vsel %vm2907_vm11, %v2843_v3, %v2971_v33  ;;  %vm2910_vm14 = vcmp.gt.f32.partialorder %v2846_v54, 0.0  ;;  %v2974_v45 = vmul.f32 0.2, %v2846_v54  ;;  %vm2911_vm15 = vcmp.gt.f32.partialorder %v2847_v43, 0.0 }
 0x43f   : > { %3098 = vst [vmem:[%s6333_s4 + $0x38] sm:$0xff] %v3034_v0  ;;  %v3036_v53 = vsel %vm2908_vm12, %v2844_v23, %v2972_v34  ;;  %v3037_v60 = vsel %vm2909_vm13, %v2845_v39, %v2973_v35  ;;  %v2975_v57 = vmul.f32 0.2, %v2847_v43  ;;  %vm2912_vm0 = vcmp.gt.f32.partialorder %v2848_v36, 0.0 }
 0x440   : > { %3099 = vst [vmem:[%s6333_s4 + $0x40] sm:$0xff] %v3035_v41  ;;  %v3038_v49 = vsel %vm2910_vm14, %v2846_v54, %v2974_v45  ;;  %v2976_v61 = vmul.f32 0.2, %v2848_v36  ;;  %v2782_v16 = vmul.f32 %v5926_v59, %v5519_v17  ;;  %v2783_v1 = vmul.f32 %v5926_v59, %v5527_v21 }
 0x441   : > { %3100 = vst [vmem:[%s6333_s4 + $0x48] sm:$0xff] %v3036_v53  ;;  %v3039_v5 = vsel %vm2911_vm15, %v2847_v43, %v2975_v57  ;;  %v2784_v32 = vmul.f32 %v5926_v59, %v5535_v25  ;;  %v2785_v9 = vmul.f32 %v5926_v59, %v5543_v29  ;;  %v2786_v13 = vmul.f32 %v5926_v59, %v5551_v37 }
 0x442   : > { %3101 = vst [vmem:[%s6333_s4 + $0x50] sm:$0xff] %v3037_v60  ;;  %v3040_v17 = vsel %vm2912_vm0, %v2848_v36, %v2976_v61  ;;  %v2849_v21 = vadd.f32 %v5942_v8, %v2782_v16  ;;  %v2850_v51 = vadd.f32 %v5942_v8, %v2783_v1  ;;  %v2787_v14 = vmul.f32 %v5926_v59, %v5559_v42 }
 0x443   : > { %3102 = vst [vmem:[%s6333_s4 + $0x58] sm:$0xff] %v3038_v49  ;;  %v2851_v25 = vadd.f32 %v5942_v8, %v2784_v32  ;;  %v2852_v29 = vadd.f32 %v5942_v8, %v2785_v9  ;;  %v2853_v37 = vadd.f32 %v5942_v8, %v2786_v13  ;;  %v2788_v18 = vmul.f32 %v5926_v59, %v5567_v47 }
 0x444   : > { %3103 = vst [vmem:[%s6333_s4 + $0x60] sm:$0xff] %v3039_v5  ;;  %vm2913_vm1 = vcmp.gt.f32.partialorder %v2849_v21, 0.0  ;;  %v2977_v28 = vmul.f32 0.2, %v2849_v21  ;;  %vm2914_vm2 = vcmp.gt.f32.partialorder %v2850_v51, 0.0  ;;  %v2854_v42 = vadd.f32 %v5942_v8, %v2787_v14 }
 0x445   : > { %3104 = vst [vmem:[%s6333_s4 + $0x68] sm:$0xff] %v3040_v17  ;;  %v2978_v30 = vmul.f32 0.2, %v2850_v51  ;;  %vm2915_vm3 = vcmp.gt.f32.partialorder %v2851_v25, 0.0  ;;  %v2979_v11 = vmul.f32 0.2, %v2851_v25  ;;  %v2855_v22 = vadd.f32 %v5942_v8, %v2788_v18 }
 0x446   : > { %v3041_v2 = vsel %vm2913_vm1, %v2849_v21, %v2977_v28  ;;  %vm2916_vm4 = vcmp.gt.f32.partialorder %v2852_v29, 0.0  ;;  %v2980_v47 = vmul.f32 0.2, %v2852_v29  ;;  %vm2917_vm5 = vcmp.gt.f32.partialorder %v2853_v37, 0.0 }
 0x447   : > { %3105 = vst [vmem:[%s6333_s4 + $0x70] sm:$0xff] %v3041_v2  ;;  %v3042_v44 = vsel %vm2914_vm2, %v2850_v51, %v2978_v30  ;;  %v3043_v46 = vsel %vm2915_vm3, %v2851_v25, %v2979_v11  ;;  %v2981_v56 = vmul.f32 0.2, %v2853_v37  ;;  %vm2918_vm6 = vcmp.gt.f32.partialorder %v2854_v42, 0.0 }
 0x448   : > { %3106 = vst [vmem:[%s6333_s4 + $0x78] sm:$0xff] %v3042_v44  ;;  %v3044_v7 = vsel %vm2916_vm4, %v2852_v29, %v2980_v47  ;;  %v2982_v3 = vmul.f32 0.2, %v2854_v42  ;;  %vm2919_vm7 = vcmp.gt.f32.partialorder %v2855_v22, 0.0  ;;  %v2983_v23 = vmul.f32 0.2, %v2855_v22 }
 0x449   : > { %3107 = vst [vmem:[%s6333_s4 + $0x80] sm:$0xff] %v3043_v46  ;;  %v3045_v24 = vsel %vm2917_vm5, %v2853_v37, %v2981_v56  ;;  %v2789_v39 = vmul.f32 %v5926_v59, %v5575_v52  ;;  %v2790_v54 = vmul.f32 %v5926_v59, %v5583_v58  ;;  %v2791_v43 = vmul.f32 %v5926_v59, %v5591_v63 }
 0x44a   : > { %3108 = vst [vmem:[%s6333_s4 + $0x88] sm:$0xff] %v3044_v7  ;;  %v3046_v0 = vsel %vm2918_vm6, %v2854_v42, %v2982_v3  ;;  %v3047_v33 = vsel %vm2919_vm7, %v2855_v22, %v2983_v23  ;;  %v2792_v34 = vmul.f32 %v5926_v59, %v5599_v4  ;;  %v2793_v35 = vmul.f32 %v5926_v59, %v5607_v10 }
 0x44b   : > { %3109 = vst [vmem:[%s6333_s4 + $0x90] sm:$0xff] %v3045_v24  ;;  %v2856_v52 = vadd.f32 %v5942_v8, %v2789_v39  ;;  %v2857_v58 = vadd.f32 %v5942_v8, %v2790_v54  ;;  %v2858_v63 = vadd.f32 %v5942_v8, %v2791_v43  ;;  %v2794_v36 = vmul.f32 %v5926_v59, %v5615_v15 }
 0x44c   : > { %3110 = vst [vmem:[%s6333_s4 + $0x98] sm:$0xff] %v3046_v0  ;;  %v2859_v4 = vadd.f32 %v5942_v8, %v2792_v34  ;;  %v2860_v10 = vadd.f32 %v5942_v8, %v2793_v35  ;;  %v2795_v41 = vmul.f32 %v5926_v59, %v5623_v20  ;;  %v2796_v45 = vmul.f32 %v5926_v59, %v5631_v26  ;;  %v6382_v34 = vld [vmem:[#allocation3_spill] sm:$0xff] }
 0x44d   : > { %3111 = vst [vmem:[%s6333_s4 + $0xa0] sm:$0xff] %v3047_v33  ;;  %vm2920_vm8 = vcmp.gt.f32.partialorder %v2856_v52, 0.0  ;;  %v2984_v15 = vmul.f32 0.2, %v2856_v52  ;;  %vm2921_vm9 = vcmp.gt.f32.partialorder %v2857_v58, 0.0  ;;  %vm2922_vm10 = vcmp.gt.f32.partialorder %v2858_v63, 0.0 }
 0x44e   : > { %v2985_v53 = vmul.f32 0.2, %v2857_v58  ;;  %v2986_v60 = vmul.f32 0.2, %v2858_v63  ;;  %vm2923_vm11 = vcmp.gt.f32.partialorder %v2859_v4, 0.0  ;;  %vm2924_vm12 = vcmp.gt.f32.partialorder %v2860_v10, 0.0 }
 0x44f   : > { %v3048_v57 = vsel %vm2920_vm8, %v2856_v52, %v2984_v15  ;;  %v2987_v49 = vmul.f32 0.2, %v2859_v4  ;;  %v2988_v61 = vmul.f32 0.2, %v2860_v10  ;;  %v2861_v20 = vadd.f32 %v5942_v8, %v2794_v36  ;;  %v6383_v52 = vld [vmem:[#allocation4_spill] sm:$0xff] }
 0x450   : > { %3112 = vst [vmem:[%s6333_s4 + $0xa8] sm:$0xff] %v3048_v57  ;;  %v3049_v26 = vsel %vm2921_vm9, %v2857_v58, %v2985_v53  ;;  %v3050_v16 = vsel %vm2922_vm10, %v2858_v63, %v2986_v60  ;;  %v2862_v1 = vadd.f32 %v5942_v8, %v2795_v41  ;;  %v2863_v5 = vadd.f32 %v5942_v8, %v2796_v45  ;;  %v6384_v63 = vld [vmem:[#allocation5_spill] sm:$0xff] }
 0x451   : > { %3113 = vst [vmem:[%s6333_s4 + $0xb0] sm:$0xff] %v3049_v26  ;;  %v3051_v32 = vsel %vm2923_vm11, %v2859_v4, %v2987_v49  ;;  %v3052_v9 = vsel %vm2924_vm12, %v2860_v10, %v2988_v61  ;;  %vm2925_vm13 = vcmp.gt.f32.partialorder %v2861_v20, 0.0  ;;  %v2989_v13 = vmul.f32 0.2, %v2861_v20 }
 0x452   : > { %3114 = vst [vmem:[%s6333_s4 + $0xb8] sm:$0xff] %v3050_v16  ;;  %vm2926_vm14 = vcmp.gt.f32.partialorder %v2862_v1, 0.0  ;;  %v2990_v17 = vmul.f32 0.2, %v2862_v1  ;;  %vm2927_vm15 = vcmp.gt.f32.partialorder %v2863_v5, 0.0  ;;  %v2797_v21 = vmul.f32 %v5926_v59, %v5639_v31 }
 0x453   : > { %3115 = vst [vmem:[%s6333_s4 + $0xc0] sm:$0xff] %v3051_v32  ;;  %v3053_v51 = vsel %vm2925_vm13, %v2861_v20, %v2989_v13  ;;  %v2991_v14 = vmul.f32 0.2, %v2863_v5  ;;  %v2798_v25 = vmul.f32 %v5926_v59, %v5647_v40  ;;  %v2799_v29 = vmul.f32 %v5926_v59, %v5655_v48 }
 0x454   : > { %3116 = vst [vmem:[%s6333_s4 + $0xc8] sm:$0xff] %v3052_v9  ;;  %v3054_v37 = vsel %vm2926_vm14, %v2862_v1, %v2990_v17  ;;  %v2864_v18 = vadd.f32 %v5942_v8, %v2797_v21  ;;  %v2800_v31 = vmul.f32 %v5926_v59, %v5663_v55  ;;  %v2801_v28 = vmul.f32 %v5926_v59, %v5671_v62  ;;  %v6385_v1 = vld [vmem:[#allocation6_spill] sm:$0xff]  ;;  %v6386_v9 = vld [vmem:[#allocation7_spill] sm:$0xff]  ;;  %v6387_v17 = vld [vmem:[#allocation8_spill] sm:$0xff] }
 0x455   : > { %3117 = vst [vmem:[%s6333_s4 + $0xd0] sm:$0xff] %v3053_v51  ;;  %v3055_v40 = vsel %vm2927_vm15, %v2863_v5, %v2991_v14  ;;  %v2865_v48 = vadd.f32 %v5942_v8, %v2798_v25  ;;  %v2866_v42 = vadd.f32 %v5942_v8, %v2799_v29  ;;  %v2802_v30 = vmul.f32 %v5926_v59, %v5679_v6  ;;  %v6388_v51 = vld [vmem:[#allocation9_spill] sm:$0xff] }
 0x456   : > { %3118 = vst [vmem:[%s6333_s4 + $0xd8] sm:$0xff] %v3054_v37  ;;  %vm2928_vm0 = vcmp.gt.f32.partialorder %v2864_v18, 0.0  ;;  %v2992_v55 = vmul.f32 0.2, %v2864_v18  ;;  %v2867_v62 = vadd.f32 %v5942_v8, %v2800_v31  ;;  %v2868_v11 = vadd.f32 %v5942_v8, %v2801_v28 }
 0x457   : > { %3119 = vst [vmem:[%s6333_s4 + $0xe0] sm:$0xff] %v3055_v40  ;;  %vm2929_vm1 = vcmp.gt.f32.partialorder %v2865_v48, 0.0  ;;  %v2993_v22 = vmul.f32 0.2, %v2865_v48  ;;  %vm2930_vm2 = vcmp.gt.f32.partialorder %v2866_v42, 0.0  ;;  %v2869_v2 = vadd.f32 %v5942_v8, %v2802_v30  ;;  %v6389_v40 = vld [vmem:[#allocation10_spill] sm:$0xff] }
 0x458   : > { %v3056_v6 = vsel %vm2928_vm0, %v2864_v18, %v2992_v55  ;;  %v2994_v47 = vmul.f32 0.2, %v2866_v42  ;;  %vm2931_vm3 = vcmp.gt.f32.partialorder %v2867_v62, 0.0  ;;  %v2995_v44 = vmul.f32 0.2, %v2867_v62  ;;  %v6390_v55 = vld [vmem:[#allocation11_spill] sm:$0xff] }
 0x459   : > { %3120 = vst [vmem:[%s6333_s4 + $0xe8] sm:$0xff] %v3056_v6  ;;  %v3057_v46 = vsel %vm2929_vm1, %v2865_v48, %v2993_v22  ;;  %vm2932_vm4 = vcmp.gt.f32.partialorder %v2868_v11, 0.0  ;;  %v2996_v56 = vmul.f32 0.2, %v2868_v11  ;;  %vm2933_vm5 = vcmp.gt.f32.partialorder %v2869_v2, 0.0 }
 0x45a   : > { %3121 = vst [vmem:[%s6333_s4 + $0xf0] sm:$0xff] %v3057_v46  ;;  %v3058_v7 = vsel %vm2930_vm2, %v2866_v42, %v2994_v47  ;;  %v3059_v3 = vsel %vm2931_vm3, %v2867_v62, %v2995_v44  ;;  %v2997_v23 = vmul.f32 0.2, %v2869_v2  ;;  %v2803_v24 = vmul.f32 %v5926_v59, %v5687_v12 }
 0x45b   : > { %3122 = vst [vmem:[%s6333_s4 + $0xf8] sm:$0xff] %v3058_v7  ;;  %v3060_v39 = vsel %vm2932_vm4, %v2868_v11, %v2996_v56  ;;  %v2804_v54 = vmul.f32 %v5926_v59, %v5695_v19  ;;  %v2805_v43 = vmul.f32 %v5926_v59, %v5703_v27  ;;  %v2806_v0 = vmul.f32 %v5926_v59, %v5711_v38  ;;  %v6391_v56 = vld [vmem:[#allocation12_spill] sm:$0xff] }
 0x45c   : > { %3123 = vst [vmem:[%s6333_s4 + $0x100] sm:$0xff] %v3059_v3  ;;  %v3061_v33 = vsel %vm2933_vm5, %v2869_v2, %v2997_v23  ;;  %v2870_v12 = vadd.f32 %v5942_v8, %v2803_v24  ;;  %v2807_v35 = vmul.f32 %v5926_v59, %v6382_v34  ;;  %v2808_v58 = vmul.f32 %v5926_v59, %v6383_v52  ;;  %v6392_v3 = vld [vmem:[#allocation13_spill] sm:$0xff]  ;;  %v6393_v34 = vld [vmem:[#allocation14_spill] sm:$0xff]  ;;  %v6394_v52 = vld [vmem:[#allocation15_spill] sm:$0xff] }
 0x45d   : > { %3124 = vst [vmem:[%s6333_s4 + $0x108] sm:$0xff] %v3060_v39  ;;  %v2871_v19 = vadd.f32 %v5942_v8, %v2804_v54  ;;  %v2872_v27 = vadd.f32 %v5942_v8, %v2805_v43  ;;  %v2873_v38 = vadd.f32 %v5942_v8, %v2806_v0  ;;  %v2809_v36 = vmul.f32 %v5926_v59, %v6384_v63 }
 0x45e   : > { %3125 = vst [vmem:[%s6333_s4 + $0x110] sm:$0xff] %v3061_v33  ;;  %vm2934_vm6 = vcmp.gt.f32.partialorder %v2870_v12, 0.0  ;;  %v2998_v4 = vmul.f32 0.2, %v2870_v12  ;;  %v2874_v10 = vadd.f32 %v5942_v8, %v2807_v35  ;;  %v2875_v41 = vadd.f32 %v5942_v8, %v2808_v58 }
 0x45f   : > { %vm2935_vm7 = vcmp.gt.f32.partialorder %v2871_v19, 0.0  ;;  %v2999_v45 = vmul.f32 0.2, %v2871_v19  ;;  %vm2936_vm8 = vcmp.gt.f32.partialorder %v2872_v27, 0.0  ;;  %v3000_v15 = vmul.f32 0.2, %v2872_v27 }
 0x460   : > { %v3062_v53 = vsel %vm2934_vm6, %v2870_v12, %v2998_v4  ;;  %vm2937_vm9 = vcmp.gt.f32.partialorder %v2873_v38, 0.0  ;;  %v3001_v60 = vmul.f32 0.2, %v2873_v38  ;;  %vm2938_vm10 = vcmp.gt.f32.partialorder %v2874_v10, 0.0 }
 0x461   : > { %3126 = vst [vmem:[%s6333_s4 + $0x118] sm:$0xff] %v3062_v53  ;;  %v3063_v57 = vsel %vm2935_vm7, %v2871_v19, %v2999_v45  ;;  %v3064_v49 = vsel %vm2936_vm8, %v2872_v27, %v3000_v15  ;;  %v3002_v61 = vmul.f32 0.2, %v2874_v10  ;;  %vm2939_vm11 = vcmp.gt.f32.partialorder %v2875_v41, 0.0  ;;  %v6395_v19 = vld [vmem:[#allocation16_spill] sm:$0xff]  ;;  %v6396_v15 = vld [vmem:[#allocation17_spill] sm:$0xff] }
 0x462   : > { %3127 = vst [vmem:[%s6333_s4 + $0x120] sm:$0xff] %v3063_v57  ;;  %v3065_v20 = vsel %vm2937_vm9, %v2873_v38, %v3001_v60  ;;  %v3003_v26 = vmul.f32 0.2, %v2875_v41  ;;  %v2876_v16 = vadd.f32 %v5942_v8, %v2809_v36  ;;  %v2810_v5 = vmul.f32 %v5926_v59, %v6385_v1  ;;  %v6397_v60 = vld [vmem:[#allocation18_spill] sm:$0xff] }
 0x463   : > { %3128 = vst [vmem:[%s6333_s4 + $0x128] sm:$0xff] %v3064_v49  ;;  %v3066_v32 = vsel %vm2938_vm10, %v2874_v10, %v3002_v61  ;;  %v2811_v13 = vmul.f32 %v5926_v59, %v6386_v9  ;;  %v2812_v21 = vmul.f32 %v5926_v59, %v6387_v17  ;;  %v2813_v14 = vmul.f32 %v5926_v59, %v6388_v51  ;;  %v6398_v49 = vld [vmem:[#allocation19_spill] sm:$0xff]  ;;  %v6399_v17 = vld [vmem:[#allocation20_spill] sm:$0xff] }
 0x464   : > { %3129 = vst [vmem:[%s6333_s4 + $0x130] sm:$0xff] %v3065_v20  ;;  %v3067_v25 = vsel %vm2939_vm11, %v2875_v41, %v3003_v26  ;;  %vm2940_vm12 = vcmp.gt.f32.partialorder %v2876_v16, 0.0  ;;  %v3004_v29 = vmul.f32 0.2, %v2876_v16  ;;  %v2877_v37 = vadd.f32 %v5942_v8, %v2810_v5 }
 0x465   : > { %3130 = vst [vmem:[%s6333_s4 + $0x138] sm:$0xff] %v3066_v32  ;;  %v2878_v18 = vadd.f32 %v5942_v8, %v2811_v13  ;;  %v2879_v31 = vadd.f32 %v5942_v8, %v2812_v21  ;;  %v2880_v28 = vadd.f32 %v5942_v8, %v2813_v14  ;;  %v2814_v48 = vmul.f32 %v5926_v59, %v6389_v40 }
 0x466   : > { %3131 = vst [vmem:[%s6333_s4 + $0x140] sm:$0xff] %v3067_v25  ;;  %v3068_v42 = vsel %vm2940_vm12, %v2876_v16, %v3004_v29  ;;  %vm2941_vm13 = vcmp.gt.f32.partialorder %v2877_v37, 0.0  ;;  %v3005_v30 = vmul.f32 0.2, %v2877_v37  ;;  %v2815_v62 = vmul.f32 %v5926_v59, %v6390_v55 }
 0x467   : > { %3132 = vst [vmem:[%s6333_s4 + $0x148] sm:$0xff] %v3068_v42  ;;  %vm2942_vm14 = vcmp.gt.f32.partialorder %v2878_v18, 0.0  ;;  %v3006_v11 = vmul.f32 0.2, %v2878_v18  ;;  %vm2943_vm15 = vcmp.gt.f32.partialorder %v2879_v31, 0.0  ;;  %vm2944_vm0 = vcmp.gt.f32.partialorder %v2880_v28, 0.0 }
 0x468   : > { %v3069_v22 = vsel %vm2941_vm13, %v2877_v37, %v3005_v30  ;;  %v3007_v2 = vmul.f32 0.2, %v2879_v31  ;;  %v3008_v6 = vmul.f32 0.2, %v2880_v28  ;;  %v2881_v47 = vadd.f32 %v5942_v8, %v2814_v48  ;;  %v6401_v48 = vld [vmem:[#allocation22_spill] sm:$0xff] }
 0x469   : > { %3133 = vst [vmem:[%s6333_s4 + $0x150] sm:$0xff] %v3069_v22  ;;  %v3070_v44 = vsel %vm2942_vm14, %v2878_v18, %v3006_v11  ;;  %v2882_v46 = vadd.f32 %v5942_v8, %v2815_v62  ;;  %v2816_v7 = vmul.f32 %v5926_v59, %v6391_v56  ;;  %v2817_v23 = vmul.f32 %v5926_v59, %v6392_v3  ;;  %v6402_v62 = vld [vmem:[#allocation23_spill] sm:$0xff] }
 0x46a   : > { %3134 = vst [vmem:[%s6333_s4 + $0x158] sm:$0xff] %v3070_v44  ;;  %v3071_v24 = vsel %vm2943_vm15, %v2879_v31, %v3007_v2  ;;  %v3072_v39 = vsel %vm2944_vm0, %v2880_v28, %v3008_v6  ;;  %vm2945_vm1 = vcmp.gt.f32.partialorder %v2881_v47, 0.0  ;;  %v3009_v54 = vmul.f32 0.2, %v2881_v47  ;;  %v6400_v28 = vld [vmem:[#allocation21_spill] sm:$0xff] }
 0x46b   : > { %3135 = vst [vmem:[%s6333_s4 + $0x160] sm:$0xff] %v3071_v24  ;;  %vm2946_vm2 = vcmp.gt.f32.partialorder %v2882_v46, 0.0  ;;  %v3010_v43 = vmul.f32 0.2, %v2882_v46  ;;  %v2883_v0 = vadd.f32 %v5942_v8, %v2816_v7  ;;  %v2884_v33 = vadd.f32 %v5942_v8, %v2817_v23  ;;  %v6404_v7 = vld [vmem:[#allocation25_spill] sm:$0xff]  ;;  %v6405_v23 = vld [vmem:[#allocation26_spill] sm:$0xff] }
 0x46c   : > { %3136 = vst [vmem:[%s6333_s4 + $0x168] sm:$0xff] %v3072_v39  ;;  %v3073_v12 = vsel %vm2945_vm1, %v2881_v47, %v3009_v54  ;;  %v2818_v35 = vmul.f32 %v5926_v59, %v6393_v34  ;;  %v2819_v58 = vmul.f32 %v5926_v59, %v6394_v52  ;;  %v2820_v27 = vmul.f32 %v5926_v59, %v6395_v19  ;;  %v6403_v47 = vld [vmem:[#allocation24_spill] sm:$0xff] }
 0x46d   : > { %3137 = vst [vmem:[%s6333_s4 + $0x170] sm:$0xff] %v3073_v12  ;;  %v3074_v38 = vsel %vm2946_vm2, %v2882_v46, %v3010_v43  ;;  %vm2947_vm3 = vcmp.gt.f32.partialorder %v2883_v0, 0.0  ;;  %v3011_v63 = vmul.f32 0.2, %v2883_v0  ;;  %vm2948_vm4 = vcmp.gt.f32.partialorder %v2884_v33, 0.0 }
 0x46e   : > { %3138 = vst [vmem:[%s6333_s4 + $0x178] sm:$0xff] %v3074_v38  ;;  %v3012_v36 = vmul.f32 0.2, %v2884_v33  ;;  %v2885_v4 = vadd.f32 %v5942_v8, %v2818_v35  ;;  %v2886_v10 = vadd.f32 %v5942_v8, %v2819_v58  ;;  %v2887_v41 = vadd.f32 %v5942_v8, %v2820_v27 }
 0x46f   : > { %v3075_v45 = vsel %vm2947_vm3, %v2883_v0, %v3011_v63  ;;  %v2821_v53 = vmul.f32 %v5926_v59, %v6396_v15  ;;  %v2822_v57 = vmul.f32 %v5926_v59, %v6397_v60  ;;  %v2823_v61 = vmul.f32 %v5926_v59, %v6398_v49 }
 0x470   : > { %3139 = vst [vmem:[%s6333_s4 + $0x180] sm:$0xff] %v3075_v45  ;;  %v3076_v20 = vsel %vm2948_vm4, %v2884_v33, %v3012_v36  ;;  %vm2949_vm5 = vcmp.gt.f32.partialorder %v2885_v4, 0.0  ;;  %v3013_v26 = vmul.f32 0.2, %v2885_v4  ;;  %vm2950_vm6 = vcmp.gt.f32.partialorder %v2886_v10, 0.0 }
 0x471   : > { %3140 = vst [vmem:[%s6333_s4 + $0x188] sm:$0xff] %v3076_v20  ;;  %v3014_v16 = vmul.f32 0.2, %v2886_v10  ;;  %vm2951_vm7 = vcmp.gt.f32.partialorder %v2887_v41, 0.0  ;;  %v3015_v1 = vmul.f32 0.2, %v2887_v41  ;;  %v2888_v5 = vadd.f32 %v5942_v8, %v2821_v53 }
 0x472   : > { %v3077_v32 = vsel %vm2949_vm5, %v2885_v4, %v3013_v26  ;;  %v2889_v9 = vadd.f32 %v5942_v8, %v2822_v57  ;;  %v2890_v13 = vadd.f32 %v5942_v8, %v2823_v61  ;;  %v2824_v21 = vmul.f32 %v5926_v59, %v6399_v17 }
 0x473   : > { %3141 = vst [vmem:[%s6333_s4 + $0x190] sm:$0xff] %v3077_v32  ;;  %v3078_v51 = vsel %vm2950_vm6, %v2886_v10, %v3014_v16  ;;  %v3079_v14 = vsel %vm2951_vm7, %v2887_v41, %v3015_v1  ;;  %vm2952_vm8 = vcmp.gt.f32.partialorder %v2888_v5, 0.0  ;;  %v3016_v25 = vmul.f32 0.2, %v2888_v5 }
 0x474   : > { %3142 = vst [vmem:[%s6333_s4 + $0x198] sm:$0xff] %v3078_v51  ;;  %vm2953_vm9 = vcmp.gt.f32.partialorder %v2889_v9, 0.0  ;;  %v3017_v29 = vmul.f32 0.2, %v2889_v9  ;;  %vm2954_vm10 = vcmp.gt.f32.partialorder %v2890_v13, 0.0  ;;  %v2891_v37 = vadd.f32 %v5942_v8, %v2824_v21 }
 0x475   : > { %3143 = vst [vmem:[%s6333_s4 + $0x1a0] sm:$0xff] %v3079_v14  ;;  %v3080_v18 = vsel %vm2952_vm8, %v2888_v5, %v3016_v25  ;;  %v3018_v31 = vmul.f32 0.2, %v2890_v13  ;;  %v2825_v40 = vmul.f32 %v5926_v59, %v6400_v28  ;;  %v2826_v42 = vmul.f32 %v5926_v59, %v6401_v48 }
 0x476   : > { %3144 = vst [vmem:[%s6333_s4 + $0x1a8] sm:$0xff] %v3080_v18  ;;  %v3081_v30 = vsel %vm2953_vm9, %v2889_v9, %v3017_v29  ;;  %vm2955_vm11 = vcmp.gt.f32.partialorder %v2891_v37, 0.0  ;;  %v3019_v55 = vmul.f32 0.2, %v2891_v37  ;;  %v2827_v11 = vmul.f32 %v5926_v59, %v6402_v62 }
 0x477   : > { %3145 = vst [vmem:[%s6333_s4 + $0x1b0] sm:$0xff] %v3081_v30  ;;  %v3082_v22 = vsel %vm2954_vm10, %v2890_v13, %v3018_v31  ;;  %v2892_v2 = vadd.f32 %v5942_v8, %v2825_v40  ;;  %v2893_v6 = vadd.f32 %v5942_v8, %v2826_v42  ;;  %v2828_v44 = vmul.f32 %v5926_v59, %v6403_v47 }
 0x478   : > { %3146 = vst [vmem:[%s6333_s4 + $0x1b8] sm:$0xff] %v3082_v22  ;;  %v3083_v46 = vsel %vm2955_vm11, %v2891_v37, %v3019_v55  ;;  %v2894_v56 = vadd.f32 %v5942_v8, %v2827_v11  ;;  %v2829_v3 = vmul.f32 %v5926_v59, %v6404_v7  ;;  %v2830_v24 = vmul.f32 %v5926_v59, %v6405_v23 }
 0x479   : > { %3147 = vst [vmem:[%s6333_s4 + $0x1c0] sm:$0xff] %v3083_v46  ;;  %vm2956_vm12 = vcmp.gt.f32.partialorder %v2892_v2, 0.0  ;;  %v3020_v39 = vmul.f32 0.2, %v2892_v2  ;;  %vm2957_vm13 = vcmp.gt.f32.partialorder %v2893_v6, 0.0  ;;  %v2895_v54 = vadd.f32 %v5942_v8, %v2828_v44 }
 0x47a   : > { %v3021_v43 = vmul.f32 0.2, %v2893_v6  ;;  %vm2958_vm14 = vcmp.gt.f32.partialorder %v2894_v56, 0.0  ;;  %v3022_v0 = vmul.f32 0.2, %v2894_v56  ;;  %v2896_v33 = vadd.f32 %v5942_v8, %v2829_v3 }
 0x47b   : > { %v3084_v12 = vsel %vm2956_vm12, %v2892_v2, %v3020_v39  ;;  %vm2959_vm15 = vcmp.gt.f32.partialorder %v2895_v54, 0.0  ;;  %v3023_v34 = vmul.f32 0.2, %v2895_v54  ;;  %v2897_v35 = vadd.f32 %v5942_v8, %v2830_v24 }
 0x47c   : > { %3148 = vst [vmem:[%s6333_s4 + $0x1c8] sm:$0xff] %v3084_v12  ;;  %v3085_v52 = vsel %vm2957_vm13, %v2893_v6, %v3021_v43  ;;  %v3086_v58 = vsel %vm2958_vm14, %v2894_v56, %v3022_v0  ;;  %vm2960_vm0 = vcmp.gt.f32.partialorder %v2896_v33, 0.0  ;;  %v3024_v19 = vmul.f32 0.2, %v2896_v33 }
 0x47d   : > { %3149 = vst [vmem:[%s6333_s4 + $0x1d0] sm:$0xff] %v3085_v52  ;;  %v3087_v27 = vsel %vm2959_vm15, %v2895_v54, %v3023_v34  ;;  %vm2961_vm1 = vcmp.gt.f32.partialorder %v2897_v35, 0.0  ;;  %v3025_v38 = vmul.f32 0.2, %v2897_v35  ;;  %v2831_v63 = vmul.f32 %v5926_v59, %v5911_v50 }
 0x47e   : > { %3150 = vst [vmem:[%s6333_s4 + $0x1d8] sm:$0xff] %v3086_v58  ;;  %v3088_v36 = vsel %vm2960_vm0, %v2896_v33, %v3024_v19 }
 0x47f   : > { %3151 = vst [vmem:[%s6333_s4 + $0x1e0] sm:$0xff] %v3087_v27  ;;  %v3089_v4 = vsel %vm2961_vm1, %v2897_v35, %v3025_v38  ;;  %v2898_v10 = vadd.f32 %v5942_v8, %v2831_v63 }
 0x480   : > { %3152 = vst [vmem:[%s6333_s4 + $0x1e8] sm:$0xff] %v3088_v36 }
 0x481   : > { %3153 = vst [vmem:[%s6333_s4 + $0x1f0] sm:$0xff] %v3089_v4  ;;  %vm2962_vm2 = vcmp.gt.f32.partialorder %v2898_v10, 0.0  ;;  %v3026_v50 = vmul.f32 0.2, %v2898_v10 }
 0x483   : > { %v3090_v59 = vsel %vm2962_vm2, %v2898_v10, %v3026_v50 }
 0x484   : > { %3154 = vst [vmem:[%s6333_s4 + $0x1f8] sm:$0xff] %v3090_v59 }
 0x485 PF: > { %s14_s19 = sadd.s32 1, %s4136_s19   ;;  %s6406_s15 = smov %s4124_s16 }
 0x486   : > { %p11_p12 = scmp.ge.s32.totalorder %s14_s19, 4   ;;  %s6407_s16 = smov %s4199_s23 }
 0x487   : > { %s6408_s17 = smov %s4132_s18  ;;  %s6409_s18 = smov %s6411_s20 }
 0x488   :  { %13 = sbr.rel (!%p11_p12) target bundleno = 3 (0x3), region = 105 }

// kernel: _lambda_.8
= control target key start
LH: loop header
LB: loop body
LE: loop exit
PB: predicated region body
PF: predicated region fallthrough
CT: control target
= control target key end

     0   :  { %vm1592_vm5 = vcmask 1040384   ;;  %s3988_s1 = inlined_call_operand.vmem [shape: bf16[512,256], index: 1, kind: input, shape index: {}]   ;;  %s3989_s0 = inlined_call_operand.vmem [shape: bf16[176,512], index: 0, kind: input, shape index: {}]   ;;  %s3990_s2 = inlined_call_operand.vmem [shape: f32[1,256], index: 2, kind: input, shape index: {}]   ;;  %s3991_s3 = inlined_call_operand.vmem [shape: f32[1,256], index: 3, kind: input, shape index: {}]   ;;  %s3992_s4 = inlined_call_operand.vmem [shape: f32[176,256], index: 4, kind: output, shape index: {}]  }
   0x1   :  { %v2117_v0 = vld [vmem:[%s3988_s1 + $0x70] sm:$0xf]  ;;  %v2374_v1 = vld [vmem:[%s3988_s1 + $0x74] sm:$0xf0]  ;;  %v2109_v11 = vld [vmem:[%s3988_s1 + $0x60] sm:$0xf] }
   0x2   :  { %v2181_v2 = vld [vmem:[%s3988_s1 + $0xf0] sm:$0xf]  ;;  %v2118_v3 = vor.u32 %v2374_v1, %v2117_v0  ;;  %v2390_v4 = vld [vmem:[%s3988_s1 + $0xf4] sm:$0xf0]  ;;  %v2372_v13 = vld [vmem:[%s3988_s1 + $0x64] sm:$0xf0] }
   0x3   :  { %v2245_v5 = vld [vmem:[%s3988_s1 + $0x170] sm:$0xf]  ;;  %v2406_v6 = vld [vmem:[%s3988_s1 + $0x174] sm:$0xf0]  ;;  %v2182_v7 = vor.u32 %v2390_v4, %v2181_v2  ;;  %v2173_v14 = vld [vmem:[%s3988_s1 + $0xe0] sm:$0xf]  ;;  %v2110_v16 = vor.u32 %v2372_v13, %v2109_v11 }
   0x4   :  { %v2246_v8 = vor.u32 %v2406_v6, %v2245_v5  ;;  %v2309_v9 = vld [vmem:[%s3988_s1 + $0x1f0] sm:$0xf]  ;;  %v2422_v10 = vld [vmem:[%s3988_s1 + $0x1f4] sm:$0xf0]  ;;  %757 = vmatpush.bf16.msra.mxu0 %v2118_v3  ;;  %v2388_v15 = vld [vmem:[%s3988_s1 + $0xe4] sm:$0xf0] }
   0x5   :  { %v2310_v12 = vor.u32 %v2422_v10, %v2309_v9  ;;  %821 = vmatpush.bf16.msra.mxu1 %v2182_v7  ;;  %v2174_v17 = vor.u32 %v2388_v15, %v2173_v14  ;;  %v2237_v18 = vld [vmem:[%s3988_s1 + $0x160] sm:$0xf]  ;;  %v2404_v19 = vld [vmem:[%s3988_s1 + $0x164] sm:$0xf0]  ;;  %v2101_v23 = vld [vmem:[%s3988_s1 + $0x50] sm:$0xf] }
   0x6   :  { %885 = vmatpush.bf16.msra.mxu2 %v2246_v8  ;;  %v2301_v20 = vld [vmem:[%s3988_s1 + $0x1e0] sm:$0xf]  ;;  %v2238_v21 = vor.u32 %v2404_v19, %v2237_v18  ;;  %v2420_v22 = vld [vmem:[%s3988_s1 + $0x1e4] sm:$0xf0]  ;;  %v2370_v24 = vld [vmem:[%s3988_s1 + $0x54] sm:$0xf0] }
   0x7   :  { %949 = vmatpush.bf16.msra.mxu3 %v2310_v12  ;;  %v2302_v25 = vor.u32 %v2420_v22, %v2301_v20  ;;  %v2165_v26 = vld [vmem:[%s3988_s1 + $0xd0] sm:$0xf]  ;;  %v2386_v27 = vld [vmem:[%s3988_s1 + $0xd4] sm:$0xf0]  ;;  %v2102_v29 = vor.u32 %v2370_v24, %v2101_v23  ;;  %v2093_v35 = vld [vmem:[%s3988_s1 + $0x40] sm:$0xf] }
   0x8   :  { %v2229_v28 = vld [vmem:[%s3988_s1 + $0x150] sm:$0xf]  ;;  %758 = vmatpush.bf16.msra.mxu0 %v2110_v16  ;;  %v2402_v30 = vld [vmem:[%s3988_s1 + $0x154] sm:$0xf0]  ;;  %v2166_v33 = vor.u32 %v2386_v27, %v2165_v26  ;;  %v2368_v36 = vld [vmem:[%s3988_s1 + $0x44] sm:$0xf0] }
   0x9   :  { %v2293_v31 = vld [vmem:[%s3988_s1 + $0x1d0] sm:$0xf]  ;;  %v2418_v32 = vld [vmem:[%s3988_s1 + $0x1d4] sm:$0xf0]  ;;  %822 = vmatpush.bf16.msra.mxu1 %v2174_v17  ;;  %v2230_v34 = vor.u32 %v2402_v30, %v2229_v28  ;;  %v2157_v37 = vld [vmem:[%s3988_s1 + $0xc0] sm:$0xf]  ;;  %v2094_v44 = vor.u32 %v2368_v36, %v2093_v35 }
   0xa   :  { %886 = vmatpush.bf16.msra.mxu2 %v2238_v21  ;;  %v2294_v38 = vor.u32 %v2418_v32, %v2293_v31  ;;  %v2384_v39 = vld [vmem:[%s3988_s1 + $0xc4] sm:$0xf0]  ;;  %v2221_v40 = vld [vmem:[%s3988_s1 + $0x140] sm:$0xf]  ;;  %v2085_v47 = vld [vmem:[%s3988_s1 + $0x30] sm:$0xf] }
   0xb   :  { %950 = vmatpush.bf16.msra.mxu3 %v2302_v25  ;;  %v2400_v41 = vld [vmem:[%s3988_s1 + $0x144] sm:$0xf0]  ;;  %v2285_v42 = vld [vmem:[%s3988_s1 + $0x1c0] sm:$0xf]  ;;  %v2158_v45 = vor.u32 %v2384_v39, %v2157_v37  ;;  %v2366_v48 = vld [vmem:[%s3988_s1 + $0x34] sm:$0xf0] }
   0xc   :  { %v2416_v43 = vld [vmem:[%s3988_s1 + $0x1c4] sm:$0xf0]  ;;  %759 = vmatpush.bf16.msra.mxu0 %v2102_v29  ;;  %v2222_v46 = vor.u32 %v2400_v41, %v2221_v40  ;;  %v2149_v49 = vld [vmem:[%s3988_s1 + $0xb0] sm:$0xf]  ;;  %v2382_v51 = vld [vmem:[%s3988_s1 + $0xb4] sm:$0xf0]  ;;  %v2086_v56 = vor.u32 %v2366_v48, %v2085_v47 }
   0xd   :  { %823 = vmatpush.bf16.msra.mxu1 %v2166_v33  ;;  %v2286_v50 = vor.u32 %v2416_v43, %v2285_v42  ;;  %v2213_v52 = vld [vmem:[%s3988_s1 + $0x130] sm:$0xf]  ;;  %v2398_v53 = vld [vmem:[%s3988_s1 + $0x134] sm:$0xf0]  ;;  %v2150_v57 = vor.u32 %v2382_v51, %v2149_v49  ;;  %v2077_v59 = vld [vmem:[%s3988_s1 + $0x20] sm:$0xf] }
   0xe   :  { %887 = vmatpush.bf16.msra.mxu2 %v2230_v34  ;;  %v2277_v54 = vld [vmem:[%s3988_s1 + $0x1b0] sm:$0xf]  ;;  %v2414_v55 = vld [vmem:[%s3988_s1 + $0x1b4] sm:$0xf0]  ;;  %v2214_v58 = vor.u32 %v2398_v53, %v2213_v52  ;;  %v2364_v60 = vld [vmem:[%s3988_s1 + $0x24] sm:$0xf0] }
   0xf   :  { %951 = vmatpush.bf16.msra.mxu3 %v2294_v38  ;;  %v2141_v61 = vld [vmem:[%s3988_s1 + $0xa0] sm:$0xf]  ;;  %v2278_v62 = vor.u32 %v2414_v55, %v2277_v54  ;;  %v2380_v63 = vld [vmem:[%s3988_s1 + $0xa4] sm:$0xf0]  ;;  %v2078_v4 = vor.u32 %v2364_v60, %v2077_v59  ;;  %v2069_v7 = vld [vmem:[%s3988_s1 + $0x10] sm:$0xf] }
  0x10   :  { %760 = vmatpush.bf16.msra.mxu0 %v2094_v44  ;;  %v2205_v0 = vld [vmem:[%s3988_s1 + $0x120] sm:$0xf]  ;;  %v2396_v1 = vld [vmem:[%s3988_s1 + $0x124] sm:$0xf0]  ;;  %v2142_v5 = vor.u32 %v2380_v63, %v2141_v61  ;;  %v2362_v8 = vld [vmem:[%s3988_s1 + $0x14] sm:$0xf0] }
  0x11   :  { %824 = vmatpush.bf16.msra.mxu1 %v2158_v45  ;;  %v2269_v2 = vld [vmem:[%s3988_s1 + $0x1a0] sm:$0xf]  ;;  %v2412_v3 = vld [vmem:[%s3988_s1 + $0x1a4] sm:$0xf0]  ;;  %v2206_v6 = vor.u32 %v2396_v1, %v2205_v0  ;;  %v2133_v9 = vld [vmem:[%s3988_s1 + $0x90] sm:$0xf]  ;;  %v2070_v17 = vor.u32 %v2362_v8, %v2069_v7 }
  0x12   :  { %888 = vmatpush.bf16.msra.mxu2 %v2222_v46  ;;  %v2270_v10 = vor.u32 %v2412_v3, %v2269_v2  ;;  %v2378_v11 = vld [vmem:[%s3988_s1 + $0x94] sm:$0xf0]  ;;  %v2197_v12 = vld [vmem:[%s3988_s1 + $0x110] sm:$0xf]  ;;  %v2061_v16 = vld [vmem:[%s3988_s1] sm:$0xf] }
  0x13   :  { %952 = vmatpush.bf16.msra.mxu3 %v2286_v50  ;;  %v2394_v13 = vld [vmem:[%s3988_s1 + $0x114] sm:$0xf0]  ;;  %v2261_v14 = vld [vmem:[%s3988_s1 + $0x190] sm:$0xf]  ;;  %v2360_v18 = vld [vmem:[%s3988_s1 + $0x4] sm:$0xf0]  ;;  %v2134_v21 = vor.u32 %v2378_v11, %v2133_v9 }
  0x14   :  { %761 = vmatpush.bf16.msra.mxu0 %v2086_v56  ;;  %v2410_v15 = vld [vmem:[%s3988_s1 + $0x194] sm:$0xf0]  ;;  %v2125_v19 = vld [vmem:[%s3988_s1 + $0x80] sm:$0xf]  ;;  %v2376_v20 = vld [vmem:[%s3988_s1 + $0x84] sm:$0xf0]  ;;  %v2198_v22 = vor.u32 %v2394_v13, %v2197_v12  ;;  %v2062_v34 = vor.u32 %v2360_v18, %v2061_v16 }
  0x15   :  { %825 = vmatpush.bf16.msra.mxu1 %v2150_v57  ;;  %v2189_v23 = vld [vmem:[%s3988_s1 + $0x100] sm:$0xf]  ;;  %v2392_v24 = vld [vmem:[%s3988_s1 + $0x104] sm:$0xf0]  ;;  %v2262_v26 = vor.u32 %v2410_v15, %v2261_v14  ;;  %v2317_v29 = vld [vmem:[%s3989_s0 + $0xc] sm:$0xf0]  ;;  %v2126_v38 = vor.u32 %v2376_v20, %v2125_v19 }
  0x16   :  { %889 = vmatpush.bf16.msra.mxu2 %v2214_v58  ;;  %v2253_v25 = vld [vmem:[%s3988_s1 + $0x180] sm:$0xf]  ;;  %v2408_v27 = vld [vmem:[%s3988_s1 + $0x184] sm:$0xf0]  ;;  %v2315_v30 = vld [vmem:[%s3989_s0 + $0x4] sm:$0xf]  ;;  %v2190_v39 = vor.u32 %v2392_v24, %v2189_v23 }
  0x17   :  { %953 = vmatpush.bf16.msra.mxu3 %v2278_v62  ;;  %v1885_v28 = vld [vmem:[%s3989_s0] sm:$0xf]  ;;  %v1887_v31 = vld [vmem:[%s3989_s0 + $0x10] sm:$0xf0]  ;;  %v2247_v33 = vld [vmem:[%s3988_s1 + $0x178] sm:$0xf0]  ;;  %v2254_v43 = vor.u32 %v2408_v27, %v2253_v25 }
  0x18   :  { %762 = vmatpush.bf16.msra.mxu0 %v2078_v4  ;;  %v2405_v32 = vld [vmem:[%s3988_s1 + $0x174] sm:$0xf]  ;;  %v1893_v35 = vld [vmem:[%s3989_s0 + $0x8] sm:$0xf]  ;;  %v2311_v37 = vld [vmem:[%s3988_s1 + $0x1f8] sm:$0xf0]  ;;  %v2690_v48 = vor.u32 %v2317_v29, %v1885_v28  ;;  %v2701_v53 = vor.u32 %v2315_v30, %v1887_v31 }
  0x19   :  { %826 = vmatpush.bf16.msra.mxu1 %v2142_v5  ;;  %v2421_v36 = vld [vmem:[%s3988_s1 + $0x1f4] sm:$0xf]  ;;  %v2318_v40 = vld [vmem:[%s3989_s0 + $0x14] sm:$0xf0]  ;;  %v2316_v41 = vld [vmem:[%s3989_s0 + $0xc] sm:$0xf]  ;;  %v2250_v44 = vor.u32 %v2405_v32, %v2247_v33 }
  0x1a   :  { %890 = vmatpush.bf16.msra.mxu2 %v2206_v6  ;;  %v1895_v42 = vld [vmem:[%s3989_s0 + $0x18] sm:$0xf0]  ;;  %v2373_v45 = vld [vmem:[%s3988_s1 + $0x74] sm:$0xf]  ;;  %v2314_v49 = vor.u32 %v2421_v36, %v2311_v37  ;;  %v2403_v51 = vld [vmem:[%s3988_s1 + $0x164] sm:$0xf]  ;;  %v2703_v54 = vor.u32 %v2318_v40, %v1893_v35 }
  0x1b   :  { %954 = vmatpush.bf16.msra.mxu3 %v2270_v10  ;;  %v2119_v46 = vld [vmem:[%s3988_s1 + $0x78] sm:$0xf0]  ;;  %v2389_v47 = vld [vmem:[%s3988_s1 + $0xf4] sm:$0xf]  ;;  %v2239_v52 = vld [vmem:[%s3988_s1 + $0x168] sm:$0xf0]  ;;  %v2711_v57 = vor.u32 %v2316_v41, %v1895_v42 }
  0x1c   :  { %763 = vmatpush.bf16.msra.mxu0 %v2070_v17  ;;  %v2183_v50 = vld [vmem:[%s3988_s1 + $0xf8] sm:$0xf0]  ;;  %v2419_v55 = vld [vmem:[%s3988_s1 + $0x1e4] sm:$0xf]  ;;  %v2303_v56 = vld [vmem:[%s3988_s1 + $0x1e8] sm:$0xf0]  ;;  %v2122_v58 = vor.u32 %v2373_v45, %v2119_v46  ;;  %v2242_v60 = vor.u32 %v2403_v51, %v2239_v52 }
  0x1d   :  { %827 = vmatpush.bf16.msra.mxu1 %v2134_v21  ;;  %v2186_v59 = vor.u32 %v2389_v47, %v2183_v50  ;;  %v2371_v61 = vld [vmem:[%s3988_s1 + $0x64] sm:$0xf]  ;;  %v2111_v62 = vld [vmem:[%s3988_s1 + $0x68] sm:$0xf0]  ;;  %v2306_v63 = vor.u32 %v2419_v55, %v2303_v56  ;;  %v2401_v3 = vld [vmem:[%s3988_s1 + $0x154] sm:$0xf] }
  0x1e   :  { %891 = vmatpush.bf16.msra.mxu2 %v2198_v22  ;;  %v2387_v0 = vld [vmem:[%s3988_s1 + $0xe4] sm:$0xf]  ;;  %v2175_v1 = vld [vmem:[%s3988_s1 + $0xe8] sm:$0xf0]  ;;  %v2114_v2 = vor.u32 %v2371_v61, %v2111_v62  ;;  %v2231_v4 = vld [vmem:[%s3988_s1 + $0x158] sm:$0xf0] }
  0x1f   :  { %955 = vmatpush.bf16.msra.mxu3 %v2262_v26  ;;  %v2417_v5 = vld [vmem:[%s3988_s1 + $0x1d4] sm:$0xf]  ;;  %v2178_v6 = vor.u32 %v2387_v0, %v2175_v1  ;;  %v2234_v7 = vor.u32 %v2401_v3, %v2231_v4  ;;  %v2295_v8 = vld [vmem:[%s3988_s1 + $0x1d8] sm:$0xf0]  ;;  %v1901_v10 = vld [vmem:[%s3989_s0 + $0x20] sm:$0xf] }
  0x20   :  { %764 = vmatpush.bf16.msra.mxu0 %v2062_v34  ;;  %v2298_v9 = vor.u32 %v2417_v5, %v2295_v8  ;;  %v2321_v11 = vld [vmem:[%s3989_s0 + $0x2c] sm:$0xf0]  ;;  %v2319_v12 = vld [vmem:[%s3989_s0 + $0x24] sm:$0xf]  ;;  %v1903_v13 = vld [vmem:[%s3989_s0 + $0x30] sm:$0xf0] }
  0x21   :  { %828 = vmatpush.bf16.msra.mxu1 %v2126_v38  ;;  %v1909_v14 = vld [vmem:[%s3989_s0 + $0x28] sm:$0xf]  ;;  %v2322_v15 = vld [vmem:[%s3989_s0 + $0x34] sm:$0xf0]  ;;  %v2320_v16 = vld [vmem:[%s3989_s0 + $0x2c] sm:$0xf]  ;;  %v2765_v18 = vor.u32 %v2321_v11, %v1901_v10  ;;  %v2767_v19 = vor.u32 %v2319_v12, %v1903_v13 }
  0x22   :  { %892 = vmatpush.bf16.msra.mxu2 %v2190_v39  ;;  %v1911_v17 = vld [vmem:[%s3989_s0 + $0x38] sm:$0xf0]  ;;  %v2769_v20 = vor.u32 %v2322_v15, %v1909_v14  ;;  %v2369_v22 = vld [vmem:[%s3988_s1 + $0x54] sm:$0xf]  ;;  %v1917_v28 = vld [vmem:[%s3989_s0 + $0x40] sm:$0xf] }
  0x23   :  { %956 = vmatpush.bf16.msra.mxu3 %v2254_v43  ;;  %765 = vmatmul.bf16.vlgmr.msra.gmra.mxu0 %v2690_v48  ;;  %v2771_v21 = vor.u32 %v2320_v16, %v1911_v17  ;;  %v2103_v23 = vld [vmem:[%s3988_s1 + $0x58] sm:$0xf0]  ;;  %v2385_v24 = vld [vmem:[%s3988_s1 + $0xd4] sm:$0xf]  ;;  %v2325_v29 = vld [vmem:[%s3989_s0 + $0x4c] sm:$0xf0] }
  0x24   :  { %829 = vmatmul.bf16.vlgmr.msra.gmra.mxu1 %v2701_v53  ;;  %1013 = vmatpush.bf16.msrb.mxu0 %v2122_v58  ;;  %v2106_v25 = vor.u32 %v2369_v22, %v2103_v23  ;;  %v2167_v26 = vld [vmem:[%s3988_s1 + $0xd8] sm:$0xf0]  ;;  %v2323_v30 = vld [vmem:[%s3989_s0 + $0x44] sm:$0xf]  ;;  %v1919_v31 = vld [vmem:[%s3989_s0 + $0x50] sm:$0xf0]  ;;  %v2813_v36 = vor.u32 %v2325_v29, %v1917_v28 }
  0x25   :  { %893 = vmatmul.bf16.vlgmr.msra.gmra.mxu2 %v2703_v54  ;;  %1077 = vmatpush.bf16.msrb.mxu1 %v2186_v59  ;;  %v2170_v27 = vor.u32 %v2385_v24, %v2167_v26  ;;  %v1925_v32 = vld [vmem:[%s3989_s0 + $0x48] sm:$0xf]  ;;  %v2326_v33 = vld [vmem:[%s3989_s0 + $0x54] sm:$0xf0]  ;;  %v2324_v34 = vld [vmem:[%s3989_s0 + $0x4c] sm:$0xf]  ;;  %v2815_v37 = vor.u32 %v2323_v30, %v1919_v31 }
  0x26   :  { %1141 = vmatpush.bf16.msrb.mxu2 %v2250_v44  ;;  %957 = vmatmul.bf16.vlgmr.msra.gmra.mxu3 %v2711_v57  ;;  %v1927_v35 = vld [vmem:[%s3989_s0 + $0x58] sm:$0xf0]  ;;  %v2817_v38 = vor.u32 %v2326_v33, %v1925_v32  ;;  %v2399_v40 = vld [vmem:[%s3988_s1 + $0x144] sm:$0xf]  ;;  %v2223_v41 = vld [vmem:[%s3988_s1 + $0x148] sm:$0xf0] }
  0x27   :  { %1205 = vmatpush.bf16.msrb.mxu3 %v2314_v49  ;;  %v2819_v39 = vor.u32 %v2324_v34, %v1927_v35  ;;  %v2415_v42 = vld [vmem:[%s3988_s1 + $0x1c4] sm:$0xf]  ;;  %v2226_v43 = vor.u32 %v2399_v40, %v2223_v41  ;;  %v2287_v44 = vld [vmem:[%s3988_s1 + $0x1c8] sm:$0xf0]  ;;  %v1933_v55 = vld [vmem:[%s3989_s0 + $0x60] sm:$0xf] }
  0x28   :  { %1014 = vmatpush.bf16.msrb.mxu0 %v2114_v2  ;;  %v2367_v45 = vld [vmem:[%s3988_s1 + $0x44] sm:$0xf]  ;;  %v2095_v46 = vld [vmem:[%s3988_s1 + $0x48] sm:$0xf0]  ;;  %v2290_v47 = vor.u32 %v2415_v42, %v2287_v44  ;;  %v2329_v56 = vld [vmem:[%s3989_s0 + $0x6c] sm:$0xf0] }
  0x29   :  { %1078 = vmatpush.bf16.msrb.mxu1 %v2178_v6  ;;  %v2098_v49 = vor.u32 %v2367_v45, %v2095_v46  ;;  %v2383_v50 = vld [vmem:[%s3988_s1 + $0xc4] sm:$0xf]  ;;  %v2159_v51 = vld [vmem:[%s3988_s1 + $0xc8] sm:$0xf0]  ;;  %v1935_v59 = vld [vmem:[%s3989_s0 + $0x70] sm:$0xf0]  ;;  %v2873_v0 = vor.u32 %v2329_v56, %v1933_v55 }
  0x2a   :  { %1142 = vmatpush.bf16.msrb.mxu2 %v2242_v60  ;;  %v2162_v52 = vor.u32 %v2383_v50, %v2159_v51  ;;  %v2327_v58 = vld [vmem:[%s3989_s0 + $0x64] sm:$0xf]  ;;  %v1941_v60 = vld [vmem:[%s3989_s0 + $0x68] sm:$0xf]  ;;  %v2330_v61 = vld [vmem:[%s3989_s0 + $0x74] sm:$0xf0] }
  0x2b   :  { %1206 = vmatpush.bf16.msrb.mxu3 %v2306_v63  ;;  %v2328_v62 = vld [vmem:[%s3989_s0 + $0x6c] sm:$0xf]  ;;  %v1943_v63 = vld [vmem:[%s3989_s0 + $0x78] sm:$0xf0]  ;;  %v2875_v1 = vor.u32 %v2327_v58, %v1935_v59  ;;  %v2877_v2 = vor.u32 %v2330_v61, %v1941_v60  ;;  %v2397_v4 = vld [vmem:[%s3988_s1 + $0x134] sm:$0xf] }
  0x2c   :  { %1015 = vmatpush.bf16.msrb.mxu0 %v2106_v25  ;;  %v2879_v3 = vor.u32 %v2328_v62, %v1943_v63  ;;  %v2215_v5 = vld [vmem:[%s3988_s1 + $0x138] sm:$0xf0]  ;;  %v2413_v6 = vld [vmem:[%s3988_s1 + $0x1b4] sm:$0xf]  ;;  %v1949_v16 = vld [vmem:[%s3989_s0 + $0x80] sm:$0xf] }
  0x2d   :  { %1079 = vmatpush.bf16.msrb.mxu1 %v2170_v27  ;;  %v2279_v8 = vld [vmem:[%s3988_s1 + $0x1b8] sm:$0xf0]  ;;  %v2381_v13 = vld [vmem:[%s3988_s1 + $0xb4] sm:$0xf]  ;;  %v2333_v17 = vld [vmem:[%s3989_s0 + $0x8c] sm:$0xf0] }
  0x2e   :  { %1143 = vmatpush.bf16.msrb.mxu2 %v2234_v7  ;;  %v2218_v7 = vor.u32 %v2397_v4, %v2215_v5  ;;  %v2087_v10 = vld [vmem:[%s3988_s1 + $0x38] sm:$0xf0]  ;;  %v2282_v11 = vor.u32 %v2413_v6, %v2279_v8  ;;  %v2331_v22 = vld [vmem:[%s3989_s0 + $0x84] sm:$0xf]  ;;  %v1951_v23 = vld [vmem:[%s3989_s0 + $0x90] sm:$0xf0]  ;;  %v2933_v28 = vor.u32 %v2333_v17, %v1949_v16 }
  0x2f   :  { %1207 = vmatpush.bf16.msrb.mxu3 %v2298_v9  ;;  %v2365_v9 = vld [vmem:[%s3988_s1 + $0x34] sm:$0xf]  ;;  %v2151_v14 = vld [vmem:[%s3988_s1 + $0xb8] sm:$0xf0]  ;;  %v1957_v24 = vld [vmem:[%s3989_s0 + $0x88] sm:$0xf]  ;;  %v2935_v29 = vor.u32 %v2331_v22, %v1951_v23 }
  0x30   :  { %1016 = vmatpush.bf16.msrb.mxu0 %v2098_v49  ;;  %v2090_v12 = vor.u32 %v2365_v9, %v2087_v10  ;;  %v2154_v15 = vor.u32 %v2381_v13, %v2151_v14  ;;  %v2334_v25 = vld [vmem:[%s3989_s0 + $0x94] sm:$0xf0]  ;;  %v2332_v26 = vld [vmem:[%s3989_s0 + $0x8c] sm:$0xf]  ;;  %v1959_v27 = vld [vmem:[%s3989_s0 + $0x98] sm:$0xf0] }
  0x31   :  { %1080 = vmatpush.bf16.msrb.mxu1 %v2162_v52  ;;  %v2937_v30 = vor.u32 %v2334_v25, %v1957_v24  ;;  %v2939_v31 = vor.u32 %v2332_v26, %v1959_v27  ;;  %v2395_v32 = vld [vmem:[%s3988_s1 + $0x124] sm:$0xf]  ;;  %v2207_v33 = vld [vmem:[%s3988_s1 + $0x128] sm:$0xf0]  ;;  %v1965_v35 = vld [vmem:[%s3989_s0 + $0xa0] sm:$0xf] }
  0x32   :  { %1144 = vmatpush.bf16.msrb.mxu2 %v2226_v43  ;;  %v2210_v34 = vor.u32 %v2395_v32, %v2207_v33  ;;  %v2337_v40 = vld [vmem:[%s3989_s0 + $0xac] sm:$0xf0]  ;;  %v2335_v41 = vld [vmem:[%s3989_s0 + $0xa4] sm:$0xf]  ;;  %v1967_v42 = vld [vmem:[%s3989_s0 + $0xb0] sm:$0xf0] }
  0x33   :  { %770 = vmatmul.bf16.gmra.mxu0 %v2765_v18  ;;  %1208 = vmatpush.bf16.msrb.mxu3 %v2290_v47  ;;  %v1973_v43 = vld [vmem:[%s3989_s0 + $0xa8] sm:$0xf]  ;;  %v2338_v44 = vld [vmem:[%s3989_s0 + $0xb4] sm:$0xf0]  ;;  %v2336_v45 = vld [vmem:[%s3989_s0 + $0xac] sm:$0xf]  ;;  %v2975_v47 = vor.u32 %v2337_v40, %v1965_v35  ;;  %v2977_v49 = vor.u32 %v2335_v41, %v1967_v42 }
  0x34   :  { %834 = vmatmul.bf16.gmra.mxu1 %v2767_v19  ;;  %1017 = vmatpush.bf16.msrb.mxu0 %v2090_v12  ;;  %v1975_v46 = vld [vmem:[%s3989_s0 + $0xb8] sm:$0xf0]  ;;  %v2979_v50 = vor.u32 %v2338_v44, %v1973_v43  ;;  %v2411_v52 = vld [vmem:[%s3988_s1 + $0x1a4] sm:$0xf]  ;;  %v2271_v55 = vld [vmem:[%s3988_s1 + $0x1a8] sm:$0xf0] }
  0x35   :  { %898 = vmatmul.bf16.gmra.mxu2 %v2769_v20  ;;  %1081 = vmatpush.bf16.msrb.mxu1 %v2154_v15  ;;  %v2981_v51 = vor.u32 %v2336_v45, %v1975_v46  ;;  %v2363_v56 = vld [vmem:[%s3988_s1 + $0x24] sm:$0xf]  ;;  %v2274_v58 = vor.u32 %v2411_v52, %v2271_v55  ;;  %v2079_v59 = vld [vmem:[%s3988_s1 + $0x28] sm:$0xf0]  ;;  %v1981_v4 = vld [vmem:[%s3989_s0 + $0xc0] sm:$0xf] }
  0x36   :  { %962 = vmatmul.bf16.gmra.mxu3 %v2771_v21  ;;  %1145 = vmatpush.bf16.msrb.mxu2 %v2218_v7  ;;  %v2379_v60 = vld [vmem:[%s3988_s1 + $0xa4] sm:$0xf]  ;;  %v2143_v61 = vld [vmem:[%s3988_s1 + $0xa8] sm:$0xf0]  ;;  %v2082_v62 = vor.u32 %v2363_v56, %v2079_v59  ;;  %v2341_v5 = vld [vmem:[%s3989_s0 + $0xcc] sm:$0xf0] }
  0x37   :  { %1209 = vmatpush.bf16.msrb.mxu3 %v2282_v11  ;;  %v2146_v63 = vor.u32 %v2379_v60, %v2143_v61  ;;  %v2339_v6 = vld [vmem:[%s3989_s0 + $0xc4] sm:$0xf]  ;;  %v1983_v7 = vld [vmem:[%s3989_s0 + $0xd0] sm:$0xf0]  ;;  %v1989_v8 = vld [vmem:[%s3989_s0 + $0xc8] sm:$0xf]  ;;  %v3029_v12 = vor.u32 %v2341_v5, %v1981_v4 }
  0x38   :  { %1018 = vmatpush.bf16.msrb.mxu0 %v2082_v62  ;;  %v2342_v9 = vld [vmem:[%s3989_s0 + $0xd4] sm:$0xf0]  ;;  %v2340_v10 = vld [vmem:[%s3989_s0 + $0xcc] sm:$0xf]  ;;  %v1991_v11 = vld [vmem:[%s3989_s0 + $0xd8] sm:$0xf0]  ;;  %v3031_v13 = vor.u32 %v2339_v6, %v1983_v7 }
  0x39   :  { %1082 = vmatpush.bf16.msrb.mxu1 %v2146_v63  ;;  %v3033_v14 = vor.u32 %v2342_v9, %v1989_v8  ;;  %v3035_v15 = vor.u32 %v2340_v10, %v1991_v11  ;;  %v1997_v16 = vld [vmem:[%s3989_s0 + $0xe0] sm:$0xf]  ;;  %v2345_v17 = vld [vmem:[%s3989_s0 + $0xec] sm:$0xf0]  ;;  %v2343_v22 = vld [vmem:[%s3989_s0 + $0xe4] sm:$0xf] }
  0x3a   :  { %1146 = vmatpush.bf16.msrb.mxu2 %v2210_v34  ;;  %v1999_v23 = vld [vmem:[%s3989_s0 + $0xf0] sm:$0xf0]  ;;  %v2005_v24 = vld [vmem:[%s3989_s0 + $0xe8] sm:$0xf]  ;;  %v2346_v25 = vld [vmem:[%s3989_s0 + $0xf4] sm:$0xf0]  ;;  %v3074_v35 = vor.u32 %v2345_v17, %v1997_v16 }
  0x3b   :  { %1210 = vmatpush.bf16.msrb.mxu3 %v2274_v58  ;;  %v2344_v26 = vld [vmem:[%s3989_s0 + $0xec] sm:$0xf]  ;;  %v2007_v27 = vld [vmem:[%s3989_s0 + $0xf8] sm:$0xf0]  ;;  %v2393_v32 = vld [vmem:[%s3988_s1 + $0x114] sm:$0xf]  ;;  %v3085_v44 = vor.u32 %v2343_v22, %v1999_v23  ;;  %v3087_v45 = vor.u32 %v2346_v25, %v2005_v24 }
  0x3c   :  { %v2199_v33 = vld [vmem:[%s3988_s1 + $0x118] sm:$0xf0]  ;;  %v2409_v34 = vld [vmem:[%s3988_s1 + $0x194] sm:$0xf]  ;;  %v3095_v58 = vor.u32 %v2344_v26, %v2007_v27  ;;  %v2013_v60 = vld [vmem:[%s3989_s0 + $0x100] sm:$0xf] }
  0x3d   :  { %v2202_v40 = vor.u32 %v2393_v32, %v2199_v33  ;;  %v2263_v41 = vld [vmem:[%s3988_s1 + $0x198] sm:$0xf0]  ;;  %v2361_v42 = vld [vmem:[%s3988_s1 + $0x14] sm:$0xf]  ;;  %v2349_v61 = vld [vmem:[%s3989_s0 + $0x10c] sm:$0xf0] }
  0x3e   :  { %v2071_v43 = vld [vmem:[%s3988_s1 + $0x18] sm:$0xf0]  ;;  %v2266_v46 = vor.u32 %v2409_v34, %v2263_v41  ;;  %v2377_v55 = vld [vmem:[%s3988_s1 + $0x94] sm:$0xf]  ;;  %v2347_v62 = vld [vmem:[%s3989_s0 + $0x104] sm:$0xf]  ;;  %v3125_v8 = vor.u32 %v2349_v61, %v2013_v60 }
  0x3f   :  { %v2074_v52 = vor.u32 %v2361_v42, %v2071_v43  ;;  %v2135_v56 = vld [vmem:[%s3988_s1 + $0x98] sm:$0xf0]  ;;  %1147 = vmatpush.bf16.msrb.mxu2 %v2202_v40  ;;  %v2015_v63 = vld [vmem:[%s3989_s0 + $0x110] sm:$0xf0]  ;;  %v2021_v4 = vld [vmem:[%s3989_s0 + $0x108] sm:$0xf] }
  0x40   :  { %v2138_v59 = vor.u32 %v2377_v55, %v2135_v56  ;;  %1211 = vmatpush.bf16.msrb.mxu3 %v2266_v46  ;;  %v2350_v5 = vld [vmem:[%s3989_s0 + $0x114] sm:$0xf0]  ;;  %v2348_v6 = vld [vmem:[%s3989_s0 + $0x10c] sm:$0xf]  ;;  %v2023_v7 = vld [vmem:[%s3989_s0 + $0x118] sm:$0xf0]  ;;  %v3127_v10 = vor.u32 %v2347_v62, %v2015_v63 }
  0x41   :  { %1019 = vmatpush.bf16.msrb.mxu0 %v2074_v52  ;;  %v3129_v11 = vor.u32 %v2350_v5, %v2021_v4  ;;  %v2391_v16 = vld [vmem:[%s3988_s1 + $0x104] sm:$0xf]  ;;  %v2191_v17 = vld [vmem:[%s3988_s1 + $0x108] sm:$0xf0]  ;;  %v3137_v23 = vor.u32 %v2348_v6, %v2023_v7  ;;  %v2029_v62 = vld [vmem:[%s3989_s0 + $0x120] sm:$0xf] }
  0x42   :  { %1083 = vmatpush.bf16.msrb.mxu1 %v2138_v59  ;;  %v2194_v24 = vor.u32 %v2391_v16, %v2191_v17  ;;  %v2407_v34 = vld [vmem:[%s3988_s1 + $0x184] sm:$0xf]  ;;  %v2255_v40 = vld [vmem:[%s3988_s1 + $0x188] sm:$0xf0]  ;;  %v2353_v63 = vld [vmem:[%s3989_s0 + $0x12c] sm:$0xf0] }
  0x43   :  { %775 = vmatmul.bf16.gmra.mxu0 %v2813_v36  ;;  %v2359_v41 = vld [vmem:[%s3988_s1 + $0x4] sm:$0xf]  ;;  %v2258_v43 = vor.u32 %v2407_v34, %v2255_v40  ;;  %v2063_v46 = vld [vmem:[%s3988_s1 + $0x8] sm:$0xf0]  ;;  %v2031_v5 = vld [vmem:[%s3989_s0 + $0x130] sm:$0xf0] }
  0x44   :  { %839 = vmatmul.bf16.gmra.mxu1 %v2815_v37  ;;  %1148 = vmatpush.bf16.msrb.mxu2 %v2194_v24  ;;  %v2375_v52 = vld [vmem:[%s3988_s1 + $0x84] sm:$0xf]  ;;  %v2127_v55 = vld [vmem:[%s3988_s1 + $0x88] sm:$0xf0]  ;;  %v2066_v60 = vor.u32 %v2359_v41, %v2063_v46  ;;  %v2037_v6 = vld [vmem:[%s3989_s0 + $0x128] sm:$0xf] }
  0x45   :  { %903 = vmatmul.bf16.gmra.mxu2 %v2817_v38  ;;  %v2130_v61 = vor.u32 %v2375_v52, %v2127_v55  ;;  %1212 = vmatpush.bf16.msrb.mxu3 %v2258_v43  ;;  %v2351_v4 = vld [vmem:[%s3989_s0 + $0x124] sm:$0xf]  ;;  %v2354_v7 = vld [vmem:[%s3989_s0 + $0x134] sm:$0xf0]  ;;  %v2039_v16 = vld [vmem:[%s3989_s0 + $0x138] sm:$0xf0] }
  0x46   :  { %967 = vmatmul.bf16.gmra.mxu3 %v2819_v39  ;;  %1020 = vmatpush.bf16.msrb.mxu0 %v2066_v60 }
  0x47   :  { %1084 = vmatpush.bf16.msrb.mxu1 %v2130_v61  ;;  %v2045_v61 = vld [vmem:[%s3989_s0 + $0x140] sm:$0xf] }
  0x53   :  { %780 = vmatmul.bf16.gmra.mxu0 %v2873_v0 }
  0x54   :  { %844 = vmatmul.bf16.gmra.mxu1 %v2875_v1 }
  0x55   :  { %908 = vmatmul.bf16.gmra.mxu2 %v2877_v2 }
  0x56   :  { %972 = vmatmul.bf16.gmra.mxu3 %v2879_v3 }
  0x63   :  { %785 = vmatmul.bf16.gmra.mxu0 %v2933_v28 }
  0x64   :  { %849 = vmatmul.bf16.gmra.mxu1 %v2935_v29 }
  0x65   :  { %913 = vmatmul.bf16.gmra.mxu2 %v2937_v30 }
  0x66   :  { %977 = vmatmul.bf16.gmra.mxu3 %v2939_v31 }
  0x73   :  { %790 = vmatmul.bf16.gmra.mxu0 %v2975_v47 }
  0x74   :  { %854 = vmatmul.bf16.gmra.mxu1 %v2977_v49 }
  0x75   :  { %918 = vmatmul.bf16.gmra.mxu2 %v2979_v50 }
  0x76   :  { %982 = vmatmul.bf16.gmra.mxu3 %v2981_v51 }
  0x83   :  { %795 = vmatmul.bf16.gmra.mxu0 %v3029_v12 }
  0x84   :  { %859 = vmatmul.bf16.gmra.mxu1 %v3031_v13 }
  0x85   :  { %923 = vmatmul.bf16.gmra.mxu2 %v3033_v14 }
  0x86   :  { %987 = vmatmul.bf16.gmra.mxu3 %v3035_v15 }
  0x93   :  { %800 = vmatmul.bf16.gmra.mxu0 %v3074_v35 }
  0x94   :  { %864 = vmatmul.bf16.gmra.mxu1 %v3085_v44 }
  0x95   :  { %928 = vmatmul.bf16.gmra.mxu2 %v3087_v45 }
  0x96   :  { %992 = vmatmul.bf16.gmra.mxu3 %v3095_v58 }
  0xa0   :  { %v766_v9 = vpop.f32.mrf.mxu0 }
  0xa1   :  { %v830_v22 = vpop.f32.mrf.mxu1 }
  0xa2   :  { %v831_v25 = vadd.f32 %v830_v22, %v766_v9  ;;  %v2352_v9 = vld [vmem:[%s3989_s0 + $0x12c] sm:$0xf]  ;;  %v3187_v22 = vor.u32 %v2353_v63, %v2029_v62  ;;  %v2357_v62 = vld [vmem:[%s3989_s0 + $0x14c] sm:$0xf0]  ;;  %v2355_v63 = vld [vmem:[%s3989_s0 + $0x144] sm:$0xf] }
  0xa3   :  { %805 = vmatmul.bf16.gmra.mxu0 %v3125_v8  ;;  %v3193_v34 = vor.u32 %v2352_v9, %v2039_v16  ;;  %v2055_v9 = vld [vmem:[%s3989_s0 + $0x158] sm:$0xf0] }
  0xa4   :  { %869 = vmatmul.bf16.gmra.mxu1 %v3127_v10 }
  0xa5   :  { %933 = vmatmul.bf16.gmra.mxu2 %v3129_v11 }
  0xa6   :  { %997 = vmatmul.bf16.gmra.mxu3 %v3137_v23 }
  0xa8   :  { %v894_v26 = vpop.f32.mrf.mxu2  ;;  %v768_v33 = vpop.f32.mrf.mxu0 }
  0xa9   :  { %v895_v27 = vadd.f32 %v894_v26, %v831_v25  ;;  %v958_v32 = vpop.f32.mrf.mxu3  ;;  %v832_v42 = vpop.f32.mrf.mxu1 }
  0xaa   :  { %v833_v59 = vadd.f32 %v832_v42, %v768_v33 }
  0xab   :  { %v3161_v56 = vadd.f32 %v958_v32, %v895_v27  ;;  %v3189_v27 = vor.u32 %v2351_v4, %v2031_v5  ;;  %v3191_v32 = vor.u32 %v2354_v7, %v2037_v6  ;;  %v2047_v4 = vld [vmem:[%s3989_s0 + $0x150] sm:$0xf0]  ;;  %v2053_v5 = vld [vmem:[%s3989_s0 + $0x148] sm:$0xf]  ;;  %v2358_v6 = vld [vmem:[%s3989_s0 + $0x154] sm:$0xf0] }
  0xac   :  { %v2356_v7 = vld [vmem:[%s3989_s0 + $0x14c] sm:$0xf] }
  0xb0   :  { %v896_v17 = vpop.f32.mrf.mxu2  ;;  %v771_v26 = vpop.f32.mrf.mxu0 }
  0xb1   :  { %v897_v24 = vadd.f32 %v896_v17, %v833_v59  ;;  %v960_v25 = vpop.f32.mrf.mxu3  ;;  %v835_v33 = vpop.f32.mrf.mxu1  ;;  %v3227_v17 = vor.u32 %v2357_v62, %v2045_v61 }
  0xb2   :  { %v836_v41 = vadd.f32 %v835_v33, %v771_v26  ;;  %v3229_v33 = vor.u32 %v2355_v63, %v2047_v4 }
  0xb3   :  { %v3195_v40 = vadd.f32 %v960_v25, %v897_v24  ;;  %810 = vmatmul.bf16.gmra.mxu0 %v3187_v22 }
  0xb4   :  { %874 = vmatmul.bf16.gmra.mxu1 %v3189_v27 }
  0xb5   :  { %938 = vmatmul.bf16.gmra.mxu2 %v3191_v32 }
  0xb6   :  { %1002 = vmatmul.bf16.gmra.mxu3 %v3193_v34 }
  0xb8   :  { %v899_v42 = vpop.f32.mrf.mxu2  ;;  %v773_v52 = vpop.f32.mrf.mxu0 }
  0xb9   :  { %v900_v43 = vadd.f32 %v899_v42, %v836_v41  ;;  %v963_v46 = vpop.f32.mrf.mxu3  ;;  %v837_v55 = vpop.f32.mrf.mxu1  ;;  %v3231_v41 = vor.u32 %v2358_v6, %v2053_v5 }
  0xba   :  { %v838_v60 = vadd.f32 %v837_v55, %v773_v52 }
  0xbb   :  { %v3201_v59 = vadd.f32 %v963_v46, %v900_v43  ;;  %v3233_v43 = vor.u32 %v2356_v7, %v2055_v9 }
  0xc0   :  { %v901_v16 = vpop.f32.mrf.mxu2  ;;  %v776_v26 = vpop.f32.mrf.mxu0 }
  0xc1   :  { %v902_v24 = vadd.f32 %v901_v16, %v838_v60  ;;  %v965_v25 = vpop.f32.mrf.mxu3  ;;  %v840_v42 = vpop.f32.mrf.mxu1 }
  0xc2   :  { %v841_v52 = vadd.f32 %v840_v42, %v776_v26 }
  0xc3   :  { %v3235_v46 = vadd.f32 %v965_v25, %v902_v24  ;;  %815 = vmatmul.bf16.gmra.mxu0 %v3227_v17 }
  0xc4   :  { %879 = vmatmul.bf16.gmra.mxu1 %v3229_v33 }
  0xc5   :  { %4010 = vst [vmem:[#allocation2_spill] sm:$0xff] %v3235_v46  ;;  %943 = vmatmul.bf16.gmra.mxu2 %v3231_v41 }
  0xc6   :  { %1007 = vmatmul.bf16.gmra.mxu3 %v3233_v43 }
  0xc8   :  { %v904_v55 = vpop.f32.mrf.mxu2  ;;  %v778_v62 = vpop.f32.mrf.mxu0 }
  0xc9   :  { %v905_v60 = vadd.f32 %v904_v55, %v841_v52  ;;  %v968_v61 = vpop.f32.mrf.mxu3  ;;  %v842_v63 = vpop.f32.mrf.mxu1 }
  0xca   :  { %v843_v5 = vadd.f32 %v842_v63, %v778_v62 }
  0xcb   :  { %v3241_v4 = vadd.f32 %v968_v61, %v905_v60 }
  0xcd   :  { %4011 = vst [vmem:[#allocation3_spill] sm:$0xff] %v3241_v4 }
  0xd0   :  { %v906_v6 = vpop.f32.mrf.mxu2  ;;  %v781_v16 = vpop.f32.mrf.mxu0 }
  0xd1   :  { %v907_v7 = vadd.f32 %v906_v6, %v843_v5  ;;  %v970_v9 = vpop.f32.mrf.mxu3  ;;  %v845_v24 = vpop.f32.mrf.mxu1 }
  0xd2   :  { %v846_v26 = vadd.f32 %v845_v24, %v781_v16 }
  0xd3   :  { %v3243_v25 = vadd.f32 %v970_v9, %v907_v7  ;;  %1021 = vmatmul.bf16.vlgmr.msrb.gmra.mxu0 %v2690_v48 }
  0xd4   :  { %1085 = vmatmul.bf16.vlgmr.msrb.gmra.mxu1 %v2701_v53 }
  0xd5   :  { %4012 = vst [vmem:[#allocation4_spill] sm:$0xff] %v3243_v25  ;;  %1149 = vmatmul.bf16.vlgmr.msrb.gmra.mxu2 %v2703_v54 }
  0xd6   :  { %1213 = vmatmul.bf16.vlgmr.msrb.gmra.mxu3 %v2711_v57 }
  0xd8   :  { %v909_v42 = vpop.f32.mrf.mxu2  ;;  %v783_v60 = vpop.f32.mrf.mxu0 }
  0xd9   :  { %v910_v52 = vadd.f32 %v909_v42, %v846_v26  ;;  %v973_v55 = vpop.f32.mrf.mxu3  ;;  %v847_v61 = vpop.f32.mrf.mxu1 }
  0xda   :  { %v848_v63 = vadd.f32 %v847_v61, %v783_v60 }
  0xdb   :  { %v3249_v62 = vadd.f32 %v973_v55, %v910_v52 }
  0xdd   :  { %4013 = vst [vmem:[#allocation5_spill] sm:$0xff] %v3249_v62 }
  0xe0   :  { %v911_v5 = vpop.f32.mrf.mxu2  ;;  %v786_v9 = vpop.f32.mrf.mxu0 }
  0xe1   :  { %v912_v6 = vadd.f32 %v911_v5, %v848_v63  ;;  %v975_v7 = vpop.f32.mrf.mxu3  ;;  %v850_v16 = vpop.f32.mrf.mxu1 }
  0xe2   :  { %v851_v53 = vadd.f32 %v850_v16, %v786_v9 }
  0xe3   :  { %v3251_v48 = vadd.f32 %v975_v7, %v912_v6  ;;  %1026 = vmatmul.bf16.gmra.mxu0 %v2765_v18 }
  0xe4   :  { %1090 = vmatmul.bf16.gmra.mxu1 %v2767_v19 }
  0xe5   :  { %4014 = vst [vmem:[#allocation6_spill] sm:$0xff] %v3251_v48  ;;  %1154 = vmatmul.bf16.gmra.mxu2 %v2769_v20 }
  0xe6   :  { %1218 = vmatmul.bf16.gmra.mxu3 %v2771_v21 }
  0xe8   :  { %v914_v54 = vpop.f32.mrf.mxu2  ;;  %v788_v26 = vpop.f32.mrf.mxu0 }
  0xe9   :  { %v915_v57 = vadd.f32 %v914_v54, %v851_v53  ;;  %v978_v24 = vpop.f32.mrf.mxu3  ;;  %v852_v42 = vpop.f32.mrf.mxu1 }
  0xea   :  { %v853_v55 = vadd.f32 %v852_v42, %v788_v26 }
  0xeb   :  { %v3257_v52 = vadd.f32 %v978_v24, %v915_v57 }
  0xed   :  { %4015 = vst [vmem:[#allocation7_spill] sm:$0xff] %v3257_v52 }
  0xf0   :  { %v916_v60 = vpop.f32.mrf.mxu2  ;;  %v791_v5 = vpop.f32.mrf.mxu0 }
  0xf1   :  { %v917_v61 = vadd.f32 %v916_v60, %v853_v55  ;;  %v980_v63 = vpop.f32.mrf.mxu3  ;;  %v855_v6 = vpop.f32.mrf.mxu1 }
  0xf2   :  { %v856_v19 = vadd.f32 %v855_v6, %v791_v5 }
  0xf3   :  { %v3259_v18 = vadd.f32 %v980_v63, %v917_v61  ;;  %1031 = vmatmul.bf16.gmra.mxu0 %v2813_v36 }
  0xf4   :  { %1095 = vmatmul.bf16.gmra.mxu1 %v2815_v37 }
  0xf5   :  { %4016 = vst [vmem:[#allocation8_spill] sm:$0xff] %v3259_v18  ;;  %1159 = vmatmul.bf16.gmra.mxu2 %v2817_v38 }
  0xf6   :  { %1223 = vmatmul.bf16.gmra.mxu3 %v2819_v39 }
  0xf8   :  { %v919_v20 = vpop.f32.mrf.mxu2  ;;  %v793_v9 = vpop.f32.mrf.mxu0 }
  0xf9   :  { %v920_v21 = vadd.f32 %v919_v20, %v856_v19  ;;  %v983_v7 = vpop.f32.mrf.mxu3  ;;  %v857_v16 = vpop.f32.mrf.mxu1 }
  0xfa   :  { %v858_v54 = vadd.f32 %v857_v16, %v793_v9 }
  0xfb   :  { %v3265_v53 = vadd.f32 %v983_v7, %v920_v21 }
  0xfd   :  { %4017 = vst [vmem:[#allocation9_spill] sm:$0xff] %v3265_v53 }
 0x100   :  { %v921_v57 = vpop.f32.mrf.mxu2  ;;  %v796_v42 = vpop.f32.mrf.mxu0 }
 0x101   :  { %v922_v24 = vadd.f32 %v921_v57, %v858_v54  ;;  %v985_v26 = vpop.f32.mrf.mxu3  ;;  %v860_v55 = vpop.f32.mrf.mxu1 }
 0x102   :  { %v861_v37 = vadd.f32 %v860_v55, %v796_v42 }
 0x103   :  { %v3267_v36 = vadd.f32 %v985_v26, %v922_v24  ;;  %1036 = vmatmul.bf16.gmra.mxu0 %v2873_v0 }
 0x104   :  { %1100 = vmatmul.bf16.gmra.mxu1 %v2875_v1 }
 0x105   :  { %4018 = vst [vmem:[#allocation10_spill] sm:$0xff] %v3267_v36  ;;  %1164 = vmatmul.bf16.gmra.mxu2 %v2877_v2 }
 0x106   :  { %1228 = vmatmul.bf16.gmra.mxu3 %v2879_v3 }
 0x108   :  { %v924_v38 = vpop.f32.mrf.mxu2  ;;  %v798_v61 = vpop.f32.mrf.mxu0 }
 0x109   :  { %v925_v39 = vadd.f32 %v924_v38, %v861_v37  ;;  %v988_v60 = vpop.f32.mrf.mxu3  ;;  %v862_v63 = vpop.f32.mrf.mxu1 }
 0x10a   :  { %v863_v6 = vadd.f32 %v862_v63, %v798_v61 }
 0x10b   :  { %v3273_v5 = vadd.f32 %v988_v60, %v925_v39 }
 0x10d   :  { %4019 = vst [vmem:[#allocation11_spill] sm:$0xff] %v3273_v5 }
 0x110   :  { %v926_v19 = vpop.f32.mrf.mxu2  ;;  %v801_v7 = vpop.f32.mrf.mxu0 }
 0x111   :  { %v927_v20 = vadd.f32 %v926_v19, %v863_v6  ;;  %v990_v21 = vpop.f32.mrf.mxu3  ;;  %v865_v9 = vpop.f32.mrf.mxu1 }
 0x112   :  { %v866_v1 = vadd.f32 %v865_v9, %v801_v7 }
 0x113   :  { %v3275_v0 = vadd.f32 %v990_v21, %v927_v20  ;;  %1041 = vmatmul.bf16.gmra.mxu0 %v2933_v28 }
 0x114   :  { %1105 = vmatmul.bf16.gmra.mxu1 %v2935_v29 }
 0x115   :  { %4020 = vst [vmem:[#allocation12_spill] sm:$0xff] %v3275_v0  ;;  %1169 = vmatmul.bf16.gmra.mxu2 %v2937_v30 }
 0x116   :  { %1233 = vmatmul.bf16.gmra.mxu3 %v2939_v31 }
 0x118   :  { %v929_v2 = vpop.f32.mrf.mxu2  ;;  %v803_v54 = vpop.f32.mrf.mxu0 }
 0x119   :  { %v930_v3 = vadd.f32 %v929_v2, %v866_v1  ;;  %v993_v16 = vpop.f32.mrf.mxu3  ;;  %v867_v57 = vpop.f32.mrf.mxu1 }
 0x11a   :  { %v868_v26 = vadd.f32 %v867_v57, %v803_v54 }
 0x11b   :  { %v3281_v24 = vadd.f32 %v993_v16, %v930_v3 }
 0x11d   :  { %4021 = vst [vmem:[#allocation13_spill] sm:$0xff] %v3281_v24 }
 0x120   :  { %v931_v42 = vpop.f32.mrf.mxu2  ;;  %v806_v38 = vpop.f32.mrf.mxu0 }
 0x121   :  { %v932_v55 = vadd.f32 %v931_v42, %v868_v26  ;;  %v995_v37 = vpop.f32.mrf.mxu3  ;;  %v870_v39 = vpop.f32.mrf.mxu1 }
 0x122   :  { %v871_v29 = vadd.f32 %v870_v39, %v806_v38 }
 0x123   :  { %v3283_v28 = vadd.f32 %v995_v37, %v932_v55  ;;  %1046 = vmatmul.bf16.gmra.mxu0 %v2975_v47 }
 0x124   :  { %1110 = vmatmul.bf16.gmra.mxu1 %v2977_v49 }
 0x125   :  { %4022 = vst [vmem:[#allocation14_spill] sm:$0xff] %v3283_v28  ;;  %1174 = vmatmul.bf16.gmra.mxu2 %v2979_v50 }
 0x126   :  { %1238 = vmatmul.bf16.gmra.mxu3 %v2981_v51 }
 0x128   :  { %v934_v30 = vpop.f32.mrf.mxu2  ;;  %v808_v61 = vpop.f32.mrf.mxu0 }
 0x129   :  { %v935_v31 = vadd.f32 %v934_v30, %v871_v29  ;;  %v998_v60 = vpop.f32.mrf.mxu3  ;;  %v872_v63 = vpop.f32.mrf.mxu1 }
 0x12a   :  { %v873_v19 = vadd.f32 %v872_v63, %v808_v61 }
 0x12b   :  { %v3289_v6 = vadd.f32 %v998_v60, %v935_v31 }
 0x12d   :  { %4023 = vst [vmem:[#allocation15_spill] sm:$0xff] %v3289_v6 }
 0x130   :  { %v936_v20 = vpop.f32.mrf.mxu2  ;;  %v811_v9 = vpop.f32.mrf.mxu0 }
 0x131   :  { %v937_v21 = vadd.f32 %v936_v20, %v873_v19  ;;  %v1000_v7 = vpop.f32.mrf.mxu3  ;;  %v875_v1 = vpop.f32.mrf.mxu1 }
 0x132   :  { %v876_v49 = vadd.f32 %v875_v1, %v811_v9 }
 0x133   :  { %v3291_v47 = vadd.f32 %v1000_v7, %v937_v21  ;;  %1051 = vmatmul.bf16.gmra.mxu0 %v3029_v12 }
 0x134   :  { %1115 = vmatmul.bf16.gmra.mxu1 %v3031_v13 }
 0x135   :  { %4024 = vst [vmem:[#allocation16_spill] sm:$0xff] %v3291_v47  ;;  %1179 = vmatmul.bf16.gmra.mxu2 %v3033_v14 }
 0x136   :  { %1243 = vmatmul.bf16.gmra.mxu3 %v3035_v15 }
 0x138   :  { %v939_v50 = vpop.f32.mrf.mxu2  ;;  %v813_v3 = vpop.f32.mrf.mxu0 }
 0x139   :  { %v940_v51 = vadd.f32 %v939_v50, %v876_v49  ;;  %v1003_v2 = vpop.f32.mrf.mxu3  ;;  %v877_v16 = vpop.f32.mrf.mxu1 }
 0x13a   :  { %v878_v57 = vadd.f32 %v877_v16, %v813_v3 }
 0x13b   :  { %v3297_v54 = vadd.f32 %v1003_v2, %v940_v51 }
 0x13d   :  { %4025 = vst [vmem:[#allocation17_spill] sm:$0xff] %v3297_v54 }
 0x140   :  { %v941_v26 = vpop.f32.mrf.mxu2  ;;  %v816_v37 = vpop.f32.mrf.mxu0 }
 0x141   :  { %v942_v42 = vadd.f32 %v941_v26, %v878_v57  ;;  %v1005_v55 = vpop.f32.mrf.mxu3  ;;  %v880_v38 = vpop.f32.mrf.mxu1 }
 0x142   :  { %v881_v13 = vadd.f32 %v880_v38, %v816_v37 }
 0x143   :  { %v3299_v12 = vadd.f32 %v1005_v55, %v942_v42  ;;  %1056 = vmatmul.bf16.gmra.mxu0 %v3074_v35 }
 0x144   :  { %1120 = vmatmul.bf16.gmra.mxu1 %v3085_v44 }
 0x145   :  { %4026 = vst [vmem:[#allocation18_spill] sm:$0xff] %v3299_v12  ;;  %1184 = vmatmul.bf16.gmra.mxu2 %v3087_v45 }
 0x146   :  { %1248 = vmatmul.bf16.gmra.mxu3 %v3095_v58 }
 0x148   :  { %v944_v14 = vpop.f32.mrf.mxu2  ;;  %v818_v29 = vpop.f32.mrf.mxu0 }
 0x149   :  { %v945_v15 = vadd.f32 %v944_v14, %v881_v13  ;;  %v1008_v39 = vpop.f32.mrf.mxu3  ;;  %v882_v30 = vpop.f32.mrf.mxu1 }
 0x14a   :  { %v883_v60 = vadd.f32 %v882_v30, %v818_v29 }
 0x14b   :  { %v3305_v31 = vadd.f32 %v1008_v39, %v945_v15 }
 0x150   :  { %v946_v61 = vpop.f32.mrf.mxu2  ;;  %v1022_v20 = vpop.f32.mrf.mxu0 }
 0x151   :  { %v947_v63 = vadd.f32 %v946_v61, %v883_v60  ;;  %v1010_v19 = vpop.f32.mrf.mxu3  ;;  %v1086_v21 = vpop.f32.mrf.mxu1 }
 0x152   :  { %v1087_v44 = vadd.f32 %v1086_v21, %v1022_v20 }
 0x153   :  { %v3307_v35 = vadd.f32 %v1010_v19, %v947_v63  ;;  %1061 = vmatmul.bf16.gmra.mxu0 %v3125_v8 }
 0x154   :  { %1125 = vmatmul.bf16.gmra.mxu1 %v3127_v10 }
 0x155   :  { %1189 = vmatmul.bf16.gmra.mxu2 %v3129_v11 }
 0x156   :  { %1253 = vmatmul.bf16.gmra.mxu3 %v3137_v23 }
 0x158   :  { %v1150_v45 = vpop.f32.mrf.mxu2  ;;  %v1024_v9 = vpop.f32.mrf.mxu0 }
 0x159   :  { %v1151_v58 = vadd.f32 %v1150_v45, %v1087_v44  ;;  %v1214_v7 = vpop.f32.mrf.mxu3  ;;  %v1088_v1 = vpop.f32.mrf.mxu1 }
 0x15a   :  { %v1089_v50 = vadd.f32 %v1088_v1, %v1024_v9 }
 0x15b   :  { %v3313_v49 = vadd.f32 %v1214_v7, %v1151_v58 }
 0x160   :  { %v1152_v51 = vpop.f32.mrf.mxu2  ;;  %v1027_v16 = vpop.f32.mrf.mxu0 }
 0x161   :  { %v1153_v2 = vadd.f32 %v1152_v51, %v1089_v50  ;;  %v1216_v3 = vpop.f32.mrf.mxu3  ;;  %v1091_v57 = vpop.f32.mrf.mxu1 }
 0x162   :  { %v1092_v10 = vadd.f32 %v1091_v57, %v1027_v16 }
 0x163   :  { %v3315_v8 = vadd.f32 %v1216_v3, %v1153_v2  ;;  %1066 = vmatmul.bf16.gmra.mxu0 %v3187_v22 }
 0x164   :  { %1130 = vmatmul.bf16.gmra.mxu1 %v3189_v27 }
 0x165   :  { %1194 = vmatmul.bf16.gmra.mxu2 %v3191_v32 }
 0x166   :  { %1258 = vmatmul.bf16.gmra.mxu3 %v3193_v34 }
 0x168   :  { %v1155_v11 = vpop.f32.mrf.mxu2  ;;  %v1029_v42 = vpop.f32.mrf.mxu0 }
 0x169   :  { %v1156_v23 = vadd.f32 %v1155_v11, %v1092_v10  ;;  %v1219_v26 = vpop.f32.mrf.mxu3  ;;  %v1093_v55 = vpop.f32.mrf.mxu1 }
 0x16a   :  { %v1094_v38 = vadd.f32 %v1093_v55, %v1029_v42 }
 0x16b   :  { %v3321_v37 = vadd.f32 %v1219_v26, %v1156_v23 }
 0x170   :  { %v1157_v13 = vpop.f32.mrf.mxu2  ;;  %v1032_v39 = vpop.f32.mrf.mxu0 }
 0x171   :  { %v1158_v14 = vadd.f32 %v1157_v13, %v1094_v38  ;;  %v1221_v15 = vpop.f32.mrf.mxu3  ;;  %v1096_v29 = vpop.f32.mrf.mxu1 }
 0x172   :  { %v1097_v27 = vadd.f32 %v1096_v29, %v1032_v39 }
 0x173   :  { %v3323_v22 = vadd.f32 %v1221_v15, %v1158_v14  ;;  %1071 = vmatmul.bf16.gmra.mxu0 %v3227_v17 }
 0x174   :  { %1135 = vmatmul.bf16.gmra.mxu1 %v3229_v33 }
 0x175   :  { %1199 = vmatmul.bf16.gmra.mxu2 %v3231_v41 }
 0x176   :  { %1263 = vmatmul.bf16.gmra.mxu3 %v3233_v43 }
 0x178   :  { %v1160_v32 = vpop.f32.mrf.mxu2  ;;  %v1034_v60 = vpop.f32.mrf.mxu0 }
 0x179   :  { %v1161_v34 = vadd.f32 %v1160_v32, %v1097_v27  ;;  %v1224_v30 = vpop.f32.mrf.mxu3  ;;  %v1098_v61 = vpop.f32.mrf.mxu1 }
 0x17a   :  { %v1099_v19 = vadd.f32 %v1098_v61, %v1034_v60 }
 0x17b   :  { %v3329_v63 = vadd.f32 %v1224_v30, %v1161_v34 }
 0x180   :  { %v1162_v20 = vpop.f32.mrf.mxu2  ;;  %v1037_v45 = vpop.f32.mrf.mxu0 }
 0x181   :  { %v1163_v21 = vadd.f32 %v1162_v20, %v1099_v19  ;;  %v1226_v44 = vpop.f32.mrf.mxu3  ;;  %v1101_v58 = vpop.f32.mrf.mxu1 }
 0x182   :  { %v1102_v33 = vadd.f32 %v1101_v58, %v1037_v45 }
 0x183   :  { %v3331_v17 = vadd.f32 %v1226_v44, %v1163_v21 }
 0x188   :  { %v1165_v7 = vpop.f32.mrf.mxu2  ;;  %v1039_v43 = vpop.f32.mrf.mxu0 }
 0x189   :  { %v1166_v41 = vadd.f32 %v1165_v7, %v1102_v33  ;;  %v1229_v9 = vpop.f32.mrf.mxu3  ;;  %v1103_v1 = vpop.f32.mrf.mxu1 }
 0x18a   :  { %v1104_v51 = vadd.f32 %v1103_v1, %v1039_v43 }
 0x18b   :  { %v3333_v50 = vadd.f32 %v1229_v9, %v1166_v41 }
 0x190   :  { %v1167_v2 = vpop.f32.mrf.mxu2  ;;  %v1042_v57 = vpop.f32.mrf.mxu0 }
 0x191   :  { %v1168_v3 = vadd.f32 %v1167_v2, %v1104_v51  ;;  %v1231_v16 = vpop.f32.mrf.mxu3  ;;  %v1106_v10 = vpop.f32.mrf.mxu1  ;;  %v1462_v51 = vmul.f32 %v3195_v40, %v3195_v40 }
 0x192   :  { %v1107_v23 = vadd.f32 %v1106_v10, %v1042_v57  ;;  %v1464_v57 = vmul.f32 %v3201_v59, %v3201_v59 }
 0x193   :  { %v3335_v11 = vadd.f32 %v1231_v16, %v1168_v3  ;;  %v1460_v3 = vmul.f32 %v3161_v56, %v3161_v56  ;;  %v1404_v16 = vadd.f32 %v3195_v40, %v3161_v56 }
 0x195   :  { %v1504_v10 = vadd.f32 %v1462_v51, %v1460_v3  ;;  %v1474_v3 = vmul.f32 %v3251_v48, %v3251_v48 }
 0x198   :  { %v1170_v26 = vpop.f32.mrf.mxu2  ;;  %v1044_v38 = vpop.f32.mrf.mxu0 }
 0x199   :  { %v1171_v42 = vadd.f32 %v1170_v26, %v1107_v23  ;;  %v1234_v55 = vpop.f32.mrf.mxu3  ;;  %v1108_v13 = vpop.f32.mrf.mxu1  ;;  %v1405_v23 = vadd.f32 %v1404_v16, %v3201_v59  ;;  %v1466_v26 = vmul.f32 %v3235_v46, %v3235_v46 }
 0x19a   :  { %v1109_v15 = vadd.f32 %v1108_v13, %v1044_v38  ;;  %v1468_v38 = vmul.f32 %v3241_v4, %v3241_v4 }
 0x19b   :  { %v3337_v14 = vadd.f32 %v1234_v55, %v1171_v42  ;;  %v1505_v42 = vadd.f32 %v1504_v10, %v1464_v57  ;;  %v1406_v55 = vadd.f32 %v1405_v23, %v3235_v46  ;;  %v1476_v10 = vmul.f32 %v3257_v52, %v3257_v52 }
 0x1a0   :  { %v1172_v39 = vpop.f32.mrf.mxu2  ;;  %v1047_v32 = vpop.f32.mrf.mxu0 }
 0x1a1   :  { %v1173_v29 = vadd.f32 %v1172_v39, %v1109_v15  ;;  %v1236_v27 = vpop.f32.mrf.mxu3  ;;  %v1111_v34 = vpop.f32.mrf.mxu1 }
 0x1a2   :  { %v1112_v60 = vadd.f32 %v1111_v34, %v1047_v32  ;;  %v1470_v32 = vmul.f32 %v3243_v25, %v3243_v25 }
 0x1a3   :  { %v3339_v30 = vadd.f32 %v1236_v27, %v1173_v29  ;;  %v1506_v29 = vadd.f32 %v1505_v42, %v1466_v26  ;;  %v1407_v27 = vadd.f32 %v1406_v55, %v3241_v4 }
 0x1a8   :  { %v1175_v61 = vpop.f32.mrf.mxu2  ;;  %v3341_v21 = vpop.f32.mrf.mxu0 }
 0x1a9   :  { %v1176_v19 = vadd.f32 %v1175_v61, %v1112_v60  ;;  %v1239_v20 = vpop.f32.mrf.mxu3  ;;  %v3343_v44 = vpop.f32.mrf.mxu1  ;;  %v1507_v60 = vadd.f32 %v1506_v29, %v1468_v38  ;;  %v1408_v61 = vadd.f32 %v1407_v27, %v3243_v25  ;;  %v1478_v29 = vmul.f32 %v3259_v18, %v3259_v18 }
 0x1ab   :  { %v3345_v45 = vadd.f32 %v1239_v20, %v1176_v19  ;;  %v1472_v19 = vmul.f32 %v3249_v62, %v3249_v62  ;;  %v1508_v20 = vadd.f32 %v1507_v60, %v1470_v32  ;;  %v1409_v51 = vadd.f32 %v1408_v61, %v3249_v62 }
 0x1ac   :  { %v1480_v61 = vmul.f32 %v3265_v53, %v3265_v53 }
 0x1ad   :  { %v1509_v16 = vadd.f32 %v1508_v20, %v1472_v19  ;;  %v1410_v57 = vadd.f32 %v1409_v51, %v3251_v48  ;;  %v1482_v51 = vmul.f32 %v3267_v36, %v3267_v36 }
 0x1af   :  { %v1510_v55 = vadd.f32 %v1509_v16, %v1474_v3  ;;  %v1411_v38 = vadd.f32 %v1410_v57, %v3257_v52  ;;  %v1484_v57 = vmul.f32 %v3273_v5, %v3273_v5 }
 0x1b0   :  { %v3347_v58 = vpop.f32.mrf.mxu2  ;;  %v3351_v7 = vpop.f32.mrf.mxu0 }
 0x1b1   :  { %v3349_v33 = vpop.f32.mrf.mxu3  ;;  %v3353_v41 = vpop.f32.mrf.mxu1  ;;  %v1511_v32 = vadd.f32 %v1510_v55, %v1476_v10  ;;  %v1412_v60 = vadd.f32 %v1411_v38, %v3259_v18  ;;  %v1490_v18 = vmul.f32 %v3283_v28, %v3283_v28 }
 0x1b3   :  { %v1512_v19 = vadd.f32 %v1511_v32, %v1478_v29  ;;  %v1413_v20 = vadd.f32 %v1412_v60, %v3265_v53  ;;  %v1486_v32 = vmul.f32 %v3275_v0, %v3275_v0 }
 0x1b5   :  { %v1513_v3 = vadd.f32 %v1512_v19, %v1480_v61  ;;  %v1414_v16 = vadd.f32 %v1413_v20, %v3267_v36  ;;  %v1488_v20 = vmul.f32 %v3281_v24, %v3281_v24 }
 0x1b7   :  { %v1514_v38 = vadd.f32 %v1513_v3, %v1482_v51  ;;  %v1415_v29 = vadd.f32 %v1414_v16, %v3273_v5  ;;  %v1492_v16 = vmul.f32 %v3289_v6, %v3289_v6 }
 0x1b8   :  { %v3355_v9 = vpop.f32.mrf.mxu2  ;;  %v3359_v1 = vpop.f32.mrf.mxu0 }
 0x1b9   :  { %v3357_v43 = vpop.f32.mrf.mxu3  ;;  %v3363_v2 = vpop.f32.mrf.mxu1  ;;  %v1515_v61 = vadd.f32 %v1514_v38, %v1484_v57  ;;  %v1416_v19 = vadd.f32 %v1415_v29, %v3275_v0 }
 0x1bb   :  { %v1516_v36 = vadd.f32 %v1515_v61, %v1486_v32  ;;  %v1417_v53 = vadd.f32 %v1416_v19, %v3281_v24  ;;  %v1494_v61 = vmul.f32 %v3291_v47, %v3291_v47  ;;  %v1461_v24 = vmul.f32 %v3313_v49, %v3313_v49 }
 0x1bd   :  { %v1517_v51 = vadd.f32 %v1516_v36, %v1488_v20  ;;  %v1418_v3 = vadd.f32 %v1417_v53, %v3283_v28  ;;  %v1463_v53 = vmul.f32 %v3315_v8, %v3315_v8  ;;  %v1496_v28 = vmul.f32 %v3297_v54, %v3297_v54 }
 0x1bf   :  { %v1518_v29 = vadd.f32 %v1517_v51, %v1490_v18  ;;  %v1419_v32 = vadd.f32 %v1418_v3, %v3289_v6  ;;  %v1465_v18 = vmul.f32 %v3321_v37, %v3321_v37  ;;  %v1431_v6 = vadd.f32 %v3315_v8, %v3313_v49 }
 0x1c0   :  { %v3377_v13 = vpop.f32.mrf.mxu2  ;;  %v3381_v39 = vpop.f32.mrf.mxu0  ;;  %v1531_v0 = vadd.f32 %v1463_v53, %v1461_v24  ;;  %v1500_v24 = vmul.f32 %v3305_v31, %v3305_v31  ;;  %v1117_v53 = vadd.f32 %v3353_v41, %v3351_v7 }
 0x1c1   :  { %v3379_v15 = vpop.f32.mrf.mxu3  ;;  %v3386_v34 = vpop.f32.mrf.mxu1  ;;  %v1519_v36 = vadd.f32 %v1518_v29, %v1492_v16  ;;  %v1420_v20 = vadd.f32 %v1419_v32, %v3291_v47  ;;  %v1467_v16 = vmul.f32 %v3323_v22, %v3323_v22  ;;  %v1498_v47 = vmul.f32 %v3299_v12, %v3299_v12 }
 0x1c2   :  { %v1432_v62 = vadd.f32 %v1431_v6, %v3321_v37  ;;  %v1532_v25 = vadd.f32 %v1531_v0, %v1465_v18  ;;  %v1471_v0 = vmul.f32 %v3331_v17, %v3331_v17  ;;  %v1181_v7 = vadd.f32 %v3355_v9, %v1117_v53 }
 0x1c3   :  { %v1520_v51 = vadd.f32 %v1519_v36, %v1494_v61  ;;  %v1421_v3 = vadd.f32 %v1420_v20, %v3297_v54  ;;  %v1469_v61 = vmul.f32 %v3329_v63, %v3329_v63 }
 0x1c4   :  { %v1533_v6 = vadd.f32 %v1532_v25, %v1467_v16  ;;  %v1119_v25 = vadd.f32 %v3363_v2, %v3359_v1  ;;  %v1475_v16 = vmul.f32 %v3335_v11, %v3335_v11 }
 0x1c5   :  { %v1521_v29 = vadd.f32 %v1520_v51, %v1496_v28  ;;  %v1422_v32 = vadd.f32 %v1421_v3, %v3299_v12  ;;  %v1114_v28 = vadd.f32 %v3343_v44, %v3341_v21  ;;  %v1433_v3 = vadd.f32 %v1432_v62, %v3323_v22 }
 0x1c6   :  { %v1534_v46 = vadd.f32 %v1533_v6, %v1469_v61  ;;  %v1473_v21 = vmul.f32 %v3333_v50, %v3333_v50  ;;  %v1122_v62 = vadd.f32 %v3386_v34, %v3381_v39  ;;  %v1183_v9 = vadd.f32 %v3377_v13, %v1119_v25 }
 0x1c7   :  { %v1522_v18 = vadd.f32 %v1521_v29, %v1498_v47  ;;  %v1423_v12 = vadd.f32 %v1422_v32, %v3305_v31  ;;  %v1178_v54 = vadd.f32 %v3347_v58, %v1114_v28  ;;  %v1434_v4 = vadd.f32 %v1433_v3, %v3329_v63 }
 0x1c8   :  { %v3397_v23 = vpop.f32.mrf.mxu2  ;;  %v3401_v42 = vpop.f32.mrf.mxu0  ;;  %v1502_v47 = vmul.f32 %v3307_v35, %v3307_v35  ;;  %v1535_v41 = vadd.f32 %v1534_v46, %v1471_v0  ;;  %v1477_v34 = vmul.f32 %v3337_v14, %v3337_v14  ;;  %v3503_v46 = vadd.f32 %v3357_v43, %v1181_v7 }
 0x1c9   :  { %v3399_v26 = vpop.f32.mrf.mxu3  ;;  %v3406_v27 = vpop.f32.mrf.mxu1  ;;  %v1523_v44 = vadd.f32 %v1522_v18, %v1500_v24  ;;  %v1435_v58 = vadd.f32 %v1434_v4, %v3331_v17  ;;  %v1424_v29 = vadd.f32 %v1423_v12, %v3307_v35  ;;  %v3496_v32 = vadd.f32 %v3349_v33, %v1178_v54 }
 0x1ca   :  { %v1536_v39 = vadd.f32 %v1535_v41, %v1473_v21  ;;  %v1186_v24 = vadd.f32 %v3397_v23, %v1122_v62  ;;  %v1124_v54 = vadd.f32 %v3406_v27, %v3401_v42  ;;  %v1479_v3 = vmul.f32 %v3339_v30, %v3339_v30 }
 0x1cb   :  { %v1436_v2 = vadd.f32 %v1435_v58, %v3333_v50  ;;  %v1524_v13 = vadd.f32 %v1523_v44, %v1502_v47  ;;  %v3514_v6 = vadd.f32 %v3379_v15, %v1183_v9  ;;  %v1425_v23 = vrot.slane %v1424_v29, 4 }
 0x1cc   :  { %v1537_v53 = vadd.f32 %v1536_v39, %v1475_v16  ;;  %v1481_v27 = vmul.f32 %v3345_v45, %v3345_v45  ;;  %v1483_v25 = vmul.f32 %v3496_v32, %v3496_v32 }
 0x1cd   :  { %v1437_v28 = vadd.f32 %v1436_v2, %v3335_v11  ;;  %v1525_v18 = vrot.slane %v1524_v13, 4  ;;  %v1426_v58 = vadd.f32 %v1425_v23, %v1424_v29 }
 0x1ce   :  { %v1538_v42 = vadd.f32 %v1537_v53, %v1477_v34 }
 0x1cf   :  { %v1438_v0 = vadd.f32 %v1437_v28, %v3337_v14  ;;  %v1526_v2 = vadd.f32 %v1525_v18, %v1524_v13 }
 0x1d0   :  { %v3417_v52 = vpop.f32.mrf.mxu2  ;;  %v3421_v55 = vpop.f32.mrf.mxu0  ;;  %v1539_v62 = vadd.f32 %v1538_v42, %v1479_v3 }
 0x1d1   :  { %v3419_v10 = vpop.f32.mrf.mxu3  ;;  %v3426_v60 = vpop.f32.mrf.mxu1  ;;  %v1188_v43 = vadd.f32 %v3417_v52, %v1124_v54  ;;  %v1439_v44 = vadd.f32 %v1438_v0, %v3339_v30  ;;  %v1427_v54 = vrot.slane %v1426_v58, 2  ;;  %v1527_v0 = vrot.slane %v1526_v2, 2 }
 0x1d2   :  { %v1127_v12 = vadd.f32 %v3426_v60, %v3421_v55  ;;  %v3521_v55 = vadd.f32 %v3399_v26, %v1186_v24 }
 0x1d3   :  { %v3528_v52 = vadd.f32 %v3419_v10, %v1188_v43  ;;  %v1540_v10 = vadd.f32 %v1539_v62, %v1481_v27  ;;  %v1428_v42 = vadd.f32 %v1427_v54, %v1426_v58 }
 0x1d5   :  { %v1541_v29 = vadd.f32 %v1540_v10, %v1483_v25  ;;  %v1491_v28 = vmul.f32 %v3528_v52, %v3528_v52  ;;  %v1429_v62 = vrot.slane %v1428_v42, 1 }
 0x1d8   :  { %v3437_v5 = vpop.f32.mrf.mxu2  ;;  %v3441_v38 = vpop.f32.mrf.mxu0 }
 0x1d9   :  { %v3439_v57 = vpop.f32.mrf.mxu3  ;;  %v3446_v19 = vpop.f32.mrf.mxu1  ;;  %v1191_v60 = vadd.f32 %v3437_v5, %v1127_v12  ;;  %v1440_v5 = vadd.f32 %v1439_v44, %v3345_v45  ;;  %v1489_v12 = vmul.f32 %v3521_v55, %v3521_v55 }
 0x1da   :  { %v1129_v21 = vadd.f32 %v3446_v19, %v3441_v38 }
 0x1db   :  { %v3534_v41 = vadd.f32 %v3439_v57, %v1191_v60  ;;  %v1441_v9 = vadd.f32 %v1440_v5, %v3496_v32 }
 0x1dd   :  { %v1442_v24 = vadd.f32 %v1441_v9, %v3503_v46  ;;  %v1493_v27 = vmul.f32 %v3534_v41, %v3534_v41 }
 0x1e0   :  { %v1192_v48 = vpop.f32.mrf.mxu2  ;;  %v1067_v20 = vpop.f32.mrf.mxu0 }
 0x1e1   :  { %v3468_v36 = vpop.f32.mrf.mxu3  ;;  %v1131_v51 = vpop.f32.mrf.mxu1  ;;  %v1193_v47 = vadd.f32 %v1192_v48, %v1129_v21  ;;  %v1487_v48 = vmul.f32 %v3514_v6, %v3514_v6 }
 0x1e2   :  { %v1132_v15 = vadd.f32 %v1131_v51, %v1067_v20  ;;  %v1485_v20 = vmul.f32 %v3503_v46, %v3503_v46 }
 0x1e3   :  { %v3542_v39 = vadd.f32 %v3468_v36, %v1193_v47  ;;  %v1528_v47 = vadd.f32 %v1527_v0, %v1526_v2 }
 0x1e5   :  { %v1495_v25 = vmul.f32 %v3542_v39, %v3542_v39 }
 0x1e8   :  { %v1195_v1 = vpop.f32.mrf.mxu2  ;;  %v1069_v4 = vpop.f32.mrf.mxu0 }
 0x1e9   :  { %v1259_v61 = vpop.f32.mrf.mxu3  ;;  %v1133_v33 = vpop.f32.mrf.mxu1  ;;  %v1196_v51 = vadd.f32 %v1195_v1, %v1132_v15  ;;  %v1542_v1 = vadd.f32 %v1541_v29, %v1485_v20  ;;  %v1529_v29 = vrot.slane %v1528_v47, 1 }
 0x1ea   :  { %v1134_v16 = vadd.f32 %v1133_v33, %v1069_v4  ;;  %v1443_v33 = vadd.f32 %v1442_v24, %v3514_v6 }
 0x1eb   :  { %v3547_v4 = vadd.f32 %v1259_v61, %v1196_v51  ;;  %v1543_v53 = vadd.f32 %v1542_v1, %v1487_v48  ;;  %v1430_v48 = vadd.f32 %v1429_v62, %v1428_v42 }
 0x1ec   :  { %v1444_v23 = vadd.f32 %v1443_v33, %v3521_v55 }
 0x1ed   :  { %v1544_v61 = vadd.f32 %v1543_v53, %v1489_v12  ;;  %v1458_v1 = vmul.f32 0.0061728396, %v1430_v48 }
 0x1ee   :  { %v1445_v18 = vadd.f32 %v1444_v23, %v3528_v52 }
 0x1ef   :  { %v1545_v44 = vadd.f32 %v1544_v61, %v1491_v28  ;;  %v1530_v28 = vadd.f32 %v1529_v29, %v1528_v47 }
 0x1f0   :  { %v1197_v7 = vpop.f32.mrf.mxu2  ;;  %v1072_v38 = vpop.f32.mrf.mxu0 }
 0x1f1   :  { %v1261_v26 = vpop.f32.mrf.mxu3  ;;  %v1136_v19 = vpop.f32.mrf.mxu1  ;;  %v1198_v57 = vadd.f32 %v1197_v7, %v1134_v16  ;;  %v1446_v7 = vadd.f32 %v1445_v18, %v3534_v41  ;;  %v1558_v42 = vmul.f32 0.0061728396, %v1530_v28 }
 0x1f2   :  { %v1137_v34 = vadd.f32 %v1136_v19, %v1072_v38  ;;  %v1497_v38 = vmul.f32 %v3547_v4, %v3547_v4 }
 0x1f3   :  { %v3552_v36 = vadd.f32 %v1261_v26, %v1198_v57  ;;  %v1546_v26 = vadd.f32 %v1545_v44, %v1493_v27  ;;  %v1447_v5 = vadd.f32 %v1446_v7, %v3542_v39  ;;  %v1560_v27 = vmul.f32 %v1458_v1, %v1458_v1 }
 0x1f5   :  { %v1448_v10 = vadd.f32 %v1447_v5, %v3547_v4  ;;  %v1499_v51 = vmul.f32 %v3552_v36, %v3552_v36  ;;  %v1547_v16 = vadd.f32 %v1546_v26, %v1495_v25  ;;  %v1562_v44 = vsub.f32 %v1558_v42, %v1560_v27 }
 0x1f7   :  { %v1449_v2 = vadd.f32 %v1448_v10, %v3552_v36  ;;  %v1548_v24 = vadd.f32 %v1547_v16, %v1497_v38 }
 0x1f8   :  { %v1200_v13 = vpop.f32.mrf.mxu2  ;;  %v1074_v21 = vpop.f32.mrf.mxu0 }
 0x1f9   :  { %v1201_v3 = vadd.f32 %v1200_v13, %v1137_v34  ;;  %v1264_v43 = vpop.f32.mrf.mxu3  ;;  %v1138_v15 = vpop.f32.mrf.mxu1  ;;  %v1549_v12 = vadd.f32 %v1548_v24, %v1499_v51 }
 0x1fa   :  { %v1139_v58 = vadd.f32 %v1138_v15, %v1074_v21 }
 0x1fb   :  { %v3557_v60 = vadd.f32 %v1264_v43, %v1201_v3 }
 0x1fd   :  { %v1501_v34 = vmul.f32 %v3557_v60, %v3557_v60  ;;  %v1450_v54 = vadd.f32 %v1449_v2, %v3557_v60 }
 0x1ff   :  { %v1550_v53 = vadd.f32 %v1549_v12, %v1501_v34 }
 0x200   :  { %v1202_v19 = vpop.f32.mrf.mxu2 }
 0x201   :  { %v1203_v20 = vadd.f32 %v1202_v19, %v1139_v58  ;;  %v1266_v9 = vpop.f32.mrf.mxu3  ;;  %v1564_v58 = vmax.f32 %v1562_v44, 0.0 }
 0x203   :  { %v3569_v57 = vadd.f32 %v1266_v9, %v1203_v20  ;;  %v1567_v20 = vadd.f32 1e-05, %v1564_v58 }
 0x205   :  { %v1451_v33 = vadd.f32 %v1450_v54, %v3569_v57  ;;  %v1503_v13 = vmul.f32 %v3569_v57, %v3569_v57  ;;  %2424 = vrsqrt.f32 %v1567_v20  ;;  %vm1575_vm4 = vweird.f32 %v1567_v20 }
 0x207   :  { %v1452_v3 = vrot.slane %v1451_v33, 4  ;;  %v1551_v43 = vadd.f32 %v1550_v53, %v1503_v13 }
 0x209   :  { %v1453_v23 = vadd.f32 %v1452_v3, %v1451_v33  ;;  %v1552_v0 = vrot.slane %v1551_v43, 4 }
 0x20b   :  { %v1454_v61 = vrot.slane %v1453_v23, 2  ;;  %v1553_v18 = vadd.f32 %v1552_v0, %v1551_v43  ;;  %v2425_v9 = vpop.eup %2424  ;;  %v1566_v0 = vld [vmem:[%s3990_s2] sm:$0x3] }
 0x20c   :  { %v1570_v48 = vmul.f32 %v2425_v9, %v1567_v20  ;;  %vm1576_vm3 = vweird.f32 %v2425_v9 }
 0x20d   :  { %v1455_v21 = vadd.f32 %v1454_v61, %v1453_v23  ;;  %v1554_v15 = vrot.slane %v1553_v18, 2  ;;  %vm1577_vm6 = vmor %vm1575_vm4, %vm1576_vm3 }
 0x20e   :  { %v1571_v34 = vmul.f32 %v2425_v9, %v1570_v48 }
 0x20f   :  { %v1456_v7 = vrot.slane %v1455_v21, 1  ;;  %v1555_v25 = vadd.f32 %v1554_v15, %v1553_v18 }
 0x210   :  { %v1572_v12 = vmul.f32 0.5, %v1571_v34  ;;  %v4032_v34 = vld [vmem:[#allocation7_spill] sm:$0xff] }
 0x211   :  { %v1457_v62 = vadd.f32 %v1456_v7, %v1455_v21  ;;  %v1556_v26 = vrot.slane %v1555_v25, 1  ;;  %v1596_v7 = vld [vmem:[%s3991_s3] sm:$0x3] }
 0x212   :  { %v1573_v28 = vsub.f32 1.5, %v1572_v12 }
 0x213   :  { %v1459_v5 = vmul.f32 0.0061728396, %v1457_v62  ;;  %v1557_v38 = vadd.f32 %v1556_v26, %v1555_v25 }
 0x214   :  { %v1574_v3 = vmul.f32 %v2425_v9, %v1573_v28 }
 0x215   :  { %v1559_v47 = vmul.f32 0.0061728396, %v1557_v38  ;;  %v1561_v19 = vmul.f32 %v1459_v5, %v1459_v5 }
 0x216   :  { %v1578_v23 = vsel %vm1577_vm6, %v2425_v9, %v1574_v3  ;;  %v4029_v9 = vld [vmem:[#allocation4_spill] sm:$0xff]  ;;  %v4035_v3 = vld [vmem:[#allocation10_spill] sm:$0xff] }
 0x217   :  { %v1563_v10 = vsub.f32 %v1559_v47, %v1561_v19 }
 0x219   :  { %v1565_v51 = vmax.f32 %v1563_v10, 0.0  ;;  %v4027_v10 = vld [vmem:[#allocation2_spill] sm:$0xff] }
 0x21b   :  { %v1568_v16 = vadd.f32 1e-05, %v1565_v51  ;;  %v4028_v51 = vld [vmem:[#allocation3_spill] sm:$0xff] }
 0x21d   :  { %2426 = vrsqrt.f32 %v1568_v16  ;;  %vm1585_vm1 = vweird.f32 %v1568_v16 }
 0x223   :  { %v2427_v29 = vpop.eup %2426 }
 0x224   :  { %v1580_v2 = vmul.f32 %v2427_v29, %v1568_v16  ;;  %vm1586_vm0 = vweird.f32 %v2427_v29 }
 0x225   :  { %vm1587_vm2 = vmor %vm1585_vm1, %vm1586_vm0 }
 0x226   :  { %v1581_v24 = vmul.f32 %v2427_v29, %v1580_v2 }
 0x228   :  { %v1582_v54 = vmul.f32 0.5, %v1581_v24 }
 0x22a   :  { %v1583_v33 = vsub.f32 1.5, %v1582_v54 }
 0x22c   :  { %v1584_v13 = vmul.f32 %v2427_v29, %v1583_v33 }
 0x22e   :  { %v1588_v53 = vsel %vm1587_vm2, %v2427_v29, %v1584_v13  ;;  %v4031_v29 = vld [vmem:[#allocation6_spill] sm:$0xff]  ;;  %v4034_v13 = vld [vmem:[#allocation9_spill] sm:$0xff] }
 0x22f   :  { %v1591_v43 = vrot.slane %v1588_v53, 7 }
 0x231   :  { %v1593_v42 = vsel %vm1592_vm5, %v1578_v23, %v1591_v43  ;;  %v4036_v23 = vld [vmem:[#allocation11_spill] sm:$0xff] }
 0x232   :  { %v1595_v27 = vmul.f32 %v1593_v42, %v1566_v0  ;;  %v4037_v42 = vld [vmem:[#allocation12_spill] sm:$0xff] }
 0x234   :  { %v3581_v61 = vperm.slane %v1595_v27, 1  ;;  %v3584_v21 = vperm.slane %v1595_v27, 0 }
 0x236   :  { %v1603_v18 = vmul.f32 %v3581_v61, %v1459_v5  ;;  %v1602_v44 = vmul.f32 %v3584_v21, %v1458_v1  ;;  %v1610_v58 = vmul.f32 %v3584_v21, %v3161_v56  ;;  %v1611_v38 = vmul.f32 %v3581_v61, %v3313_v49 }
 0x237   :  { %v1612_v5 = vmul.f32 %v3584_v21, %v3195_v40  ;;  %v1613_v1 = vmul.f32 %v3581_v61, %v3315_v8  ;;  %v1614_v19 = vmul.f32 %v3584_v21, %v3201_v59  ;;  %v1615_v20 = vmul.f32 %v3581_v61, %v3321_v37  ;;  %v4030_v37 = vld [vmem:[#allocation5_spill] sm:$0xff] }
 0x238   :  { %v1606_v15 = vrot.slane %v1603_v18, 7  ;;  %v1616_v56 = vmul.f32 %v3584_v21, %v4027_v10  ;;  %v1617_v49 = vmul.f32 %v3581_v61, %v3323_v22  ;;  %v1618_v40 = vmul.f32 %v3584_v21, %v4028_v51 }
 0x239   :  { %v1619_v16 = vmul.f32 %v3581_v61, %v3329_v63  ;;  %v1620_v8 = vmul.f32 %v3584_v21, %v4029_v9  ;;  %v3617_v59 = vmul.f32 %v3581_v61, %v3331_v17  ;;  %v3621_v48 = vmul.f32 %v3584_v21, %v4030_v37  ;;  %v4042_v9 = vld [vmem:[#allocation17_spill] sm:$0xff] }
 0x23a   :  { %v1607_v25 = vsel %vm1592_vm5, %v1602_v44, %v1606_v15  ;;  %v3625_v22 = vmul.f32 %v3581_v61, %v3333_v50  ;;  %v3629_v2 = vmul.f32 %v3584_v21, %v4031_v29  ;;  %v3633_v63 = vmul.f32 %v3581_v61, %v3335_v11  ;;  %v4033_v50 = vld [vmem:[#allocation8_spill] sm:$0xff]  ;;  %v4038_v15 = vld [vmem:[#allocation13_spill] sm:$0xff] }
 0x23b   :  { %v1609_v62 = vsub.f32 %v1596_v7, %v1607_v25  ;;  %v3637_v17 = vmul.f32 %v3584_v21, %v4032_v34  ;;  %v3643_v54 = vmul.f32 %v3581_v61, %v3337_v14  ;;  %v3647_v12 = vmul.f32 %v3584_v21, %v4033_v50  ;;  %v4039_v7 = vld [vmem:[#allocation14_spill] sm:$0xff] }
 0x23c   :  { %v3651_v33 = vmul.f32 %v3581_v61, %v3339_v30  ;;  %v3655_v28 = vmul.f32 %v3584_v21, %v4034_v13  ;;  %v3659_v53 = vmul.f32 %v3581_v61, %v3345_v45  ;;  %v3663_v14 = vmul.f32 %v3584_v21, %v4035_v3 }
 0x23d   :  { %v3590_v26 = vperm.slane %v1609_v62, 0  ;;  %v3639_v24 = vperm.slane %v1609_v62, 1  ;;  %v3667_v43 = vmul.f32 %v3581_v61, %v3496_v32  ;;  %v3671_v30 = vmul.f32 %v3584_v21, %v4036_v23  ;;  %v4040_v62 = vld [vmem:[#allocation15_spill] sm:$0xff] }
 0x23e   :  { %v3675_v0 = vmul.f32 %v3581_v61, %v3503_v46  ;;  %v3679_v45 = vmul.f32 %v3584_v21, %v4037_v42  ;;  %v3683_v18 = vmul.f32 %v3581_v61, %v3514_v6  ;;  %v3687_v32 = vmul.f32 %v3584_v21, %v4038_v15 }
 0x23f   :  { %v1659_v47 = vadd.f32 %v3590_v26, %v1610_v58  ;;  %v3691_v44 = vmul.f32 %v3581_v61, %v3521_v55  ;;  %v1660_v46 = vadd.f32 %v3639_v24, %v1611_v38  ;;  %v3699_v25 = vmul.f32 %v3584_v21, %v4039_v7 }
 0x240   :  { %v3703_v6 = vmul.f32 %v3581_v61, %v3528_v52  ;;  %v3707_v58 = vmul.f32 %v3584_v21, %v4040_v62  ;;  %v1661_v55 = vadd.f32 %v3590_v26, %v1612_v5  ;;  %v3712_v38 = vmul.f32 %v3581_v61, %v3534_v41  ;;  %v4043_v41 = vld [vmem:[#allocation18_spill] sm:$0xff] }
 0x241   :  { %vm1703_vm7 = vcmp.gt.f32.partialorder %v1659_v47, 0.0  ;;  %v1747_v11 = vmul.f32 0.2, %v1659_v47  ;;  %v3720_v51 = vmul.f32 %v3581_v61, %v3542_v39  ;;  %v1662_v52 = vadd.f32 %v3639_v24, %v1613_v1 }
 0x242   :  { %v3725_v37 = vmul.f32 %v3584_v21, %v4042_v9  ;;  %v3729_v5 = vmul.f32 %v3581_v61, %v3547_v4  ;;  %v3733_v29 = vmul.f32 %v3584_v21, %v4043_v41  ;;  %v1663_v34 = vadd.f32 %v3590_v26, %v1614_v19 }
 0x243   :  { %v1791_v27 = vsel %vm1703_vm7, %v1659_v47, %v1747_v11  ;;  %v4041_v47 = vld [vmem:[#allocation16_spill] sm:$0xff]  ;;  %v3738_v39 = vmul.f32 %v3581_v61, %v3552_v36  ;;  %v3742_v1 = vmul.f32 %v3584_v21, %v3305_v31  ;;  %v1664_v50 = vadd.f32 %v3639_v24, %v1615_v20 }
 0x244   :  { %1835 = vst [vmem:[%s3992_s4] sm:$0xff] %v1791_v27  ;;  %v3716_v10 = vmul.f32 %v3584_v21, %v4041_v47  ;;  %v1748_v11 = vmul.f32 0.2, %v1660_v46  ;;  %v3747_v4 = vmul.f32 %v3581_v61, %v3557_v60  ;;  %v1665_v13 = vadd.f32 %v3590_v26, %v1616_v56 }
 0x245   :  { %vm1704_vm8 = vcmp.gt.f32.partialorder %v1660_v46, 0.0  ;;  %v1749_v3 = vmul.f32 0.2, %v1661_v55  ;;  %v3752_v19 = vmul.f32 %v3584_v21, %v3307_v35  ;;  %v1666_v36 = vadd.f32 %v3639_v24, %v1617_v49 }
 0x246   :  { %vm1705_vm9 = vcmp.gt.f32.partialorder %v1661_v55, 0.0  ;;  %v1750_v31 = vmul.f32 0.2, %v1662_v52  ;;  %v3757_v20 = vmul.f32 %v3581_v61, %v3569_v57  ;;  %v1667_v23 = vadd.f32 %v3590_v26, %v1618_v40 }
 0x247   :  { %vm1706_vm10 = vcmp.gt.f32.partialorder %v1662_v52, 0.0  ;;  %v1751_v60 = vmul.f32 0.2, %v1663_v34  ;;  %v1668_v56 = vadd.f32 %v3639_v24, %v1619_v16  ;;  %vm1707_vm11 = vcmp.gt.f32.partialorder %v1663_v34, 0.0 }
 0x248   :  { %v1752_v42 = vmul.f32 0.2, %v1664_v50  ;;  %v1792_v27 = vsel %vm1704_vm8, %v1660_v46, %v1748_v11  ;;  %v1669_v35 = vadd.f32 %v3590_v26, %v1620_v8  ;;  %vm1708_vm12 = vcmp.gt.f32.partialorder %v1664_v50, 0.0 }
 0x249   :  { %v1753_v21 = vmul.f32 0.2, %v1665_v13  ;;  %v1793_v49 = vsel %vm1705_vm9, %v1661_v55, %v1749_v3  ;;  %v1670_v15 = vadd.f32 %v3639_v24, %v3617_v59  ;;  %vm1709_vm13 = vcmp.gt.f32.partialorder %v1665_v13, 0.0  ;;  %1836 = vst [vmem:[%s3992_s4 + $0x8] sm:$0xff] %v1792_v27 }
 0x24a   :  { %v1754_v57 = vmul.f32 0.2, %v1666_v36  ;;  %v1794_v61 = vsel %vm1706_vm10, %v1662_v52, %v1750_v31  ;;  %v1671_v40 = vadd.f32 %v3590_v26, %v3621_v48  ;;  %vm1710_vm14 = vcmp.gt.f32.partialorder %v1666_v36, 0.0  ;;  %1837 = vst [vmem:[%s3992_s4 + $0x10] sm:$0xff] %v1793_v49 }
 0x24b   :  { %v1755_v7 = vmul.f32 0.2, %v1667_v23  ;;  %v1795_v16 = vsel %vm1707_vm11, %v1663_v34, %v1751_v60  ;;  %v1672_v8 = vadd.f32 %v3639_v24, %v3625_v22  ;;  %vm1711_vm15 = vcmp.gt.f32.partialorder %v1667_v23, 0.0  ;;  %1838 = vst [vmem:[%s3992_s4 + $0x18] sm:$0xff] %v1794_v61 }
 0x24c   :  { %v1756_v46 = vmul.f32 0.2, %v1668_v56  ;;  %v1796_v62 = vsel %vm1708_vm12, %v1664_v50, %v1752_v42  ;;  %v1673_v59 = vadd.f32 %v3590_v26, %v3629_v2  ;;  %vm1712_vm0 = vcmp.gt.f32.partialorder %v1668_v56, 0.0  ;;  %1839 = vst [vmem:[%s3992_s4 + $0x20] sm:$0xff] %v1795_v16 }
 0x24d   :  { %v1757_v48 = vmul.f32 0.2, %v1669_v35  ;;  %v1797_v55 = vsel %vm1709_vm13, %v1665_v13, %v1753_v21  ;;  %v1674_v22 = vadd.f32 %v3639_v24, %v3633_v63  ;;  %vm1713_vm1 = vcmp.gt.f32.partialorder %v1669_v35, 0.0  ;;  %1840 = vst [vmem:[%s3992_s4 + $0x28] sm:$0xff] %v1796_v62 }
 0x24e   :  { %v1758_v47 = vmul.f32 0.2, %v1670_v15  ;;  %v1798_v52 = vsel %vm1710_vm14, %v1666_v36, %v1754_v57  ;;  %v1675_v2 = vadd.f32 %v3590_v26, %v3637_v17  ;;  %vm1714_vm2 = vcmp.gt.f32.partialorder %v1670_v15, 0.0  ;;  %1841 = vst [vmem:[%s3992_s4 + $0x30] sm:$0xff] %v1797_v55 }
 0x24f   :  { %v1759_v9 = vmul.f32 0.2, %v1671_v40  ;;  %v1799_v41 = vsel %vm1711_vm15, %v1667_v23, %v1755_v7  ;;  %v1676_v63 = vadd.f32 %v3639_v24, %v3643_v54  ;;  %vm1715_vm3 = vcmp.gt.f32.partialorder %v1671_v40, 0.0  ;;  %1842 = vst [vmem:[%s3992_s4 + $0x38] sm:$0xff] %v1798_v52 }
 0x250   :  { %v1760_v34 = vmul.f32 0.2, %v1672_v8  ;;  %v1800_v50 = vsel %vm1712_vm0, %v1668_v56, %v1756_v46  ;;  %v1677_v17 = vadd.f32 %v3590_v26, %v3647_v12  ;;  %vm1716_vm4 = vcmp.gt.f32.partialorder %v1672_v8, 0.0  ;;  %1843 = vst [vmem:[%s3992_s4 + $0x40] sm:$0xff] %v1799_v41 }
 0x251   :  { %v1761_v11 = vmul.f32 0.2, %v1673_v59  ;;  %v1801_v13 = vsel %vm1713_vm1, %v1669_v35, %v1757_v48  ;;  %v1678_v54 = vadd.f32 %v3639_v24, %v3651_v33  ;;  %vm1717_vm5 = vcmp.gt.f32.partialorder %v1673_v59, 0.0  ;;  %1844 = vst [vmem:[%s3992_s4 + $0x48] sm:$0xff] %v1800_v50 }
 0x252   :  { %v1762_v3 = vmul.f32 0.2, %v1674_v22  ;;  %v1802_v36 = vsel %vm1714_vm2, %v1670_v15, %v1758_v47  ;;  %v1679_v12 = vadd.f32 %v3590_v26, %v3655_v28  ;;  %vm1718_vm6 = vcmp.gt.f32.partialorder %v1674_v22, 0.0  ;;  %1845 = vst [vmem:[%s3992_s4 + $0x50] sm:$0xff] %v1801_v13 }
 0x253   :  { %v1763_v31 = vmul.f32 0.2, %v1675_v2  ;;  %v1803_v23 = vsel %vm1715_vm3, %v1671_v40, %v1759_v9  ;;  %v1680_v33 = vadd.f32 %v3639_v24, %v3659_v53  ;;  %vm1719_vm7 = vcmp.gt.f32.partialorder %v1675_v2, 0.0  ;;  %1846 = vst [vmem:[%s3992_s4 + $0x58] sm:$0xff] %v1802_v36 }
 0x254   :  { %v1764_v60 = vmul.f32 0.2, %v1676_v63  ;;  %v1804_v56 = vsel %vm1716_vm4, %v1672_v8, %v1760_v34  ;;  %v1681_v28 = vadd.f32 %v3590_v26, %v3663_v14  ;;  %vm1720_vm8 = vcmp.gt.f32.partialorder %v1676_v63, 0.0  ;;  %1847 = vst [vmem:[%s3992_s4 + $0x60] sm:$0xff] %v1803_v23 }
 0x255   :  { %v1765_v42 = vmul.f32 0.2, %v1677_v17  ;;  %v1805_v27 = vsel %vm1717_vm5, %v1673_v59, %v1761_v11  ;;  %v1682_v53 = vadd.f32 %v3639_v24, %v3667_v43  ;;  %vm1721_vm9 = vcmp.gt.f32.partialorder %v1677_v17, 0.0  ;;  %1848 = vst [vmem:[%s3992_s4 + $0x68] sm:$0xff] %v1804_v56 }
 0x256   :  { %v1766_v35 = vmul.f32 0.2, %v1678_v54  ;;  %v1806_v21 = vsel %vm1718_vm6, %v1674_v22, %v1762_v3  ;;  %v1683_v14 = vadd.f32 %v3590_v26, %v3671_v30  ;;  %vm1722_vm10 = vcmp.gt.f32.partialorder %v1678_v54, 0.0  ;;  %1849 = vst [vmem:[%s3992_s4 + $0x70] sm:$0xff] %v1805_v27 }
 0x257   :  { %v1767_v49 = vmul.f32 0.2, %v1679_v12  ;;  %v1807_v15 = vsel %vm1719_vm7, %v1675_v2, %v1763_v31  ;;  %v1684_v43 = vadd.f32 %v3639_v24, %v3675_v0  ;;  %vm1723_vm11 = vcmp.gt.f32.partialorder %v1679_v12, 0.0  ;;  %1850 = vst [vmem:[%s3992_s4 + $0x78] sm:$0xff] %v1806_v21 }
 0x258   :  { %v1768_v57 = vmul.f32 0.2, %v1680_v33  ;;  %v1808_v61 = vsel %vm1720_vm8, %v1676_v63, %v1764_v60  ;;  %v1685_v30 = vadd.f32 %v3590_v26, %v3679_v45  ;;  %vm1724_vm12 = vcmp.gt.f32.partialorder %v1680_v33, 0.0  ;;  %1851 = vst [vmem:[%s3992_s4 + $0x80] sm:$0xff] %v1807_v15 }
 0x259   :  { %v1769_v40 = vmul.f32 0.2, %v1681_v28  ;;  %v1809_v7 = vsel %vm1721_vm9, %v1677_v17, %v1765_v42  ;;  %v1686_v0 = vadd.f32 %v3639_v24, %v3683_v18  ;;  %vm1725_vm13 = vcmp.gt.f32.partialorder %v1681_v28, 0.0  ;;  %1852 = vst [vmem:[%s3992_s4 + $0x88] sm:$0xff] %v1808_v61 }
 0x25a   :  { %v1770_v16 = vmul.f32 0.2, %v1682_v53  ;;  %v1810_v8 = vsel %vm1722_vm10, %v1678_v54, %v1766_v35  ;;  %v1687_v45 = vadd.f32 %v3590_v26, %v3687_v32  ;;  %vm1726_vm14 = vcmp.gt.f32.partialorder %v1682_v53, 0.0  ;;  %1853 = vst [vmem:[%s3992_s4 + $0x90] sm:$0xff] %v1809_v7 }
 0x25b   :  { %v1771_v46 = vmul.f32 0.2, %v1683_v14  ;;  %v1811_v62 = vsel %vm1723_vm11, %v1679_v12, %v1767_v49  ;;  %v1688_v18 = vadd.f32 %v3639_v24, %v3691_v44  ;;  %vm1727_vm15 = vcmp.gt.f32.partialorder %v1683_v14, 0.0  ;;  %1854 = vst [vmem:[%s3992_s4 + $0x98] sm:$0xff] %v1810_v8 }
 0x25c   :  { %v1772_v59 = vmul.f32 0.2, %v1684_v43  ;;  %v1812_v48 = vsel %vm1724_vm12, %v1680_v33, %v1768_v57  ;;  %v1689_v32 = vadd.f32 %v3590_v26, %v3699_v25  ;;  %vm1728_vm0 = vcmp.gt.f32.partialorder %v1684_v43, 0.0  ;;  %1855 = vst [vmem:[%s3992_s4 + $0xa0] sm:$0xff] %v1811_v62 }
 0x25d   :  { %v1773_v55 = vmul.f32 0.2, %v1685_v30  ;;  %v1813_v22 = vsel %vm1725_vm13, %v1681_v28, %v1769_v40  ;;  %v1690_v44 = vadd.f32 %v3639_v24, %v3703_v6  ;;  %vm1729_vm1 = vcmp.gt.f32.partialorder %v1685_v30, 0.0  ;;  %1856 = vst [vmem:[%s3992_s4 + $0xa8] sm:$0xff] %v1812_v48 }
 0x25e   :  { %v1774_v47 = vmul.f32 0.2, %v1686_v0  ;;  %v1814_v52 = vsel %vm1726_vm14, %v1682_v53, %v1770_v16  ;;  %v1691_v25 = vadd.f32 %v3590_v26, %v3707_v58  ;;  %vm1730_vm2 = vcmp.gt.f32.partialorder %v1686_v0, 0.0  ;;  %1857 = vst [vmem:[%s3992_s4 + $0xb0] sm:$0xff] %v1813_v22 }
 0x25f   :  { %v1775_v2 = vmul.f32 0.2, %v1687_v45  ;;  %v1815_v9 = vsel %vm1727_vm15, %v1683_v14, %v1771_v46  ;;  %v1692_v6 = vadd.f32 %v3639_v24, %v3712_v38  ;;  %vm1731_vm3 = vcmp.gt.f32.partialorder %v1687_v45, 0.0  ;;  %1858 = vst [vmem:[%s3992_s4 + $0xb8] sm:$0xff] %v1814_v52 }
 0x260   :  { %v1776_v41 = vmul.f32 0.2, %v1688_v18  ;;  %v1816_v63 = vsel %vm1728_vm0, %v1684_v43, %v1772_v59  ;;  %v1693_v58 = vadd.f32 %v3590_v26, %v3716_v10  ;;  %vm1732_vm4 = vcmp.gt.f32.partialorder %v1688_v18, 0.0  ;;  %1859 = vst [vmem:[%s3992_s4 + $0xc0] sm:$0xff] %v1815_v9 }
 0x261   :  { %v1777_v34 = vmul.f32 0.2, %v1689_v32  ;;  %v1817_v50 = vsel %vm1729_vm1, %v1685_v30, %v1773_v55  ;;  %v1694_v38 = vadd.f32 %v3639_v24, %v3720_v51  ;;  %vm1733_vm5 = vcmp.gt.f32.partialorder %v1689_v32, 0.0  ;;  %1860 = vst [vmem:[%s3992_s4 + $0xc8] sm:$0xff] %v1816_v63 }
 0x262   :  { %v1778_v17 = vmul.f32 0.2, %v1690_v44  ;;  %v1818_v11 = vsel %vm1730_vm2, %v1686_v0, %v1774_v47  ;;  %v1695_v10 = vadd.f32 %v3590_v26, %v3725_v37  ;;  %vm1734_vm6 = vcmp.gt.f32.partialorder %v1690_v44, 0.0  ;;  %1861 = vst [vmem:[%s3992_s4 + $0xd0] sm:$0xff] %v1817_v50 }
 0x263   :  { %v1779_v13 = vmul.f32 0.2, %v1691_v25  ;;  %v1819_v54 = vsel %vm1731_vm3, %v1687_v45, %v1775_v2  ;;  %v1696_v51 = vadd.f32 %v3639_v24, %v3729_v5  ;;  %vm1735_vm7 = vcmp.gt.f32.partialorder %v1691_v25, 0.0  ;;  %1862 = vst [vmem:[%s3992_s4 + $0xd8] sm:$0xff] %v1818_v11 }
 0x264   :  { %v1780_v3 = vmul.f32 0.2, %v1692_v6  ;;  %v1820_v36 = vsel %vm1732_vm4, %v1688_v18, %v1776_v41  ;;  %v1697_v37 = vadd.f32 %v3590_v26, %v3733_v29  ;;  %vm1736_vm8 = vcmp.gt.f32.partialorder %v1692_v6, 0.0  ;;  %1863 = vst [vmem:[%s3992_s4 + $0xe0] sm:$0xff] %v1819_v54 }
 0x265   :  { %v1781_v12 = vmul.f32 0.2, %v1693_v58  ;;  %v1821_v31 = vsel %vm1733_vm5, %v1689_v32, %v1777_v34  ;;  %v1698_v5 = vadd.f32 %v3639_v24, %v3738_v39  ;;  %vm1737_vm9 = vcmp.gt.f32.partialorder %v1693_v58, 0.0  ;;  %1864 = vst [vmem:[%s3992_s4 + $0xe8] sm:$0xff] %v1820_v36 }
 0x266   :  { %v1782_v23 = vmul.f32 0.2, %v1694_v38  ;;  %v1822_v33 = vsel %vm1734_vm6, %v1690_v44, %v1778_v17  ;;  %v1699_v29 = vadd.f32 %v3590_v26, %v3742_v1  ;;  %vm1738_vm10 = vcmp.gt.f32.partialorder %v1694_v38, 0.0  ;;  %1865 = vst [vmem:[%s3992_s4 + $0xf0] sm:$0xff] %v1821_v31 }
 0x267   :  { %v1783_v60 = vmul.f32 0.2, %v1695_v10  ;;  %v1823_v56 = vsel %vm1735_vm7, %v1691_v25, %v1779_v13  ;;  %v1700_v39 = vadd.f32 %v3639_v24, %v3747_v4  ;;  %vm1739_vm11 = vcmp.gt.f32.partialorder %v1695_v10, 0.0  ;;  %1866 = vst [vmem:[%s3992_s4 + $0xf8] sm:$0xff] %v1822_v33 }
 0x268   :  { %v1784_v28 = vmul.f32 0.2, %v1696_v51  ;;  %v1824_v42 = vsel %vm1736_vm8, %v1692_v6, %v1780_v3  ;;  %v1701_v1 = vadd.f32 %v3590_v26, %v3752_v19  ;;  %vm1740_vm12 = vcmp.gt.f32.partialorder %v1696_v51, 0.0  ;;  %1867 = vst [vmem:[%s3992_s4 + $0x100] sm:$0xff] %v1823_v56 }
 0x269   :  { %v1785_v27 = vmul.f32 0.2, %v1697_v37  ;;  %v1825_v53 = vsel %vm1737_vm9, %v1693_v58, %v1781_v12  ;;  %v1702_v4 = vadd.f32 %v3639_v24, %v3757_v20  ;;  %vm1741_vm13 = vcmp.gt.f32.partialorder %v1697_v37, 0.0  ;;  %1868 = vst [vmem:[%s3992_s4 + $0x108] sm:$0xff] %v1824_v42 }
 0x26a   :  { %v1786_v35 = vmul.f32 0.2, %v1698_v5  ;;  %v1826_v21 = vsel %vm1738_vm10, %v1694_v38, %v1782_v23  ;;  %vm1742_vm14 = vcmp.gt.f32.partialorder %v1698_v5, 0.0  ;;  %v1787_v26 = vmul.f32 0.2, %v1699_v29  ;;  %1869 = vst [vmem:[%s3992_s4 + $0x110] sm:$0xff] %v1825_v53 }
 0x26b   :  { %v1827_v19 = vsel %vm1739_vm11, %v1695_v10, %v1783_v60  ;;  %vm1743_vm15 = vcmp.gt.f32.partialorder %v1699_v29, 0.0  ;;  %v1788_v14 = vmul.f32 0.2, %v1700_v39  ;;  %v1828_v49 = vsel %vm1740_vm12, %v1696_v51, %v1784_v28  ;;  %1870 = vst [vmem:[%s3992_s4 + $0x118] sm:$0xff] %v1826_v21 }
 0x26c   :  { %vm1744_vm0 = vcmp.gt.f32.partialorder %v1700_v39, 0.0  ;;  %v1789_v24 = vmul.f32 0.2, %v1701_v1  ;;  %v1829_v20 = vsel %vm1741_vm13, %v1697_v37, %v1785_v27  ;;  %vm1745_vm1 = vcmp.gt.f32.partialorder %v1701_v1, 0.0  ;;  %1871 = vst [vmem:[%s3992_s4 + $0x120] sm:$0xff] %v1827_v19 }
 0x26d   :  { %v1790_v15 = vmul.f32 0.2, %v1702_v4  ;;  %v1830_v43 = vsel %vm1742_vm14, %v1698_v5, %v1786_v35  ;;  %vm1746_vm2 = vcmp.gt.f32.partialorder %v1702_v4, 0.0  ;;  %v1831_v57 = vsel %vm1743_vm15, %v1699_v29, %v1787_v26  ;;  %1872 = vst [vmem:[%s3992_s4 + $0x128] sm:$0xff] %v1828_v49 }
 0x26e   :  { %v1832_v61 = vsel %vm1744_vm0, %v1700_v39, %v1788_v14  ;;  %1873 = vst [vmem:[%s3992_s4 + $0x130] sm:$0xff] %v1829_v20  ;;  %v1833_v30 = vsel %vm1745_vm1, %v1701_v1, %v1789_v24 }
 0x26f   :  { %1874 = vst [vmem:[%s3992_s4 + $0x138] sm:$0xff] %v1830_v43  ;;  %v1834_v40 = vsel %vm1746_vm2, %v1702_v4, %v1790_v15 }
 0x270   :  { %1875 = vst [vmem:[%s3992_s4 + $0x140] sm:$0xff] %v1831_v57 }
 0x271   :  { %1876 = vst [vmem:[%s3992_s4 + $0x148] sm:$0xff] %v1832_v61 }
 0x272   :  { %1877 = vst [vmem:[%s3992_s4 + $0x150] sm:$0xff] %v1833_v30 }
 0x273   :  { %1878 = vst [vmem:[%s3992_s4 + $0x158] sm:$0xff] %v1834_v40 }

// kernel: _lambda_.9
= control target key start
LH: loop header
LB: loop body
LE: loop exit
PB: predicated region body
PF: predicated region fallthrough
CT: control target
= control target key end

     0   :  { %s1637_s15 = smov 0   ;;  %s1639_s16 = smov 0   ;;  %s2054_s0 = inlined_call_operand.vmem [shape: bf16[32,4096], index: 0, kind: input, shape index: {}]   ;;  %s2055_s1 = inlined_call_operand.vmem [shape: bf16[4096,256], index: 1, kind: input, shape index: {}]   ;;  %s2056_s2 = inlined_call_operand.vmem [shape: f32[1,256], index: 2, kind: input, shape index: {}]   ;;  %s2057_s3 = inlined_call_operand.vmem [shape: f32[1,256], index: 3, kind: input, shape index: {}]   ;;  %s2058_s4 = inlined_call_operand.vmem [shape: f32[32,256], index: 4, kind: output, shape index: {}]  }
   0x1   :  { %s1641_s17 = smov 0   ;;  %s1643_s18 = smov 0  }
   0x2   :  { %s1645_s19 = smov 0  }
   0x3 LB: > { %s23_s20 = sadd.s32 1, %s1605_s18  ;;  %p42_p1 = scmp.ne.s32.totalorder %s1597_s16, %s1593_s15  ;;  %s1609_s19 = sphi %s1645_s19, %s14_s19   ;;  %s1605_s18 = sphi %s1643_s18, %s2062_s18   ;;  %s1601_s17 = sphi %s1641_s17, %s2061_s17   ;;  %s1597_s16 = sphi %s1639_s16, %s2060_s16   ;;  %s1593_s15 = sphi %s1637_s15, %s2059_s15  }
   0x4   : > { %p24_p0 = scmp.ge.s32.totalorder %s23_s20, 8  ;;  %p43_p2 = scmp.eq.s32.totalorder %s1609_s19, 0 }
   0x5   : > { %s35_s22 = sadd.s32 1, %s1597_s16  ;;  %p1149_p5 = scmp.ge.s32.totalorder %s1609_s19, 8 }
   0x6   : > { %s2064_s20 = smov (%p24_p0, %s23_s20), 0  ;;  %p44_p3 = por %p43_p2, %p42_p1 }
   0x7   : > { %s31_s21 = ssub.s32 %s1605_s18, %s2064_s20  ;;  %168 = sbr.rel (%p1149_p5) target bundleno = 24 (0x18), region = 24 }
   0x8   : > { %p33_p4 = scmp.eq.s32.totalorder %s31_s21, 0 }
   0xa   : > { %s1672_s23 = scalar_select %p33_p4, %s1597_s16, %s35_s22  }
   0xc   : > { %171 = sbr.rel (!%p44_p3) target bundleno = 24 (0x18), region = 28  ;;  %s173_s24 = sand.u32 (%p44_p3), 1, %s1597_s16  }
   0xd   : > { %s1452_s25 = sshll.u32 (%p44_p3), %s1605_s18, 4  ;;  %s1150_s26 = sshll.u32 (%p44_p3), %s173_s24, 6 }
   0xe   : > { %s181_s29 = scalar_lea.vmem (%p44_p3), %s2054_s0, %s1452_s25  ;;  %s175_s30 = scalar_lea.vmem (%p44_p3), [#allocation2], %s1150_s26 }
   0xf   : > { %v194_v0 = vld [vmem:[%s181_s29] sm:$0xff] (%p44_p3)  ;;  %v196_v1 = vld [vmem:[%s181_s29 + $0x8] sm:$0xff] (%p44_p3) }
  0x10   : > { %v198_v2 = vld [vmem:[%s181_s29 + $0x80] sm:$0xff] (%p44_p3)  ;;  %195 = vst [vmem:[%s175_s30] sm:$0xff] (%p44_p3), %v194_v0  ;;  %v200_v3 = vld [vmem:[%s181_s29 + $0x88] sm:$0xff] (%p44_p3) }
  0x11   : > { %197 = vst [vmem:[%s175_s30 + $0x8] sm:$0xff] %v196_v1  ;;  %v202_v4 = vld [vmem:[%s181_s29 + $0x100] sm:$0xff]  ;;  %v204_v5 = vld [vmem:[%s181_s29 + $0x108] sm:$0xff] }
  0x12   : > { %199 = vst [vmem:[%s175_s30 + $0x10] sm:$0xff] %v198_v2  ;;  %v206_v6 = vld [vmem:[%s181_s29 + $0x180] sm:$0xff]  ;;  %v208_v7 = vld [vmem:[%s181_s29 + $0x188] sm:$0xff] }
  0x13   : > { %201 = vst [vmem:[%s175_s30 + $0x18] sm:$0xff] %v200_v3 }
  0x14   : > { %203 = vst [vmem:[%s175_s30 + $0x20] sm:$0xff] %v202_v4 }
  0x15   : > { %205 = vst [vmem:[%s175_s30 + $0x28] sm:$0xff] %v204_v5 }
  0x16   : > { %207 = vst [vmem:[%s175_s30 + $0x30] sm:$0xff] %v206_v6 }
  0x17   : > { %209 = vst [vmem:[%s175_s30 + $0x38] sm:$0xff] %v208_v7 }
  0x18 PF: > { %p1153_p6 = scmp.ge.s32.totalorder %s1609_s19, 1  ;;  %p224_p7 = scmp.lt.s32.totalorder %s1609_s19, 9 }
  0x1a   : > { %p225_p8 = pnand %p1153_p6, %p224_p7 }
  0x1b   : > { %s231_s5 = sand.u32 (!%p225_p8), 1, %s1593_s15   ;;  %s1155_s6 = sshll.u32 (!%p225_p8), %s1601_s17, 6 }
  0x1c   : > { %228 = sbr.rel (%p225_p8) target bundleno = 356 (0x164), region = 55  ;;  %s1154_s7 = sshll.u32 (!%p225_p8), %s231_s5, 6 }
  0x1d   : > { %p266_p9 = scmp.lt.s32.totalorder (!%p225_p8), %s1155_s6, 511  ;;  %s1689_s12 = scalar_lea.vmem (!%p225_p8), [#allocation2], %s1154_s7 }
  0x1e   : > { %p1158_p10 = scmp.ne.s32.totalorder (!%p225_p8), %s1601_s17, 0 }
  0x21   : > { %s2066_s6 = smov (!%p266_p9, %s1155_s6), 511  ;;  %282 = sbr.rel (%p1158_p10) target bundleno = 47 (0x2f), region = 63 }
  0x22   : > { %s1453_s8 = sshll.u32 %s2066_s6, 3 }
  0x23   : > { %s1687_s11 = scalar_lea.vmem %s2055_s1, %s1453_s8 }
  0x26   : > { %v1611_v8 = vmov 0.0  }
  0x27   : > { %283 = vst [vmem:[%s2058_s4] sm:$0xff] %v1611_v8 }
  0x28   : > { %284 = vst [vmem:[%s2058_s4 + $0x8] sm:$0xff] %v1611_v8 }
  0x29   : > { %285 = vst [vmem:[%s2058_s4 + $0x10] sm:$0xff] %v1611_v8 }
  0x2a   : > { %286 = vst [vmem:[%s2058_s4 + $0x18] sm:$0xff] %v1611_v8 }
  0x2b   : > { %287 = vst [vmem:[%s2058_s4 + $0x20] sm:$0xff] %v1611_v8 }
  0x2c   : > { %288 = vst [vmem:[%s2058_s4 + $0x28] sm:$0xff] %v1611_v8 }
  0x2d   : > { %289 = vst [vmem:[%s2058_s4 + $0x30] sm:$0xff] %v1611_v8 }
  0x2e   : > { %290 = vst [vmem:[%s2058_s4 + $0x38] sm:$0xff] %v1611_v8 }
  0x2f PF: > { %v1249_v9 = vld [vmem:[%s1687_s11 + $0x70] sm:$0xf]  ;;  %v1477_v10 = vld [vmem:[%s1687_s11 + $0x74] sm:$0xf0]  ;;  %v1241_v20 = vld [vmem:[%s1687_s11 + $0x60] sm:$0xf] }
  0x30   : > { %v1313_v11 = vld [vmem:[%s1687_s11 + $0xf0] sm:$0xf]  ;;  %v1250_v12 = vor.u32 %v1477_v10, %v1249_v9  ;;  %v1493_v13 = vld [vmem:[%s1687_s11 + $0xf4] sm:$0xf0]  ;;  %v1475_v22 = vld [vmem:[%s1687_s11 + $0x64] sm:$0xf0] }
  0x31   : > { %v1377_v14 = vld [vmem:[%s1687_s11 + $0x170] sm:$0xf]  ;;  %v1509_v15 = vld [vmem:[%s1687_s11 + $0x174] sm:$0xf0]  ;;  %v1314_v16 = vor.u32 %v1493_v13, %v1313_v11  ;;  %v1305_v23 = vld [vmem:[%s1687_s11 + $0xe0] sm:$0xf]  ;;  %v1242_v25 = vor.u32 %v1475_v22, %v1241_v20 }
  0x32   : > { %v1378_v17 = vor.u32 %v1509_v15, %v1377_v14  ;;  %v1441_v18 = vld [vmem:[%s1687_s11 + $0x1f0] sm:$0xf]  ;;  %v1525_v19 = vld [vmem:[%s1687_s11 + $0x1f4] sm:$0xf0]  ;;  %731 = vmatpush.bf16.msra.mxu0 %v1250_v12  ;;  %v1491_v24 = vld [vmem:[%s1687_s11 + $0xe4] sm:$0xf0] }
  0x33   : > { %v1442_v21 = vor.u32 %v1525_v19, %v1441_v18  ;;  %750 = vmatpush.bf16.msra.mxu1 %v1314_v16  ;;  %v1306_v26 = vor.u32 %v1491_v24, %v1305_v23  ;;  %v1369_v27 = vld [vmem:[%s1687_s11 + $0x160] sm:$0xf]  ;;  %v1507_v28 = vld [vmem:[%s1687_s11 + $0x164] sm:$0xf0]  ;;  %v1233_v32 = vld [vmem:[%s1687_s11 + $0x50] sm:$0xf] }
  0x34   : > { %769 = vmatpush.bf16.msra.mxu2 %v1378_v17  ;;  %v1433_v29 = vld [vmem:[%s1687_s11 + $0x1e0] sm:$0xf]  ;;  %v1370_v30 = vor.u32 %v1507_v28, %v1369_v27  ;;  %v1523_v31 = vld [vmem:[%s1687_s11 + $0x1e4] sm:$0xf0]  ;;  %v1473_v33 = vld [vmem:[%s1687_s11 + $0x54] sm:$0xf0] }
  0x35   : > { %788 = vmatpush.bf16.msra.mxu3 %v1442_v21  ;;  %v1434_v34 = vor.u32 %v1523_v31, %v1433_v29  ;;  %v1297_v35 = vld [vmem:[%s1687_s11 + $0xd0] sm:$0xf]  ;;  %v1489_v36 = vld [vmem:[%s1687_s11 + $0xd4] sm:$0xf0]  ;;  %v1234_v38 = vor.u32 %v1473_v33, %v1233_v32  ;;  %v1225_v44 = vld [vmem:[%s1687_s11 + $0x40] sm:$0xf] }
  0x36   : > { %v1361_v37 = vld [vmem:[%s1687_s11 + $0x150] sm:$0xf]  ;;  %732 = vmatpush.bf16.msra.mxu0 %v1242_v25  ;;  %v1505_v39 = vld [vmem:[%s1687_s11 + $0x154] sm:$0xf0]  ;;  %v1298_v42 = vor.u32 %v1489_v36, %v1297_v35  ;;  %v1471_v45 = vld [vmem:[%s1687_s11 + $0x44] sm:$0xf0] }
  0x37   : > { %v1425_v40 = vld [vmem:[%s1687_s11 + $0x1d0] sm:$0xf]  ;;  %v1521_v41 = vld [vmem:[%s1687_s11 + $0x1d4] sm:$0xf0]  ;;  %751 = vmatpush.bf16.msra.mxu1 %v1306_v26  ;;  %v1362_v43 = vor.u32 %v1505_v39, %v1361_v37  ;;  %v1289_v46 = vld [vmem:[%s1687_s11 + $0xc0] sm:$0xf]  ;;  %v1226_v53 = vor.u32 %v1471_v45, %v1225_v44 }
  0x38   : > { %770 = vmatpush.bf16.msra.mxu2 %v1370_v30  ;;  %v1426_v47 = vor.u32 %v1521_v41, %v1425_v40  ;;  %v1487_v48 = vld [vmem:[%s1687_s11 + $0xc4] sm:$0xf0]  ;;  %v1353_v49 = vld [vmem:[%s1687_s11 + $0x140] sm:$0xf]  ;;  %v1217_v56 = vld [vmem:[%s1687_s11 + $0x30] sm:$0xf] }
  0x39   : > { %789 = vmatpush.bf16.msra.mxu3 %v1434_v34  ;;  %v1503_v50 = vld [vmem:[%s1687_s11 + $0x144] sm:$0xf0]  ;;  %v1417_v51 = vld [vmem:[%s1687_s11 + $0x1c0] sm:$0xf]  ;;  %v1290_v54 = vor.u32 %v1487_v48, %v1289_v46  ;;  %v1469_v57 = vld [vmem:[%s1687_s11 + $0x34] sm:$0xf0] }
  0x3a   : > { %v1519_v52 = vld [vmem:[%s1687_s11 + $0x1c4] sm:$0xf0]  ;;  %733 = vmatpush.bf16.msra.mxu0 %v1234_v38  ;;  %v1354_v55 = vor.u32 %v1503_v50, %v1353_v49  ;;  %v1281_v58 = vld [vmem:[%s1687_s11 + $0xb0] sm:$0xf]  ;;  %v1485_v60 = vld [vmem:[%s1687_s11 + $0xb4] sm:$0xf0]  ;;  %v1218_v1 = vor.u32 %v1469_v57, %v1217_v56 }
  0x3b   : > { %752 = vmatpush.bf16.msra.mxu1 %v1298_v42  ;;  %v1418_v59 = vor.u32 %v1519_v52, %v1417_v51  ;;  %v1345_v61 = vld [vmem:[%s1687_s11 + $0x130] sm:$0xf]  ;;  %v1501_v62 = vld [vmem:[%s1687_s11 + $0x134] sm:$0xf0]  ;;  %v1282_v2 = vor.u32 %v1485_v60, %v1281_v58  ;;  %v1209_v4 = vld [vmem:[%s1687_s11 + $0x20] sm:$0xf] }
  0x3c   : > { %771 = vmatpush.bf16.msra.mxu2 %v1362_v43  ;;  %v1409_v63 = vld [vmem:[%s1687_s11 + $0x1b0] sm:$0xf]  ;;  %v1517_v0 = vld [vmem:[%s1687_s11 + $0x1b4] sm:$0xf0]  ;;  %v1346_v3 = vor.u32 %v1501_v62, %v1345_v61  ;;  %v1467_v5 = vld [vmem:[%s1687_s11 + $0x24] sm:$0xf0] }
  0x3d   : > { %790 = vmatpush.bf16.msra.mxu3 %v1426_v47  ;;  %v1273_v6 = vld [vmem:[%s1687_s11 + $0xa0] sm:$0xf]  ;;  %v1410_v7 = vor.u32 %v1517_v0, %v1409_v63  ;;  %v1483_v8 = vld [vmem:[%s1687_s11 + $0xa4] sm:$0xf0]  ;;  %v1210_v13 = vor.u32 %v1467_v5, %v1209_v4  ;;  %v1201_v16 = vld [vmem:[%s1687_s11 + $0x10] sm:$0xf] }
  0x3e   : > { %734 = vmatpush.bf16.msra.mxu0 %v1226_v53  ;;  %v1337_v9 = vld [vmem:[%s1687_s11 + $0x120] sm:$0xf]  ;;  %v1499_v10 = vld [vmem:[%s1687_s11 + $0x124] sm:$0xf0]  ;;  %v1274_v14 = vor.u32 %v1483_v8, %v1273_v6  ;;  %v1465_v17 = vld [vmem:[%s1687_s11 + $0x14] sm:$0xf0] }
  0x3f   : > { %753 = vmatpush.bf16.msra.mxu1 %v1290_v54  ;;  %v1401_v11 = vld [vmem:[%s1687_s11 + $0x1a0] sm:$0xf]  ;;  %v1515_v12 = vld [vmem:[%s1687_s11 + $0x1a4] sm:$0xf0]  ;;  %v1338_v15 = vor.u32 %v1499_v10, %v1337_v9  ;;  %v1265_v18 = vld [vmem:[%s1687_s11 + $0x90] sm:$0xf]  ;;  %v1202_v26 = vor.u32 %v1465_v17, %v1201_v16 }
  0x40   : > { %772 = vmatpush.bf16.msra.mxu2 %v1354_v55  ;;  %v1402_v19 = vor.u32 %v1515_v12, %v1401_v11  ;;  %v1481_v20 = vld [vmem:[%s1687_s11 + $0x94] sm:$0xf0]  ;;  %v1329_v21 = vld [vmem:[%s1687_s11 + $0x110] sm:$0xf]  ;;  %v1193_v25 = vld [vmem:[%s1687_s11] sm:$0xf] }
  0x41   : > { %791 = vmatpush.bf16.msra.mxu3 %v1418_v59  ;;  %v1497_v22 = vld [vmem:[%s1687_s11 + $0x114] sm:$0xf0]  ;;  %v1393_v23 = vld [vmem:[%s1687_s11 + $0x190] sm:$0xf]  ;;  %v1463_v27 = vld [vmem:[%s1687_s11 + $0x4] sm:$0xf0]  ;;  %v1266_v30 = vor.u32 %v1481_v20, %v1265_v18 }
  0x42   : > { %735 = vmatpush.bf16.msra.mxu0 %v1218_v1  ;;  %v1513_v24 = vld [vmem:[%s1687_s11 + $0x194] sm:$0xf0]  ;;  %v1257_v28 = vld [vmem:[%s1687_s11 + $0x80] sm:$0xf]  ;;  %v1479_v29 = vld [vmem:[%s1687_s11 + $0x84] sm:$0xf0]  ;;  %v1330_v31 = vor.u32 %v1497_v22, %v1329_v21  ;;  %v1194_v43 = vor.u32 %v1463_v27, %v1193_v25 }
  0x43   : > { %754 = vmatpush.bf16.msra.mxu1 %v1282_v2  ;;  %v1321_v32 = vld [vmem:[%s1687_s11 + $0x100] sm:$0xf]  ;;  %v1495_v33 = vld [vmem:[%s1687_s11 + $0x104] sm:$0xf0]  ;;  %v1394_v35 = vor.u32 %v1513_v24, %v1393_v23  ;;  %v1456_v38 = vld [vmem:[%s1689_s12 + $0xc] sm:$0xf0]  ;;  %v1258_v47 = vor.u32 %v1479_v29, %v1257_v28 }
  0x44   : > { %773 = vmatpush.bf16.msra.mxu2 %v1346_v3  ;;  %v1385_v34 = vld [vmem:[%s1687_s11 + $0x180] sm:$0xf]  ;;  %v1511_v36 = vld [vmem:[%s1687_s11 + $0x184] sm:$0xf0]  ;;  %v1454_v39 = vld [vmem:[%s1689_s12 + $0x4] sm:$0xf]  ;;  %v1322_v48 = vor.u32 %v1495_v33, %v1321_v32 }
  0x45   : > { %792 = vmatpush.bf16.msra.mxu3 %v1410_v7  ;;  %v1161_v37 = vld [vmem:[%s1689_s12] sm:$0xf]  ;;  %v1163_v40 = vld [vmem:[%s1689_s12 + $0x10] sm:$0xf0]  ;;  %v1379_v42 = vld [vmem:[%s1687_s11 + $0x178] sm:$0xf0]  ;;  %v1386_v52 = vor.u32 %v1511_v36, %v1385_v34 }
  0x46   : > { %736 = vmatpush.bf16.msra.mxu0 %v1210_v13  ;;  %v1508_v41 = vld [vmem:[%s1687_s11 + $0x174] sm:$0xf]  ;;  %v1169_v44 = vld [vmem:[%s1689_s12 + $0x8] sm:$0xf]  ;;  %v1315_v46 = vld [vmem:[%s1687_s11 + $0xf8] sm:$0xf0]  ;;  %v1795_v57 = vor.u32 %v1456_v38, %v1161_v37  ;;  %v1800_v62 = vor.u32 %v1454_v39, %v1163_v40 }
  0x47   : > { %755 = vmatpush.bf16.msra.mxu1 %v1274_v14  ;;  %v1492_v45 = vld [vmem:[%s1687_s11 + $0xf4] sm:$0xf]  ;;  %v1457_v49 = vld [vmem:[%s1689_s12 + $0x14] sm:$0xf0]  ;;  %v1455_v50 = vld [vmem:[%s1689_s12 + $0xc] sm:$0xf]  ;;  %v1382_v53 = vor.u32 %v1508_v41, %v1379_v42 }
  0x48   : > { %774 = vmatpush.bf16.msra.mxu2 %v1338_v15  ;;  %v1171_v51 = vld [vmem:[%s1689_s12 + $0x18] sm:$0xf0]  ;;  %v1476_v54 = vld [vmem:[%s1687_s11 + $0x74] sm:$0xf]  ;;  %v1318_v58 = vor.u32 %v1492_v45, %v1315_v46  ;;  %v1506_v60 = vld [vmem:[%s1687_s11 + $0x164] sm:$0xf]  ;;  %v1802_v63 = vor.u32 %v1457_v49, %v1169_v44 }
  0x49   : > { %793 = vmatpush.bf16.msra.mxu3 %v1402_v19  ;;  %v1251_v55 = vld [vmem:[%s1687_s11 + $0x78] sm:$0xf0]  ;;  %v1524_v56 = vld [vmem:[%s1687_s11 + $0x1f4] sm:$0xf]  ;;  %v1371_v61 = vld [vmem:[%s1687_s11 + $0x168] sm:$0xf0]  ;;  %v1806_v2 = vor.u32 %v1455_v50, %v1171_v51 }
  0x4a   : > { %737 = vmatpush.bf16.msra.mxu0 %v1202_v26  ;;  %v1443_v59 = vld [vmem:[%s1687_s11 + $0x1f8] sm:$0xf0]  ;;  %v1490_v0 = vld [vmem:[%s1687_s11 + $0xe4] sm:$0xf]  ;;  %v1307_v1 = vld [vmem:[%s1687_s11 + $0xe8] sm:$0xf0]  ;;  %v1254_v3 = vor.u32 %v1476_v54, %v1251_v55  ;;  %v1374_v5 = vor.u32 %v1506_v60, %v1371_v61 }
  0x4b   : > { %756 = vmatpush.bf16.msra.mxu1 %v1266_v30  ;;  %v1446_v4 = vor.u32 %v1524_v56, %v1443_v59  ;;  %v1474_v6 = vld [vmem:[%s1687_s11 + $0x64] sm:$0xf]  ;;  %v1243_v7 = vld [vmem:[%s1687_s11 + $0x68] sm:$0xf0]  ;;  %v1310_v9 = vor.u32 %v1490_v0, %v1307_v1  ;;  %v1504_v11 = vld [vmem:[%s1687_s11 + $0x154] sm:$0xf] }
  0x4c   : > { %775 = vmatpush.bf16.msra.mxu2 %v1330_v31  ;;  %v1522_v8 = vld [vmem:[%s1687_s11 + $0x1e4] sm:$0xf]  ;;  %v1435_v10 = vld [vmem:[%s1687_s11 + $0x1e8] sm:$0xf0]  ;;  %v1363_v12 = vld [vmem:[%s1687_s11 + $0x158] sm:$0xf0]  ;;  %v1246_v15 = vor.u32 %v1474_v6, %v1243_v7 }
  0x4d   : > { %794 = vmatpush.bf16.msra.mxu3 %v1394_v35  ;;  %v1488_v13 = vld [vmem:[%s1687_s11 + $0xd4] sm:$0xf]  ;;  %v1299_v14 = vld [vmem:[%s1687_s11 + $0xd8] sm:$0xf0]  ;;  %v1438_v16 = vor.u32 %v1522_v8, %v1435_v10  ;;  %v1366_v17 = vor.u32 %v1504_v11, %v1363_v12  ;;  %v1502_v23 = vld [vmem:[%s1687_s11 + $0x144] sm:$0xf] }
  0x4e   : > { %738 = vmatpush.bf16.msra.mxu0 %v1194_v43  ;;  %v1472_v18 = vld [vmem:[%s1687_s11 + $0x54] sm:$0xf]  ;;  %v1235_v19 = vld [vmem:[%s1687_s11 + $0x58] sm:$0xf0]  ;;  %v1302_v21 = vor.u32 %v1488_v13, %v1299_v14  ;;  %v1355_v24 = vld [vmem:[%s1687_s11 + $0x148] sm:$0xf0] }
  0x4f   : > { %757 = vmatpush.bf16.msra.mxu1 %v1258_v47  ;;  %v1520_v20 = vld [vmem:[%s1687_s11 + $0x1d4] sm:$0xf]  ;;  %v1427_v22 = vld [vmem:[%s1687_s11 + $0x1d8] sm:$0xf0]  ;;  %v1486_v25 = vld [vmem:[%s1687_s11 + $0xc4] sm:$0xf]  ;;  %v1238_v27 = vor.u32 %v1472_v18, %v1235_v19  ;;  %v1358_v32 = vor.u32 %v1502_v23, %v1355_v24 }
  0x50   : > { %776 = vmatpush.bf16.msra.mxu2 %v1322_v48  ;;  %v1291_v26 = vld [vmem:[%s1687_s11 + $0xc8] sm:$0xf0]  ;;  %v1470_v28 = vld [vmem:[%s1687_s11 + $0x44] sm:$0xf]  ;;  %v1430_v31 = vor.u32 %v1520_v20, %v1427_v22  ;;  %v1177_v34 = vld [vmem:[%s1689_s12 + $0x20] sm:$0xf] }
  0x51   : > { %795 = vmatpush.bf16.msra.mxu3 %v1386_v52  ;;  %739 = vmatmul.bf16.vlgmr.msra.gmra.mxu0 %v1795_v57  ;;  %v1227_v29 = vld [vmem:[%s1687_s11 + $0x48] sm:$0xf0]  ;;  %v1518_v30 = vld [vmem:[%s1687_s11 + $0x1c4] sm:$0xf]  ;;  %v1460_v35 = vld [vmem:[%s1689_s12 + $0x2c] sm:$0xf0]  ;;  %v1294_v36 = vor.u32 %v1486_v25, %v1291_v26 }
  0x52   : > { %758 = vmatmul.bf16.vlgmr.msra.gmra.mxu1 %v1800_v62  ;;  %807 = vmatpush.bf16.msrb.mxu0 %v1254_v3  ;;  %v1419_v33 = vld [vmem:[%s1687_s11 + $0x1c8] sm:$0xf0]  ;;  %v1458_v37 = vld [vmem:[%s1689_s12 + $0x24] sm:$0xf]  ;;  %v1179_v38 = vld [vmem:[%s1689_s12 + $0x30] sm:$0xf0]  ;;  %v1230_v44 = vor.u32 %v1470_v28, %v1227_v29 }
  0x53   : > { %826 = vmatpush.bf16.msrb.mxu1 %v1318_v58  ;;  %777 = vmatmul.bf16.vlgmr.msra.gmra.mxu2 %v1802_v63  ;;  %v1500_v39 = vld [vmem:[%s1687_s11 + $0x134] sm:$0xf]  ;;  %v1347_v40 = vld [vmem:[%s1687_s11 + $0x138] sm:$0xf0]  ;;  %v1185_v41 = vld [vmem:[%s1689_s12 + $0x28] sm:$0xf]  ;;  %v1422_v48 = vor.u32 %v1518_v30, %v1419_v33  ;;  %v1852_v59 = vor.u32 %v1458_v37, %v1179_v38 }
  0x54   : > { %845 = vmatpush.bf16.msrb.mxu2 %v1382_v53  ;;  %796 = vmatmul.bf16.vlgmr.msra.gmra.mxu3 %v1806_v2  ;;  %v1484_v42 = vld [vmem:[%s1687_s11 + $0xb4] sm:$0xf]  ;;  %v1283_v43 = vld [vmem:[%s1687_s11 + $0xb8] sm:$0xf0]  ;;  %v1461_v45 = vld [vmem:[%s1689_s12 + $0x34] sm:$0xf0]  ;;  %v1350_v49 = vor.u32 %v1500_v39, %v1347_v40  ;;  %v1847_v53 = vor.u32 %v1460_v35, %v1177_v34 }
  0x55   : > { %864 = vmatpush.bf16.msrb.mxu3 %v1446_v4  ;;  %v1459_v46 = vld [vmem:[%s1689_s12 + $0x2c] sm:$0xf]  ;;  %v1187_v47 = vld [vmem:[%s1689_s12 + $0x38] sm:$0xf0]  ;;  %v1468_v50 = vld [vmem:[%s1687_s11 + $0x34] sm:$0xf]  ;;  %v1286_v54 = vor.u32 %v1484_v42, %v1283_v43  ;;  %v1854_v60 = vor.u32 %v1461_v45, %v1185_v41 }
  0x56   : > { %808 = vmatpush.bf16.msrb.mxu0 %v1246_v15  ;;  %v1219_v51 = vld [vmem:[%s1687_s11 + $0x38] sm:$0xf0]  ;;  %v1516_v52 = vld [vmem:[%s1687_s11 + $0x1b4] sm:$0xf]  ;;  %v1498_v56 = vld [vmem:[%s1687_s11 + $0x124] sm:$0xf]  ;;  %v1190_v1 = vor.u32 %v1459_v46, %v1187_v47 }
  0x57   : > { %827 = vmatpush.bf16.msrb.mxu1 %v1310_v9  ;;  %v1411_v55 = vld [vmem:[%s1687_s11 + $0x1b8] sm:$0xf0]  ;;  %v1339_v58 = vld [vmem:[%s1687_s11 + $0x128] sm:$0xf0]  ;;  %v1482_v61 = vld [vmem:[%s1687_s11 + $0xa4] sm:$0xf]  ;;  %v1222_v3 = vor.u32 %v1468_v50, %v1219_v51 }
  0x58   : > { %846 = vmatpush.bf16.msrb.mxu2 %v1374_v5  ;;  %v1275_v0 = vld [vmem:[%s1687_s11 + $0xa8] sm:$0xf0]  ;;  %v1414_v4 = vor.u32 %v1516_v52, %v1411_v55  ;;  %v1342_v5 = vor.u32 %v1498_v56, %v1339_v58  ;;  %v1466_v6 = vld [vmem:[%s1687_s11 + $0x24] sm:$0xf]  ;;  %v1496_v11 = vld [vmem:[%s1687_s11 + $0x114] sm:$0xf] }
  0x59   : > { %865 = vmatpush.bf16.msrb.mxu3 %v1438_v16  ;;  %v1211_v7 = vld [vmem:[%s1687_s11 + $0x28] sm:$0xf0]  ;;  %v1514_v8 = vld [vmem:[%s1687_s11 + $0x1a4] sm:$0xf]  ;;  %v1278_v9 = vor.u32 %v1482_v61, %v1275_v0  ;;  %v1331_v12 = vld [vmem:[%s1687_s11 + $0x118] sm:$0xf0] }
  0x5a   : > { %809 = vmatpush.bf16.msrb.mxu0 %v1238_v27  ;;  %v1403_v10 = vld [vmem:[%s1687_s11 + $0x1a8] sm:$0xf0]  ;;  %v1480_v13 = vld [vmem:[%s1687_s11 + $0x94] sm:$0xf]  ;;  %v1267_v14 = vld [vmem:[%s1687_s11 + $0x98] sm:$0xf0]  ;;  %v1214_v15 = vor.u32 %v1466_v6, %v1211_v7 }
  0x5b   : > { %828 = vmatpush.bf16.msrb.mxu1 %v1302_v21  ;;  %v1406_v16 = vor.u32 %v1514_v8, %v1403_v10  ;;  %v1464_v18 = vld [vmem:[%s1687_s11 + $0x14] sm:$0xf]  ;;  %v1203_v19 = vld [vmem:[%s1687_s11 + $0x18] sm:$0xf0]  ;;  %v1270_v21 = vor.u32 %v1480_v13, %v1267_v14  ;;  %v1494_v23 = vld [vmem:[%s1687_s11 + $0x104] sm:$0xf] }
  0x5c   : > { %847 = vmatpush.bf16.msrb.mxu2 %v1366_v17  ;;  %v1334_v17 = vor.u32 %v1496_v11, %v1331_v12  ;;  %v1512_v20 = vld [vmem:[%s1687_s11 + $0x194] sm:$0xf]  ;;  %v1395_v22 = vld [vmem:[%s1687_s11 + $0x198] sm:$0xf0]  ;;  %v1323_v24 = vld [vmem:[%s1687_s11 + $0x108] sm:$0xf0]  ;;  %v1206_v27 = vor.u32 %v1464_v18, %v1203_v19 }
  0x5d   : > { %866 = vmatpush.bf16.msrb.mxu3 %v1430_v31  ;;  %v1478_v25 = vld [vmem:[%s1687_s11 + $0x84] sm:$0xf]  ;;  %v1259_v26 = vld [vmem:[%s1687_s11 + $0x88] sm:$0xf0]  ;;  %v1398_v28 = vor.u32 %v1512_v20, %v1395_v22  ;;  %v1326_v29 = vor.u32 %v1494_v23, %v1323_v24  ;;  %v297_v6 = vld [vmem:[%s2058_s4 + $0x30] sm:$0xff]  ;;  %p1447_p11 = scmp.ne.s32.totalorder %s1601_s17, 7 }
  0x5e   : > { %810 = vmatpush.bf16.msrb.mxu0 %v1230_v44  ;;  %v1462_v30 = vld [vmem:[%s1687_s11 + $0x4] sm:$0xf]  ;;  %v1195_v31 = vld [vmem:[%s1687_s11 + $0x8] sm:$0xf0]  ;;  %v294_v24 = vld [vmem:[%s2058_s4 + $0x18] sm:$0xff] }
  0x5f   : > { %829 = vmatpush.bf16.msrb.mxu1 %v1294_v36  ;;  %v1510_v33 = vld [vmem:[%s1687_s11 + $0x184] sm:$0xf]  ;;  %v1387_v34 = vld [vmem:[%s1687_s11 + $0x188] sm:$0xf0]  ;;  %v1198_v35 = vor.u32 %v1462_v30, %v1195_v31 }
  0x60   : > { %848 = vmatpush.bf16.msrb.mxu2 %v1358_v32  ;;  %v1262_v32 = vor.u32 %v1478_v25, %v1259_v26  ;;  %v1390_v36 = vor.u32 %v1510_v33, %v1387_v34  ;;  %v296_v33 = vld [vmem:[%s2058_s4 + $0x28] sm:$0xff] }
  0x61   : > { %867 = vmatpush.bf16.msrb.mxu3 %v1422_v48  ;;  %744 = vmatmul.bf16.gmra.mxu0 %v1847_v53 }
  0x62   : > { %763 = vmatmul.bf16.gmra.mxu1 %v1852_v59  ;;  %811 = vmatpush.bf16.msrb.mxu0 %v1222_v3 }
  0x63   : > { %830 = vmatpush.bf16.msrb.mxu1 %v1286_v54  ;;  %782 = vmatmul.bf16.gmra.mxu2 %v1854_v60 }
  0x64   : > { %849 = vmatpush.bf16.msrb.mxu2 %v1350_v49  ;;  %801 = vmatmul.bf16.gmra.mxu3 %v1190_v1  ;;  %v293_v49 = vld [vmem:[%s2058_s4 + $0x10] sm:$0xff] }
  0x65   : > { %868 = vmatpush.bf16.msrb.mxu3 %v1414_v4 }
  0x66   : > { %812 = vmatpush.bf16.msrb.mxu0 %v1214_v15 }
  0x67   : > { %831 = vmatpush.bf16.msrb.mxu1 %v1278_v9 }
  0x68   : > { %850 = vmatpush.bf16.msrb.mxu2 %v1342_v5 }
  0x69   : > { %869 = vmatpush.bf16.msrb.mxu3 %v1406_v16 }
  0x6a   : > { %813 = vmatpush.bf16.msrb.mxu0 %v1206_v27 }
  0x6b   : > { %832 = vmatpush.bf16.msrb.mxu1 %v1270_v21 }
  0x6c   : > { %851 = vmatpush.bf16.msrb.mxu2 %v1334_v17  ;;  %v292_v17 = vld [vmem:[%s2058_s4 + $0x8] sm:$0xff] }
  0x6d   : > { %870 = vmatpush.bf16.msrb.mxu3 %v1398_v28 }
  0x6e   : > { %814 = vmatpush.bf16.msrb.mxu0 %v1198_v35 }
  0x6f   : > { %833 = vmatpush.bf16.msrb.mxu1 %v1262_v32 }
  0x70   : > { %852 = vmatpush.bf16.msrb.mxu2 %v1326_v29 }
  0x71   : > { %871 = vmatpush.bf16.msrb.mxu3 %v1390_v36  ;;  %815 = vmatmul.bf16.vlgmr.msrb.gmra.mxu0 %v1795_v57 }
  0x72   : > { %834 = vmatmul.bf16.vlgmr.msrb.gmra.mxu1 %v1800_v62  ;;  %v291_v62 = vld [vmem:[%s2058_s4] sm:$0xff] }
  0x73   : > { %853 = vmatmul.bf16.vlgmr.msrb.gmra.mxu2 %v1802_v63 }
  0x74   : > { %872 = vmatmul.bf16.vlgmr.msrb.gmra.mxu3 %v1806_v2 }
  0x81   : > { %820 = vmatmul.bf16.gmra.mxu0 %v1847_v53 }
  0x82   : > { %839 = vmatmul.bf16.gmra.mxu1 %v1852_v59  ;;  %v295_v59 = vld [vmem:[%s2058_s4 + $0x20] sm:$0xff] }
  0x83   : > { %858 = vmatmul.bf16.gmra.mxu2 %v1854_v60 }
  0x84   : > { %877 = vmatmul.bf16.gmra.mxu3 %v1190_v1 }
  0xce   : > { %v740_v37 = vpop.f32.mrf.mxu0 }
  0xcf   : > { %v759_v38 = vpop.f32.mrf.mxu1 }
  0xd0   : > { %v760_v39 = vadd.f32 %v759_v38, %v740_v37 }
  0xd6   : > { %v778_v40 = vpop.f32.mrf.mxu2  ;;  %v742_v57 = vpop.f32.mrf.mxu0 }
  0xd7   : > { %v779_v41 = vadd.f32 %v778_v40, %v760_v39  ;;  %v797_v42 = vpop.f32.mrf.mxu3  ;;  %v761_v63 = vpop.f32.mrf.mxu1 }
  0xd8   : > { %v762_v44 = vadd.f32 %v761_v63, %v742_v57 }
  0xd9   : > { %v798_v2 = vadd.f32 %v797_v42, %v779_v41  ;;  %v298_v41 = vld [vmem:[%s2058_s4 + $0x38] sm:$0xff] }
  0xdb   : > { %v883_v43 = vadd.f32 %v798_v2, %v291_v62 }
  0xdd   : > { %891 = vst [vmem:[%s2058_s4] sm:$0xff] %v883_v43 }
  0xde   : > { %v780_v45 = vpop.f32.mrf.mxu2  ;;  %v745_v48 = vpop.f32.mrf.mxu0 }
  0xdf   : > { %v781_v46 = vadd.f32 %v780_v45, %v762_v44  ;;  %v799_v47 = vpop.f32.mrf.mxu3  ;;  %v764_v50 = vpop.f32.mrf.mxu1 }
  0xe0   : > { %v765_v53 = vadd.f32 %v764_v50, %v745_v48 }
  0xe1   : > { %v800_v51 = vadd.f32 %v799_v47, %v781_v46 }
  0xe3   : > { %v885_v52 = vadd.f32 %v800_v51, %v293_v49 }
  0xe5   : > { %893 = vst [vmem:[%s2058_s4 + $0x10] sm:$0xff] %v885_v52 }
  0xe6   : > { %v783_v54 = vpop.f32.mrf.mxu2  ;;  %v747_v58 = vpop.f32.mrf.mxu0 }
  0xe7   : > { %v784_v55 = vadd.f32 %v783_v54, %v765_v53  ;;  %v802_v56 = vpop.f32.mrf.mxu3  ;;  %v766_v60 = vpop.f32.mrf.mxu1 }
  0xe8   : > { %v767_v1 = vadd.f32 %v766_v60, %v747_v58 }
  0xe9   : > { %v803_v61 = vadd.f32 %v802_v56, %v784_v55 }
  0xeb   : > { %v887_v0 = vadd.f32 %v803_v61, %v295_v59 }
  0xed   : > { %895 = vst [vmem:[%s2058_s4 + $0x20] sm:$0xff] %v887_v0 }
  0xee   : > { %v785_v3 = vpop.f32.mrf.mxu2  ;;  %v816_v7 = vpop.f32.mrf.mxu0 }
  0xef   : > { %v786_v4 = vadd.f32 %v785_v3, %v767_v1  ;;  %v804_v5 = vpop.f32.mrf.mxu3  ;;  %v835_v8 = vpop.f32.mrf.mxu1 }
  0xf0   : > { %v836_v11 = vadd.f32 %v835_v8, %v816_v7 }
  0xf1   : > { %v805_v9 = vadd.f32 %v804_v5, %v786_v4 }
  0xf3   : > { %v889_v10 = vadd.f32 %v805_v9, %v297_v6 }
  0xf5   : > { %897 = vst [vmem:[%s2058_s4 + $0x30] sm:$0xff] %v889_v10 }
  0xf6   : > { %v854_v12 = vpop.f32.mrf.mxu2  ;;  %v818_v15 = vpop.f32.mrf.mxu0 }
  0xf7   : > { %v873_v13 = vpop.f32.mrf.mxu3  ;;  %v855_v14 = vadd.f32 %v854_v12, %v836_v11  ;;  %v837_v16 = vpop.f32.mrf.mxu1 }
  0xf8   : > { %v838_v20 = vadd.f32 %v837_v16, %v818_v15 }
  0xf9   : > { %v874_v18 = vadd.f32 %v873_v13, %v855_v14 }
  0xfb   : > { %v884_v19 = vadd.f32 %v874_v18, %v292_v17 }
  0xfd   : > { %892 = vst [vmem:[%s2058_s4 + $0x8] sm:$0xff] %v884_v19 }
  0xfe   : > { %v856_v21 = vpop.f32.mrf.mxu2  ;;  %v821_v25 = vpop.f32.mrf.mxu0 }
  0xff   : > { %v875_v22 = vpop.f32.mrf.mxu3  ;;  %v857_v23 = vadd.f32 %v856_v21, %v838_v20  ;;  %v840_v26 = vpop.f32.mrf.mxu1 }
 0x100   : > { %v841_v29 = vadd.f32 %v840_v26, %v821_v25 }
 0x101   : > { %v876_v27 = vadd.f32 %v875_v22, %v857_v23 }
 0x103   : > { %v886_v28 = vadd.f32 %v876_v27, %v294_v24 }
 0x105   : > { %894 = vst [vmem:[%s2058_s4 + $0x18] sm:$0xff] %v886_v28 }
 0x106   : > { %v859_v30 = vpop.f32.mrf.mxu2  ;;  %v823_v35 = vpop.f32.mrf.mxu0 }
 0x107   : > { %v878_v31 = vpop.f32.mrf.mxu3  ;;  %v860_v32 = vadd.f32 %v859_v30, %v841_v29  ;;  %v842_v36 = vpop.f32.mrf.mxu1 }
 0x108   : > { %v843_v38 = vadd.f32 %v842_v36, %v823_v35 }
 0x109   : > { %v879_v34 = vadd.f32 %v878_v31, %v860_v32 }
 0x10b   : > { %v888_v37 = vadd.f32 %v879_v34, %v296_v33 }
 0x10d   : > { %896 = vst [vmem:[%s2058_s4 + $0x28] sm:$0xff] %v888_v37 }
 0x10e   : > { %v861_v39 = vpop.f32.mrf.mxu2 }
 0x10f   : > { %v862_v40 = vadd.f32 %v861_v39, %v843_v38  ;;  %v880_v42 = vpop.f32.mrf.mxu3 }
 0x111   : > { %v881_v57 = vadd.f32 %v880_v42, %v862_v40  ;;  %902 = sbr.rel (%p1447_p11) target bundleno = 356 (0x164), region = 67 }
 0x113   : > { %v890_v62 = vadd.f32 %v881_v57, %v298_v41 }
 0x115   : > { %898 = vst [vmem:[%s2058_s4 + $0x38] sm:$0xff] %v890_v62 }
 0x116   : > { %v1940_v63 = vld [vmem:[%s2058_s4] sm:$0xff]  ;;  %v1945_v2 = vld [vmem:[%s2058_s4 + $0x8] sm:$0xff]  ;;  %v1950_v43 = vld [vmem:[%s2058_s4 + $0x10] sm:$0xff]  ;;  %vm991_vm6 = vcmask 1040384  }
 0x117   : > { %v1955_v44 = vld [vmem:[%s2058_s4 + $0x18] sm:$0xff]  ;;  %v1960_v45 = vld [vmem:[%s2058_s4 + $0x20] sm:$0xff]  ;;  %v1965_v46 = vld [vmem:[%s2058_s4 + $0x28] sm:$0xff]  ;;  %v911_v47 = vadd.f32 %v1950_v43, %v1940_v63  ;;  %v931_v48 = vmul.f32 %v1940_v63, %v1940_v63  ;;  %v932_v49 = vmul.f32 %v1945_v2, %v1945_v2  ;;  %v933_v50 = vmul.f32 %v1950_v43, %v1950_v43 }
 0x118   : > { %v1978_v51 = vld [vmem:[%s2058_s4 + $0x30] sm:$0xff]  ;;  %v920_v53 = vadd.f32 %v1955_v44, %v1945_v2  ;;  %v934_v54 = vmul.f32 %v1955_v44, %v1955_v44  ;;  %v935_v55 = vmul.f32 %v1960_v45, %v1960_v45  ;;  %v936_v56 = vmul.f32 %v1965_v46, %v1965_v46 }
 0x119   : > { %v912_v58 = vadd.f32 %v911_v47, %v1960_v45  ;;  %v937_v59 = vmul.f32 %v1978_v51, %v1978_v51  ;;  %v939_v60 = vadd.f32 %v933_v50, %v931_v48 }
 0x11a   : > { %v921_v61 = vadd.f32 %v920_v53, %v1965_v46  ;;  %v948_v1 = vadd.f32 %v934_v54, %v932_v49 }
 0x11b   : > { %v913_v3 = vadd.f32 %v912_v58, %v1978_v51  ;;  %v940_v4 = vadd.f32 %v939_v60, %v935_v55 }
 0x11c   : > { %v1983_v52 = vld [vmem:[%s2058_s4 + $0x38] sm:$0xff]  ;;  %v949_v6 = vadd.f32 %v948_v1, %v936_v56 }
 0x11d   : > { %v938_v0 = vmul.f32 %v1983_v52, %v1983_v52  ;;  %v922_v5 = vadd.f32 %v921_v61, %v1983_v52  ;;  %v914_v7 = vrot.slane %v913_v3, 4  ;;  %v941_v8 = vadd.f32 %v940_v4, %v937_v59 }
 0x11f   : > { %v923_v9 = vrot.slane %v922_v5, 4  ;;  %v950_v10 = vadd.f32 %v949_v6, %v938_v0  ;;  %v915_v11 = vadd.f32 %v914_v7, %v913_v3  ;;  %v942_v12 = vrot.slane %v941_v8, 4  ;;  %v965_v3 = vld [vmem:[%s2056_s2] sm:$0x3] }
 0x121   : > { %v924_v13 = vadd.f32 %v923_v9, %v922_v5  ;;  %v951_v14 = vrot.slane %v950_v10, 4  ;;  %v916_v15 = vrot.slane %v915_v11, 2  ;;  %v943_v16 = vadd.f32 %v942_v12, %v941_v8 }
 0x123   : > { %v925_v17 = vrot.slane %v924_v13, 2  ;;  %v952_v18 = vadd.f32 %v951_v14, %v950_v10  ;;  %v917_v19 = vadd.f32 %v916_v15, %v915_v11  ;;  %v944_v20 = vrot.slane %v943_v16, 2  ;;  %v995_v11 = vld [vmem:[%s2057_s3] sm:$0x3] }
 0x125   : > { %v926_v21 = vadd.f32 %v925_v17, %v924_v13  ;;  %v953_v22 = vrot.slane %v952_v18, 2  ;;  %v918_v23 = vrot.slane %v917_v19, 1  ;;  %v945_v24 = vadd.f32 %v944_v20, %v943_v16 }
 0x127   : > { %v927_v25 = vrot.slane %v926_v21, 1  ;;  %v954_v26 = vadd.f32 %v953_v22, %v952_v18  ;;  %v919_v27 = vadd.f32 %v918_v23, %v917_v19  ;;  %v946_v28 = vrot.slane %v945_v24, 1 }
 0x129   : > { %v928_v29 = vadd.f32 %v927_v25, %v926_v21  ;;  %v955_v30 = vrot.slane %v954_v26, 1  ;;  %v929_v31 = vmul.f32 0.03125, %v919_v27  ;;  %v947_v32 = vadd.f32 %v946_v28, %v945_v24 }
 0x12b   : > { %v930_v33 = vmul.f32 0.03125, %v928_v29  ;;  %v956_v34 = vadd.f32 %v955_v30, %v954_v26  ;;  %v957_v35 = vmul.f32 0.03125, %v947_v32  ;;  %v959_v36 = vmul.f32 %v929_v31, %v929_v31 }
 0x12d   : > { %v958_v37 = vmul.f32 0.03125, %v956_v34  ;;  %v960_v38 = vmul.f32 %v930_v33, %v930_v33  ;;  %v961_v39 = vsub.f32 %v957_v35, %v959_v36 }
 0x12f   : > { %v962_v40 = vsub.f32 %v958_v37, %v960_v38  ;;  %v963_v41 = vmax.f32 %v961_v39, 0.0 }
 0x131   : > { %v964_v42 = vmax.f32 %v962_v40, 0.0  ;;  %v966_v57 = vadd.f32 1e-05, %v963_v41 }
 0x133   : > { %v967_v62 = vadd.f32 1e-05, %v964_v42  ;;  %1567 = vrsqrt.f32 %v966_v57  ;;  %vm974_vm0 = vweird.f32 %v966_v57 }
 0x135   : > { %1569 = vrsqrt.f32 %v967_v62  ;;  %vm984_vm2 = vweird.f32 %v967_v62 }
 0x139   : > { %v1568_v47 = vpop.eup %1567 }
 0x13a   : > { %v969_v49 = vmul.f32 %v1568_v47, %v966_v57  ;;  %vm975_vm1 = vweird.f32 %v1568_v47 }
 0x13b   : > { %v1570_v48 = vpop.eup %1569  ;;  %vm976_vm4 = vmor %vm974_vm0, %vm975_vm1 }
 0x13c   : > { %v979_v50 = vmul.f32 %v1570_v48, %v967_v62  ;;  %v970_v53 = vmul.f32 %v1568_v47, %v969_v49  ;;  %vm985_vm3 = vweird.f32 %v1570_v48 }
 0x13d   : > { %vm986_vm5 = vmor %vm984_vm2, %vm985_vm3 }
 0x13e   : > { %v980_v54 = vmul.f32 %v1570_v48, %v979_v50  ;;  %v971_v55 = vmul.f32 0.5, %v970_v53 }
 0x140   : > { %v981_v56 = vmul.f32 0.5, %v980_v54  ;;  %v972_v58 = vsub.f32 1.5, %v971_v55 }
 0x142   : > { %v982_v59 = vsub.f32 1.5, %v981_v56  ;;  %v973_v60 = vmul.f32 %v1568_v47, %v972_v58 }
 0x144   : > { %v983_v61 = vmul.f32 %v1570_v48, %v982_v59  ;;  %v977_v0 = vsel %vm976_vm4, %v1568_v47, %v973_v60 }
 0x146   : > { %v987_v1 = vsel %vm986_vm5, %v1570_v48, %v983_v61 }
 0x147   : > { %v990_v4 = vrot.slane %v987_v1, 7 }
 0x149   : > { %v992_v5 = vsel %vm991_vm6, %v977_v0, %v990_v4 }
 0x14a   : > { %v994_v6 = vmul.f32 %v992_v5, %v965_v3 }
 0x14c   : > { %v997_v7 = vperm.slane %v994_v6, 0  ;;  %v998_v8 = vperm.slane %v994_v6, 1 }
 0x14e   : > { %v1001_v9 = vmul.f32 %v997_v7, %v929_v31  ;;  %v1002_v10 = vmul.f32 %v998_v8, %v930_v33  ;;  %v1009_v14 = vmul.f32 %v997_v7, %v1940_v63  ;;  %v1010_v16 = vmul.f32 %v998_v8, %v1945_v2 }
 0x14f   : > { %v1011_v17 = vmul.f32 %v997_v7, %v1950_v43  ;;  %v1012_v18 = vmul.f32 %v998_v8, %v1955_v44  ;;  %v1013_v19 = vmul.f32 %v997_v7, %v1960_v45  ;;  %v1014_v20 = vmul.f32 %v998_v8, %v1965_v46 }
 0x150   : > { %v1005_v12 = vrot.slane %v1002_v10, 7  ;;  %v1015_v21 = vmul.f32 %v997_v7, %v1978_v51  ;;  %v1016_v22 = vmul.f32 %v998_v8, %v1983_v52 }
 0x152   : > { %v1006_v13 = vsel %vm991_vm6, %v1001_v9, %v1005_v12 }
 0x153   : > { %v1008_v15 = vsub.f32 %v995_v11, %v1006_v13 }
 0x155   : > { %v1018_v23 = vperm.slane %v1008_v15, 0  ;;  %v1019_v24 = vperm.slane %v1008_v15, 1 }
 0x157   : > { %v1022_v25 = vadd.f32 %v1018_v23, %v1009_v14  ;;  %v1023_v26 = vadd.f32 %v1019_v24, %v1010_v16  ;;  %v1024_v63 = vadd.f32 %v1018_v23, %v1011_v17  ;;  %v1025_v27 = vadd.f32 %v1019_v24, %v1012_v18 }
 0x158   : > { %v1026_v28 = vadd.f32 %v1018_v23, %v1013_v19  ;;  %v1027_v2 = vadd.f32 %v1019_v24, %v1014_v20  ;;  %v1028_v29 = vadd.f32 %v1018_v23, %v1015_v21  ;;  %v1029_v43 = vadd.f32 %v1019_v24, %v1016_v22 }
 0x159   : > { %vm1030_vm7 = vcmp.gt.f32.partialorder %v1022_v25, 0.0  ;;  %v1038_v44 = vmul.f32 0.2, %v1022_v25  ;;  %vm1031_vm8 = vcmp.gt.f32.partialorder %v1023_v26, 0.0  ;;  %v1039_v45 = vmul.f32 0.2, %v1023_v26 }
 0x15a   : > { %vm1032_vm9 = vcmp.gt.f32.partialorder %v1024_v63, 0.0  ;;  %v1040_v46 = vmul.f32 0.2, %v1024_v63  ;;  %vm1033_vm10 = vcmp.gt.f32.partialorder %v1025_v27, 0.0  ;;  %v1041_v51 = vmul.f32 0.2, %v1025_v27 }
 0x15b   : > { %v1046_v30 = vsel %vm1030_vm7, %v1022_v25, %v1038_v44  ;;  %v1047_v52 = vsel %vm1031_vm8, %v1023_v26, %v1039_v45  ;;  %vm1034_vm11 = vcmp.gt.f32.partialorder %v1026_v28, 0.0  ;;  %v1042_v31 = vmul.f32 0.2, %v1026_v28 }
 0x15c   : > { %1054 = vst [vmem:[%s2058_s4] sm:$0xff] %v1046_v30  ;;  %v1048_v32 = vsel %vm1032_vm9, %v1024_v63, %v1040_v46  ;;  %v1049_v33 = vsel %vm1033_vm10, %v1025_v27, %v1041_v51  ;;  %vm1035_vm12 = vcmp.gt.f32.partialorder %v1027_v2, 0.0  ;;  %v1043_v34 = vmul.f32 0.2, %v1027_v2 }
 0x15d   : > { %1055 = vst [vmem:[%s2058_s4 + $0x8] sm:$0xff] %v1047_v52  ;;  %v1050_v35 = vsel %vm1034_vm11, %v1026_v28, %v1042_v31  ;;  %vm1036_vm13 = vcmp.gt.f32.partialorder %v1028_v29, 0.0  ;;  %v1044_v36 = vmul.f32 0.2, %v1028_v29  ;;  %vm1037_vm14 = vcmp.gt.f32.partialorder %v1029_v43, 0.0 }
 0x15e   : > { %1056 = vst [vmem:[%s2058_s4 + $0x10] sm:$0xff] %v1048_v32  ;;  %v1051_v37 = vsel %vm1035_vm12, %v1027_v2, %v1043_v34  ;;  %v1045_v38 = vmul.f32 0.2, %v1029_v43 }
 0x15f   : > { %1057 = vst [vmem:[%s2058_s4 + $0x18] sm:$0xff] %v1049_v33  ;;  %v1052_v39 = vsel %vm1036_vm13, %v1028_v29, %v1044_v36 }
 0x160   : > { %1058 = vst [vmem:[%s2058_s4 + $0x20] sm:$0xff] %v1050_v35  ;;  %v1053_v40 = vsel %vm1037_vm14, %v1029_v43, %v1045_v38 }
 0x161   : > { %1059 = vst [vmem:[%s2058_s4 + $0x28] sm:$0xff] %v1051_v37 }
 0x162   : > { %1060 = vst [vmem:[%s2058_s4 + $0x30] sm:$0xff] %v1052_v39 }
 0x163   : > { %1061 = vst [vmem:[%s2058_s4 + $0x38] sm:$0xff] %v1053_v40 }
 0x164 PF: > { %s14_s19 = sadd.s32 1, %s1609_s19   ;;  %s2059_s15 = smov %s1597_s16 }
 0x165   : > { %p11_p12 = scmp.ge.s32.totalorder %s14_s19, 10   ;;  %s2060_s16 = smov %s1672_s23 }
 0x166   : > { %s2061_s17 = smov %s1605_s18  ;;  %s2062_s18 = smov %s2064_s20 }
 0x167   :  { %13 = sbr.rel (!%p11_p12) target bundleno = 3 (0x3), region = 105 }

// kernel: _lambda_.10
= control target key start
LH: loop header
LB: loop body
LE: loop exit
PB: predicated region body
PF: predicated region fallthrough
CT: control target
= control target key end

     0   :  { %s2685_s15 = smov 0   ;;  %s2687_s16 = smov 0   ;;  %s3468_s0 = inlined_call_operand.vmem [shape: bf16[32,1024], index: 0, kind: input, shape index: {}]   ;;  %s3469_s1 = inlined_call_operand.vmem [shape: bf16[1024,512], index: 1, kind: input, shape index: {}]   ;;  %s3470_s2 = inlined_call_operand.vmem [shape: f32[1,512], index: 2, kind: input, shape index: {}]   ;;  %s3471_s3 = inlined_call_operand.vmem [shape: f32[1,512], index: 3, kind: input, shape index: {}]   ;;  %s3472_s4 = inlined_call_operand.vmem [shape: f32[32,512], index: 4, kind: output, shape index: {}]  }
   0x1   :  { %s2689_s17 = smov 0   ;;  %s2691_s18 = smov 0  }
   0x2   :  { %s2693_s19 = smov 0  }
   0x3 LB: > { %s23_s20 = sadd.s32 1, %s2653_s18  ;;  %p42_p1 = scmp.ne.s32.totalorder %s2645_s16, %s2641_s15  ;;  %s2657_s19 = sphi %s2693_s19, %s14_s19   ;;  %s2653_s18 = sphi %s2691_s18, %s3478_s18   ;;  %s2649_s17 = sphi %s2689_s17, %s3477_s17   ;;  %s2645_s16 = sphi %s2687_s16, %s3476_s16   ;;  %s2641_s15 = sphi %s2685_s15, %s3475_s15  }
   0x4   : > { %p24_p0 = scmp.ge.s32.totalorder %s23_s20, 2  ;;  %p43_p2 = scmp.eq.s32.totalorder %s2657_s19, 0 }
   0x5   : > { %s35_s22 = sadd.s32 1, %s2645_s16  ;;  %p1873_p5 = scmp.ge.s32.totalorder %s2657_s19, 2 }
   0x6   : > { %s3480_s20 = smov (%p24_p0, %s23_s20), 0  ;;  %p44_p3 = por %p43_p2, %p42_p1 }
   0x7   : > { %s31_s21 = ssub.s32 %s2653_s18, %s3480_s20  ;;  %168 = sbr.rel (%p1873_p5) target bundleno = 24 (0x18), region = 24 }
   0x8   : > { %p33_p4 = scmp.eq.s32.totalorder %s31_s21, 0 }
   0xa   : > { %s2720_s23 = scalar_select %p33_p4, %s2645_s16, %s35_s22  }
   0xc   : > { %171 = sbr.rel (!%p44_p3) target bundleno = 24 (0x18), region = 28  ;;  %s173_s24 = sand.u32 (%p44_p3), 1, %s2645_s16  }
   0xd   : > { %s2432_s25 = sshll.u32 (%p44_p3), %s2653_s18, 4  ;;  %s1874_s26 = sshll.u32 (%p44_p3), %s173_s24, 6 }
   0xe   : > { %s181_s29 = scalar_lea.vmem (%p44_p3), %s3468_s0, %s2432_s25  ;;  %s175_s30 = scalar_lea.vmem (%p44_p3), [#allocation2], %s1874_s26 }
   0xf   : > { %v194_v0 = vld [vmem:[%s181_s29] sm:$0xff] (%p44_p3)  ;;  %v196_v1 = vld [vmem:[%s181_s29 + $0x8] sm:$0xff] (%p44_p3) }
  0x10   : > { %v198_v2 = vld [vmem:[%s181_s29 + $0x20] sm:$0xff] (%p44_p3)  ;;  %195 = vst [vmem:[%s175_s30] sm:$0xff] (%p44_p3), %v194_v0  ;;  %v200_v3 = vld [vmem:[%s181_s29 + $0x28] sm:$0xff] (%p44_p3) }
  0x11   : > { %197 = vst [vmem:[%s175_s30 + $0x8] sm:$0xff] %v196_v1  ;;  %v202_v4 = vld [vmem:[%s181_s29 + $0x40] sm:$0xff]  ;;  %v204_v5 = vld [vmem:[%s181_s29 + $0x48] sm:$0xff] }
  0x12   : > { %199 = vst [vmem:[%s175_s30 + $0x10] sm:$0xff] %v198_v2  ;;  %v206_v6 = vld [vmem:[%s181_s29 + $0x60] sm:$0xff]  ;;  %v208_v7 = vld [vmem:[%s181_s29 + $0x68] sm:$0xff] }
  0x13   : > { %201 = vst [vmem:[%s175_s30 + $0x18] sm:$0xff] %v200_v3 }
  0x14   : > { %203 = vst [vmem:[%s175_s30 + $0x20] sm:$0xff] %v202_v4 }
  0x15   : > { %205 = vst [vmem:[%s175_s30 + $0x28] sm:$0xff] %v204_v5 }
  0x16   : > { %207 = vst [vmem:[%s175_s30 + $0x30] sm:$0xff] %v206_v6 }
  0x17   : > { %209 = vst [vmem:[%s175_s30 + $0x38] sm:$0xff] %v208_v7 }
  0x18 PF: > { %p1877_p6 = scmp.ge.s32.totalorder %s2657_s19, 1  ;;  %p224_p7 = scmp.lt.s32.totalorder %s2657_s19, 3 }
  0x1a   : > { %p225_p8 = pnand %p1877_p6, %p224_p7 }
  0x1b   : > { %s231_s5 = sand.u32 (!%p225_p8), 1, %s2641_s15   ;;  %s1879_s6 = sshll.u32 (!%p225_p8), %s2649_s17, 6 }
  0x1c   : > { %228 = sbr.rel (%p225_p8) target bundleno = 445 (0x1bd), region = 55  ;;  %s1878_s7 = sshll.u32 (!%p225_p8), %s231_s5, 6 }
  0x1d   : > { %p266_p9 = scmp.lt.s32.totalorder (!%p225_p8), %s1879_s6, 127  ;;  %s2737_s12 = scalar_lea.vmem (!%p225_p8), [#allocation2], %s1878_s7 }
  0x1e   : > { %p1882_p10 = scmp.ne.s32.totalorder (!%p225_p8), %s2649_s17, 0 }
  0x21   : > { %s3482_s6 = smov (!%p266_p9, %s1879_s6), 127  ;;  %282 = sbr.rel (%p1882_p10) target bundleno = 55 (0x37), region = 63 }
  0x22   : > { %s2433_s8 = sshll.u32 %s3482_s6, 4 }
  0x23   : > { %s2735_s11 = scalar_lea.vmem %s3469_s1, %s2433_s8 }
  0x26   : > { %v2659_v8 = vmov 0.0  }
  0x27   : > { %283 = vst [vmem:[%s3472_s4] sm:$0xff] %v2659_v8 }
  0x28   : > { %284 = vst [vmem:[%s3472_s4 + $0x8] sm:$0xff] %v2659_v8 }
  0x29   : > { %285 = vst [vmem:[%s3472_s4 + $0x10] sm:$0xff] %v2659_v8 }
  0x2a   : > { %286 = vst [vmem:[%s3472_s4 + $0x18] sm:$0xff] %v2659_v8 }
  0x2b   : > { %287 = vst [vmem:[%s3472_s4 + $0x20] sm:$0xff] %v2659_v8 }
  0x2c   : > { %288 = vst [vmem:[%s3472_s4 + $0x28] sm:$0xff] %v2659_v8 }
  0x2d   : > { %289 = vst [vmem:[%s3472_s4 + $0x30] sm:$0xff] %v2659_v8 }
  0x2e   : > { %290 = vst [vmem:[%s3472_s4 + $0x38] sm:$0xff] %v2659_v8 }
  0x2f   : > { %291 = vst [vmem:[%s3472_s4 + $0x40] sm:$0xff] %v2659_v8 }
  0x30   : > { %292 = vst [vmem:[%s3472_s4 + $0x48] sm:$0xff] %v2659_v8 }
  0x31   : > { %293 = vst [vmem:[%s3472_s4 + $0x50] sm:$0xff] %v2659_v8 }
  0x32   : > { %294 = vst [vmem:[%s3472_s4 + $0x58] sm:$0xff] %v2659_v8 }
  0x33   : > { %295 = vst [vmem:[%s3472_s4 + $0x60] sm:$0xff] %v2659_v8 }
  0x34   : > { %296 = vst [vmem:[%s3472_s4 + $0x68] sm:$0xff] %v2659_v8 }
  0x35   : > { %297 = vst [vmem:[%s3472_s4 + $0x70] sm:$0xff] %v2659_v8 }
  0x36   : > { %298 = vst [vmem:[%s3472_s4 + $0x78] sm:$0xff] %v2659_v8 }
  0x37 PF: > { %v2029_v9 = vld [vmem:[%s2735_s11 + $0xe0] sm:$0xf]  ;;  %v2472_v10 = vld [vmem:[%s2735_s11 + $0xec] sm:$0xf0]  ;;  %p2427_p11 = scmp.ne.s32.totalorder %s2649_s17, 1 }
  0x38   : > { %v2157_v11 = vld [vmem:[%s2735_s11 + $0x1e0] sm:$0xf]  ;;  %v2030_v12 = vor.u32 %v2472_v10, %v2029_v9  ;;  %v2504_v13 = vld [vmem:[%s2735_s11 + $0x1ec] sm:$0xf0] }
  0x39   : > { %v2285_v14 = vld [vmem:[%s2735_s11 + $0x2e0] sm:$0xf]  ;;  %v2536_v15 = vld [vmem:[%s2735_s11 + $0x2ec] sm:$0xf0]  ;;  %v2158_v16 = vor.u32 %v2504_v13, %v2157_v11 }
  0x3a   : > { %v2286_v17 = vor.u32 %v2536_v15, %v2285_v14  ;;  %v2413_v18 = vld [vmem:[%s2735_s11 + $0x3e0] sm:$0xf]  ;;  %v2568_v19 = vld [vmem:[%s2735_s11 + $0x3ec] sm:$0xf0]  ;;  %1131 = vmatpush.bf16.msra.mxu0 %v2030_v12 }
  0x3b   : > { %v2013_v20 = vld [vmem:[%s2735_s11 + $0xc0] sm:$0xf]  ;;  %v2414_v21 = vor.u32 %v2568_v19, %v2413_v18  ;;  %v2468_v22 = vld [vmem:[%s2735_s11 + $0xcc] sm:$0xf0]  ;;  %1150 = vmatpush.bf16.msra.mxu1 %v2158_v16 }
  0x3c   : > { %v2141_v23 = vld [vmem:[%s2735_s11 + $0x1c0] sm:$0xf]  ;;  %v2500_v24 = vld [vmem:[%s2735_s11 + $0x1cc] sm:$0xf0]  ;;  %1169 = vmatpush.bf16.msra.mxu2 %v2286_v17  ;;  %v2014_v25 = vor.u32 %v2468_v22, %v2013_v20 }
  0x3d   : > { %v2142_v26 = vor.u32 %v2500_v24, %v2141_v23  ;;  %v2269_v27 = vld [vmem:[%s2735_s11 + $0x2c0] sm:$0xf]  ;;  %v2532_v28 = vld [vmem:[%s2735_s11 + $0x2cc] sm:$0xf0]  ;;  %1188 = vmatpush.bf16.msra.mxu3 %v2414_v21 }
  0x3e   : > { %v2397_v29 = vld [vmem:[%s2735_s11 + $0x3c0] sm:$0xf]  ;;  %v2270_v30 = vor.u32 %v2532_v28, %v2269_v27  ;;  %v2564_v31 = vld [vmem:[%s2735_s11 + $0x3cc] sm:$0xf0]  ;;  %1132 = vmatpush.bf16.msra.mxu0 %v2014_v25 }
  0x3f   : > { %v1997_v32 = vld [vmem:[%s2735_s11 + $0xa0] sm:$0xf]  ;;  %v2464_v33 = vld [vmem:[%s2735_s11 + $0xac] sm:$0xf0]  ;;  %v2398_v34 = vor.u32 %v2564_v31, %v2397_v29  ;;  %1151 = vmatpush.bf16.msra.mxu1 %v2142_v26 }
  0x40   : > { %v2125_v35 = vld [vmem:[%s2735_s11 + $0x1a0] sm:$0xf]  ;;  %v2496_v36 = vld [vmem:[%s2735_s11 + $0x1ac] sm:$0xf0]  ;;  %v1998_v38 = vor.u32 %v2464_v33, %v1997_v32  ;;  %1170 = vmatpush.bf16.msra.mxu2 %v2270_v30 }
  0x41   : > { %v2253_v37 = vld [vmem:[%s2735_s11 + $0x2a0] sm:$0xf]  ;;  %v2528_v39 = vld [vmem:[%s2735_s11 + $0x2ac] sm:$0xf0]  ;;  %v2126_v42 = vor.u32 %v2496_v36, %v2125_v35  ;;  %1189 = vmatpush.bf16.msra.mxu3 %v2398_v34 }
  0x42   : > { %v2381_v40 = vld [vmem:[%s2735_s11 + $0x3a0] sm:$0xf]  ;;  %v2560_v41 = vld [vmem:[%s2735_s11 + $0x3ac] sm:$0xf0]  ;;  %v2254_v43 = vor.u32 %v2528_v39, %v2253_v37  ;;  %1133 = vmatpush.bf16.msra.mxu0 %v1998_v38  ;;  %v2434_v39 = vld [vmem:[%s2737_s12 + $0x4] sm:$0xf] }
  0x43   : > { %v1981_v44 = vld [vmem:[%s2735_s11 + $0x80] sm:$0xf]  ;;  %v2460_v45 = vld [vmem:[%s2735_s11 + $0x8c] sm:$0xf0]  ;;  %v2382_v47 = vor.u32 %v2560_v41, %v2381_v40  ;;  %1152 = vmatpush.bf16.msra.mxu1 %v2126_v42  ;;  %v1887_v40 = vld [vmem:[%s2737_s12 + $0x10] sm:$0xf0] }
  0x44   : > { %v2109_v46 = vld [vmem:[%s2735_s11 + $0x180] sm:$0xf]  ;;  %v2492_v48 = vld [vmem:[%s2735_s11 + $0x18c] sm:$0xf0]  ;;  %v1982_v53 = vor.u32 %v2460_v45, %v1981_v44  ;;  %1171 = vmatpush.bf16.msra.mxu2 %v2254_v43  ;;  %v2534_v41 = vld [vmem:[%s2735_s11 + $0x2e4] sm:$0xf] }
  0x45   : > { %v2237_v49 = vld [vmem:[%s2735_s11 + $0x280] sm:$0xf]  ;;  %v2524_v50 = vld [vmem:[%s2735_s11 + $0x28c] sm:$0xf0]  ;;  %v2110_v54 = vor.u32 %v2492_v48, %v2109_v46  ;;  %1190 = vmatpush.bf16.msra.mxu3 %v2382_v47  ;;  %v2287_v42 = vld [vmem:[%s2735_s11 + $0x2f0] sm:$0xf0] }
  0x46   : > { %v2365_v51 = vld [vmem:[%s2735_s11 + $0x380] sm:$0xf]  ;;  %v2556_v52 = vld [vmem:[%s2735_s11 + $0x38c] sm:$0xf0]  ;;  %v2238_v55 = vor.u32 %v2524_v50, %v2237_v49  ;;  %1134 = vmatpush.bf16.msra.mxu0 %v1982_v53  ;;  %v1893_v44 = vld [vmem:[%s2737_s12 + $0x8] sm:$0xf]  ;;  %v2290_v53 = vor.u32 %v2534_v41, %v2287_v42 }
  0x47   : > { %v1965_v56 = vld [vmem:[%s2735_s11 + $0x60] sm:$0xf]  ;;  %v2456_v57 = vld [vmem:[%s2735_s11 + $0x6c] sm:$0xf0]  ;;  %v2366_v59 = vor.u32 %v2556_v52, %v2365_v51  ;;  %1153 = vmatpush.bf16.msra.mxu1 %v2110_v54  ;;  %v2502_v45 = vld [vmem:[%s2735_s11 + $0x1e4] sm:$0xf] }
  0x48   : > { %v2093_v58 = vld [vmem:[%s2735_s11 + $0x160] sm:$0xf]  ;;  %v2488_v60 = vld [vmem:[%s2735_s11 + $0x16c] sm:$0xf0]  ;;  %v1966_v1 = vor.u32 %v2456_v57, %v1965_v56  ;;  %1172 = vmatpush.bf16.msra.mxu2 %v2238_v55  ;;  %v2159_v46 = vld [vmem:[%s2735_s11 + $0x1f0] sm:$0xf0] }
  0x49   : > { %v2221_v61 = vld [vmem:[%s2735_s11 + $0x260] sm:$0xf]  ;;  %v2520_v62 = vld [vmem:[%s2735_s11 + $0x26c] sm:$0xf0]  ;;  %v2094_v2 = vor.u32 %v2488_v60, %v2093_v58  ;;  %1191 = vmatpush.bf16.msra.mxu3 %v2366_v59  ;;  %v2437_v49 = vld [vmem:[%s2737_s12 + $0x14] sm:$0xf0]  ;;  %v2162_v58 = vor.u32 %v2502_v45, %v2159_v46 }
  0x4a   : > { %v2349_v63 = vld [vmem:[%s2735_s11 + $0x360] sm:$0xf]  ;;  %v2552_v0 = vld [vmem:[%s2735_s11 + $0x36c] sm:$0xf0]  ;;  %v2222_v3 = vor.u32 %v2520_v62, %v2221_v61  ;;  %1135 = vmatpush.bf16.msra.mxu0 %v1966_v1  ;;  %v2435_v50 = vld [vmem:[%s2737_s12 + $0xc] sm:$0xf]  ;;  %v2872_v62 = vor.u32 %v2434_v39, %v1887_v40 }
  0x4b   : > { %v1949_v4 = vld [vmem:[%s2735_s11 + $0x40] sm:$0xf]  ;;  %v2452_v5 = vld [vmem:[%s2735_s11 + $0x4c] sm:$0xf0]  ;;  %v2350_v7 = vor.u32 %v2552_v0, %v2349_v63  ;;  %1154 = vmatpush.bf16.msra.mxu1 %v2094_v2  ;;  %v1895_v51 = vld [vmem:[%s2737_s12 + $0x18] sm:$0xf0]  ;;  %v2874_v63 = vor.u32 %v2437_v49, %v1893_v44 }
  0x4c   : > { %v2077_v6 = vld [vmem:[%s2735_s11 + $0x140] sm:$0xf]  ;;  %v2484_v8 = vld [vmem:[%s2735_s11 + $0x14c] sm:$0xf0]  ;;  %v1950_v13 = vor.u32 %v2452_v5, %v1949_v4  ;;  %1173 = vmatpush.bf16.msra.mxu2 %v2222_v3  ;;  %v2470_v54 = vld [vmem:[%s2735_s11 + $0xe4] sm:$0xf]  ;;  %v2878_v2 = vor.u32 %v2435_v50, %v1895_v51 }
  0x4d   : > { %v2205_v9 = vld [vmem:[%s2735_s11 + $0x240] sm:$0xf]  ;;  %v2516_v10 = vld [vmem:[%s2735_s11 + $0x24c] sm:$0xf0]  ;;  %v2078_v14 = vor.u32 %v2484_v8, %v2077_v6  ;;  %1192 = vmatpush.bf16.msra.mxu3 %v2350_v7  ;;  %v2031_v55 = vld [vmem:[%s2735_s11 + $0xf0] sm:$0xf0] }
  0x4e   : > { %v2333_v11 = vld [vmem:[%s2735_s11 + $0x340] sm:$0xf]  ;;  %v2548_v12 = vld [vmem:[%s2735_s11 + $0x34c] sm:$0xf0]  ;;  %v2206_v15 = vor.u32 %v2516_v10, %v2205_v9  ;;  %1136 = vmatpush.bf16.msra.mxu0 %v1950_v13  ;;  %v2566_v56 = vld [vmem:[%s2735_s11 + $0x3e4] sm:$0xf]  ;;  %v2034_v3 = vor.u32 %v2470_v54, %v2031_v55 }
  0x4f   : > { %v1933_v16 = vld [vmem:[%s2735_s11 + $0x20] sm:$0xf]  ;;  %v2448_v17 = vld [vmem:[%s2735_s11 + $0x2c] sm:$0xf0]  ;;  %v2334_v19 = vor.u32 %v2548_v12, %v2333_v11  ;;  %1155 = vmatpush.bf16.msra.mxu1 %v2078_v14  ;;  %v2415_v59 = vld [vmem:[%s2735_s11 + $0x3f0] sm:$0xf0] }
  0x50   : > { %v2061_v18 = vld [vmem:[%s2735_s11 + $0x120] sm:$0xf]  ;;  %v2480_v20 = vld [vmem:[%s2735_s11 + $0x12c] sm:$0xf0]  ;;  %v1934_v26 = vor.u32 %v2448_v17, %v1933_v16  ;;  %1174 = vmatpush.bf16.msra.mxu2 %v2206_v15  ;;  %v2530_v60 = vld [vmem:[%s2735_s11 + $0x2c4] sm:$0xf]  ;;  %v2418_v4 = vor.u32 %v2566_v56, %v2415_v59 }
  0x51   : > { %v2189_v21 = vld [vmem:[%s2735_s11 + $0x220] sm:$0xf]  ;;  %v2512_v22 = vld [vmem:[%s2735_s11 + $0x22c] sm:$0xf0]  ;;  %v2062_v30 = vor.u32 %v2480_v20, %v2061_v18  ;;  %1193 = vmatpush.bf16.msra.mxu3 %v2334_v19  ;;  %v2271_v61 = vld [vmem:[%s2735_s11 + $0x2d0] sm:$0xf0] }
  0x52   : > { %v2317_v23 = vld [vmem:[%s2735_s11 + $0x320] sm:$0xf]  ;;  %v2544_v24 = vld [vmem:[%s2735_s11 + $0x32c] sm:$0xf0]  ;;  %v2190_v31 = vor.u32 %v2512_v22, %v2189_v21  ;;  %1137 = vmatpush.bf16.msra.mxu0 %v1934_v26  ;;  %v2498_v0 = vld [vmem:[%s2735_s11 + $0x1c4] sm:$0xf]  ;;  %v2274_v5 = vor.u32 %v2530_v60, %v2271_v61 }
  0x53   : > { %v1917_v25 = vld [vmem:[%s2735_s11] sm:$0xf]  ;;  %v2444_v27 = vld [vmem:[%s2735_s11 + $0xc] sm:$0xf0]  ;;  %v2318_v35 = vor.u32 %v2544_v24, %v2317_v23  ;;  %1156 = vmatpush.bf16.msra.mxu1 %v2062_v30  ;;  %v2143_v1 = vld [vmem:[%s2735_s11 + $0x1d0] sm:$0xf0] }
  0x54   : > { %v2045_v28 = vld [vmem:[%s2735_s11 + $0x100] sm:$0xf]  ;;  %v2476_v29 = vld [vmem:[%s2735_s11 + $0x10c] sm:$0xf0]  ;;  %v1918_v43 = vor.u32 %v2444_v27, %v1917_v25  ;;  %1175 = vmatpush.bf16.msra.mxu2 %v2190_v31  ;;  %v2466_v6 = vld [vmem:[%s2735_s11 + $0xc4] sm:$0xf]  ;;  %v2146_v9 = vor.u32 %v2498_v0, %v2143_v1 }
  0x55   : > { %v2173_v32 = vld [vmem:[%s2735_s11 + $0x200] sm:$0xf]  ;;  %v2508_v33 = vld [vmem:[%s2735_s11 + $0x20c] sm:$0xf0]  ;;  %v2046_v47 = vor.u32 %v2476_v29, %v2045_v28  ;;  %1194 = vmatpush.bf16.msra.mxu3 %v2318_v35  ;;  %v2015_v7 = vld [vmem:[%s2735_s11 + $0xd0] sm:$0xf0] }
  0x56   : > { %v2301_v34 = vld [vmem:[%s2735_s11 + $0x300] sm:$0xf]  ;;  %v2540_v36 = vld [vmem:[%s2735_s11 + $0x30c] sm:$0xf0]  ;;  %v2174_v48 = vor.u32 %v2508_v33, %v2173_v32  ;;  %1138 = vmatpush.bf16.msra.mxu0 %v1918_v43  ;;  %v2562_v8 = vld [vmem:[%s2735_s11 + $0x3c4] sm:$0xf]  ;;  %v2018_v15 = vor.u32 %v2466_v6, %v2015_v7 }
  0x57   : > { %v1885_v37 = vld [vmem:[%s2737_s12] sm:$0xf]  ;;  %v2436_v38 = vld [vmem:[%s2737_s12 + $0xc] sm:$0xf0]  ;;  %v2302_v52 = vor.u32 %v2540_v36, %v2301_v34  ;;  %1157 = vmatpush.bf16.msra.mxu1 %v2046_v47  ;;  %v2399_v10 = vld [vmem:[%s2735_s11 + $0x3d0] sm:$0xf0] }
  0x58   : > { %v2867_v57 = vor.u32 %v2436_v38, %v1885_v37  ;;  %1176 = vmatpush.bf16.msra.mxu2 %v2174_v48  ;;  %v2526_v11 = vld [vmem:[%s2735_s11 + $0x2a4] sm:$0xf]  ;;  %v2255_v12 = vld [vmem:[%s2735_s11 + $0x2b0] sm:$0xf0]  ;;  %v2402_v16 = vor.u32 %v2562_v8, %v2399_v10  ;;  %v1901_v34 = vld [vmem:[%s2737_s12 + $0x20] sm:$0xf] }
  0x59   : > { %1195 = vmatpush.bf16.msra.mxu3 %v2302_v52  ;;  %v2494_v13 = vld [vmem:[%s2735_s11 + $0x1a4] sm:$0xf]  ;;  %v2127_v14 = vld [vmem:[%s2735_s11 + $0x1b0] sm:$0xf0]  ;;  %v2258_v17 = vor.u32 %v2526_v11, %v2255_v12  ;;  %v2440_v35 = vld [vmem:[%s2737_s12 + $0x2c] sm:$0xf0] }
  0x5a   : > { %1139 = vmatmul.bf16.vlgmr.msra.gmra.mxu0 %v2867_v57  ;;  %1158 = vmatmul.bf16.vlgmr.msra.gmra.mxu1 %v2872_v62  ;;  %v2462_v18 = vld [vmem:[%s2735_s11 + $0xa4] sm:$0xf]  ;;  %v1999_v19 = vld [vmem:[%s2735_s11 + $0xb0] sm:$0xf0]  ;;  %v2130_v21 = vor.u32 %v2494_v13, %v2127_v14  ;;  %v1909_v41 = vld [vmem:[%s2737_s12 + $0x28] sm:$0xf] }
  0x5b   : > { %1226 = vmatpush.bf16.msrb.mxu1 %v2162_v58  ;;  %1177 = vmatmul.bf16.vlgmr.msra.gmra.mxu2 %v2874_v63  ;;  %v2558_v20 = vld [vmem:[%s2735_s11 + $0x3a4] sm:$0xf]  ;;  %v2383_v22 = vld [vmem:[%s2735_s11 + $0x3b0] sm:$0xf0]  ;;  %v2002_v27 = vor.u32 %v2462_v18, %v1999_v19  ;;  %v2441_v45 = vld [vmem:[%s2737_s12 + $0x34] sm:$0xf0] }
  0x5c   : > { %1245 = vmatpush.bf16.msrb.mxu2 %v2290_v53  ;;  %1196 = vmatmul.bf16.vlgmr.msra.gmra.mxu3 %v2878_v2  ;;  %v2522_v23 = vld [vmem:[%s2735_s11 + $0x284] sm:$0xf]  ;;  %v2239_v24 = vld [vmem:[%s2735_s11 + $0x290] sm:$0xf0]  ;;  %v2386_v31 = vor.u32 %v2558_v20, %v2383_v22  ;;  %v2439_v46 = vld [vmem:[%s2737_s12 + $0x2c] sm:$0xf]  ;;  %v2919_v53 = vor.u32 %v2440_v35, %v1901_v34  ;;  %v2926_v60 = vor.u32 %v2441_v45, %v1909_v41 }
  0x5d   : > { %1207 = vmatpush.bf16.msrb.mxu0 %v2034_v3  ;;  %1264 = vmatpush.bf16.msrb.mxu3 %v2418_v4  ;;  %v2490_v25 = vld [vmem:[%s2735_s11 + $0x184] sm:$0xf]  ;;  %v2111_v26 = vld [vmem:[%s2735_s11 + $0x190] sm:$0xf0]  ;;  %v2242_v32 = vor.u32 %v2522_v23, %v2239_v24  ;;  %v1911_v47 = vld [vmem:[%s2737_s12 + $0x38] sm:$0xf0] }
  0x5e   : > { %v2458_v28 = vld [vmem:[%s2735_s11 + $0x84] sm:$0xf]  ;;  %v1983_v29 = vld [vmem:[%s2735_s11 + $0x90] sm:$0xf0]  ;;  %v2114_v36 = vor.u32 %v2490_v25, %v2111_v26  ;;  %v2930_v1 = vor.u32 %v2439_v46, %v1911_v47  ;;  %v2473_v41 = vld [vmem:[%s2735_s11 + $0xf4] sm:$0xf0] }
  0x5f   : > { %1227 = vmatpush.bf16.msrb.mxu1 %v2146_v9  ;;  %v2554_v30 = vld [vmem:[%s2735_s11 + $0x384] sm:$0xf]  ;;  %v2367_v33 = vld [vmem:[%s2735_s11 + $0x390] sm:$0xf0]  ;;  %v1986_v44 = vor.u32 %v2458_v28, %v1983_v29  ;;  %v2537_v28 = vld [vmem:[%s2735_s11 + $0x2f4] sm:$0xf0] }
  0x60   : > { %1246 = vmatpush.bf16.msrb.mxu2 %v2274_v5  ;;  %v2438_v37 = vld [vmem:[%s2737_s12 + $0x24] sm:$0xf]  ;;  %v1903_v38 = vld [vmem:[%s2737_s12 + $0x30] sm:$0xf0]  ;;  %v2370_v48 = vor.u32 %v2554_v30, %v2367_v33  ;;  %v2277_v45 = vld [vmem:[%s2735_s11 + $0x2c8] sm:$0xf] }
  0x61   : > { %1208 = vmatpush.bf16.msrb.mxu0 %v2018_v15  ;;  %1265 = vmatpush.bf16.msrb.mxu3 %v2402_v16  ;;  %v2518_v39 = vld [vmem:[%s2735_s11 + $0x264] sm:$0xf]  ;;  %v2223_v40 = vld [vmem:[%s2735_s11 + $0x270] sm:$0xf0]  ;;  %v2924_v59 = vor.u32 %v2438_v37, %v1903_v38  ;;  %v2533_v46 = vld [vmem:[%s2735_s11 + $0x2d4] sm:$0xf0] }
  0x62   : > { %v2486_v42 = vld [vmem:[%s2735_s11 + $0x164] sm:$0xf]  ;;  %v2095_v43 = vld [vmem:[%s2735_s11 + $0x170] sm:$0xf0]  ;;  %v2226_v49 = vor.u32 %v2518_v39, %v2223_v40  ;;  %v2037_v40 = vld [vmem:[%s2735_s11 + $0xe8] sm:$0xf] }
  0x63   : > { %1228 = vmatpush.bf16.msrb.mxu1 %v2130_v21  ;;  %v2454_v50 = vld [vmem:[%s2735_s11 + $0x64] sm:$0xf]  ;;  %v1967_v51 = vld [vmem:[%s2735_s11 + $0x70] sm:$0xf0]  ;;  %v2098_v54 = vor.u32 %v2486_v42, %v2095_v43  ;;  %v2421_v42 = vld [vmem:[%s2735_s11 + $0x3e8] sm:$0xf] }
  0x64   : > { %1247 = vmatpush.bf16.msrb.mxu2 %v2258_v17  ;;  %v2550_v52 = vld [vmem:[%s2735_s11 + $0x364] sm:$0xf]  ;;  %v2351_v55 = vld [vmem:[%s2735_s11 + $0x370] sm:$0xf0]  ;;  %v1970_v3 = vor.u32 %v2454_v50, %v1967_v51  ;;  %v2021_v50 = vld [vmem:[%s2735_s11 + $0xc8] sm:$0xf] }
  0x65   : > { %1209 = vmatpush.bf16.msrb.mxu0 %v2002_v27  ;;  %1266 = vmatpush.bf16.msrb.mxu3 %v2386_v31  ;;  %v2514_v56 = vld [vmem:[%s2735_s11 + $0x244] sm:$0xf]  ;;  %v2207_v58 = vld [vmem:[%s2735_s11 + $0x250] sm:$0xf0]  ;;  %v2354_v4 = vor.u32 %v2550_v52, %v2351_v55  ;;  %v2293_v27 = vld [vmem:[%s2735_s11 + $0x2e8] sm:$0xf] }
  0x66   : > { %v2482_v61 = vld [vmem:[%s2735_s11 + $0x144] sm:$0xf]  ;;  %v2079_v0 = vld [vmem:[%s2735_s11 + $0x150] sm:$0xf0]  ;;  %v2210_v5 = vor.u32 %v2514_v56, %v2207_v58  ;;  %v2165_v31 = vld [vmem:[%s2735_s11 + $0x1e8] sm:$0xf]  ;;  %v2294_v39 = vor.u32 %v2537_v28, %v2293_v27 }
  0x67   : > { %1229 = vmatpush.bf16.msrb.mxu1 %v2114_v36  ;;  %v2450_v6 = vld [vmem:[%s2735_s11 + $0x44] sm:$0xf]  ;;  %v1951_v7 = vld [vmem:[%s2735_s11 + $0x50] sm:$0xf0]  ;;  %v2082_v9 = vor.u32 %v2482_v61, %v2079_v0  ;;  %v2469_v51 = vld [vmem:[%s2735_s11 + $0xd4] sm:$0xf0] }
  0x68   : > { %1248 = vmatpush.bf16.msrb.mxu2 %v2242_v32  ;;  %v2546_v8 = vld [vmem:[%s2735_s11 + $0x344] sm:$0xf]  ;;  %v2335_v10 = vld [vmem:[%s2735_s11 + $0x350] sm:$0xf0]  ;;  %v1954_v15 = vor.u32 %v2450_v6, %v1951_v7  ;;  %v2505_v32 = vld [vmem:[%s2735_s11 + $0x1f4] sm:$0xf0] }
  0x69   : > { %1210 = vmatpush.bf16.msrb.mxu0 %v1986_v44  ;;  %1267 = vmatpush.bf16.msrb.mxu3 %v2370_v48  ;;  %v2510_v11 = vld [vmem:[%s2735_s11 + $0x224] sm:$0xf]  ;;  %v2191_v12 = vld [vmem:[%s2735_s11 + $0x230] sm:$0xf0]  ;;  %v2338_v17 = vor.u32 %v2546_v8, %v2335_v10  ;;  %v2166_v43 = vor.u32 %v2505_v32, %v2165_v31  ;;  %v2569_v44 = vld [vmem:[%s2735_s11 + $0x3f4] sm:$0xf0] }
  0x6a   : > { %1144 = vmatmul.bf16.gmra.mxu0 %v2919_v53  ;;  %1163 = vmatmul.bf16.gmra.mxu1 %v2924_v59  ;;  %v2478_v13 = vld [vmem:[%s2735_s11 + $0x124] sm:$0xf]  ;;  %v2063_v14 = vld [vmem:[%s2735_s11 + $0x130] sm:$0xf0]  ;;  %v2194_v18 = vor.u32 %v2510_v11, %v2191_v12  ;;  %v2422_v52 = vor.u32 %v2569_v44, %v2421_v42  ;;  %v2149_v55 = vld [vmem:[%s2735_s11 + $0x1c8] sm:$0xf] }
  0x6b   : > { %1230 = vmatpush.bf16.msrb.mxu1 %v2098_v54  ;;  %1182 = vmatmul.bf16.gmra.mxu2 %v2926_v60  ;;  %v2446_v16 = vld [vmem:[%s2735_s11 + $0x24] sm:$0xf]  ;;  %v1935_v19 = vld [vmem:[%s2735_s11 + $0x30] sm:$0xf0]  ;;  %v2066_v22 = vor.u32 %v2478_v13, %v2063_v14  ;;  %v2278_v54 = vor.u32 %v2533_v46, %v2277_v45  ;;  %v2501_v56 = vld [vmem:[%s2735_s11 + $0x1d4] sm:$0xf0] }
  0x6c   : > { %1249 = vmatpush.bf16.msrb.mxu2 %v2226_v49  ;;  %1201 = vmatmul.bf16.gmra.mxu3 %v2930_v1  ;;  %v2542_v20 = vld [vmem:[%s2735_s11 + $0x324] sm:$0xf]  ;;  %v2319_v21 = vld [vmem:[%s2735_s11 + $0x330] sm:$0xf0]  ;;  %v1938_v29 = vor.u32 %v2446_v16, %v1935_v19  ;;  %v2038_v49 = vor.u32 %v2473_v41, %v2037_v40  ;;  %v2405_v58 = vld [vmem:[%s2735_s11 + $0x3c8] sm:$0xf] }
  0x6d   : > { %1211 = vmatpush.bf16.msrb.mxu0 %v1970_v3  ;;  %1268 = vmatpush.bf16.msrb.mxu3 %v2354_v4  ;;  %v2506_v23 = vld [vmem:[%s2735_s11 + $0x204] sm:$0xf]  ;;  %v2175_v24 = vld [vmem:[%s2735_s11 + $0x210] sm:$0xf0]  ;;  %v2322_v33 = vor.u32 %v2542_v20, %v2319_v21  ;;  %v2565_v61 = vld [vmem:[%s2735_s11 + $0x3d4] sm:$0xf0]  ;;  %v2022_v4 = vor.u32 %v2469_v51, %v2021_v50 }
  0x6e   : > { %v2474_v25 = vld [vmem:[%s2735_s11 + $0x104] sm:$0xf]  ;;  %v2047_v26 = vld [vmem:[%s2735_s11 + $0x110] sm:$0xf0]  ;;  %v2178_v34 = vor.u32 %v2506_v23, %v2175_v24  ;;  %v2261_v0 = vld [vmem:[%s2735_s11 + $0x2a8] sm:$0xf]  ;;  %v2406_v8 = vor.u32 %v2565_v61, %v2405_v58 }
  0x6f   : > { %1231 = vmatpush.bf16.msrb.mxu1 %v2082_v9  ;;  %v2442_v30 = vld [vmem:[%s2735_s11 + $0x4] sm:$0xf]  ;;  %v1919_v35 = vld [vmem:[%s2735_s11 + $0x10] sm:$0xf0]  ;;  %v2050_v38 = vor.u32 %v2474_v25, %v2047_v26  ;;  %v2529_v3 = vld [vmem:[%s2735_s11 + $0x2b4] sm:$0xf0] }
  0x70   : > { %1250 = vmatpush.bf16.msrb.mxu2 %v2210_v5  ;;  %v2538_v36 = vld [vmem:[%s2735_s11 + $0x304] sm:$0xf]  ;;  %v2303_v37 = vld [vmem:[%s2735_s11 + $0x310] sm:$0xf0]  ;;  %v1922_v47 = vor.u32 %v2442_v30, %v1919_v35  ;;  %v2150_v5 = vor.u32 %v2501_v56, %v2149_v55  ;;  %v2005_v6 = vld [vmem:[%s2735_s11 + $0xa8] sm:$0xf]  ;;  %v2262_v9 = vor.u32 %v2529_v3, %v2261_v0 }
  0x71   : > { %1212 = vmatpush.bf16.msrb.mxu0 %v1954_v15  ;;  %1269 = vmatpush.bf16.msrb.mxu3 %v2338_v17  ;;  %v2306_v48 = vor.u32 %v2538_v36, %v2303_v37  ;;  %v2465_v7 = vld [vmem:[%s2735_s11 + $0xb4] sm:$0xf0]  ;;  %v2133_v10 = vld [vmem:[%s2735_s11 + $0x1a8] sm:$0xf] }
  0x72   : > { %v2497_v11 = vld [vmem:[%s2735_s11 + $0x1b4] sm:$0xf0]  ;;  %v2389_v12 = vld [vmem:[%s2735_s11 + $0x3a8] sm:$0xf]  ;;  %v2006_v16 = vor.u32 %v2465_v7, %v2005_v6 }
  0x73   : > { %1232 = vmatpush.bf16.msrb.mxu1 %v2066_v22  ;;  %v2561_v13 = vld [vmem:[%s2735_s11 + $0x3b4] sm:$0xf0]  ;;  %v2245_v14 = vld [vmem:[%s2735_s11 + $0x288] sm:$0xf]  ;;  %v2134_v17 = vor.u32 %v2497_v11, %v2133_v10 }
  0x74   : > { %1251 = vmatpush.bf16.msrb.mxu2 %v2194_v18  ;;  %v2525_v15 = vld [vmem:[%s2735_s11 + $0x294] sm:$0xf0]  ;;  %v1989_v18 = vld [vmem:[%s2735_s11 + $0x88] sm:$0xf]  ;;  %v2390_v20 = vor.u32 %v2561_v13, %v2389_v12 }
  0x75   : > { %1213 = vmatpush.bf16.msrb.mxu0 %v1938_v29  ;;  %1270 = vmatpush.bf16.msrb.mxu3 %v2322_v33  ;;  %v2461_v19 = vld [vmem:[%s2735_s11 + $0x94] sm:$0xf0]  ;;  %v2246_v21 = vor.u32 %v2525_v15, %v2245_v14  ;;  %v2117_v22 = vld [vmem:[%s2735_s11 + $0x188] sm:$0xf] }
  0x76   : > { %v2493_v23 = vld [vmem:[%s2735_s11 + $0x194] sm:$0xf0]  ;;  %v2373_v24 = vld [vmem:[%s2735_s11 + $0x388] sm:$0xf]  ;;  %v1990_v28 = vor.u32 %v2461_v19, %v1989_v18 }
  0x77   : > { %1233 = vmatpush.bf16.msrb.mxu1 %v2050_v38  ;;  %v2557_v25 = vld [vmem:[%s2735_s11 + $0x394] sm:$0xf0]  ;;  %v2229_v26 = vld [vmem:[%s2735_s11 + $0x268] sm:$0xf]  ;;  %v2118_v29 = vor.u32 %v2493_v23, %v2117_v22  ;;  %v2039_v22 = vld [vmem:[%s2735_s11 + $0xf8] sm:$0xf0] }
  0x78   : > { %1252 = vmatpush.bf16.msrb.mxu2 %v2178_v34  ;;  %v2521_v27 = vld [vmem:[%s2735_s11 + $0x274] sm:$0xf0]  ;;  %v1973_v30 = vld [vmem:[%s2735_s11 + $0x68] sm:$0xf]  ;;  %v2374_v32 = vor.u32 %v2557_v25, %v2373_v24  ;;  %v2503_v23 = vld [vmem:[%s2735_s11 + $0x1ec] sm:$0xf] }
  0x79   : > { %1214 = vmatpush.bf16.msrb.mxu0 %v1922_v47  ;;  %1271 = vmatpush.bf16.msrb.mxu3 %v2306_v48  ;;  %v2457_v31 = vld [vmem:[%s2735_s11 + $0x74] sm:$0xf0]  ;;  %v2230_v33 = vor.u32 %v2521_v27, %v2229_v26  ;;  %v2101_v34 = vld [vmem:[%s2735_s11 + $0x168] sm:$0xf]  ;;  %v2167_v24 = vld [vmem:[%s2735_s11 + $0x1f8] sm:$0xf0] }
  0x7a   : > { %1234 = vmatmul.bf16.vlgmr.msrb.gmra.mxu1 %v2872_v62  ;;  %v2489_v35 = vld [vmem:[%s2735_s11 + $0x174] sm:$0xf0]  ;;  %v2357_v36 = vld [vmem:[%s2735_s11 + $0x368] sm:$0xf]  ;;  %v1974_v40 = vor.u32 %v2457_v31, %v1973_v30  ;;  %v2567_v25 = vld [vmem:[%s2735_s11 + $0x3ec] sm:$0xf] }
  0x7b   : > { %1302 = vmatpush.bf16.msra.mxu1 %v2166_v43  ;;  %1253 = vmatmul.bf16.vlgmr.msrb.gmra.mxu2 %v2874_v63  ;;  %v2553_v37 = vld [vmem:[%s2735_s11 + $0x374] sm:$0xf0]  ;;  %v2213_v38 = vld [vmem:[%s2735_s11 + $0x248] sm:$0xf]  ;;  %v2102_v41 = vor.u32 %v2489_v35, %v2101_v34  ;;  %v2423_v26 = vld [vmem:[%s2735_s11 + $0x3f8] sm:$0xf0] }
  0x7c   : > { %1321 = vmatpush.bf16.msra.mxu2 %v2294_v39  ;;  %1215 = vmatmul.bf16.vlgmr.msrb.gmra.mxu0 %v2867_v57  ;;  %v2517_v39 = vld [vmem:[%s2735_s11 + $0x254] sm:$0xf0]  ;;  %v1957_v42 = vld [vmem:[%s2735_s11 + $0x48] sm:$0xf]  ;;  %v2358_v44 = vor.u32 %v2553_v37, %v2357_v36  ;;  %v2279_v30 = vld [vmem:[%s2735_s11 + $0x2d8] sm:$0xf0]  ;;  %v2426_v34 = vor.u32 %v2567_v25, %v2423_v26 }
  0x7d   : > { %1283 = vmatpush.bf16.msra.mxu0 %v2038_v49  ;;  %1340 = vmatpush.bf16.msra.mxu3 %v2422_v52  ;;  %v2453_v43 = vld [vmem:[%s2735_s11 + $0x54] sm:$0xf0]  ;;  %v2214_v45 = vor.u32 %v2517_v39, %v2213_v38  ;;  %v2085_v46 = vld [vmem:[%s2735_s11 + $0x148] sm:$0xf]  ;;  %v2467_v35 = vld [vmem:[%s2735_s11 + $0xcc] sm:$0xf] }
  0x7e   : > { %1272 = vmatmul.bf16.vlgmr.msrb.gmra.mxu3 %v2878_v2  ;;  %v2485_v47 = vld [vmem:[%s2735_s11 + $0x154] sm:$0xf0]  ;;  %v2341_v48 = vld [vmem:[%s2735_s11 + $0x348] sm:$0xf]  ;;  %v1958_v52 = vor.u32 %v2453_v43, %v1957_v42  ;;  %v2023_v36 = vld [vmem:[%s2735_s11 + $0xd8] sm:$0xf0] }
  0x7f   : > { %1303 = vmatpush.bf16.msra.mxu1 %v2150_v5  ;;  %v2549_v49 = vld [vmem:[%s2735_s11 + $0x354] sm:$0xf0]  ;;  %v2197_v50 = vld [vmem:[%s2735_s11 + $0x228] sm:$0xf]  ;;  %v2499_v38 = vld [vmem:[%s2735_s11 + $0x1cc] sm:$0xf] }
  0x80   : > { %1322 = vmatpush.bf16.msra.mxu2 %v2278_v54  ;;  %v2513_v51 = vld [vmem:[%s2735_s11 + $0x234] sm:$0xf0]  ;;  %v2086_v54 = vor.u32 %v2485_v47, %v2085_v46  ;;  %v1941_v55 = vld [vmem:[%s2735_s11 + $0x28] sm:$0xf]  ;;  %v2342_v58 = vor.u32 %v2549_v49, %v2341_v48  ;;  %v2151_v39 = vld [vmem:[%s2735_s11 + $0x1d8] sm:$0xf0] }
  0x81   : > { %1284 = vmatpush.bf16.msra.mxu0 %v2022_v4  ;;  %1341 = vmatpush.bf16.msra.mxu3 %v2406_v8  ;;  %v2449_v56 = vld [vmem:[%s2735_s11 + $0x34] sm:$0xf0]  ;;  %v2198_v61 = vor.u32 %v2513_v51, %v2197_v50  ;;  %v2069_v0 = vld [vmem:[%s2735_s11 + $0x128] sm:$0xf]  ;;  %v2535_v8 = vld [vmem:[%s2735_s11 + $0x2ec] sm:$0xf]  ;;  %v2154_v47 = vor.u32 %v2499_v38, %v2151_v39 }
  0x82   : > { %v2481_v3 = vld [vmem:[%s2735_s11 + $0x134] sm:$0xf0]  ;;  %v2325_v4 = vld [vmem:[%s2735_s11 + $0x328] sm:$0xf]  ;;  %v1942_v10 = vor.u32 %v2449_v56, %v1941_v55  ;;  %v2407_v42 = vld [vmem:[%s2735_s11 + $0x3d8] sm:$0xf0] }
  0x83   : > { %1304 = vmatpush.bf16.msra.mxu1 %v2134_v17  ;;  %v2545_v5 = vld [vmem:[%s2735_s11 + $0x334] sm:$0xf0]  ;;  %v2181_v6 = vld [vmem:[%s2735_s11 + $0x208] sm:$0xf]  ;;  %v2070_v11 = vor.u32 %v2481_v3, %v2069_v0  ;;  %v2527_v43 = vld [vmem:[%s2735_s11 + $0x2ac] sm:$0xf] }
  0x84   : > { %1323 = vmatpush.bf16.msra.mxu2 %v2262_v9  ;;  %v2509_v7 = vld [vmem:[%s2735_s11 + $0x214] sm:$0xf0]  ;;  %v2295_v9 = vld [vmem:[%s2735_s11 + $0x2f8] sm:$0xf0]  ;;  %v1925_v12 = vld [vmem:[%s2735_s11 + $0x8] sm:$0xf]  ;;  %v2326_v15 = vor.u32 %v2545_v5, %v2325_v4 }
  0x85   : > { %1285 = vmatpush.bf16.msra.mxu0 %v2006_v16  ;;  %1342 = vmatpush.bf16.msra.mxu3 %v2390_v20  ;;  %v2445_v13 = vld [vmem:[%s2735_s11 + $0x14] sm:$0xf0]  ;;  %v2053_v14 = vld [vmem:[%s2735_s11 + $0x108] sm:$0xf]  ;;  %v2182_v16 = vor.u32 %v2509_v7, %v2181_v6  ;;  %v2298_v20 = vor.u32 %v2535_v8, %v2295_v9  ;;  %v2007_v46 = vld [vmem:[%s2735_s11 + $0xb8] sm:$0xf0] }
  0x86   : > { %v2477_v17 = vld [vmem:[%s2735_s11 + $0x114] sm:$0xf0]  ;;  %v2309_v18 = vld [vmem:[%s2735_s11 + $0x308] sm:$0xf]  ;;  %v1926_v27 = vor.u32 %v2445_v13, %v1925_v12  ;;  %v2495_v49 = vld [vmem:[%s2735_s11 + $0x1ac] sm:$0xf] }
  0x87   : > { %1305 = vmatpush.bf16.msra.mxu1 %v2118_v29  ;;  %v2541_v19 = vld [vmem:[%s2735_s11 + $0x314] sm:$0xf0]  ;;  %v2531_v29 = vld [vmem:[%s2735_s11 + $0x2cc] sm:$0xf]  ;;  %v2135_v50 = vld [vmem:[%s2735_s11 + $0x1b8] sm:$0xf0] }
  0x88   : > { %1324 = vmatpush.bf16.msra.mxu2 %v2246_v21  ;;  %v2471_v21 = vld [vmem:[%s2735_s11 + $0xec] sm:$0xf]  ;;  %v2310_v31 = vor.u32 %v2541_v19, %v2309_v18  ;;  %v2282_v37 = vor.u32 %v2531_v29, %v2279_v30  ;;  %v2391_v55 = vld [vmem:[%s2735_s11 + $0x3b8] sm:$0xf0]  ;;  %v2138_v3 = vor.u32 %v2495_v49, %v2135_v50 }
  0x89   : > { %1286 = vmatpush.bf16.msra.mxu0 %v1990_v28  ;;  %1343 = vmatpush.bf16.msra.mxu3 %v2374_v32  ;;  %v2054_v28 = vor.u32 %v2477_v17, %v2053_v14  ;;  %v2042_v32 = vor.u32 %v2471_v21, %v2039_v22  ;;  %v2523_v56 = vld [vmem:[%s2735_s11 + $0x28c] sm:$0xf]  ;;  %v1991_v0 = vld [vmem:[%s2735_s11 + $0x98] sm:$0xf0] }
  0x8a   : > { %1239 = vmatmul.bf16.gmra.mxu1 %v2924_v59  ;;  %v2491_v5 = vld [vmem:[%s2735_s11 + $0x18c] sm:$0xf]  ;;  %v2119_v6 = vld [vmem:[%s2735_s11 + $0x198] sm:$0xf0] }
  0x8b   : > { %1306 = vmatpush.bf16.msra.mxu1 %v2102_v41  ;;  %1258 = vmatmul.bf16.gmra.mxu2 %v2926_v60  ;;  %v2563_v41 = vld [vmem:[%s2735_s11 + $0x3cc] sm:$0xf]  ;;  %v2231_v12 = vld [vmem:[%s2735_s11 + $0x278] sm:$0xf0] }
  0x8c   : > { %1325 = vmatpush.bf16.msra.mxu2 %v2230_v33  ;;  %1220 = vmatmul.bf16.gmra.mxu0 %v2919_v53  ;;  %v2170_v33 = vor.u32 %v2503_v23, %v2167_v24  ;;  %v2410_v48 = vor.u32 %v2563_v41, %v2407_v42  ;;  %v2555_v9 = vld [vmem:[%s2735_s11 + $0x38c] sm:$0xf]  ;;  %v1975_v14 = vld [vmem:[%s2735_s11 + $0x78] sm:$0xf0] }
  0x8d   : > { %1287 = vmatpush.bf16.msra.mxu0 %v1974_v40  ;;  %1344 = vmatpush.bf16.msra.mxu3 %v2358_v44  ;;  %v2026_v40 = vor.u32 %v2467_v35, %v2023_v36  ;;  %v2263_v44 = vld [vmem:[%s2735_s11 + $0x2b8] sm:$0xf0]  ;;  %v2455_v13 = vld [vmem:[%s2735_s11 + $0x6c] sm:$0xf] }
  0x8e   : > { %1277 = vmatmul.bf16.gmra.mxu3 %v2930_v1  ;;  %v2266_v51 = vor.u32 %v2527_v43, %v2263_v44  ;;  %v2487_v17 = vld [vmem:[%s2735_s11 + $0x16c] sm:$0xf]  ;;  %v2103_v18 = vld [vmem:[%s2735_s11 + $0x178] sm:$0xf0] }
  0x8f   : > { %1307 = vmatpush.bf16.msra.mxu1 %v2086_v54  ;;  %v2559_v54 = vld [vmem:[%s2735_s11 + $0x3ac] sm:$0xf]  ;;  %v2359_v22 = vld [vmem:[%s2735_s11 + $0x378] sm:$0xf0] }
  0x90   : > { %1326 = vmatpush.bf16.msra.mxu2 %v2214_v45  ;;  %v2463_v45 = vld [vmem:[%s2735_s11 + $0xac] sm:$0xf]  ;;  %v2394_v4 = vor.u32 %v2559_v54, %v2391_v55  ;;  %v2215_v24 = vld [vmem:[%s2735_s11 + $0x258] sm:$0xf0] }
  0x91   : > { %1288 = vmatpush.bf16.msra.mxu0 %v1958_v52  ;;  %1345 = vmatpush.bf16.msra.mxu3 %v2342_v58  ;;  %v2010_v52 = vor.u32 %v2463_v45, %v2007_v46  ;;  %v2247_v58 = vld [vmem:[%s2735_s11 + $0x298] sm:$0xf0]  ;;  %v2551_v21 = vld [vmem:[%s2735_s11 + $0x36c] sm:$0xf] }
  0x92   : > { %v2250_v7 = vor.u32 %v2523_v56, %v2247_v58  ;;  %v2515_v23 = vld [vmem:[%s2735_s11 + $0x24c] sm:$0xf]  ;;  %v1959_v26 = vld [vmem:[%s2735_s11 + $0x58] sm:$0xf0] }
  0x93   : > { %1308 = vmatpush.bf16.msra.mxu1 %v2070_v11  ;;  %v2519_v11 = vld [vmem:[%s2735_s11 + $0x26c] sm:$0xf]  ;;  %v2087_v30 = vld [vmem:[%s2735_s11 + $0x158] sm:$0xf0] }
  0x94   : > { %1327 = vmatpush.bf16.msra.mxu2 %v2198_v61  ;;  %v2459_v61 = vld [vmem:[%s2735_s11 + $0x8c] sm:$0xf]  ;;  %v2234_v19 = vor.u32 %v2519_v11, %v2231_v12  ;;  %v2199_v36 = vld [vmem:[%s2735_s11 + $0x238] sm:$0xf0] }
  0x95   : > { %1289 = vmatpush.bf16.msra.mxu0 %v1942_v10  ;;  %1346 = vmatpush.bf16.msra.mxu3 %v2326_v15  ;;  %v1994_v8 = vor.u32 %v2459_v61, %v1991_v0  ;;  %v2375_v10 = vld [vmem:[%s2735_s11 + $0x398] sm:$0xf0]  ;;  %v2122_v15 = vor.u32 %v2491_v5, %v2119_v6  ;;  %v2451_v25 = vld [vmem:[%s2735_s11 + $0x4c] sm:$0xf] }
  0x96   : > { %v2483_v29 = vld [vmem:[%s2735_s11 + $0x14c] sm:$0xf]  ;;  %v1943_v38 = vld [vmem:[%s2735_s11 + $0x38] sm:$0xf0] }
  0x97   : > { %1309 = vmatpush.bf16.msra.mxu1 %v2054_v28  ;;  %v2362_v28 = vor.u32 %v2551_v21, %v2359_v22  ;;  %v2511_v35 = vld [vmem:[%s2735_s11 + $0x22c] sm:$0xf]  ;;  %v2090_v39 = vor.u32 %v2483_v29, %v2087_v30  ;;  %v2071_v42 = vld [vmem:[%s2735_s11 + $0x138] sm:$0xf0]  ;;  %v307_v22 = vld [vmem:[%s3472_s4 + $0x40] sm:$0xff] }
  0x98   : > { %1328 = vmatpush.bf16.msra.mxu2 %v2182_v16  ;;  %v2378_v16 = vor.u32 %v2555_v9, %v2375_v10  ;;  %v2479_v41 = vld [vmem:[%s2735_s11 + $0x12c] sm:$0xf]  ;;  %v2202_v43 = vor.u32 %v2511_v35, %v2199_v36  ;;  %v2327_v46 = vld [vmem:[%s2735_s11 + $0x338] sm:$0xf0]  ;;  %v311_v30 = vld [vmem:[%s3472_s4 + $0x60] sm:$0xff] }
  0x99   : > { %1290 = vmatpush.bf16.msra.mxu0 %v1926_v27  ;;  %1347 = vmatpush.bf16.msra.mxu3 %v2310_v31  ;;  %v2106_v27 = vor.u32 %v2487_v17, %v2103_v18  ;;  %v2218_v31 = vor.u32 %v2515_v23, %v2215_v24  ;;  %v2543_v45 = vld [vmem:[%s2735_s11 + $0x32c] sm:$0xf]  ;;  %v1927_v50 = vld [vmem:[%s2735_s11 + $0x18] sm:$0xf0] }
  0x9a   : > { %1310 = vmatmul.bf16.vlgmr.msra.gmra.mxu1 %v2872_v62  ;;  %v2443_v49 = vld [vmem:[%s2735_s11 + $0xc] sm:$0xf]  ;;  %v2055_v58 = vld [vmem:[%s2735_s11 + $0x118] sm:$0xf0] }
  0x9b   : > { %1378 = vmatpush.bf16.msrb.mxu1 %v2170_v33  ;;  %1329 = vmatmul.bf16.vlgmr.msra.gmra.mxu2 %v2874_v63  ;;  %v2547_v33 = vld [vmem:[%s2735_s11 + $0x34c] sm:$0xf]  ;;  %v1930_v56 = vor.u32 %v2443_v49, %v1927_v50  ;;  %v2311_v0 = vld [vmem:[%s2735_s11 + $0x318] sm:$0xf0] }
  0x9c   : > { %1397 = vmatpush.bf16.msrb.mxu2 %v2298_v20  ;;  %1291 = vmatmul.bf16.vlgmr.msra.gmra.mxu0 %v2867_v57  ;;  %v1978_v20 = vor.u32 %v2455_v13, %v1975_v14  ;;  %v2475_v54 = vld [vmem:[%s2735_s11 + $0x10c] sm:$0xf]  ;;  %v303_v13 = vld [vmem:[%s3472_s4 + $0x20] sm:$0xff] }
  0x9d   : > { %1359 = vmatpush.bf16.msrb.mxu0 %v2042_v32  ;;  %1416 = vmatpush.bf16.msrb.mxu3 %v2426_v34  ;;  %v1962_v32 = vor.u32 %v2451_v25, %v1959_v26  ;;  %v2343_v34 = vld [vmem:[%s2735_s11 + $0x358] sm:$0xf0]  ;;  %v2539_v61 = vld [vmem:[%s2735_s11 + $0x30c] sm:$0xf] }
  0x9e   : > { %1348 = vmatmul.bf16.vlgmr.msra.gmra.mxu3 %v2878_v2  ;;  %v304_v50 = vld [vmem:[%s3472_s4 + $0x28] sm:$0xff] }
  0x9f   : > { %1379 = vmatpush.bf16.msrb.mxu1 %v2154_v47  ;;  %v2507_v47 = vld [vmem:[%s2735_s11 + $0x20c] sm:$0xf] }
  0xa0   : > { %1398 = vmatpush.bf16.msrb.mxu2 %v2282_v37  ;;  %v2447_v37 = vld [vmem:[%s2735_s11 + $0x2c] sm:$0xf] }
  0xa1   : > { %1360 = vmatpush.bf16.msrb.mxu0 %v2026_v40  ;;  %1417 = vmatpush.bf16.msrb.mxu3 %v2410_v48  ;;  %v2346_v40 = vor.u32 %v2547_v33, %v2343_v34  ;;  %v1946_v44 = vor.u32 %v2447_v37, %v1943_v38  ;;  %v2183_v48 = vld [vmem:[%s2735_s11 + $0x218] sm:$0xf0] }
  0xa2   : > { %v2186_v55 = vor.u32 %v2507_v47, %v2183_v48 }
  0xa3   : > { %1380 = vmatpush.bf16.msrb.mxu1 %v2138_v3  ;;  %v2058_v3 = vor.u32 %v2475_v54, %v2055_v58 }
  0xa4   : > { %1399 = vmatpush.bf16.msrb.mxu2 %v2266_v51  ;;  %v2074_v51 = vor.u32 %v2479_v41, %v2071_v42  ;;  %v300_v41 = vld [vmem:[%s3472_s4 + $0x8] sm:$0xff] }
  0xa5   : > { %1361 = vmatpush.bf16.msrb.mxu0 %v2010_v52  ;;  %1418 = vmatpush.bf16.msrb.mxu3 %v2394_v4  ;;  %v2330_v52 = vor.u32 %v2543_v45, %v2327_v46  ;;  %v2314_v4 = vor.u32 %v2539_v61, %v2311_v0 }
  0xa7   : > { %1381 = vmatpush.bf16.msrb.mxu1 %v2122_v15 }
  0xa8   : > { %1400 = vmatpush.bf16.msrb.mxu2 %v2250_v7 }
  0xa9   : > { %1362 = vmatpush.bf16.msrb.mxu0 %v1994_v8  ;;  %1419 = vmatpush.bf16.msrb.mxu3 %v2378_v16 }
  0xaa   : > { %1315 = vmatmul.bf16.gmra.mxu1 %v2924_v59 }
  0xab   : > { %1382 = vmatpush.bf16.msrb.mxu1 %v2106_v27  ;;  %1334 = vmatmul.bf16.gmra.mxu2 %v2926_v60 }
  0xac   : > { %1401 = vmatpush.bf16.msrb.mxu2 %v2234_v19  ;;  %1296 = vmatmul.bf16.gmra.mxu0 %v2919_v53 }
  0xad   : > { %1363 = vmatpush.bf16.msrb.mxu0 %v1978_v20  ;;  %1420 = vmatpush.bf16.msrb.mxu3 %v2362_v28 }
  0xae   : > { %1353 = vmatmul.bf16.gmra.mxu3 %v2930_v1 }
  0xaf   : > { %1383 = vmatpush.bf16.msrb.mxu1 %v2090_v39 }
  0xb0   : > { %1402 = vmatpush.bf16.msrb.mxu2 %v2218_v31 }
  0xb1   : > { %1364 = vmatpush.bf16.msrb.mxu0 %v1962_v32  ;;  %1421 = vmatpush.bf16.msrb.mxu3 %v2346_v40 }
  0xb3   : > { %1384 = vmatpush.bf16.msrb.mxu1 %v2074_v51 }
  0xb4   : > { %1403 = vmatpush.bf16.msrb.mxu2 %v2202_v43 }
  0xb5   : > { %1365 = vmatpush.bf16.msrb.mxu0 %v1946_v44  ;;  %1422 = vmatpush.bf16.msrb.mxu3 %v2330_v52 }
  0xb7   : > { %1385 = vmatpush.bf16.msrb.mxu1 %v2058_v3  ;;  %v308_v3 = vld [vmem:[%s3472_s4 + $0x48] sm:$0xff] }
  0xb8   : > { %1404 = vmatpush.bf16.msrb.mxu2 %v2186_v55 }
  0xb9   : > { %1366 = vmatpush.bf16.msrb.mxu0 %v1930_v56  ;;  %1423 = vmatpush.bf16.msrb.mxu3 %v2314_v4 }
  0xba   : > { %1386 = vmatmul.bf16.vlgmr.msrb.gmra.mxu1 %v2872_v62  ;;  %v299_v62 = vld [vmem:[%s3472_s4] sm:$0xff] }
  0xbb   : > { %1405 = vmatmul.bf16.vlgmr.msrb.gmra.mxu2 %v2874_v63 }
  0xbc   : > { %1367 = vmatmul.bf16.vlgmr.msrb.gmra.mxu0 %v2867_v57 }
  0xbe   : > { %1424 = vmatmul.bf16.vlgmr.msrb.gmra.mxu3 %v2878_v2 }
  0xca   : > { %1391 = vmatmul.bf16.gmra.mxu1 %v2924_v59 }
  0xcb   : > { %1410 = vmatmul.bf16.gmra.mxu2 %v2926_v60 }
  0xcc   : > { %1372 = vmatmul.bf16.gmra.mxu0 %v2919_v53 }
  0xce   : > { %1429 = vmatmul.bf16.gmra.mxu3 %v2930_v1 }
  0xd7   : > { %v1140_v5 = vpop.f32.mrf.mxu0  ;;  %v1159_v6 = vpop.f32.mrf.mxu1 }
  0xd8   : > { %v1160_v7 = vadd.f32 %v1159_v6, %v1140_v5 }
  0xde   : > { %v1178_v8 = vpop.f32.mrf.mxu2 }
  0xdf   : > { %v1179_v9 = vadd.f32 %v1178_v8, %v1160_v7  ;;  %v1197_v57 = vpop.f32.mrf.mxu3  ;;  %v1142_v10 = vpop.f32.mrf.mxu0 }
  0xe0   : > { %v1161_v63 = vpop.f32.mrf.mxu1 }
  0xe1   : > { %v1198_v2 = vadd.f32 %v1197_v57, %v1179_v9  ;;  %v1162_v59 = vadd.f32 %v1161_v63, %v1142_v10 }
  0xe3   : > { %v1435_v53 = vadd.f32 %v1198_v2, %v299_v62  ;;  %v312_v62 = vld [vmem:[%s3472_s4 + $0x68] sm:$0xff] }
  0xe5   : > { %1451 = vst [vmem:[%s3472_s4] sm:$0xff] %v1435_v53 }
  0xe6   : > { %v1180_v60 = vpop.f32.mrf.mxu2 }
  0xe7   : > { %v1181_v1 = vadd.f32 %v1180_v60, %v1162_v59  ;;  %v1199_v11 = vpop.f32.mrf.mxu3  ;;  %v1145_v12 = vpop.f32.mrf.mxu0 }
  0xe8   : > { %v1164_v14 = vpop.f32.mrf.mxu1 }
  0xe9   : > { %v1200_v15 = vadd.f32 %v1199_v11, %v1181_v1  ;;  %v1165_v17 = vadd.f32 %v1164_v14, %v1145_v12 }
  0xeb   : > { %v1439_v16 = vadd.f32 %v1200_v15, %v303_v13  ;;  %v301_v13 = vld [vmem:[%s3472_s4 + $0x10] sm:$0xff] }
  0xed   : > { %1455 = vst [vmem:[%s3472_s4 + $0x20] sm:$0xff] %v1439_v16 }
  0xee   : > { %v1183_v18 = vpop.f32.mrf.mxu2 }
  0xef   : > { %v1184_v19 = vadd.f32 %v1183_v18, %v1165_v17  ;;  %v1202_v20 = vpop.f32.mrf.mxu3  ;;  %v1147_v21 = vpop.f32.mrf.mxu0 }
  0xf0   : > { %v1166_v23 = vpop.f32.mrf.mxu1 }
  0xf1   : > { %v1203_v24 = vadd.f32 %v1202_v20, %v1184_v19  ;;  %v1167_v26 = vadd.f32 %v1166_v23, %v1147_v21 }
  0xf3   : > { %v1443_v25 = vadd.f32 %v1203_v24, %v307_v22  ;;  %v305_v22 = vld [vmem:[%s3472_s4 + $0x30] sm:$0xff] }
  0xf5   : > { %1459 = vst [vmem:[%s3472_s4 + $0x40] sm:$0xff] %v1443_v25 }
  0xf6   : > { %v1185_v27 = vpop.f32.mrf.mxu2 }
  0xf7   : > { %v1186_v28 = vadd.f32 %v1185_v27, %v1167_v26  ;;  %v1204_v29 = vpop.f32.mrf.mxu3 }
  0xf8   : > { %v1235_v32 = vpop.f32.mrf.mxu1 }
  0xf9   : > { %v1216_v31 = vpop.f32.mrf.mxu0  ;;  %v1205_v33 = vadd.f32 %v1204_v29, %v1186_v28 }
  0xfa   : > { %v1236_v35 = vadd.f32 %v1235_v32, %v1216_v31  ;;  %v309_v31 = vld [vmem:[%s3472_s4 + $0x50] sm:$0xff] }
  0xfb   : > { %v1447_v34 = vadd.f32 %v1205_v33, %v311_v30 }
  0xfd   : > { %1463 = vst [vmem:[%s3472_s4 + $0x60] sm:$0xff] %v1447_v34 }
  0xfe   : > { %v1254_v36 = vpop.f32.mrf.mxu2 }
  0xff   : > { %v1255_v38 = vadd.f32 %v1254_v36, %v1236_v35 }
 0x100   : > { %v1237_v40 = vpop.f32.mrf.mxu1 }
 0x101   : > { %v1273_v37 = vpop.f32.mrf.mxu3  ;;  %v1218_v39 = vpop.f32.mrf.mxu0 }
 0x102   : > { %v1274_v42 = vadd.f32 %v1273_v37, %v1255_v38  ;;  %v1238_v44 = vadd.f32 %v1237_v40, %v1218_v39  ;;  %v313_v40 = vld [vmem:[%s3472_s4 + $0x70] sm:$0xff] }
 0x104   : > { %v1436_v43 = vadd.f32 %v1274_v42, %v300_v41 }
 0x106   : > { %1452 = vst [vmem:[%s3472_s4 + $0x8] sm:$0xff] %v1436_v43  ;;  %v1256_v45 = vpop.f32.mrf.mxu2 }
 0x107   : > { %v1257_v47 = vadd.f32 %v1256_v45, %v1238_v44 }
 0x108   : > { %v1240_v49 = vpop.f32.mrf.mxu1 }
 0x109   : > { %v1275_v46 = vpop.f32.mrf.mxu3  ;;  %v1221_v48 = vpop.f32.mrf.mxu0 }
 0x10a   : > { %v1276_v51 = vadd.f32 %v1275_v46, %v1257_v47  ;;  %v1241_v54 = vadd.f32 %v1240_v49, %v1221_v48  ;;  %v302_v49 = vld [vmem:[%s3472_s4 + $0x18] sm:$0xff] }
 0x10c   : > { %v1440_v52 = vadd.f32 %v1276_v51, %v304_v50 }
 0x10e   : > { %1456 = vst [vmem:[%s3472_s4 + $0x28] sm:$0xff] %v1440_v52  ;;  %v1259_v55 = vpop.f32.mrf.mxu2 }
 0x10f   : > { %v1260_v58 = vadd.f32 %v1259_v55, %v1241_v54 }
 0x110   : > { %v1242_v0 = vpop.f32.mrf.mxu1 }
 0x111   : > { %v1278_v56 = vpop.f32.mrf.mxu3  ;;  %v1223_v61 = vpop.f32.mrf.mxu0 }
 0x112   : > { %v1279_v4 = vadd.f32 %v1278_v56, %v1260_v58  ;;  %v1243_v6 = vadd.f32 %v1242_v0, %v1223_v61  ;;  %v306_v58 = vld [vmem:[%s3472_s4 + $0x38] sm:$0xff] }
 0x114   : > { %v1444_v5 = vadd.f32 %v1279_v4, %v308_v3 }
 0x116   : > { %1460 = vst [vmem:[%s3472_s4 + $0x48] sm:$0xff] %v1444_v5  ;;  %v1261_v7 = vpop.f32.mrf.mxu2 }
 0x117   : > { %v1262_v9 = vadd.f32 %v1261_v7, %v1243_v6 }
 0x118   : > { %v1311_v10 = vpop.f32.mrf.mxu1 }
 0x119   : > { %v1280_v8 = vpop.f32.mrf.mxu3  ;;  %v1292_v57 = vpop.f32.mrf.mxu0 }
 0x11a   : > { %v1281_v63 = vadd.f32 %v1280_v8, %v1262_v9  ;;  %v1312_v53 = vadd.f32 %v1311_v10, %v1292_v57  ;;  %v310_v9 = vld [vmem:[%s3472_s4 + $0x58] sm:$0xff] }
 0x11c   : > { %v1448_v2 = vadd.f32 %v1281_v63, %v312_v62 }
 0x11e   : > { %1464 = vst [vmem:[%s3472_s4 + $0x68] sm:$0xff] %v1448_v2  ;;  %v1330_v59 = vpop.f32.mrf.mxu2 }
 0x11f   : > { %v1331_v1 = vadd.f32 %v1330_v59, %v1312_v53 }
 0x120   : > { %v1313_v12 = vpop.f32.mrf.mxu1 }
 0x121   : > { %v1349_v60 = vpop.f32.mrf.mxu3  ;;  %v1294_v11 = vpop.f32.mrf.mxu0 }
 0x122   : > { %v1350_v14 = vadd.f32 %v1349_v60, %v1331_v1  ;;  %v1314_v16 = vadd.f32 %v1313_v12, %v1294_v11  ;;  %v314_v60 = vld [vmem:[%s3472_s4 + $0x78] sm:$0xff] }
 0x124   : > { %v1437_v15 = vadd.f32 %v1350_v14, %v301_v13 }
 0x126   : > { %1453 = vst [vmem:[%s3472_s4 + $0x10] sm:$0xff] %v1437_v15  ;;  %v1332_v17 = vpop.f32.mrf.mxu2 }
 0x127   : > { %v1333_v19 = vadd.f32 %v1332_v17, %v1314_v16 }
 0x128   : > { %v1316_v21 = vpop.f32.mrf.mxu1 }
 0x129   : > { %v1351_v18 = vpop.f32.mrf.mxu3  ;;  %v1297_v20 = vpop.f32.mrf.mxu0 }
 0x12a   : > { %v1352_v23 = vadd.f32 %v1351_v18, %v1333_v19  ;;  %v1317_v25 = vadd.f32 %v1316_v21, %v1297_v20 }
 0x12c   : > { %v1441_v24 = vadd.f32 %v1352_v23, %v305_v22 }
 0x12e   : > { %1457 = vst [vmem:[%s3472_s4 + $0x30] sm:$0xff] %v1441_v24  ;;  %v1335_v26 = vpop.f32.mrf.mxu2 }
 0x12f   : > { %v1336_v28 = vadd.f32 %v1335_v26, %v1317_v25 }
 0x130   : > { %v1318_v30 = vpop.f32.mrf.mxu1 }
 0x131   : > { %v1354_v27 = vpop.f32.mrf.mxu3  ;;  %v1299_v29 = vpop.f32.mrf.mxu0 }
 0x132   : > { %v1355_v32 = vadd.f32 %v1354_v27, %v1336_v28  ;;  %v1319_v34 = vadd.f32 %v1318_v30, %v1299_v29 }
 0x134   : > { %v1445_v33 = vadd.f32 %v1355_v32, %v309_v31 }
 0x136   : > { %1461 = vst [vmem:[%s3472_s4 + $0x50] sm:$0xff] %v1445_v33  ;;  %v1337_v35 = vpop.f32.mrf.mxu2 }
 0x137   : > { %v1338_v37 = vadd.f32 %v1337_v35, %v1319_v34 }
 0x138   : > { %v1387_v39 = vpop.f32.mrf.mxu1 }
 0x139   : > { %v1356_v36 = vpop.f32.mrf.mxu3  ;;  %v1368_v38 = vpop.f32.mrf.mxu0 }
 0x13a   : > { %v1357_v41 = vadd.f32 %v1356_v36, %v1338_v37  ;;  %v1388_v43 = vadd.f32 %v1387_v39, %v1368_v38 }
 0x13c   : > { %v1449_v42 = vadd.f32 %v1357_v41, %v313_v40 }
 0x13e   : > { %1465 = vst [vmem:[%s3472_s4 + $0x70] sm:$0xff] %v1449_v42  ;;  %v1406_v44 = vpop.f32.mrf.mxu2 }
 0x13f   : > { %v1407_v46 = vadd.f32 %v1406_v44, %v1388_v43 }
 0x140   : > { %v1389_v48 = vpop.f32.mrf.mxu1 }
 0x141   : > { %v1425_v45 = vpop.f32.mrf.mxu3  ;;  %v1370_v47 = vpop.f32.mrf.mxu0 }
 0x142   : > { %v1426_v50 = vadd.f32 %v1425_v45, %v1407_v46  ;;  %v1390_v52 = vadd.f32 %v1389_v48, %v1370_v47 }
 0x144   : > { %v1438_v51 = vadd.f32 %v1426_v50, %v302_v49 }
 0x146   : > { %1454 = vst [vmem:[%s3472_s4 + $0x18] sm:$0xff] %v1438_v51  ;;  %v1408_v54 = vpop.f32.mrf.mxu2 }
 0x147   : > { %v1409_v56 = vadd.f32 %v1408_v54, %v1390_v52 }
 0x148   : > { %v1392_v0 = vpop.f32.mrf.mxu1 }
 0x149   : > { %v1427_v55 = vpop.f32.mrf.mxu3  ;;  %v1373_v61 = vpop.f32.mrf.mxu0 }
 0x14a   : > { %v1428_v3 = vadd.f32 %v1427_v55, %v1409_v56  ;;  %v1393_v5 = vadd.f32 %v1392_v0, %v1373_v61 }
 0x14c   : > { %v1442_v4 = vadd.f32 %v1428_v3, %v306_v58 }
 0x14e   : > { %1458 = vst [vmem:[%s3472_s4 + $0x38] sm:$0xff] %v1442_v4  ;;  %v1411_v6 = vpop.f32.mrf.mxu2 }
 0x14f   : > { %v1412_v8 = vadd.f32 %v1411_v6, %v1393_v5 }
 0x150   : > { %v1394_v62 = vpop.f32.mrf.mxu1 }
 0x151   : > { %v1430_v7 = vpop.f32.mrf.mxu3  ;;  %v1375_v10 = vpop.f32.mrf.mxu0 }
 0x152   : > { %v1431_v57 = vadd.f32 %v1430_v7, %v1412_v8  ;;  %v1395_v2 = vadd.f32 %v1394_v62, %v1375_v10 }
 0x154   : > { %v1446_v63 = vadd.f32 %v1431_v57, %v310_v9 }
 0x156   : > { %1462 = vst [vmem:[%s3472_s4 + $0x58] sm:$0xff] %v1446_v63  ;;  %v1413_v53 = vpop.f32.mrf.mxu2 }
 0x157   : > { %v1414_v59 = vadd.f32 %v1413_v53, %v1395_v2 }
 0x159   : > { %v1432_v1 = vpop.f32.mrf.mxu3 }
 0x15a   : > { %v1433_v11 = vadd.f32 %v1432_v1, %v1414_v59  ;;  %1470 = sbr.rel (%p2427_p11) target bundleno = 445 (0x1bd), region = 67 }
 0x15c   : > { %v1450_v12 = vadd.f32 %v1433_v11, %v314_v60 }
 0x15e   : > { %1466 = vst [vmem:[%s3472_s4 + $0x78] sm:$0xff] %v1450_v12 }
 0x15f   : > { %v3208_v13 = vld [vmem:[%s3472_s4] sm:$0xff]  ;;  %v3213_v14 = vld [vmem:[%s3472_s4 + $0x8] sm:$0xff]  ;;  %v3218_v15 = vld [vmem:[%s3472_s4 + $0x10] sm:$0xff]  ;;  %vm1647_vm12 = vcmask 1040384   ;;  %vm1649_vm13 = vcmask 1042434   ;;  %vm1651_vm14 = vcmask 1041408  }
 0x160   : > { %v3223_v16 = vld [vmem:[%s3472_s4 + $0x18] sm:$0xff]  ;;  %v3228_v17 = vld [vmem:[%s3472_s4 + $0x20] sm:$0xff]  ;;  %v3233_v18 = vld [vmem:[%s3472_s4 + $0x28] sm:$0xff]  ;;  %v1527_v19 = vmul.f32 %v3208_v13, %v3208_v13  ;;  %v1528_v20 = vmul.f32 %v3213_v14, %v3213_v14  ;;  %v1529_v21 = vmul.f32 %v3218_v15, %v3218_v15 }
 0x161   : > { %v3244_v22 = vld [vmem:[%s3472_s4 + $0x30] sm:$0xff]  ;;  %v3249_v23 = vld [vmem:[%s3472_s4 + $0x38] sm:$0xff]  ;;  %v3254_v24 = vld [vmem:[%s3472_s4 + $0x40] sm:$0xff]  ;;  %v1487_v25 = vadd.f32 %v3228_v17, %v3208_v13  ;;  %v1496_v26 = vadd.f32 %v3233_v18, %v3213_v14  ;;  %v1530_v27 = vmul.f32 %v3223_v16, %v3223_v16  ;;  %v1531_v28 = vmul.f32 %v3228_v17, %v3228_v17 }
 0x162   : > { %v3267_v29 = vld [vmem:[%s3472_s4 + $0x48] sm:$0xff]  ;;  %v3272_v30 = vld [vmem:[%s3472_s4 + $0x50] sm:$0xff]  ;;  %v3277_v31 = vld [vmem:[%s3472_s4 + $0x58] sm:$0xff]  ;;  %v1505_v32 = vadd.f32 %v3244_v22, %v3218_v15  ;;  %v1514_v33 = vadd.f32 %v3249_v23, %v3223_v16  ;;  %v1532_v34 = vmul.f32 %v3233_v18, %v3233_v18  ;;  %v1533_v35 = vmul.f32 %v3244_v22, %v3244_v22 }
 0x163   : > { %v3290_v36 = vld [vmem:[%s3472_s4 + $0x60] sm:$0xff]  ;;  %v3295_v37 = vld [vmem:[%s3472_s4 + $0x68] sm:$0xff]  ;;  %v3300_v38 = vld [vmem:[%s3472_s4 + $0x70] sm:$0xff]  ;;  %v1488_v39 = vadd.f32 %v1487_v25, %v3254_v24  ;;  %v1497_v40 = vadd.f32 %v1496_v26, %v3267_v29  ;;  %v1534_v41 = vmul.f32 %v3249_v23, %v3249_v23  ;;  %v1535_v42 = vmul.f32 %v3254_v24, %v3254_v24 }
 0x164   : > { %v1506_v44 = vadd.f32 %v1505_v32, %v3272_v30  ;;  %v1515_v45 = vadd.f32 %v1514_v33, %v3277_v31  ;;  %v1536_v46 = vmul.f32 %v3267_v29, %v3267_v29  ;;  %v1537_v47 = vmul.f32 %v3272_v30, %v3272_v30 }
 0x165   : > { %v3311_v43 = vld [vmem:[%s3472_s4 + $0x78] sm:$0xff]  ;;  %v1489_v48 = vadd.f32 %v1488_v39, %v3290_v36  ;;  %v1498_v49 = vadd.f32 %v1497_v40, %v3295_v37  ;;  %v1538_v50 = vmul.f32 %v3277_v31, %v3277_v31  ;;  %v1539_v51 = vmul.f32 %v3290_v36, %v3290_v36 }
 0x166   : > { %v1507_v52 = vadd.f32 %v1506_v44, %v3300_v38  ;;  %v1516_v54 = vadd.f32 %v1515_v45, %v3311_v43  ;;  %v1540_v55 = vmul.f32 %v3295_v37, %v3295_v37  ;;  %v1541_v56 = vmul.f32 %v3300_v38, %v3300_v38 }
 0x167   : > { %v1490_v58 = vrot.slane %v1489_v48, 4  ;;  %v1499_v61 = vrot.slane %v1498_v49, 4  ;;  %v1542_v0 = vmul.f32 %v3311_v43, %v3311_v43  ;;  %v1543_v3 = vadd.f32 %v1531_v28, %v1527_v19 }
 0x168   : > { %v1508_v4 = vrot.slane %v1507_v52, 4  ;;  %v1517_v5 = vrot.slane %v1516_v54, 4  ;;  %v1552_v6 = vadd.f32 %v1532_v34, %v1528_v20  ;;  %v1561_v7 = vadd.f32 %v1533_v35, %v1529_v21 }
 0x169   : > { %v1491_v8 = vadd.f32 %v1490_v58, %v1489_v48  ;;  %v1500_v9 = vadd.f32 %v1499_v61, %v1498_v49  ;;  %v1544_v57 = vadd.f32 %v1543_v3, %v1535_v42  ;;  %v1570_v10 = vadd.f32 %v1534_v41, %v1530_v27 }
 0x16a   : > { %v1509_v62 = vadd.f32 %v1508_v4, %v1507_v52  ;;  %v1518_v63 = vadd.f32 %v1517_v5, %v1516_v54  ;;  %v1553_v2 = vadd.f32 %v1552_v6, %v1536_v46  ;;  %v1562_v53 = vadd.f32 %v1561_v7, %v1537_v47 }
 0x16b   : > { %v1492_v59 = vrot.slane %v1491_v8, 2  ;;  %v1501_v60 = vrot.slane %v1500_v9, 2  ;;  %v1545_v1 = vadd.f32 %v1544_v57, %v1539_v51  ;;  %v1571_v11 = vadd.f32 %v1570_v10, %v1538_v50 }
 0x16c   : > { %v1510_v12 = vrot.slane %v1509_v62, 2  ;;  %v1519_v25 = vrot.slane %v1518_v63, 2  ;;  %v1554_v26 = vadd.f32 %v1553_v2, %v1540_v55  ;;  %v1563_v19 = vadd.f32 %v1562_v53, %v1541_v56 }
 0x16d   : > { %v1493_v28 = vadd.f32 %v1492_v59, %v1491_v8  ;;  %v1502_v32 = vadd.f32 %v1501_v60, %v1500_v9  ;;  %v1546_v20 = vrot.slane %v1545_v1, 4  ;;  %v1572_v21 = vadd.f32 %v1571_v11, %v1542_v0 }
 0x16e   : > { %v1511_v33 = vadd.f32 %v1510_v12, %v1509_v62  ;;  %v1520_v34 = vadd.f32 %v1519_v25, %v1518_v63  ;;  %v1555_v35 = vrot.slane %v1554_v26, 4  ;;  %v1564_v27 = vrot.slane %v1563_v19, 4 }
 0x16f   : > { %v1494_v39 = vrot.slane %v1493_v28, 1  ;;  %v1503_v40 = vrot.slane %v1502_v32, 1  ;;  %v1547_v41 = vadd.f32 %v1546_v20, %v1545_v1  ;;  %v1573_v42 = vrot.slane %v1572_v21, 4 }
 0x170   : > { %v1512_v44 = vrot.slane %v1511_v33, 1  ;;  %v1521_v45 = vrot.slane %v1520_v34, 1  ;;  %v1556_v46 = vadd.f32 %v1555_v35, %v1554_v26  ;;  %v1565_v47 = vadd.f32 %v1564_v27, %v1563_v19 }
 0x171   : > { %v1495_v48 = vadd.f32 %v1494_v39, %v1493_v28  ;;  %v1504_v49 = vadd.f32 %v1503_v40, %v1502_v32  ;;  %v1548_v50 = vrot.slane %v1547_v41, 2  ;;  %v1574_v51 = vadd.f32 %v1573_v42, %v1572_v21 }
 0x172   : > { %v1513_v52 = vadd.f32 %v1512_v44, %v1511_v33  ;;  %v1522_v54 = vadd.f32 %v1521_v45, %v1520_v34  ;;  %v1557_v55 = vrot.slane %v1556_v46, 2  ;;  %v1566_v56 = vrot.slane %v1565_v47, 2 }
 0x173   : > { %v3333_v58 = vmul.f32 0.055555556, %v1495_v48  ;;  %v1549_v61 = vadd.f32 %v1548_v50, %v1547_v41  ;;  %v1575_v0 = vrot.slane %v1574_v51, 2  ;;  %v3335_v3 = vmul.f32 0.055555556, %v1504_v49 }
 0x174   : > { %v3337_v4 = vmul.f32 0.055555556, %v1513_v52  ;;  %v1558_v5 = vadd.f32 %v1557_v55, %v1556_v46  ;;  %v1567_v6 = vadd.f32 %v1566_v56, %v1565_v47  ;;  %v3339_v7 = vmul.f32 0.055555556, %v1522_v54 }
 0x175   : > { %v1550_v8 = vrot.slane %v1549_v61, 1  ;;  %v1576_v9 = vadd.f32 %v1575_v0, %v1574_v51  ;;  %v1583_v2 = vmul.f32 %v3333_v58, %v3333_v58  ;;  %v1584_v60 = vmul.f32 %v3335_v3, %v3335_v3 }
 0x176   : > { %v1559_v57 = vrot.slane %v1558_v5, 1  ;;  %v1568_v10 = vrot.slane %v1567_v6, 1  ;;  %v1585_v1 = vmul.f32 %v3337_v4, %v3337_v4  ;;  %v1586_v25 = vmul.f32 %v3339_v7, %v3339_v7 }
 0x177   : > { %v1551_v62 = vadd.f32 %v1550_v8, %v1549_v61  ;;  %v1577_v63 = vrot.slane %v1576_v9, 1 }
 0x178   : > { %v1560_v53 = vadd.f32 %v1559_v57, %v1558_v5  ;;  %v1569_v59 = vadd.f32 %v1568_v10, %v1567_v6 }
 0x179   : > { %v1578_v11 = vadd.f32 %v1577_v63, %v1576_v9  ;;  %v1579_v12 = vmul.f32 0.055555556, %v1551_v62 }
 0x17a   : > { %v1580_v26 = vmul.f32 0.055555556, %v1560_v53  ;;  %v1581_v19 = vmul.f32 0.055555556, %v1569_v59 }
 0x17b   : > { %v1582_v28 = vmul.f32 0.055555556, %v1578_v11  ;;  %v1587_v32 = vsub.f32 %v1579_v12, %v1583_v2 }
 0x17c   : > { %v1588_v20 = vsub.f32 %v1580_v26, %v1584_v60  ;;  %v1589_v21 = vsub.f32 %v1581_v19, %v1585_v1 }
 0x17d   : > { %v1590_v33 = vsub.f32 %v1582_v28, %v1586_v25  ;;  %v1591_v34 = vmax.f32 %v1587_v32, 0.0 }
 0x17e   : > { %v1592_v35 = vmax.f32 %v1588_v20, 0.0  ;;  %v1593_v27 = vmax.f32 %v1589_v21, 0.0  ;;  %v1595_v20 = vld [vmem:[%s3470_s2] sm:$0xf] }
 0x17f   : > { %v1594_v39 = vmax.f32 %v1590_v33, 0.0  ;;  %v1596_v40 = vadd.f32 1e-05, %v1591_v34 }
 0x180   : > { %v1597_v41 = vadd.f32 1e-05, %v1592_v35  ;;  %v1598_v42 = vadd.f32 1e-05, %v1593_v27 }
 0x181   : > { %v1599_v44 = vadd.f32 1e-05, %v1594_v39  ;;  %2611 = vrsqrt.f32 %v1596_v40  ;;  %vm1606_vm0 = vweird.f32 %v1596_v40 }
 0x182   : > { %2613 = vrsqrt.f32 %v1597_v41  ;;  %vm1616_vm2 = vweird.f32 %v1597_v41  ;;  %vm1626_vm4 = vweird.f32 %v1598_v42 }
 0x183   : > { %2615 = vrsqrt.f32 %v1598_v42  ;;  %vm1636_vm7 = vweird.f32 %v1599_v44 }
 0x184   : > { %2617 = vrsqrt.f32 %v1599_v44 }
 0x187   : > { %v2612_v45 = vpop.eup %2611 }
 0x188   : > { %v2614_v46 = vpop.eup %2613  ;;  %v1601_v47 = vmul.f32 %v2612_v45, %v1596_v40  ;;  %vm1607_vm1 = vweird.f32 %v2612_v45 }
 0x189   : > { %v2616_v48 = vpop.eup %2615  ;;  %v1611_v49 = vmul.f32 %v2614_v46, %v1597_v41  ;;  %vm1617_vm3 = vweird.f32 %v2614_v46  ;;  %vm3349_vm6 = vmor %vm1606_vm0, %vm1607_vm1 }
 0x18a   : > { %v2618_v50 = vpop.eup %2617  ;;  %v1602_v51 = vmul.f32 %v2612_v45, %v1601_v47  ;;  %v1621_v52 = vmul.f32 %v2616_v48, %v1598_v42  ;;  %vm1627_vm5 = vweird.f32 %v2616_v48  ;;  %vm1618_vm9 = vmor %vm1616_vm2, %vm1617_vm3 }
 0x18b   : > { %v1612_v54 = vmul.f32 %v2614_v46, %v1611_v49  ;;  %v1631_v55 = vmul.f32 %v2618_v50, %v1599_v44  ;;  %vm1637_vm8 = vweird.f32 %v2618_v50  ;;  %vm1628_vm10 = vmor %vm1626_vm4, %vm1627_vm5  ;;  %v1655_v49 = vld [vmem:[%s3471_s3] sm:$0xf] }
 0x18c   : > { %v1603_v56 = vmul.f32 0.5, %v1602_v51  ;;  %v1622_v61 = vmul.f32 %v2616_v48, %v1621_v52  ;;  %vm1638_vm11 = vmor %vm1636_vm7, %vm1637_vm8 }
 0x18d   : > { %v1613_v0 = vmul.f32 0.5, %v1612_v54  ;;  %v1632_v5 = vmul.f32 %v2618_v50, %v1631_v55 }
 0x18e   : > { %v1604_v6 = vsub.f32 1.5, %v1603_v56  ;;  %v1623_v8 = vmul.f32 0.5, %v1622_v61 }
 0x18f   : > { %v1614_v57 = vsub.f32 1.5, %v1613_v0  ;;  %v1633_v10 = vmul.f32 0.5, %v1632_v5 }
 0x190   : > { %v1605_v62 = vmul.f32 %v2612_v45, %v1604_v6  ;;  %v1624_v63 = vsub.f32 1.5, %v1623_v8 }
 0x191   : > { %v1615_v2 = vmul.f32 %v2614_v46, %v1614_v57  ;;  %v1634_v53 = vsub.f32 1.5, %v1633_v10 }
 0x192   : > { %v1625_v59 = vmul.f32 %v2616_v48, %v1624_v63  ;;  %v1609_v60 = vsel %vm3349_vm6, %v2612_v45, %v1605_v62 }
 0x193   : > { %v1619_v1 = vsel %vm1618_vm9, %v2614_v46, %v1615_v2  ;;  %v1635_v11 = vmul.f32 %v2618_v50, %v1634_v53 }
 0x194   : > { %v1629_v12 = vsel %vm1628_vm10, %v2616_v48, %v1625_v59  ;;  %v1644_v25 = vrot.slane %v1619_v1, 7 }
 0x195   : > { %v1639_v26 = vsel %vm1638_vm11, %v2618_v50, %v1635_v11  ;;  %v1645_v19 = vrot.slane %v1629_v12, 6 }
 0x196   : > { %v1646_v28 = vrot.slane %v1639_v26, 5  ;;  %v1648_v32 = vsel %vm1647_vm12, %v1609_v60, %v1644_v25 }
 0x198   : > { %v1650_v21 = vsel %vm1649_vm13, %v1645_v19, %v1646_v28 }
 0x199   : > { %v1652_v33 = vsel %vm1651_vm14, %v1648_v32, %v1650_v21 }
 0x19a   : > { %v1654_v34 = vmul.f32 %v1652_v33, %v1595_v20 }
 0x19c   : > { %v1657_v35 = vperm.slane %v1654_v34, 0  ;;  %v1658_v27 = vperm.slane %v1654_v34, 1  ;;  %v1659_v39 = vperm.slane %v1654_v34, 2  ;;  %v1660_v40 = vperm.slane %v1654_v34, 3 }
 0x19e   : > { %v1665_v41 = vmul.f32 %v1657_v35, %v3333_v58  ;;  %v1666_v42 = vmul.f32 %v1658_v27, %v3335_v3  ;;  %v1667_v44 = vmul.f32 %v1659_v39, %v3337_v4  ;;  %v1668_v45 = vmul.f32 %v1660_v40, %v3339_v7 }
 0x19f   : > { %v1681_v52 = vmul.f32 %v1657_v35, %v3208_v13  ;;  %v1682_v58 = vmul.f32 %v1658_v27, %v3213_v14  ;;  %v1683_v4 = vmul.f32 %v1659_v39, %v3218_v15  ;;  %v1684_v7 = vmul.f32 %v1660_v40, %v3223_v16 }
 0x1a0   : > { %v1673_v46 = vrot.slane %v1666_v42, 7  ;;  %v1674_v47 = vrot.slane %v1667_v44, 6  ;;  %v1675_v48 = vrot.slane %v1668_v45, 5  ;;  %v1685_v54 = vmul.f32 %v1657_v35, %v3228_v17 }
 0x1a1   : > { %v1686_v56 = vmul.f32 %v1658_v27, %v3233_v18  ;;  %v1687_v61 = vmul.f32 %v1659_v39, %v3244_v22  ;;  %v1688_v0 = vmul.f32 %v1660_v40, %v3249_v23  ;;  %v1689_v5 = vmul.f32 %v1657_v35, %v3254_v24 }
 0x1a2   : > { %v1676_v50 = vsel %vm1647_vm12, %v1665_v41, %v1673_v46  ;;  %v1677_v51 = vsel %vm1649_vm13, %v1674_v47, %v1675_v48  ;;  %v1690_v13 = vmul.f32 %v1658_v27, %v3267_v29  ;;  %v1691_v14 = vmul.f32 %v1659_v39, %v3272_v30 }
 0x1a3   : > { %v1678_v3 = vsel %vm1651_vm14, %v1676_v50, %v1677_v51  ;;  %v1692_v6 = vmul.f32 %v1660_v40, %v3277_v31  ;;  %v1693_v18 = vmul.f32 %v1657_v35, %v3290_v36  ;;  %v1694_v22 = vmul.f32 %v1658_v27, %v3295_v37 }
 0x1a4   : > { %v1680_v55 = vsub.f32 %v1655_v49, %v1678_v3  ;;  %v3390_v23 = vmul.f32 %v1659_v39, %v3300_v38  ;;  %v3393_v24 = vmul.f32 %v1660_v40, %v3311_v43 }
 0x1a6   : > { %v1698_v15 = vperm.slane %v1680_v55, 0  ;;  %v1699_v8 = vperm.slane %v1680_v55, 1  ;;  %v3383_v16 = vperm.slane %v1680_v55, 2  ;;  %v3385_v17 = vperm.slane %v1680_v55, 3 }
 0x1a8   : > { %v1706_v29 = vadd.f32 %v1698_v15, %v1681_v52  ;;  %v1707_v30 = vadd.f32 %v1699_v8, %v1682_v58  ;;  %v1708_v31 = vadd.f32 %v3383_v16, %v1683_v4  ;;  %v1709_v9 = vadd.f32 %v3385_v17, %v1684_v7 }
 0x1a9   : > { %v1710_v57 = vadd.f32 %v1698_v15, %v1685_v54  ;;  %v1711_v10 = vadd.f32 %v1699_v8, %v1686_v56  ;;  %v1712_v62 = vadd.f32 %v3383_v16, %v1687_v61  ;;  %v1713_v36 = vadd.f32 %v3385_v17, %v1688_v0 }
 0x1aa   : > { %vm1722_vm15 = vcmp.gt.f32.partialorder %v1706_v29, 0.0  ;;  %v1738_v37 = vmul.f32 0.2, %v1706_v29  ;;  %vm1723_vm0 = vcmp.gt.f32.partialorder %v1707_v30, 0.0  ;;  %v1739_v38 = vmul.f32 0.2, %v1707_v30 }
 0x1ab   : > { %vm1724_vm1 = vcmp.gt.f32.partialorder %v1708_v31, 0.0  ;;  %v1740_v63 = vmul.f32 0.2, %v1708_v31  ;;  %vm1725_vm2 = vcmp.gt.f32.partialorder %v1709_v9, 0.0  ;;  %v1741_v43 = vmul.f32 0.2, %v1709_v9 }
 0x1ac   : > { %v1754_v2 = vsel %vm1722_vm15, %v1706_v29, %v1738_v37  ;;  %v1755_v53 = vsel %vm1723_vm0, %v1707_v30, %v1739_v38  ;;  %vm1726_vm3 = vcmp.gt.f32.partialorder %v1710_v57, 0.0  ;;  %v1742_v59 = vmul.f32 0.2, %v1710_v57 }
 0x1ad   : > { %1770 = vst [vmem:[%s3472_s4] sm:$0xff] %v1754_v2  ;;  %v1756_v60 = vsel %vm1724_vm1, %v1708_v31, %v1740_v63  ;;  %v1757_v1 = vsel %vm1725_vm2, %v1709_v9, %v1741_v43  ;;  %vm1727_vm4 = vcmp.gt.f32.partialorder %v1711_v10, 0.0  ;;  %v1743_v11 = vmul.f32 0.2, %v1711_v10 }
 0x1ae   : > { %1771 = vst [vmem:[%s3472_s4 + $0x8] sm:$0xff] %v1755_v53  ;;  %v1758_v12 = vsel %vm1726_vm3, %v1710_v57, %v1742_v59  ;;  %vm1728_vm5 = vcmp.gt.f32.partialorder %v1712_v62, 0.0  ;;  %v1744_v25 = vmul.f32 0.2, %v1712_v62  ;;  %vm1729_vm6 = vcmp.gt.f32.partialorder %v1713_v36, 0.0 }
 0x1af   : > { %1772 = vst [vmem:[%s3472_s4 + $0x10] sm:$0xff] %v1756_v60  ;;  %v1759_v26 = vsel %vm1727_vm4, %v1711_v10, %v1743_v11  ;;  %v1745_v19 = vmul.f32 0.2, %v1713_v36  ;;  %v1714_v28 = vadd.f32 %v1698_v15, %v1689_v5  ;;  %v1715_v32 = vadd.f32 %v1699_v8, %v1690_v13 }
 0x1b0   : > { %1773 = vst [vmem:[%s3472_s4 + $0x18] sm:$0xff] %v1757_v1  ;;  %v1760_v20 = vsel %vm1728_vm5, %v1712_v62, %v1744_v25  ;;  %v1716_v21 = vadd.f32 %v3383_v16, %v1691_v14  ;;  %v1717_v33 = vadd.f32 %v3385_v17, %v1692_v6  ;;  %v1718_v34 = vadd.f32 %v1698_v15, %v1693_v18 }
 0x1b1   : > { %1774 = vst [vmem:[%s3472_s4 + $0x20] sm:$0xff] %v1758_v12  ;;  %v1761_v35 = vsel %vm1729_vm6, %v1713_v36, %v1745_v19  ;;  %vm1730_vm7 = vcmp.gt.f32.partialorder %v1714_v28, 0.0  ;;  %v1746_v27 = vmul.f32 0.2, %v1714_v28  ;;  %vm1731_vm8 = vcmp.gt.f32.partialorder %v1715_v32, 0.0 }
 0x1b2   : > { %1775 = vst [vmem:[%s3472_s4 + $0x28] sm:$0xff] %v1759_v26  ;;  %v1747_v39 = vmul.f32 0.2, %v1715_v32  ;;  %vm1732_vm9 = vcmp.gt.f32.partialorder %v1716_v21, 0.0  ;;  %v1748_v40 = vmul.f32 0.2, %v1716_v21  ;;  %v1719_v41 = vadd.f32 %v1699_v8, %v1694_v22 }
 0x1b3   : > { %1776 = vst [vmem:[%s3472_s4 + $0x30] sm:$0xff] %v1760_v20  ;;  %v1762_v42 = vsel %vm1730_vm7, %v1714_v28, %v1746_v27  ;;  %vm1733_vm10 = vcmp.gt.f32.partialorder %v1717_v33, 0.0  ;;  %v1749_v44 = vmul.f32 0.2, %v1717_v33  ;;  %vm1734_vm11 = vcmp.gt.f32.partialorder %v1718_v34, 0.0 }
 0x1b4   : > { %1777 = vst [vmem:[%s3472_s4 + $0x38] sm:$0xff] %v1761_v35  ;;  %v1763_v45 = vsel %vm1731_vm8, %v1715_v32, %v1747_v39  ;;  %v1764_v46 = vsel %vm1732_vm9, %v1716_v21, %v1748_v40  ;;  %v1750_v47 = vmul.f32 0.2, %v1718_v34  ;;  %vm1735_vm12 = vcmp.gt.f32.partialorder %v1719_v41, 0.0 }
 0x1b5   : > { %1778 = vst [vmem:[%s3472_s4 + $0x40] sm:$0xff] %v1762_v42  ;;  %v1765_v48 = vsel %vm1733_vm10, %v1717_v33, %v1749_v44  ;;  %v1751_v49 = vmul.f32 0.2, %v1719_v41  ;;  %v1720_v50 = vadd.f32 %v3383_v16, %v3390_v23  ;;  %v1721_v51 = vadd.f32 %v3385_v17, %v3393_v24 }
 0x1b6   : > { %1779 = vst [vmem:[%s3472_s4 + $0x48] sm:$0xff] %v1763_v45  ;;  %v1766_v52 = vsel %vm1734_vm11, %v1718_v34, %v1750_v47 }
 0x1b7   : > { %1780 = vst [vmem:[%s3472_s4 + $0x50] sm:$0xff] %v1764_v46  ;;  %v1767_v58 = vsel %vm1735_vm12, %v1719_v41, %v1751_v49  ;;  %vm1736_vm13 = vcmp.gt.f32.partialorder %v1720_v50, 0.0  ;;  %v1752_v3 = vmul.f32 0.2, %v1720_v50  ;;  %vm1737_vm14 = vcmp.gt.f32.partialorder %v1721_v51, 0.0 }
 0x1b8   : > { %1781 = vst [vmem:[%s3472_s4 + $0x58] sm:$0xff] %v1765_v48  ;;  %v1753_v4 = vmul.f32 0.2, %v1721_v51 }
 0x1b9   : > { %1782 = vst [vmem:[%s3472_s4 + $0x60] sm:$0xff] %v1766_v52  ;;  %v1768_v7 = vsel %vm1736_vm13, %v1720_v50, %v1752_v3 }
 0x1ba   : > { %1783 = vst [vmem:[%s3472_s4 + $0x68] sm:$0xff] %v1767_v58  ;;  %v1769_v54 = vsel %vm1737_vm14, %v1721_v51, %v1753_v4 }
 0x1bb   : > { %1784 = vst [vmem:[%s3472_s4 + $0x70] sm:$0xff] %v1768_v7 }
 0x1bc   : > { %1785 = vst [vmem:[%s3472_s4 + $0x78] sm:$0xff] %v1769_v54 }
 0x1bd PF: > { %s14_s19 = sadd.s32 1, %s2657_s19   ;;  %s3475_s15 = smov %s2645_s16 }
 0x1be   : > { %p11_p12 = scmp.ge.s32.totalorder %s14_s19, 4   ;;  %s3476_s16 = smov %s2720_s23 }
 0x1bf   : > { %s3477_s17 = smov %s2653_s18  ;;  %s3478_s18 = smov %s3480_s20 }
 0x1c0   :  { %13 = sbr.rel (!%p11_p12) target bundleno = 3 (0x3), region = 105 }

// kernel: _lambda_.11
= control target key start
LH: loop header
LB: loop body
LE: loop exit
PB: predicated region body
PF: predicated region fallthrough
CT: control target
= control target key end

     0   :  { %s2441_s15 = smov 0   ;;  %s2443_s16 = smov 0   ;;  %s3006_s0 = inlined_call_operand.vmem [shape: bf16[16,2048], index: 0, kind: input, shape index: {}]   ;;  %s3007_s1 = inlined_call_operand.vmem [shape: bf16[2048,512], index: 1, kind: input, shape index: {}]   ;;  %s3008_s2 = inlined_call_operand.vmem [shape: f32[1,512], index: 2, kind: input, shape index: {}]   ;;  %s3009_s3 = inlined_call_operand.vmem [shape: f32[1,512], index: 3, kind: input, shape index: {}]   ;;  %s3010_s4 = inlined_call_operand.vmem [shape: f32[16,512], index: 4, kind: output, shape index: {}]  }
   0x1   :  { %s2445_s17 = smov 0   ;;  %s2447_s18 = smov 0  }
   0x2   :  { %s2449_s19 = smov 0  }
   0x3 LB: > { %s23_s20 = sadd.s32 1, %s2409_s18  ;;  %p42_p1 = scmp.ne.s32.totalorder %s2401_s16, %s2397_s15  ;;  %s2413_s19 = sphi %s2449_s19, %s14_s19   ;;  %s2409_s18 = sphi %s2447_s18, %s3016_s18   ;;  %s2405_s17 = sphi %s2445_s17, %s3015_s17   ;;  %s2401_s16 = sphi %s2443_s16, %s3014_s16   ;;  %s2397_s15 = sphi %s2441_s15, %s3013_s15  }
   0x4   : > { %p24_p0 = scmp.ge.s32.totalorder %s23_s20, 4  ;;  %p43_p2 = scmp.eq.s32.totalorder %s2413_s19, 0 }
   0x5   : > { %s35_s22 = sadd.s32 1, %s2401_s16  ;;  %p1649_p5 = scmp.ge.s32.totalorder %s2413_s19, 4 }
   0x6   : > { %s3018_s20 = smov (%p24_p0, %s23_s20), 0  ;;  %p44_p3 = por %p43_p2, %p42_p1 }
   0x7   : > { %s31_s21 = ssub.s32 %s2409_s18, %s3018_s20  ;;  %168 = sbr.rel (%p1649_p5) target bundleno = 20 (0x14), region = 24 }
   0x8   : > { %p33_p4 = scmp.eq.s32.totalorder %s31_s21, 0 }
   0xa   : > { %s2476_s23 = scalar_select %p33_p4, %s2401_s16, %s35_s22  }
   0xc   : > { %171 = sbr.rel (!%p44_p3) target bundleno = 20 (0x14), region = 28  ;;  %s173_s24 = sand.u32 (%p44_p3), 1, %s2401_s16  }
   0xd   : > { %s2192_s25 = sshll.u32 (%p44_p3), %s2409_s18, 4  ;;  %s1650_s26 = sshll.u32 (%p44_p3), %s173_s24, 5 }
   0xe   : > { %s181_s29 = scalar_lea.vmem (%p44_p3), %s3006_s0, %s2192_s25  ;;  %s175_s30 = scalar_lea.vmem (%p44_p3), [#allocation2], %s1650_s26 }
   0xf   : > { %v194_v0 = vld [vmem:[%s181_s29] sm:$0xff] (%p44_p3)  ;;  %v196_v1 = vld [vmem:[%s181_s29 + $0x8] sm:$0xff] (%p44_p3) }
  0x10   : > { %v198_v2 = vld [vmem:[%s181_s29 + $0x40] sm:$0xff] (%p44_p3)  ;;  %195 = vst [vmem:[%s175_s30] sm:$0xff] (%p44_p3), %v194_v0  ;;  %v200_v3 = vld [vmem:[%s181_s29 + $0x48] sm:$0xff] (%p44_p3) }
  0x11   : > { %197 = vst [vmem:[%s175_s30 + $0x8] sm:$0xff] %v196_v1 }
  0x12   : > { %199 = vst [vmem:[%s175_s30 + $0x10] sm:$0xff] %v198_v2 }
  0x13   : > { %201 = vst [vmem:[%s175_s30 + $0x18] sm:$0xff] %v200_v3 }
  0x14 PF: > { %p1653_p6 = scmp.ge.s32.totalorder %s2413_s19, 1  ;;  %p216_p7 = scmp.lt.s32.totalorder %s2413_s19, 5 }
  0x16   : > { %p217_p8 = pnand %p1653_p6, %p216_p7 }
  0x17   : > { %s223_s5 = sand.u32 (!%p217_p8), 1, %s2397_s15   ;;  %s1655_s6 = sshll.u32 (!%p217_p8), %s2405_s17, 6 }
  0x18   : > { %220 = sbr.rel (%p217_p8) target bundleno = 402 (0x192), region = 55  ;;  %s1654_s7 = sshll.u32 (!%p217_p8), %s223_s5, 5 }
  0x19   : > { %p258_p9 = scmp.lt.s32.totalorder (!%p217_p8), %s1655_s6, 255  ;;  %s2493_s12 = scalar_lea.vmem (!%p217_p8), [#allocation2], %s1654_s7 }
  0x1a   : > { %p1658_p10 = scmp.ne.s32.totalorder (!%p217_p8), %s2405_s17, 0 }
  0x1d   : > { %s3020_s6 = smov (!%p258_p9, %s1655_s6), 255  ;;  %274 = sbr.rel (%p1658_p10) target bundleno = 43 (0x2b), region = 63 }
  0x1e   : > { %s2193_s8 = sshll.u32 %s3020_s6, 4 }
  0x1f   : > { %s2491_s11 = scalar_lea.vmem %s3007_s1, %s2193_s8 }
  0x22   : > { %v2415_v4 = vmov 0.0  }
  0x23   : > { %275 = vst [vmem:[%s3010_s4] sm:$0xff] %v2415_v4 }
  0x24   : > { %276 = vst [vmem:[%s3010_s4 + $0x8] sm:$0xff] %v2415_v4 }
  0x25   : > { %277 = vst [vmem:[%s3010_s4 + $0x10] sm:$0xff] %v2415_v4 }
  0x26   : > { %278 = vst [vmem:[%s3010_s4 + $0x18] sm:$0xff] %v2415_v4 }
  0x27   : > { %279 = vst [vmem:[%s3010_s4 + $0x20] sm:$0xff] %v2415_v4 }
  0x28   : > { %280 = vst [vmem:[%s3010_s4 + $0x28] sm:$0xff] %v2415_v4 }
  0x29   : > { %281 = vst [vmem:[%s3010_s4 + $0x30] sm:$0xff] %v2415_v4 }
  0x2a   : > { %282 = vst [vmem:[%s3010_s4 + $0x38] sm:$0xff] %v2415_v4 }
  0x2b PF: > { %v1789_v5 = vld [vmem:[%s2491_s11 + $0xe0] sm:$0xf]  ;;  %v2228_v6 = vld [vmem:[%s2491_s11 + $0xec] sm:$0xf0]  ;;  %p2187_p11 = scmp.ne.s32.totalorder %s2405_s17, 3 }
  0x2c   : > { %v1917_v7 = vld [vmem:[%s2491_s11 + $0x1e0] sm:$0xf]  ;;  %v1790_v8 = vor.u32 %v2228_v6, %v1789_v5  ;;  %v2260_v9 = vld [vmem:[%s2491_s11 + $0x1ec] sm:$0xf0] }
  0x2d   : > { %v2045_v10 = vld [vmem:[%s2491_s11 + $0x2e0] sm:$0xf]  ;;  %v2292_v11 = vld [vmem:[%s2491_s11 + $0x2ec] sm:$0xf0]  ;;  %v1918_v12 = vor.u32 %v2260_v9, %v1917_v7 }
  0x2e   : > { %v2046_v13 = vor.u32 %v2292_v11, %v2045_v10  ;;  %v2173_v14 = vld [vmem:[%s2491_s11 + $0x3e0] sm:$0xf]  ;;  %v2324_v15 = vld [vmem:[%s2491_s11 + $0x3ec] sm:$0xf0]  ;;  %1083 = vmatpush.bf16.msra.mxu0 %v1790_v8 }
  0x2f   : > { %v1773_v16 = vld [vmem:[%s2491_s11 + $0xc0] sm:$0xf]  ;;  %v2174_v17 = vor.u32 %v2324_v15, %v2173_v14  ;;  %v2224_v18 = vld [vmem:[%s2491_s11 + $0xcc] sm:$0xf0]  ;;  %1097 = vmatpush.bf16.msra.mxu1 %v1918_v12 }
  0x30   : > { %v1901_v19 = vld [vmem:[%s2491_s11 + $0x1c0] sm:$0xf]  ;;  %v2256_v20 = vld [vmem:[%s2491_s11 + $0x1cc] sm:$0xf0]  ;;  %1111 = vmatpush.bf16.msra.mxu2 %v2046_v13  ;;  %v1774_v21 = vor.u32 %v2224_v18, %v1773_v16 }
  0x31   : > { %v1902_v22 = vor.u32 %v2256_v20, %v1901_v19  ;;  %v2029_v23 = vld [vmem:[%s2491_s11 + $0x2c0] sm:$0xf]  ;;  %v2288_v24 = vld [vmem:[%s2491_s11 + $0x2cc] sm:$0xf0]  ;;  %1125 = vmatpush.bf16.msra.mxu3 %v2174_v17 }
  0x32   : > { %v2157_v25 = vld [vmem:[%s2491_s11 + $0x3c0] sm:$0xf]  ;;  %v2030_v26 = vor.u32 %v2288_v24, %v2029_v23  ;;  %v2320_v27 = vld [vmem:[%s2491_s11 + $0x3cc] sm:$0xf0]  ;;  %1084 = vmatpush.bf16.msra.mxu0 %v1774_v21 }
  0x33   : > { %v1757_v28 = vld [vmem:[%s2491_s11 + $0xa0] sm:$0xf]  ;;  %v2220_v29 = vld [vmem:[%s2491_s11 + $0xac] sm:$0xf0]  ;;  %v2158_v30 = vor.u32 %v2320_v27, %v2157_v25  ;;  %1098 = vmatpush.bf16.msra.mxu1 %v1902_v22 }
  0x34   : > { %v1885_v31 = vld [vmem:[%s2491_s11 + $0x1a0] sm:$0xf]  ;;  %v2252_v32 = vld [vmem:[%s2491_s11 + $0x1ac] sm:$0xf0]  ;;  %v1758_v34 = vor.u32 %v2220_v29, %v1757_v28  ;;  %1112 = vmatpush.bf16.msra.mxu2 %v2030_v26 }
  0x35   : > { %v2013_v33 = vld [vmem:[%s2491_s11 + $0x2a0] sm:$0xf]  ;;  %v2284_v35 = vld [vmem:[%s2491_s11 + $0x2ac] sm:$0xf0]  ;;  %v1886_v38 = vor.u32 %v2252_v32, %v1885_v31  ;;  %1126 = vmatpush.bf16.msra.mxu3 %v2158_v30 }
  0x36   : > { %v2141_v36 = vld [vmem:[%s2491_s11 + $0x3a0] sm:$0xf]  ;;  %v2316_v37 = vld [vmem:[%s2491_s11 + $0x3ac] sm:$0xf0]  ;;  %v2014_v39 = vor.u32 %v2284_v35, %v2013_v33  ;;  %1085 = vmatpush.bf16.msra.mxu0 %v1758_v34  ;;  %v2226_v33 = vld [vmem:[%s2491_s11 + $0xe4] sm:$0xf] }
  0x37   : > { %v1741_v40 = vld [vmem:[%s2491_s11 + $0x80] sm:$0xf]  ;;  %v2216_v41 = vld [vmem:[%s2491_s11 + $0x8c] sm:$0xf0]  ;;  %v2142_v43 = vor.u32 %v2316_v37, %v2141_v36  ;;  %1099 = vmatpush.bf16.msra.mxu1 %v1886_v38  ;;  %v1791_v34 = vld [vmem:[%s2491_s11 + $0xf0] sm:$0xf0] }
  0x38   : > { %v1869_v42 = vld [vmem:[%s2491_s11 + $0x180] sm:$0xf]  ;;  %v2248_v44 = vld [vmem:[%s2491_s11 + $0x18c] sm:$0xf0]  ;;  %v1742_v49 = vor.u32 %v2216_v41, %v1741_v40  ;;  %1113 = vmatpush.bf16.msra.mxu2 %v2014_v39  ;;  %v2258_v35 = vld [vmem:[%s2491_s11 + $0x1e4] sm:$0xf] }
  0x39   : > { %v1997_v45 = vld [vmem:[%s2491_s11 + $0x280] sm:$0xf]  ;;  %v2280_v46 = vld [vmem:[%s2491_s11 + $0x28c] sm:$0xf0]  ;;  %v1870_v50 = vor.u32 %v2248_v44, %v1869_v42  ;;  %1127 = vmatpush.bf16.msra.mxu3 %v2142_v43  ;;  %v1919_v37 = vld [vmem:[%s2491_s11 + $0x1f0] sm:$0xf0] }
  0x3a   : > { %v2125_v47 = vld [vmem:[%s2491_s11 + $0x380] sm:$0xf]  ;;  %v2312_v48 = vld [vmem:[%s2491_s11 + $0x38c] sm:$0xf0]  ;;  %v1998_v51 = vor.u32 %v2280_v46, %v1997_v45  ;;  %1086 = vmatpush.bf16.msra.mxu0 %v1742_v49  ;;  %v2290_v38 = vld [vmem:[%s2491_s11 + $0x2e4] sm:$0xf]  ;;  %v1794_v45 = vor.u32 %v2226_v33, %v1791_v34  ;;  %v1922_v46 = vor.u32 %v2258_v35, %v1919_v37 }
  0x3b   : > { %v1725_v52 = vld [vmem:[%s2491_s11 + $0x60] sm:$0xf]  ;;  %v2212_v53 = vld [vmem:[%s2491_s11 + $0x6c] sm:$0xf0]  ;;  %v2126_v55 = vor.u32 %v2312_v48, %v2125_v47  ;;  %1100 = vmatpush.bf16.msra.mxu1 %v1870_v50  ;;  %v2047_v39 = vld [vmem:[%s2491_s11 + $0x2f0] sm:$0xf0] }
  0x3c   : > { %v1853_v54 = vld [vmem:[%s2491_s11 + $0x160] sm:$0xf]  ;;  %v2244_v56 = vld [vmem:[%s2491_s11 + $0x16c] sm:$0xf0]  ;;  %v1726_v61 = vor.u32 %v2212_v53, %v1725_v52  ;;  %1114 = vmatpush.bf16.msra.mxu2 %v1998_v51  ;;  %v2322_v42 = vld [vmem:[%s2491_s11 + $0x3e4] sm:$0xf]  ;;  %v2050_v47 = vor.u32 %v2290_v38, %v2047_v39 }
  0x3d   : > { %v1981_v57 = vld [vmem:[%s2491_s11 + $0x260] sm:$0xf]  ;;  %v2276_v58 = vld [vmem:[%s2491_s11 + $0x26c] sm:$0xf0]  ;;  %v1854_v62 = vor.u32 %v2244_v56, %v1853_v54  ;;  %1128 = vmatpush.bf16.msra.mxu3 %v2126_v55  ;;  %v2175_v43 = vld [vmem:[%s2491_s11 + $0x3f0] sm:$0xf0] }
  0x3e   : > { %v2109_v59 = vld [vmem:[%s2491_s11 + $0x360] sm:$0xf]  ;;  %v2308_v60 = vld [vmem:[%s2491_s11 + $0x36c] sm:$0xf0]  ;;  %v1982_v63 = vor.u32 %v2276_v58, %v1981_v57  ;;  %1087 = vmatpush.bf16.msra.mxu0 %v1726_v61  ;;  %v2222_v48 = vld [vmem:[%s2491_s11 + $0xc4] sm:$0xf]  ;;  %v2178_v51 = vor.u32 %v2322_v42, %v2175_v43 }
  0x3f   : > { %v1709_v0 = vld [vmem:[%s2491_s11 + $0x40] sm:$0xf]  ;;  %v2208_v1 = vld [vmem:[%s2491_s11 + $0x4c] sm:$0xf0]  ;;  %v2110_v3 = vor.u32 %v2308_v60, %v2109_v59  ;;  %1101 = vmatpush.bf16.msra.mxu1 %v1854_v62  ;;  %v1775_v49 = vld [vmem:[%s2491_s11 + $0xd0] sm:$0xf0] }
  0x40   : > { %v1837_v2 = vld [vmem:[%s2491_s11 + $0x140] sm:$0xf]  ;;  %v2240_v4 = vld [vmem:[%s2491_s11 + $0x14c] sm:$0xf0]  ;;  %v1710_v9 = vor.u32 %v2208_v1, %v1709_v0  ;;  %1115 = vmatpush.bf16.msra.mxu2 %v1982_v63  ;;  %v2254_v50 = vld [vmem:[%s2491_s11 + $0x1c4] sm:$0xf]  ;;  %v1778_v57 = vor.u32 %v2222_v48, %v1775_v49 }
  0x41   : > { %v1965_v5 = vld [vmem:[%s2491_s11 + $0x240] sm:$0xf]  ;;  %v2272_v6 = vld [vmem:[%s2491_s11 + $0x24c] sm:$0xf0]  ;;  %v1838_v10 = vor.u32 %v2240_v4, %v1837_v2  ;;  %1129 = vmatpush.bf16.msra.mxu3 %v2110_v3  ;;  %v1903_v52 = vld [vmem:[%s2491_s11 + $0x1d0] sm:$0xf0] }
  0x42   : > { %v2093_v7 = vld [vmem:[%s2491_s11 + $0x340] sm:$0xf]  ;;  %v2304_v8 = vld [vmem:[%s2491_s11 + $0x34c] sm:$0xf0]  ;;  %v1966_v11 = vor.u32 %v2272_v6, %v1965_v5  ;;  %1088 = vmatpush.bf16.msra.mxu0 %v1710_v9  ;;  %v2286_v53 = vld [vmem:[%s2491_s11 + $0x2c4] sm:$0xf]  ;;  %v1906_v58 = vor.u32 %v2254_v50, %v1903_v52 }
  0x43   : > { %v1693_v12 = vld [vmem:[%s2491_s11 + $0x20] sm:$0xf]  ;;  %v2204_v13 = vld [vmem:[%s2491_s11 + $0x2c] sm:$0xf0]  ;;  %v2094_v15 = vor.u32 %v2304_v8, %v2093_v7  ;;  %1102 = vmatpush.bf16.msra.mxu1 %v1838_v10  ;;  %v2031_v54 = vld [vmem:[%s2491_s11 + $0x2d0] sm:$0xf0] }
  0x44   : > { %v1821_v14 = vld [vmem:[%s2491_s11 + $0x120] sm:$0xf]  ;;  %v2236_v16 = vld [vmem:[%s2491_s11 + $0x12c] sm:$0xf0]  ;;  %v1694_v21 = vor.u32 %v2204_v13, %v1693_v12  ;;  %1116 = vmatpush.bf16.msra.mxu2 %v1966_v11  ;;  %v2318_v55 = vld [vmem:[%s2491_s11 + $0x3c4] sm:$0xf]  ;;  %v2034_v59 = vor.u32 %v2286_v53, %v2031_v54 }
  0x45   : > { %v1949_v17 = vld [vmem:[%s2491_s11 + $0x220] sm:$0xf]  ;;  %v2268_v18 = vld [vmem:[%s2491_s11 + $0x22c] sm:$0xf0]  ;;  %v1822_v24 = vor.u32 %v2236_v16, %v1821_v14  ;;  %1130 = vmatpush.bf16.msra.mxu3 %v2094_v15  ;;  %v2159_v56 = vld [vmem:[%s2491_s11 + $0x3d0] sm:$0xf0] }
  0x46   : > { %v2077_v19 = vld [vmem:[%s2491_s11 + $0x320] sm:$0xf]  ;;  %v2300_v20 = vld [vmem:[%s2491_s11 + $0x32c] sm:$0xf0]  ;;  %v1950_v25 = vor.u32 %v2268_v18, %v1949_v17  ;;  %1089 = vmatpush.bf16.msra.mxu0 %v1694_v21  ;;  %v2218_v60 = vld [vmem:[%s2491_s11 + $0xa4] sm:$0xf]  ;;  %v2162_v63 = vor.u32 %v2318_v55, %v2159_v56 }
  0x47   : > { %v1677_v22 = vld [vmem:[%s2491_s11] sm:$0xf]  ;;  %v2200_v23 = vld [vmem:[%s2491_s11 + $0xc] sm:$0xf0]  ;;  %v2078_v29 = vor.u32 %v2300_v20, %v2077_v19  ;;  %1103 = vmatpush.bf16.msra.mxu1 %v1822_v24  ;;  %v1759_v61 = vld [vmem:[%s2491_s11 + $0xb0] sm:$0xf0] }
  0x48   : > { %v1805_v26 = vld [vmem:[%s2491_s11 + $0x100] sm:$0xf]  ;;  %v2232_v27 = vld [vmem:[%s2491_s11 + $0x10c] sm:$0xf0]  ;;  %v1678_v36 = vor.u32 %v2200_v23, %v1677_v22  ;;  %1117 = vmatpush.bf16.msra.mxu2 %v1950_v25  ;;  %v2250_v62 = vld [vmem:[%s2491_s11 + $0x1a4] sm:$0xf]  ;;  %v1762_v6 = vor.u32 %v2218_v60, %v1759_v61 }
  0x49   : > { %v1933_v28 = vld [vmem:[%s2491_s11 + $0x200] sm:$0xf]  ;;  %v2264_v30 = vld [vmem:[%s2491_s11 + $0x20c] sm:$0xf0]  ;;  %v1806_v40 = vor.u32 %v2232_v27, %v1805_v26  ;;  %1131 = vmatpush.bf16.msra.mxu3 %v2078_v29  ;;  %v1887_v0 = vld [vmem:[%s2491_s11 + $0x1b0] sm:$0xf0] }
  0x4a   : > { %v2061_v31 = vld [vmem:[%s2491_s11 + $0x300] sm:$0xf]  ;;  %v2296_v32 = vld [vmem:[%s2491_s11 + $0x30c] sm:$0xf0]  ;;  %v1934_v41 = vor.u32 %v2264_v30, %v1933_v28  ;;  %1090 = vmatpush.bf16.msra.mxu0 %v1678_v36  ;;  %v2282_v1 = vld [vmem:[%s2491_s11 + $0x2a4] sm:$0xf]  ;;  %v1890_v10 = vor.u32 %v2250_v62, %v1887_v0 }
  0x4b   : > { %v2062_v44 = vor.u32 %v2296_v32, %v2061_v31  ;;  %1104 = vmatpush.bf16.msra.mxu1 %v1806_v40  ;;  %v2015_v2 = vld [vmem:[%s2491_s11 + $0x2b0] sm:$0xf0]  ;;  %v2314_v3 = vld [vmem:[%s2491_s11 + $0x3a4] sm:$0xf]  ;;  %v1669_v8 = vld [vmem:[%s2493_s12 + $0x8] sm:$0xf] }
  0x4c   : > { %1118 = vmatpush.bf16.msra.mxu2 %v1934_v41  ;;  %v2143_v4 = vld [vmem:[%s2491_s11 + $0x3b0] sm:$0xf0]  ;;  %v2214_v5 = vld [vmem:[%s2491_s11 + $0x84] sm:$0xf]  ;;  %v2197_v9 = vld [vmem:[%s2493_s12 + $0x14] sm:$0xf0]  ;;  %v2018_v11 = vor.u32 %v2282_v1, %v2015_v2 }
  0x4d   : > { %1132 = vmatpush.bf16.msra.mxu3 %v2062_v44  ;;  %v1743_v7 = vld [vmem:[%s2491_s11 + $0x90] sm:$0xf0]  ;;  %v2246_v12 = vld [vmem:[%s2491_s11 + $0x184] sm:$0xf]  ;;  %v2613_v13 = vor.u32 %v2197_v9, %v1669_v8  ;;  %v2195_v14 = vld [vmem:[%s2493_s12 + $0xc] sm:$0xf]  ;;  %v2146_v16 = vor.u32 %v2314_v3, %v2143_v4 }
  0x4e   : > { %1139 = vmatpush.bf16.msrb.mxu0 %v1794_v45  ;;  %v1671_v15 = vld [vmem:[%s2493_s12 + $0x18] sm:$0xf0]  ;;  %v1871_v17 = vld [vmem:[%s2491_s11 + $0x190] sm:$0xf0]  ;;  %v2278_v18 = vld [vmem:[%s2491_s11 + $0x284] sm:$0xf]  ;;  %v1746_v24 = vor.u32 %v2214_v5, %v1743_v7 }
  0x4f   : > { %1153 = vmatpush.bf16.msrb.mxu1 %v1922_v46  ;;  %v1999_v19 = vld [vmem:[%s2491_s11 + $0x290] sm:$0xf0]  ;;  %v2620_v20 = vor.u32 %v2195_v14, %v1671_v15  ;;  %v2310_v21 = vld [vmem:[%s2491_s11 + $0x384] sm:$0xf]  ;;  %1119 = vmatmul.bf16.vlgmr.msra.gmra.mxu2 %v2613_v13  ;;  %v1661_v26 = vld [vmem:[%s2493_s12] sm:$0xf]  ;;  %v1874_v28 = vor.u32 %v2246_v12, %v1871_v17 }
  0x50   : > { %1167 = vmatpush.bf16.msrb.mxu2 %v2050_v47  ;;  %v2127_v22 = vld [vmem:[%s2491_s11 + $0x390] sm:$0xf0]  ;;  %v2210_v23 = vld [vmem:[%s2491_s11 + $0x64] sm:$0xf]  ;;  %v2196_v27 = vld [vmem:[%s2493_s12 + $0xc] sm:$0xf0]  ;;  %v2002_v29 = vor.u32 %v2278_v18, %v1999_v19 }
  0x51   : > { %1181 = vmatpush.bf16.msrb.mxu3 %v2178_v51  ;;  %v1727_v25 = vld [vmem:[%s2491_s11 + $0x70] sm:$0xf0]  ;;  %v2242_v30 = vld [vmem:[%s2491_s11 + $0x164] sm:$0xf]  ;;  %v2631_v31 = vor.u32 %v2196_v27, %v1661_v26  ;;  %v2130_v34 = vor.u32 %v2310_v21, %v2127_v22  ;;  %v1797_v14 = vld [vmem:[%s2491_s11 + $0xe8] sm:$0xf] }
  0x52   : > { %1140 = vmatpush.bf16.msrb.mxu0 %v1778_v57  ;;  %1133 = vmatmul.bf16.vlgmr.msra.gmra.mxu3 %v2620_v20  ;;  %v2194_v32 = vld [vmem:[%s2493_s12 + $0x4] sm:$0xf]  ;;  %v1663_v33 = vld [vmem:[%s2493_s12 + $0x10] sm:$0xf0]  ;;  %v1730_v41 = vor.u32 %v2210_v23, %v1727_v25  ;;  %v2229_v15 = vld [vmem:[%s2491_s11 + $0xf4] sm:$0xf0] }
  0x53   : > { %1154 = vmatpush.bf16.msrb.mxu1 %v1906_v58  ;;  %v1855_v35 = vld [vmem:[%s2491_s11 + $0x170] sm:$0xf0]  ;;  %v2274_v36 = vld [vmem:[%s2491_s11 + $0x264] sm:$0xf]  ;;  %v2638_v38 = vor.u32 %v2194_v32, %v1663_v33  ;;  %1091 = vmatmul.bf16.vlgmr.msra.gmra.mxu0 %v2631_v31  ;;  %v2261_v18 = vld [vmem:[%s2491_s11 + $0x1f4] sm:$0xf0]  ;;  %v1798_v27 = vor.u32 %v2229_v15, %v1797_v14 }
  0x54   : > { %1168 = vmatpush.bf16.msrb.mxu2 %v2034_v59  ;;  %v1983_v37 = vld [vmem:[%s2491_s11 + $0x270] sm:$0xf0]  ;;  %v2306_v39 = vld [vmem:[%s2491_s11 + $0x364] sm:$0xf]  ;;  %v1858_v42 = vor.u32 %v2242_v30, %v1855_v35  ;;  %v2053_v19 = vld [vmem:[%s2491_s11 + $0x2e8] sm:$0xf] }
  0x55   : > { %1182 = vmatpush.bf16.msrb.mxu3 %v2162_v63  ;;  %v2111_v40 = vld [vmem:[%s2491_s11 + $0x370] sm:$0xf0]  ;;  %1105 = vmatmul.bf16.vlgmr.msra.gmra.mxu1 %v2638_v38  ;;  %v1986_v43 = vor.u32 %v2274_v36, %v1983_v37  ;;  %v2206_v44 = vld [vmem:[%s2491_s11 + $0x44] sm:$0xf]  ;;  %v2293_v21 = vld [vmem:[%s2491_s11 + $0x2f4] sm:$0xf0] }
  0x56   : > { %1141 = vmatpush.bf16.msrb.mxu0 %v1762_v6  ;;  %v1711_v45 = vld [vmem:[%s2491_s11 + $0x50] sm:$0xf0]  ;;  %v2238_v46 = vld [vmem:[%s2491_s11 + $0x144] sm:$0xf]  ;;  %v2114_v47 = vor.u32 %v2306_v39, %v2111_v40  ;;  %v2325_v25 = vld [vmem:[%s2491_s11 + $0x3f4] sm:$0xf0] }
  0x57   : > { %1155 = vmatpush.bf16.msrb.mxu1 %v1890_v10  ;;  %v1839_v48 = vld [vmem:[%s2491_s11 + $0x150] sm:$0xf0]  ;;  %v2270_v49 = vld [vmem:[%s2491_s11 + $0x244] sm:$0xf]  ;;  %v1714_v53 = vor.u32 %v2206_v44, %v1711_v45  ;;  %v1781_v30 = vld [vmem:[%s2491_s11 + $0xc8] sm:$0xf] }
  0x58   : > { %1169 = vmatpush.bf16.msrb.mxu2 %v2018_v11  ;;  %v1967_v50 = vld [vmem:[%s2491_s11 + $0x250] sm:$0xf0]  ;;  %v2302_v51 = vld [vmem:[%s2491_s11 + $0x344] sm:$0xf]  ;;  %v1842_v54 = vor.u32 %v2238_v46, %v1839_v48  ;;  %v2225_v32 = vld [vmem:[%s2491_s11 + $0xd4] sm:$0xf0] }
  0x59   : > { %1183 = vmatpush.bf16.msrb.mxu3 %v2146_v16  ;;  %v2095_v52 = vld [vmem:[%s2491_s11 + $0x350] sm:$0xf0]  ;;  %v1970_v55 = vor.u32 %v2270_v49, %v1967_v50  ;;  %v2202_v56 = vld [vmem:[%s2491_s11 + $0x24] sm:$0xf]  ;;  %v1925_v16 = vld [vmem:[%s2491_s11 + $0x1e8] sm:$0xf] }
  0x5a   : > { %1142 = vmatpush.bf16.msrb.mxu0 %v1746_v24  ;;  %v1695_v57 = vld [vmem:[%s2491_s11 + $0x30] sm:$0xf0]  ;;  %v2234_v58 = vld [vmem:[%s2491_s11 + $0x124] sm:$0xf]  ;;  %v2098_v59 = vor.u32 %v2302_v51, %v2095_v52  ;;  %v2181_v24 = vld [vmem:[%s2491_s11 + $0x3e8] sm:$0xf] }
  0x5b   : > { %1156 = vmatpush.bf16.msrb.mxu1 %v1874_v28  ;;  %v1823_v60 = vld [vmem:[%s2491_s11 + $0x130] sm:$0xf0]  ;;  %v2266_v61 = vld [vmem:[%s2491_s11 + $0x224] sm:$0xf]  ;;  %v1698_v1 = vor.u32 %v2202_v56, %v1695_v57  ;;  %v1926_v28 = vor.u32 %v2261_v18, %v1925_v16  ;;  %v1909_v33 = vld [vmem:[%s2491_s11 + $0x1c8] sm:$0xf] }
  0x5c   : > { %1170 = vmatpush.bf16.msrb.mxu2 %v2002_v29  ;;  %v1951_v62 = vld [vmem:[%s2491_s11 + $0x230] sm:$0xf0]  ;;  %v2298_v63 = vld [vmem:[%s2491_s11 + $0x324] sm:$0xf]  ;;  %v1826_v4 = vor.u32 %v2234_v58, %v1823_v60  ;;  %v2054_v29 = vor.u32 %v2293_v21, %v2053_v19  ;;  %v2257_v35 = vld [vmem:[%s2491_s11 + $0x1d4] sm:$0xf0] }
  0x5d   : > { %1184 = vmatpush.bf16.msrb.mxu3 %v2130_v34  ;;  %v2079_v0 = vld [vmem:[%s2491_s11 + $0x330] sm:$0xf0]  ;;  %v2198_v2 = vld [vmem:[%s2491_s11 + $0x4] sm:$0xf]  ;;  %v1954_v5 = vor.u32 %v2266_v61, %v1951_v62  ;;  %v2182_v34 = vor.u32 %v2325_v25, %v2181_v24  ;;  %v2037_v36 = vld [vmem:[%s2491_s11 + $0x2c8] sm:$0xf] }
  0x5e   : > { %1143 = vmatpush.bf16.msrb.mxu0 %v1730_v41  ;;  %v1679_v3 = vld [vmem:[%s2491_s11 + $0x10] sm:$0xf0]  ;;  %v2230_v6 = vld [vmem:[%s2491_s11 + $0x104] sm:$0xf]  ;;  %v2082_v9 = vor.u32 %v2298_v63, %v2079_v0  ;;  %v2289_v37 = vld [vmem:[%s2491_s11 + $0x2d4] sm:$0xf0]  ;;  %v1782_v41 = vor.u32 %v2225_v32, %v1781_v30 }
  0x5f   : > { %1157 = vmatpush.bf16.msrb.mxu1 %v1858_v42  ;;  %v1807_v7 = vld [vmem:[%s2491_s11 + $0x110] sm:$0xf0]  ;;  %v2262_v8 = vld [vmem:[%s2491_s11 + $0x204] sm:$0xf]  ;;  %v1682_v17 = vor.u32 %v2198_v2, %v1679_v3  ;;  %v2165_v39 = vld [vmem:[%s2491_s11 + $0x3c8] sm:$0xf]  ;;  %v1910_v42 = vor.u32 %v2257_v35, %v1909_v33 }
  0x60   : > { %1171 = vmatpush.bf16.msrb.mxu2 %v1986_v43  ;;  %v1935_v10 = vld [vmem:[%s2491_s11 + $0x210] sm:$0xf0]  ;;  %v2294_v11 = vld [vmem:[%s2491_s11 + $0x304] sm:$0xf]  ;;  %v1810_v22 = vor.u32 %v2230_v6, %v1807_v7  ;;  %v2321_v40 = vld [vmem:[%s2491_s11 + $0x3d4] sm:$0xf0]  ;;  %v2038_v43 = vor.u32 %v2289_v37, %v2037_v36 }
  0x61   : > { %1185 = vmatpush.bf16.msrb.mxu3 %v2114_v47  ;;  %v2063_v12 = vld [vmem:[%s2491_s11 + $0x310] sm:$0xf0]  ;;  %v1938_v23 = vor.u32 %v2262_v8, %v1935_v10  ;;  %v1765_v44 = vld [vmem:[%s2491_s11 + $0xa8] sm:$0xf]  ;;  %v2221_v45 = vld [vmem:[%s2491_s11 + $0xb4] sm:$0xf0]  ;;  %v2166_v47 = vor.u32 %v2321_v40, %v2165_v39 }
  0x62   : > { %1144 = vmatpush.bf16.msrb.mxu0 %v1714_v53  ;;  %v2066_v26 = vor.u32 %v2294_v11, %v2063_v12  ;;  %v1893_v46 = vld [vmem:[%s2491_s11 + $0x1a8] sm:$0xf]  ;;  %v2253_v48 = vld [vmem:[%s2491_s11 + $0x1b4] sm:$0xf0]  ;;  %v1766_v53 = vor.u32 %v2221_v45, %v1765_v44 }
  0x63   : > { %1158 = vmatpush.bf16.msrb.mxu1 %v1842_v54  ;;  %v2021_v49 = vld [vmem:[%s2491_s11 + $0x2a8] sm:$0xf]  ;;  %v2285_v50 = vld [vmem:[%s2491_s11 + $0x2b4] sm:$0xf0]  ;;  %v1894_v54 = vor.u32 %v2253_v48, %v1893_v46 }
  0x64   : > { %1172 = vmatpush.bf16.msrb.mxu2 %v1970_v55  ;;  %v2149_v51 = vld [vmem:[%s2491_s11 + $0x3a8] sm:$0xf]  ;;  %v2317_v52 = vld [vmem:[%s2491_s11 + $0x3b4] sm:$0xf0]  ;;  %v2022_v55 = vor.u32 %v2285_v50, %v2021_v49 }
  0x65   : > { %1186 = vmatpush.bf16.msrb.mxu3 %v2098_v59  ;;  %v1749_v56 = vld [vmem:[%s2491_s11 + $0x88] sm:$0xf]  ;;  %v2217_v57 = vld [vmem:[%s2491_s11 + $0x94] sm:$0xf0]  ;;  %v2150_v59 = vor.u32 %v2317_v52, %v2149_v51 }
  0x66   : > { %1145 = vmatpush.bf16.msrb.mxu0 %v1698_v1  ;;  %v1877_v58 = vld [vmem:[%s2491_s11 + $0x188] sm:$0xf]  ;;  %v2249_v60 = vld [vmem:[%s2491_s11 + $0x194] sm:$0xf0]  ;;  %v1750_v1 = vor.u32 %v2217_v57, %v1749_v56  ;;  %v1927_v57 = vld [vmem:[%s2491_s11 + $0x1f8] sm:$0xf0] }
  0x67   : > { %1159 = vmatpush.bf16.msrb.mxu1 %v1826_v4  ;;  %v2005_v61 = vld [vmem:[%s2491_s11 + $0x288] sm:$0xf]  ;;  %v2281_v62 = vld [vmem:[%s2491_s11 + $0x294] sm:$0xf0]  ;;  %v1878_v2 = vor.u32 %v2249_v60, %v1877_v58  ;;  %v2291_v58 = vld [vmem:[%s2491_s11 + $0x2ec] sm:$0xf] }
  0x68   : > { %1173 = vmatpush.bf16.msrb.mxu2 %v1954_v5  ;;  %v2133_v63 = vld [vmem:[%s2491_s11 + $0x388] sm:$0xf]  ;;  %v2313_v0 = vld [vmem:[%s2491_s11 + $0x394] sm:$0xf0]  ;;  %v2006_v3 = vor.u32 %v2281_v62, %v2005_v61  ;;  %v2323_v62 = vld [vmem:[%s2491_s11 + $0x3ec] sm:$0xf] }
  0x69   : > { %1187 = vmatpush.bf16.msrb.mxu3 %v2082_v9  ;;  %v1733_v4 = vld [vmem:[%s2491_s11 + $0x68] sm:$0xf]  ;;  %v2213_v5 = vld [vmem:[%s2491_s11 + $0x74] sm:$0xf0]  ;;  %v2134_v7 = vor.u32 %v2313_v0, %v2133_v63  ;;  %v2183_v63 = vld [vmem:[%s2491_s11 + $0x3f8] sm:$0xf0] }
  0x6a   : > { %1146 = vmatpush.bf16.msrb.mxu0 %v1682_v17  ;;  %v1861_v6 = vld [vmem:[%s2491_s11 + $0x168] sm:$0xf]  ;;  %v2245_v8 = vld [vmem:[%s2491_s11 + $0x174] sm:$0xf0]  ;;  %v1734_v14 = vor.u32 %v2213_v5, %v1733_v4  ;;  %v2223_v4 = vld [vmem:[%s2491_s11 + $0xcc] sm:$0xf] }
  0x6b   : > { %1160 = vmatpush.bf16.msrb.mxu1 %v1810_v22  ;;  %v1989_v9 = vld [vmem:[%s2491_s11 + $0x268] sm:$0xf]  ;;  %v2277_v10 = vld [vmem:[%s2491_s11 + $0x274] sm:$0xf0]  ;;  %v1862_v15 = vor.u32 %v2245_v8, %v1861_v6  ;;  %v1783_v5 = vld [vmem:[%s2491_s11 + $0xd8] sm:$0xf0] }
  0x6c   : > { %1174 = vmatpush.bf16.msrb.mxu2 %v1938_v23  ;;  %v2117_v11 = vld [vmem:[%s2491_s11 + $0x368] sm:$0xf]  ;;  %v2309_v12 = vld [vmem:[%s2491_s11 + $0x374] sm:$0xf0]  ;;  %v1990_v16 = vor.u32 %v2277_v10, %v1989_v9  ;;  %v2255_v6 = vld [vmem:[%s2491_s11 + $0x1cc] sm:$0xf] }
  0x6d   : > { %1188 = vmatpush.bf16.msrb.mxu3 %v2066_v26  ;;  %1147 = vmatmul.bf16.vlgmr.msrb.gmra.mxu0 %v2631_v31  ;;  %v1717_v17 = vld [vmem:[%s2491_s11 + $0x48] sm:$0xf]  ;;  %v2209_v18 = vld [vmem:[%s2491_s11 + $0x54] sm:$0xf0]  ;;  %v2118_v21 = vor.u32 %v2309_v12, %v2117_v11  ;;  %v1911_v8 = vld [vmem:[%s2491_s11 + $0x1d8] sm:$0xf0] }
  0x6e   : > { %1195 = vmatpush.bf16.msra.mxu0 %v1798_v27  ;;  %1161 = vmatmul.bf16.vlgmr.msrb.gmra.mxu1 %v2638_v38  ;;  %v1845_v19 = vld [vmem:[%s2491_s11 + $0x148] sm:$0xf]  ;;  %v2241_v22 = vld [vmem:[%s2491_s11 + $0x154] sm:$0xf0]  ;;  %v1718_v27 = vor.u32 %v2209_v18, %v1717_v17  ;;  %v2287_v9 = vld [vmem:[%s2491_s11 + $0x2cc] sm:$0xf] }
  0x6f   : > { %1209 = vmatpush.bf16.msra.mxu1 %v1926_v28  ;;  %1175 = vmatmul.bf16.vlgmr.msrb.gmra.mxu2 %v2613_v13  ;;  %v1973_v23 = vld [vmem:[%s2491_s11 + $0x248] sm:$0xf]  ;;  %v2273_v24 = vld [vmem:[%s2491_s11 + $0x254] sm:$0xf0]  ;;  %v1846_v28 = vor.u32 %v2241_v22, %v1845_v19  ;;  %v2039_v10 = vld [vmem:[%s2491_s11 + $0x2d8] sm:$0xf0] }
  0x70   : > { %1223 = vmatpush.bf16.msra.mxu2 %v2054_v29  ;;  %1189 = vmatmul.bf16.vlgmr.msrb.gmra.mxu3 %v2620_v20  ;;  %v2101_v25 = vld [vmem:[%s2491_s11 + $0x348] sm:$0xf]  ;;  %v2305_v26 = vld [vmem:[%s2491_s11 + $0x354] sm:$0xf0]  ;;  %v1974_v29 = vor.u32 %v2273_v24, %v1973_v23  ;;  %v2319_v11 = vld [vmem:[%s2491_s11 + $0x3cc] sm:$0xf] }
  0x71   : > { %1237 = vmatpush.bf16.msra.mxu3 %v2182_v34  ;;  %v1701_v30 = vld [vmem:[%s2491_s11 + $0x28] sm:$0xf]  ;;  %v2205_v32 = vld [vmem:[%s2491_s11 + $0x34] sm:$0xf0]  ;;  %v2102_v34 = vor.u32 %v2305_v26, %v2101_v25  ;;  %v2167_v12 = vld [vmem:[%s2491_s11 + $0x3d8] sm:$0xf0] }
  0x72   : > { %1196 = vmatpush.bf16.msra.mxu0 %v1782_v41  ;;  %v1829_v33 = vld [vmem:[%s2491_s11 + $0x128] sm:$0xf]  ;;  %v2237_v35 = vld [vmem:[%s2491_s11 + $0x134] sm:$0xf0]  ;;  %v1702_v41 = vor.u32 %v2205_v32, %v1701_v30  ;;  %v2219_v17 = vld [vmem:[%s2491_s11 + $0xac] sm:$0xf] }
  0x73   : > { %1210 = vmatpush.bf16.msra.mxu1 %v1910_v42  ;;  %v1957_v36 = vld [vmem:[%s2491_s11 + $0x228] sm:$0xf]  ;;  %v2269_v37 = vld [vmem:[%s2491_s11 + $0x234] sm:$0xf0]  ;;  %v1830_v44 = vor.u32 %v2237_v35, %v1829_v33  ;;  %v1767_v18 = vld [vmem:[%s2491_s11 + $0xb8] sm:$0xf0] }
  0x74   : > { %1224 = vmatpush.bf16.msra.mxu2 %v2038_v43  ;;  %v2085_v39 = vld [vmem:[%s2491_s11 + $0x328] sm:$0xf]  ;;  %v2301_v40 = vld [vmem:[%s2491_s11 + $0x334] sm:$0xf0]  ;;  %v1958_v45 = vor.u32 %v2269_v37, %v1957_v36  ;;  %v2251_v19 = vld [vmem:[%s2491_s11 + $0x1ac] sm:$0xf] }
  0x75   : > { %1238 = vmatpush.bf16.msra.mxu3 %v2166_v47  ;;  %v1685_v42 = vld [vmem:[%s2491_s11 + $0x8] sm:$0xf]  ;;  %v2201_v43 = vld [vmem:[%s2491_s11 + $0x14] sm:$0xf0]  ;;  %v2086_v49 = vor.u32 %v2301_v40, %v2085_v39  ;;  %v1895_v22 = vld [vmem:[%s2491_s11 + $0x1b8] sm:$0xf0] }
  0x76   : > { %1197 = vmatpush.bf16.msra.mxu0 %v1766_v53  ;;  %v1813_v46 = vld [vmem:[%s2491_s11 + $0x108] sm:$0xf]  ;;  %v2233_v47 = vld [vmem:[%s2491_s11 + $0x114] sm:$0xf0]  ;;  %v2227_v53 = vld [vmem:[%s2491_s11 + $0xec] sm:$0xf]  ;;  %v1686_v56 = vor.u32 %v2201_v43, %v1685_v42 }
  0x77   : > { %1211 = vmatpush.bf16.msra.mxu1 %v1894_v54  ;;  %v1941_v48 = vld [vmem:[%s2491_s11 + $0x208] sm:$0xf]  ;;  %v2265_v50 = vld [vmem:[%s2491_s11 + $0x214] sm:$0xf0]  ;;  %v1799_v54 = vld [vmem:[%s2491_s11 + $0xf8] sm:$0xf0]  ;;  %v1814_v60 = vor.u32 %v2233_v47, %v1813_v46 }
  0x78   : > { %1225 = vmatpush.bf16.msra.mxu2 %v2022_v55  ;;  %v2069_v51 = vld [vmem:[%s2491_s11 + $0x308] sm:$0xf]  ;;  %v2297_v52 = vld [vmem:[%s2491_s11 + $0x314] sm:$0xf0]  ;;  %v2259_v55 = vld [vmem:[%s2491_s11 + $0x1ec] sm:$0xf]  ;;  %v1942_v61 = vor.u32 %v2265_v50, %v1941_v48 }
  0x79   : > { %1239 = vmatpush.bf16.msra.mxu3 %v2150_v59  ;;  %v2055_v59 = vld [vmem:[%s2491_s11 + $0x2f8] sm:$0xf0]  ;;  %v2070_v0 = vor.u32 %v2297_v52, %v2069_v51  ;;  %v2283_v23 = vld [vmem:[%s2491_s11 + $0x2ac] sm:$0xf] }
  0x7a   : > { %1198 = vmatpush.bf16.msra.mxu0 %v1750_v1  ;;  %v1802_v1 = vor.u32 %v2227_v53, %v1799_v54  ;;  %v2023_v24 = vld [vmem:[%s2491_s11 + $0x2b8] sm:$0xf0]  ;;  %v2315_v25 = vld [vmem:[%s2491_s11 + $0x3ac] sm:$0xf] }
  0x7b   : > { %1212 = vmatpush.bf16.msra.mxu1 %v1878_v2  ;;  %v1930_v2 = vor.u32 %v2259_v55, %v1927_v57  ;;  %v2151_v26 = vld [vmem:[%s2491_s11 + $0x3b8] sm:$0xf0]  ;;  %v2215_v30 = vld [vmem:[%s2491_s11 + $0x8c] sm:$0xf] }
  0x7c   : > { %1226 = vmatpush.bf16.msra.mxu2 %v2006_v3  ;;  %v2058_v3 = vor.u32 %v2291_v58, %v2055_v59  ;;  %v1751_v32 = vld [vmem:[%s2491_s11 + $0x98] sm:$0xf0]  ;;  %v2247_v33 = vld [vmem:[%s2491_s11 + $0x18c] sm:$0xf] }
  0x7d   : > { %1240 = vmatpush.bf16.msra.mxu3 %v2134_v7  ;;  %v2186_v7 = vor.u32 %v2323_v62, %v2183_v63  ;;  %v1879_v35 = vld [vmem:[%s2491_s11 + $0x198] sm:$0xf0]  ;;  %v2279_v36 = vld [vmem:[%s2491_s11 + $0x28c] sm:$0xf] }
  0x7e   : > { %1199 = vmatpush.bf16.msra.mxu0 %v1734_v14  ;;  %v1786_v14 = vor.u32 %v2223_v4, %v1783_v5  ;;  %v2007_v37 = vld [vmem:[%s2491_s11 + $0x298] sm:$0xf0]  ;;  %v2311_v39 = vld [vmem:[%s2491_s11 + $0x38c] sm:$0xf]  ;;  %v1882_v42 = vor.u32 %v2247_v33, %v1879_v35 }
  0x7f   : > { %1213 = vmatpush.bf16.msra.mxu1 %v1862_v15  ;;  %v1914_v15 = vor.u32 %v2255_v6, %v1911_v8  ;;  %v2135_v40 = vld [vmem:[%s2491_s11 + $0x398] sm:$0xf0]  ;;  %v2010_v43 = vor.u32 %v2279_v36, %v2007_v37  ;;  %v2243_v46 = vld [vmem:[%s2491_s11 + $0x16c] sm:$0xf] }
  0x80   : > { %1227 = vmatpush.bf16.msra.mxu2 %v1990_v16  ;;  %v2042_v16 = vor.u32 %v2287_v9, %v2039_v10  ;;  %v2138_v47 = vor.u32 %v2311_v39, %v2135_v40  ;;  %v1863_v48 = vld [vmem:[%s2491_s11 + $0x178] sm:$0xf0]  ;;  %v2307_v51 = vld [vmem:[%s2491_s11 + $0x36c] sm:$0xf]  ;;  %v283_v39 = vld [vmem:[%s3010_s4] sm:$0xff] }
  0x81   : > { %1241 = vmatpush.bf16.msra.mxu3 %v2118_v21  ;;  %v2170_v21 = vor.u32 %v2319_v11, %v2167_v12  ;;  %v1991_v50 = vld [vmem:[%s2491_s11 + $0x278] sm:$0xf0]  ;;  %v1866_v54 = vor.u32 %v2243_v46, %v1863_v48  ;;  %v2239_v58 = vld [vmem:[%s2491_s11 + $0x14c] sm:$0xf] }
  0x82   : > { %1200 = vmatpush.bf16.msra.mxu0 %v1718_v27  ;;  %v1770_v27 = vor.u32 %v2219_v17, %v1767_v18  ;;  %v2119_v52 = vld [vmem:[%s2491_s11 + $0x378] sm:$0xf0]  ;;  %v2303_v63 = vld [vmem:[%s2491_s11 + $0x34c] sm:$0xf] }
  0x83   : > { %1214 = vmatpush.bf16.msra.mxu1 %v1846_v28  ;;  %v1898_v28 = vor.u32 %v2251_v19, %v1895_v22  ;;  %v1719_v57 = vld [vmem:[%s2491_s11 + $0x58] sm:$0xf0]  ;;  %v2122_v59 = vor.u32 %v2307_v51, %v2119_v52  ;;  %v2203_v4 = vld [vmem:[%s2491_s11 + $0x2c] sm:$0xf] }
  0x84   : > { %1228 = vmatpush.bf16.msra.mxu2 %v1974_v29  ;;  %v2026_v29 = vor.u32 %v2283_v23, %v2023_v24  ;;  %v1975_v62 = vld [vmem:[%s2491_s11 + $0x258] sm:$0xf0]  ;;  %v2235_v6 = vld [vmem:[%s2491_s11 + $0x12c] sm:$0xf] }
  0x85   : > { %1242 = vmatpush.bf16.msra.mxu3 %v2102_v34  ;;  %v2154_v34 = vor.u32 %v2315_v25, %v2151_v26  ;;  %v1703_v5 = vld [vmem:[%s2491_s11 + $0x38] sm:$0xf0]  ;;  %v2267_v9 = vld [vmem:[%s2491_s11 + $0x22c] sm:$0xf] }
  0x86   : > { %1201 = vmatpush.bf16.msra.mxu0 %v1702_v41  ;;  %v1754_v41 = vor.u32 %v2215_v30, %v1751_v32  ;;  %v1831_v8 = vld [vmem:[%s2491_s11 + $0x138] sm:$0xf0]  ;;  %v2299_v11 = vld [vmem:[%s2491_s11 + $0x32c] sm:$0xf] }
  0x87   : > { %1215 = vmatpush.bf16.msra.mxu1 %v1830_v44  ;;  %v2211_v44 = vld [vmem:[%s2491_s11 + $0x6c] sm:$0xf]  ;;  %v1959_v10 = vld [vmem:[%s2491_s11 + $0x238] sm:$0xf0] }
  0x88   : > { %1229 = vmatpush.bf16.msra.mxu2 %v1958_v45  ;;  %v1735_v45 = vld [vmem:[%s2491_s11 + $0x78] sm:$0xf0]  ;;  %v2199_v17 = vld [vmem:[%s2491_s11 + $0xc] sm:$0xf] }
  0x89   : > { %1243 = vmatpush.bf16.msra.mxu3 %v2086_v49  ;;  %v2275_v49 = vld [vmem:[%s2491_s11 + $0x26c] sm:$0xf]  ;;  %v1738_v53 = vor.u32 %v2211_v44, %v1735_v45  ;;  %v2087_v12 = vld [vmem:[%s2491_s11 + $0x338] sm:$0xf0]  ;;  %v287_v44 = vld [vmem:[%s3010_s4 + $0x20] sm:$0xff] }
  0x8a   : > { %1202 = vmatpush.bf16.msra.mxu0 %v1686_v56  ;;  %v1994_v55 = vor.u32 %v2275_v49, %v1991_v50  ;;  %v2207_v56 = vld [vmem:[%s2491_s11 + $0x4c] sm:$0xf]  ;;  %v1687_v18 = vld [vmem:[%s2491_s11 + $0x18] sm:$0xf0] }
  0x8b   : > { %1216 = vmatpush.bf16.msra.mxu1 %v1814_v60  ;;  %v1847_v60 = vld [vmem:[%s2491_s11 + $0x158] sm:$0xf0]  ;;  %v2231_v19 = vld [vmem:[%s2491_s11 + $0x10c] sm:$0xf] }
  0x8c   : > { %1230 = vmatpush.bf16.msra.mxu2 %v1942_v61  ;;  %v2271_v61 = vld [vmem:[%s2491_s11 + $0x24c] sm:$0xf]  ;;  %v1815_v22 = vld [vmem:[%s2491_s11 + $0x118] sm:$0xf0] }
  0x8d   : > { %1244 = vmatpush.bf16.msra.mxu3 %v2070_v0  ;;  %1203 = vmatmul.bf16.vlgmr.msra.gmra.mxu0 %v2631_v31  ;;  %v2103_v0 = vld [vmem:[%s2491_s11 + $0x358] sm:$0xf0]  ;;  %v2263_v23 = vld [vmem:[%s2491_s11 + $0x20c] sm:$0xf] }
  0x8e   : > { %1251 = vmatpush.bf16.msrb.mxu0 %v1802_v1  ;;  %1217 = vmatmul.bf16.vlgmr.msra.gmra.mxu1 %v2638_v38  ;;  %v1722_v1 = vor.u32 %v2207_v56, %v1719_v57  ;;  %v1943_v24 = vld [vmem:[%s2491_s11 + $0x218] sm:$0xf0]  ;;  %v2295_v25 = vld [vmem:[%s2491_s11 + $0x30c] sm:$0xf] }
  0x8f   : > { %1265 = vmatpush.bf16.msrb.mxu1 %v1930_v2  ;;  %1231 = vmatmul.bf16.vlgmr.msra.gmra.mxu2 %v2613_v13  ;;  %v1850_v2 = vor.u32 %v2239_v58, %v1847_v60  ;;  %v2071_v26 = vld [vmem:[%s2491_s11 + $0x318] sm:$0xf0] }
  0x90   : > { %1279 = vmatpush.bf16.msrb.mxu2 %v2058_v3  ;;  %1245 = vmatmul.bf16.vlgmr.msra.gmra.mxu3 %v2620_v20  ;;  %v1978_v3 = vor.u32 %v2271_v61, %v1975_v62  ;;  %v2074_v30 = vor.u32 %v2295_v25, %v2071_v26  ;;  %v288_v62 = vld [vmem:[%s3010_s4 + $0x28] sm:$0xff] }
  0x91   : > { %1293 = vmatpush.bf16.msrb.mxu3 %v2186_v7  ;;  %v2106_v7 = vor.u32 %v2303_v63, %v2103_v0 }
  0x92   : > { %1252 = vmatpush.bf16.msrb.mxu0 %v1786_v14  ;;  %v1706_v14 = vor.u32 %v2203_v4, %v1703_v5 }
  0x93   : > { %1266 = vmatpush.bf16.msrb.mxu1 %v1914_v15  ;;  %v1834_v15 = vor.u32 %v2235_v6, %v1831_v8 }
  0x94   : > { %1280 = vmatpush.bf16.msrb.mxu2 %v2042_v16  ;;  %v1962_v16 = vor.u32 %v2267_v9, %v1959_v10 }
  0x95   : > { %1294 = vmatpush.bf16.msrb.mxu3 %v2170_v21  ;;  %v2090_v21 = vor.u32 %v2299_v11, %v2087_v12 }
  0x96   : > { %1253 = vmatpush.bf16.msrb.mxu0 %v1770_v27  ;;  %v1690_v27 = vor.u32 %v2199_v17, %v1687_v18  ;;  %v289_v17 = vld [vmem:[%s3010_s4 + $0x30] sm:$0xff] }
  0x97   : > { %1267 = vmatpush.bf16.msrb.mxu1 %v1898_v28  ;;  %v1818_v28 = vor.u32 %v2231_v19, %v1815_v22 }
  0x98   : > { %1281 = vmatpush.bf16.msrb.mxu2 %v2026_v29  ;;  %v1946_v29 = vor.u32 %v2263_v23, %v1943_v24 }
  0x99   : > { %1295 = vmatpush.bf16.msrb.mxu3 %v2154_v34 }
  0x9a   : > { %1254 = vmatpush.bf16.msrb.mxu0 %v1754_v41 }
  0x9b   : > { %1268 = vmatpush.bf16.msrb.mxu1 %v1882_v42 }
  0x9c   : > { %1282 = vmatpush.bf16.msrb.mxu2 %v2010_v43 }
  0x9d   : > { %1296 = vmatpush.bf16.msrb.mxu3 %v2138_v47 }
  0x9e   : > { %1255 = vmatpush.bf16.msrb.mxu0 %v1738_v53  ;;  %v284_v53 = vld [vmem:[%s3010_s4 + $0x8] sm:$0xff] }
  0x9f   : > { %1269 = vmatpush.bf16.msrb.mxu1 %v1866_v54 }
  0xa0   : > { %1283 = vmatpush.bf16.msrb.mxu2 %v1994_v55 }
  0xa1   : > { %1297 = vmatpush.bf16.msrb.mxu3 %v2122_v59 }
  0xa2   : > { %1256 = vmatpush.bf16.msrb.mxu0 %v1722_v1 }
  0xa3   : > { %1270 = vmatpush.bf16.msrb.mxu1 %v1850_v2 }
  0xa4   : > { %1284 = vmatpush.bf16.msrb.mxu2 %v1978_v3 }
  0xa5   : > { %1298 = vmatpush.bf16.msrb.mxu3 %v2106_v7  ;;  %v285_v7 = vld [vmem:[%s3010_s4 + $0x10] sm:$0xff] }
  0xa6   : > { %1257 = vmatpush.bf16.msrb.mxu0 %v1706_v14 }
  0xa7   : > { %1271 = vmatpush.bf16.msrb.mxu1 %v1834_v15 }
  0xa8   : > { %1285 = vmatpush.bf16.msrb.mxu2 %v1962_v16 }
  0xa9   : > { %1299 = vmatpush.bf16.msrb.mxu3 %v2090_v21 }
  0xaa   : > { %1258 = vmatpush.bf16.msrb.mxu0 %v1690_v27  ;;  %v286_v27 = vld [vmem:[%s3010_s4 + $0x18] sm:$0xff] }
  0xab   : > { %1272 = vmatpush.bf16.msrb.mxu1 %v1818_v28 }
  0xac   : > { %1286 = vmatpush.bf16.msrb.mxu2 %v1946_v29 }
  0xad   : > { %1300 = vmatpush.bf16.msrb.mxu3 %v2074_v30  ;;  %1259 = vmatmul.bf16.vlgmr.msrb.gmra.mxu0 %v2631_v31 }
  0xae   : > { %1273 = vmatmul.bf16.vlgmr.msrb.gmra.mxu1 %v2638_v38 }
  0xaf   : > { %1287 = vmatmul.bf16.vlgmr.msrb.gmra.mxu2 %v2613_v13 }
  0xb0   : > { %1301 = vmatmul.bf16.vlgmr.msrb.gmra.mxu3 %v2620_v20 }
  0xd0   : > { %v1092_v32 = vpop.f32.mrf.mxu0 }
  0xd2   : > { %v1106_v33 = vpop.f32.mrf.mxu1  ;;  %v1120_v35 = vpop.f32.mrf.mxu2 }
  0xd3   : > { %v1107_v34 = vadd.f32 %v1106_v33, %v1092_v32 }
  0xd5   : > { %v1134_v36 = vpop.f32.mrf.mxu3  ;;  %v1121_v37 = vadd.f32 %v1120_v35, %v1107_v34 }
  0xd7   : > { %v1135_v40 = vadd.f32 %v1134_v36, %v1121_v37  ;;  %v290_v36 = vld [vmem:[%s3010_s4 + $0x38] sm:$0xff] }
  0xd8   : > { %v1094_v42 = vpop.f32.mrf.mxu0 }
  0xd9   : > { %v1307_v41 = vadd.f32 %v1135_v40, %v283_v39 }
  0xda   : > { %v1108_v31 = vpop.f32.mrf.mxu1  ;;  %v1122_v20 = vpop.f32.mrf.mxu2 }
  0xdb   : > { %1315 = vst [vmem:[%s3010_s4] sm:$0xff] %v1307_v41  ;;  %v1109_v13 = vadd.f32 %v1108_v31, %v1094_v42 }
  0xdd   : > { %v1136_v38 = vpop.f32.mrf.mxu3  ;;  %v1123_v43 = vadd.f32 %v1122_v20, %v1109_v13 }
  0xdf   : > { %v1137_v45 = vadd.f32 %v1136_v38, %v1123_v43 }
  0xe1   : > { %v1311_v46 = vadd.f32 %v1137_v45, %v287_v44 }
  0xe3   : > { %1319 = vst [vmem:[%s3010_s4 + $0x20] sm:$0xff] %v1311_v46 }
  0xea   : > { %v1148_v47 = vpop.f32.mrf.mxu0 }
  0xeb   : > { %v1162_v48 = vpop.f32.mrf.mxu1 }
  0xec   : > { %v1163_v49 = vadd.f32 %v1162_v48, %v1148_v47 }
  0xf2   : > { %v1176_v50 = vpop.f32.mrf.mxu2  ;;  %v1150_v55 = vpop.f32.mrf.mxu0 }
  0xf3   : > { %v1177_v51 = vadd.f32 %v1176_v50, %v1163_v49  ;;  %v1190_v52 = vpop.f32.mrf.mxu3  ;;  %v1164_v56 = vpop.f32.mrf.mxu1 }
  0xf4   : > { %v1165_v58 = vadd.f32 %v1164_v56, %v1150_v55 }
  0xf5   : > { %v1191_v54 = vadd.f32 %v1190_v52, %v1177_v51 }
  0xf7   : > { %v1308_v57 = vadd.f32 %v1191_v54, %v284_v53 }
  0xf9   : > { %1316 = vst [vmem:[%s3010_s4 + $0x8] sm:$0xff] %v1308_v57 }
  0xfa   : > { %v1178_v59 = vpop.f32.mrf.mxu2 }
  0xfb   : > { %v1179_v60 = vadd.f32 %v1178_v59, %v1165_v58  ;;  %v1192_v61 = vpop.f32.mrf.mxu3 }
  0xfd   : > { %v1193_v63 = vadd.f32 %v1192_v61, %v1179_v60 }
  0xff   : > { %v1312_v0 = vadd.f32 %v1193_v63, %v288_v62 }
 0x101   : > { %1320 = vst [vmem:[%s3010_s4 + $0x28] sm:$0xff] %v1312_v0 }
 0x10a   : > { %v1204_v1 = vpop.f32.mrf.mxu0 }
 0x10b   : > { %v1218_v2 = vpop.f32.mrf.mxu1 }
 0x10c   : > { %v1219_v3 = vadd.f32 %v1218_v2, %v1204_v1 }
 0x112   : > { %v1232_v4 = vpop.f32.mrf.mxu2  ;;  %v1206_v9 = vpop.f32.mrf.mxu0 }
 0x113   : > { %v1233_v5 = vadd.f32 %v1232_v4, %v1219_v3  ;;  %v1246_v6 = vpop.f32.mrf.mxu3  ;;  %v1220_v10 = vpop.f32.mrf.mxu1 }
 0x114   : > { %v1221_v12 = vadd.f32 %v1220_v10, %v1206_v9 }
 0x115   : > { %v1247_v8 = vadd.f32 %v1246_v6, %v1233_v5 }
 0x117   : > { %v1309_v11 = vadd.f32 %v1247_v8, %v285_v7 }
 0x119   : > { %1317 = vst [vmem:[%s3010_s4 + $0x10] sm:$0xff] %v1309_v11 }
 0x11a   : > { %v1234_v14 = vpop.f32.mrf.mxu2 }
 0x11b   : > { %v1235_v15 = vadd.f32 %v1234_v14, %v1221_v12  ;;  %v1248_v16 = vpop.f32.mrf.mxu3 }
 0x11d   : > { %v1249_v18 = vadd.f32 %v1248_v16, %v1235_v15 }
 0x11f   : > { %v1313_v19 = vadd.f32 %v1249_v18, %v289_v17 }
 0x121   : > { %1321 = vst [vmem:[%s3010_s4 + $0x30] sm:$0xff] %v1313_v19 }
 0x12a   : > { %v1260_v21 = vpop.f32.mrf.mxu0 }
 0x12b   : > { %v1274_v22 = vpop.f32.mrf.mxu1 }
 0x12c   : > { %v1275_v23 = vadd.f32 %v1274_v22, %v1260_v21 }
 0x132   : > { %v1288_v24 = vpop.f32.mrf.mxu2  ;;  %v1262_v29 = vpop.f32.mrf.mxu0 }
 0x133   : > { %v1289_v25 = vadd.f32 %v1288_v24, %v1275_v23  ;;  %v1302_v26 = vpop.f32.mrf.mxu3  ;;  %v1276_v30 = vpop.f32.mrf.mxu1 }
 0x134   : > { %v1277_v33 = vadd.f32 %v1276_v30, %v1262_v29 }
 0x135   : > { %v1303_v28 = vadd.f32 %v1302_v26, %v1289_v25 }
 0x137   : > { %v1310_v32 = vadd.f32 %v1303_v28, %v286_v27 }
 0x139   : > { %1318 = vst [vmem:[%s3010_s4 + $0x18] sm:$0xff] %v1310_v32 }
 0x13a   : > { %v1290_v34 = vpop.f32.mrf.mxu2 }
 0x13b   : > { %v1291_v35 = vadd.f32 %v1290_v34, %v1277_v33  ;;  %v1304_v37 = vpop.f32.mrf.mxu3 }
 0x13d   : > { %v1305_v39 = vadd.f32 %v1304_v37, %v1291_v35  ;;  %1326 = sbr.rel (%p2187_p11) target bundleno = 402 (0x192), region = 67 }
 0x13f   : > { %v1314_v40 = vadd.f32 %v1305_v39, %v290_v36 }
 0x141   : > { %1322 = vst [vmem:[%s3010_s4 + $0x38] sm:$0xff] %v1314_v40 }
 0x142   : > { %v2860_v41 = vld [vmem:[%s3010_s4] sm:$0xff]  ;;  %v2865_v42 = vld [vmem:[%s3010_s4 + $0x8] sm:$0xff]  ;;  %v2870_v31 = vld [vmem:[%s3010_s4 + $0x10] sm:$0xff]  ;;  %vm1471_vm12 = vcmask 1040384   ;;  %vm1473_vm13 = vcmask 1042434   ;;  %vm1475_vm14 = vcmask 1041408  }
 0x143   : > { %v2875_v13 = vld [vmem:[%s3010_s4 + $0x18] sm:$0xff]  ;;  %v2880_v20 = vld [vmem:[%s3010_s4 + $0x20] sm:$0xff]  ;;  %v2885_v38 = vld [vmem:[%s3010_s4 + $0x28] sm:$0xff]  ;;  %v1367_v43 = vmul.f32 %v2860_v41, %v2860_v41  ;;  %v1368_v44 = vmul.f32 %v2865_v42, %v2865_v42  ;;  %v1369_v45 = vmul.f32 %v2870_v31, %v2870_v31 }
 0x144   : > { %v2896_v46 = vld [vmem:[%s3010_s4 + $0x30] sm:$0xff]  ;;  %v1335_v48 = vadd.f32 %v2880_v20, %v2860_v41  ;;  %v1342_v49 = vadd.f32 %v2885_v38, %v2865_v42  ;;  %v1370_v50 = vmul.f32 %v2875_v13, %v2875_v13  ;;  %v1371_v51 = vmul.f32 %v2880_v20, %v2880_v20 }
 0x145   : > { %v1349_v52 = vadd.f32 %v2896_v46, %v2870_v31  ;;  %v1372_v54 = vmul.f32 %v2885_v38, %v2885_v38  ;;  %v1373_v55 = vmul.f32 %v2896_v46, %v2896_v46 }
 0x146   : > { %v1336_v56 = vrot.slane %v1335_v48, 4  ;;  %v1343_v57 = vrot.slane %v1342_v49, 4  ;;  %v1375_v59 = vadd.f32 %v1371_v51, %v1367_v43 }
 0x147   : > { %v1350_v60 = vrot.slane %v1349_v52, 4  ;;  %v1382_v62 = vadd.f32 %v1372_v54, %v1368_v44  ;;  %v1389_v63 = vadd.f32 %v1373_v55, %v1369_v45 }
 0x148   : > { %v2901_v47 = vld [vmem:[%s3010_s4 + $0x38] sm:$0xff]  ;;  %v1337_v0 = vadd.f32 %v1336_v56, %v1335_v48  ;;  %v1344_v1 = vadd.f32 %v1343_v57, %v1342_v49  ;;  %v1376_v2 = vrot.slane %v1375_v59, 4 }
 0x149   : > { %v1356_v53 = vadd.f32 %v2901_v47, %v2875_v13  ;;  %v1374_v58 = vmul.f32 %v2901_v47, %v2901_v47  ;;  %v1351_v4 = vadd.f32 %v1350_v60, %v1349_v52  ;;  %v1383_v6 = vrot.slane %v1382_v62, 4 }
 0x14a   : > { %v1390_v7 = vrot.slane %v1389_v63, 4  ;;  %v1338_v8 = vrot.slane %v1337_v0, 2  ;;  %v1345_v9 = vrot.slane %v1344_v1, 2  ;;  %v1377_v10 = vadd.f32 %v1376_v2, %v1375_v59 }
 0x14b   : > { %v1357_v61 = vrot.slane %v1356_v53, 4  ;;  %v1396_v3 = vadd.f32 %v1374_v58, %v1370_v50  ;;  %v1352_v12 = vrot.slane %v1351_v4, 2  ;;  %v1384_v15 = vadd.f32 %v1383_v6, %v1382_v62 }
 0x14c   : > { %v1391_v16 = vadd.f32 %v1390_v7, %v1389_v63  ;;  %v1339_v17 = vadd.f32 %v1338_v8, %v1337_v0  ;;  %v1346_v18 = vadd.f32 %v1345_v9, %v1344_v1  ;;  %v1378_v19 = vrot.slane %v1377_v10, 2 }
 0x14d   : > { %v1358_v5 = vadd.f32 %v1357_v61, %v1356_v53  ;;  %v1397_v11 = vrot.slane %v1396_v3, 4  ;;  %v1353_v22 = vadd.f32 %v1352_v12, %v1351_v4  ;;  %v1385_v24 = vrot.slane %v1384_v15, 2 }
 0x14e   : > { %v1392_v25 = vrot.slane %v1391_v16, 2  ;;  %v1340_v26 = vrot.slane %v1339_v17, 1  ;;  %v1347_v27 = vrot.slane %v1346_v18, 1  ;;  %v1379_v28 = vadd.f32 %v1378_v19, %v1377_v10 }
 0x14f   : > { %v1359_v14 = vrot.slane %v1358_v5, 2  ;;  %v1398_v21 = vadd.f32 %v1397_v11, %v1396_v3  ;;  %v1354_v30 = vrot.slane %v1353_v22, 1  ;;  %v1386_v33 = vadd.f32 %v1385_v24, %v1384_v15 }
 0x150   : > { %v1393_v34 = vadd.f32 %v1392_v25, %v1391_v16  ;;  %v1341_v35 = vadd.f32 %v1340_v26, %v1339_v17  ;;  %v1348_v36 = vadd.f32 %v1347_v27, %v1346_v18  ;;  %v1380_v37 = vrot.slane %v1379_v28, 1 }
 0x151   : > { %v1360_v23 = vadd.f32 %v1359_v14, %v1358_v5  ;;  %v1399_v29 = vrot.slane %v1398_v21, 2  ;;  %v1355_v40 = vadd.f32 %v1354_v30, %v1353_v22  ;;  %v1387_v44 = vrot.slane %v1386_v33, 1 }
 0x152   : > { %v1394_v45 = vrot.slane %v1393_v34, 1  ;;  %v2921_v48 = vmul.f32 0.125, %v1341_v35  ;;  %v2923_v49 = vmul.f32 0.125, %v1348_v36  ;;  %v1381_v50 = vadd.f32 %v1380_v37, %v1379_v28 }
 0x153   : > { %v1361_v32 = vrot.slane %v1360_v23, 1  ;;  %v1400_v39 = vadd.f32 %v1399_v29, %v1398_v21  ;;  %v2925_v52 = vmul.f32 0.125, %v1355_v40  ;;  %v1388_v54 = vadd.f32 %v1387_v44, %v1386_v33 }
 0x154   : > { %v1395_v55 = vadd.f32 %v1394_v45, %v1393_v34  ;;  %v1403_v57 = vmul.f32 0.125, %v1381_v50  ;;  %v1407_v58 = vmul.f32 %v2921_v48, %v2921_v48  ;;  %v1408_v59 = vmul.f32 %v2923_v49, %v2923_v49 }
 0x155   : > { %v1362_v43 = vadd.f32 %v1361_v32, %v1360_v23  ;;  %v1401_v51 = vrot.slane %v1400_v39, 1  ;;  %v1404_v60 = vmul.f32 0.125, %v1388_v54  ;;  %v1409_v62 = vmul.f32 %v2925_v52, %v2925_v52 }
 0x156   : > { %v1405_v61 = vmul.f32 0.125, %v1395_v55  ;;  %v1411_v1 = vsub.f32 %v1403_v57, %v1407_v58  ;;  %v1419_v58 = vld [vmem:[%s3008_s2] sm:$0xf] }
 0x157   : > { %v2927_v53 = vmul.f32 0.125, %v1362_v43  ;;  %v1402_v56 = vadd.f32 %v1401_v51, %v1400_v39  ;;  %v1412_v2 = vsub.f32 %v1404_v60, %v1408_v59 }
 0x158   : > { %v1413_v3 = vsub.f32 %v1405_v61, %v1409_v62  ;;  %v1415_v5 = vmax.f32 %v1411_v1, 0.0 }
 0x159   : > { %v1410_v63 = vmul.f32 %v2927_v53, %v2927_v53  ;;  %v1406_v0 = vmul.f32 0.125, %v1402_v56  ;;  %v1416_v6 = vmax.f32 %v1412_v2, 0.0 }
 0x15a   : > { %v1417_v7 = vmax.f32 %v1413_v3, 0.0  ;;  %v1420_v9 = vadd.f32 1e-05, %v1415_v5 }
 0x15b   : > { %v1414_v4 = vsub.f32 %v1406_v0, %v1410_v63  ;;  %v1421_v10 = vadd.f32 1e-05, %v1416_v6 }
 0x15c   : > { %v1422_v11 = vadd.f32 1e-05, %v1417_v7  ;;  %2367 = vrsqrt.f32 %v1420_v9  ;;  %vm1430_vm0 = vweird.f32 %v1420_v9 }
 0x15d   : > { %v1418_v8 = vmax.f32 %v1414_v4, 0.0  ;;  %2369 = vrsqrt.f32 %v1421_v10  ;;  %vm1440_vm2 = vweird.f32 %v1421_v10 }
 0x15e   : > { %2371 = vrsqrt.f32 %v1422_v11  ;;  %vm1450_vm4 = vweird.f32 %v1422_v11 }
 0x15f   : > { %v1423_v12 = vadd.f32 1e-05, %v1418_v8 }
 0x161   : > { %2373 = vrsqrt.f32 %v1423_v12  ;;  %vm1460_vm7 = vweird.f32 %v1423_v12 }
 0x162   : > { %v2368_v14 = vpop.eup %2367 }
 0x163   : > { %v2370_v15 = vpop.eup %2369  ;;  %v1425_v16 = vmul.f32 %v2368_v14, %v1420_v9  ;;  %vm1431_vm1 = vweird.f32 %v2368_v14  ;;  %v1479_v9 = vld [vmem:[%s3009_s3] sm:$0xf] }
 0x164   : > { %v2372_v17 = vpop.eup %2371  ;;  %v1435_v18 = vmul.f32 %v2370_v15, %v1421_v10  ;;  %vm1441_vm3 = vweird.f32 %v2370_v15  ;;  %vm2937_vm6 = vmor %vm1430_vm0, %vm1431_vm1 }
 0x165   : > { %v1426_v21 = vmul.f32 %v2368_v14, %v1425_v16  ;;  %v1445_v22 = vmul.f32 %v2372_v17, %v1422_v11  ;;  %vm1451_vm5 = vweird.f32 %v2372_v17  ;;  %vm1442_vm9 = vmor %vm1440_vm2, %vm1441_vm3 }
 0x166   : > { %v1436_v23 = vmul.f32 %v2370_v15, %v1435_v18  ;;  %vm1452_vm10 = vmor %vm1450_vm4, %vm1451_vm5 }
 0x167   : > { %v2374_v19 = vpop.eup %2373  ;;  %v1427_v25 = vmul.f32 0.5, %v1426_v21  ;;  %v1446_v26 = vmul.f32 %v2372_v17, %v1445_v22 }
 0x168   : > { %v1455_v24 = vmul.f32 %v2374_v19, %v1423_v12  ;;  %v1437_v27 = vmul.f32 0.5, %v1436_v23  ;;  %vm1461_vm8 = vweird.f32 %v2374_v19 }
 0x169   : > { %v1428_v29 = vsub.f32 1.5, %v1427_v25  ;;  %v1447_v30 = vmul.f32 0.5, %v1446_v26  ;;  %vm1462_vm11 = vmor %vm1460_vm7, %vm1461_vm8 }
 0x16a   : > { %v1456_v28 = vmul.f32 %v2374_v19, %v1455_v24  ;;  %v1438_v33 = vsub.f32 1.5, %v1437_v27 }
 0x16b   : > { %v1429_v35 = vmul.f32 %v2368_v14, %v1428_v29  ;;  %v1448_v36 = vsub.f32 1.5, %v1447_v30 }
 0x16c   : > { %v1457_v34 = vmul.f32 0.5, %v1456_v28  ;;  %v1439_v37 = vmul.f32 %v2370_v15, %v1438_v33 }
 0x16d   : > { %v1449_v40 = vmul.f32 %v2372_v17, %v1448_v36  ;;  %v1433_v43 = vsel %vm2937_vm6, %v2368_v14, %v1429_v35 }
 0x16e   : > { %v1458_v39 = vsub.f32 1.5, %v1457_v34  ;;  %v1443_v44 = vsel %vm1442_vm9, %v2370_v15, %v1439_v37 }
 0x16f   : > { %v1453_v50 = vsel %vm1452_vm10, %v2372_v17, %v1449_v40  ;;  %v1468_v51 = vrot.slane %v1443_v44, 7 }
 0x170   : > { %v1459_v45 = vmul.f32 %v2374_v19, %v1458_v39  ;;  %v1469_v55 = vrot.slane %v1453_v50, 6 }
 0x171   : > { %v1472_v57 = vsel %vm1471_vm12, %v1433_v43, %v1468_v51 }
 0x172   : > { %v1463_v54 = vsel %vm1462_vm11, %v2374_v19, %v1459_v45 }
 0x173   : > { %v1470_v56 = vrot.slane %v1463_v54, 5 }
 0x175   : > { %v1474_v59 = vsel %vm1473_vm13, %v1469_v55, %v1470_v56 }
 0x176   : > { %v1476_v60 = vsel %vm1475_vm14, %v1472_v57, %v1474_v59 }
 0x177   : > { %v1478_v61 = vmul.f32 %v1476_v60, %v1419_v58 }
 0x179   : > { %v1481_v62 = vperm.slane %v1478_v61, 0  ;;  %v1482_v63 = vperm.slane %v1478_v61, 1  ;;  %v1483_v0 = vperm.slane %v1478_v61, 2  ;;  %v1484_v1 = vperm.slane %v1478_v61, 3 }
 0x17b   : > { %v1489_v2 = vmul.f32 %v1481_v62, %v2921_v48  ;;  %v1490_v3 = vmul.f32 %v1482_v63, %v2923_v49  ;;  %v1491_v4 = vmul.f32 %v1483_v0, %v2925_v52  ;;  %v1492_v5 = vmul.f32 %v1484_v1, %v2927_v53 }
 0x17c   : > { %v1505_v48 = vmul.f32 %v1481_v62, %v2860_v41  ;;  %v1506_v52 = vmul.f32 %v1482_v63, %v2865_v42  ;;  %v1507_v53 = vmul.f32 %v1483_v0, %v2870_v31  ;;  %v1508_v14 = vmul.f32 %v1484_v1, %v2875_v13 }
 0x17d   : > { %v1497_v6 = vrot.slane %v1490_v3, 7  ;;  %v1498_v7 = vrot.slane %v1491_v4, 6  ;;  %v1499_v8 = vrot.slane %v1492_v5, 5  ;;  %v1509_v15 = vmul.f32 %v1481_v62, %v2880_v20 }
 0x17e   : > { %v1510_v16 = vmul.f32 %v1482_v63, %v2885_v38  ;;  %v1511_v17 = vmul.f32 %v1483_v0, %v2896_v46  ;;  %v1512_v18 = vmul.f32 %v1484_v1, %v2901_v47 }
 0x17f   : > { %v1500_v10 = vsel %vm1471_vm12, %v1489_v2, %v1497_v6  ;;  %v1501_v11 = vsel %vm1473_vm13, %v1498_v7, %v1499_v8 }
 0x180   : > { %v1502_v12 = vsel %vm1475_vm14, %v1500_v10, %v1501_v11 }
 0x181   : > { %v1504_v49 = vsub.f32 %v1479_v9, %v1502_v12 }
 0x183   : > { %v1514_v19 = vperm.slane %v1504_v49, 0  ;;  %v1515_v21 = vperm.slane %v1504_v49, 1  ;;  %v1516_v22 = vperm.slane %v1504_v49, 2  ;;  %v1517_v23 = vperm.slane %v1504_v49, 3 }
 0x185   : > { %v1522_v41 = vadd.f32 %v1514_v19, %v1505_v48  ;;  %v1523_v24 = vadd.f32 %v1515_v21, %v1506_v52  ;;  %v1524_v25 = vadd.f32 %v1516_v22, %v1507_v53  ;;  %v1525_v42 = vadd.f32 %v1517_v23, %v1508_v14 }
 0x186   : > { %v1526_v26 = vadd.f32 %v1514_v19, %v1509_v15  ;;  %v1527_v31 = vadd.f32 %v1515_v21, %v1510_v16  ;;  %v1528_v27 = vadd.f32 %v1516_v22, %v1511_v17  ;;  %v1529_v13 = vadd.f32 %v1517_v23, %v1512_v18 }
 0x187   : > { %vm1530_vm15 = vcmp.gt.f32.partialorder %v1522_v41, 0.0  ;;  %v1538_v20 = vmul.f32 0.2, %v1522_v41  ;;  %vm1531_vm0 = vcmp.gt.f32.partialorder %v1523_v24, 0.0  ;;  %v1539_v38 = vmul.f32 0.2, %v1523_v24 }
 0x188   : > { %vm1532_vm1 = vcmp.gt.f32.partialorder %v1524_v25, 0.0  ;;  %v1540_v46 = vmul.f32 0.2, %v1524_v25  ;;  %vm1533_vm2 = vcmp.gt.f32.partialorder %v1525_v42, 0.0  ;;  %v1541_v47 = vmul.f32 0.2, %v1525_v42 }
 0x189   : > { %v1546_v28 = vsel %vm1530_vm15, %v1522_v41, %v1538_v20  ;;  %v1547_v29 = vsel %vm1531_vm0, %v1523_v24, %v1539_v38  ;;  %vm1534_vm3 = vcmp.gt.f32.partialorder %v1526_v26, 0.0  ;;  %v1542_v30 = vmul.f32 0.2, %v1526_v26 }
 0x18a   : > { %1554 = vst [vmem:[%s3010_s4] sm:$0xff] %v1546_v28  ;;  %v1548_v32 = vsel %vm1532_vm1, %v1524_v25, %v1540_v46  ;;  %v1549_v33 = vsel %vm1533_vm2, %v1525_v42, %v1541_v47  ;;  %vm1535_vm4 = vcmp.gt.f32.partialorder %v1527_v31, 0.0  ;;  %v1543_v34 = vmul.f32 0.2, %v1527_v31 }
 0x18b   : > { %1555 = vst [vmem:[%s3010_s4 + $0x8] sm:$0xff] %v1547_v29  ;;  %v1550_v35 = vsel %vm1534_vm3, %v1526_v26, %v1542_v30  ;;  %vm1536_vm5 = vcmp.gt.f32.partialorder %v1528_v27, 0.0  ;;  %v1544_v36 = vmul.f32 0.2, %v1528_v27  ;;  %vm1537_vm6 = vcmp.gt.f32.partialorder %v1529_v13, 0.0 }
 0x18c   : > { %1556 = vst [vmem:[%s3010_s4 + $0x10] sm:$0xff] %v1548_v32  ;;  %v1551_v37 = vsel %vm1535_vm4, %v1527_v31, %v1543_v34  ;;  %v1545_v39 = vmul.f32 0.2, %v1529_v13 }
 0x18d   : > { %1557 = vst [vmem:[%s3010_s4 + $0x18] sm:$0xff] %v1549_v33  ;;  %v1552_v40 = vsel %vm1536_vm5, %v1528_v27, %v1544_v36 }
 0x18e   : > { %1558 = vst [vmem:[%s3010_s4 + $0x20] sm:$0xff] %v1550_v35  ;;  %v1553_v43 = vsel %vm1537_vm6, %v1529_v13, %v1545_v39 }
 0x18f   : > { %1559 = vst [vmem:[%s3010_s4 + $0x28] sm:$0xff] %v1551_v37 }
 0x190   : > { %1560 = vst [vmem:[%s3010_s4 + $0x30] sm:$0xff] %v1552_v40 }
 0x191   : > { %1561 = vst [vmem:[%s3010_s4 + $0x38] sm:$0xff] %v1553_v43 }
 0x192 PF: > { %s14_s19 = sadd.s32 1, %s2413_s19   ;;  %s3013_s15 = smov %s2401_s16 }
 0x193   : > { %p11_p12 = scmp.ge.s32.totalorder %s14_s19, 6   ;;  %s3014_s16 = smov %s2476_s23 }
 0x194   : > { %s3015_s17 = smov %s2409_s18  ;;  %s3016_s18 = smov %s3018_s20 }
 0x195   :  { %13 = sbr.rel (!%p11_p12) target bundleno = 3 (0x3), region = 105 }

</bundles_post_ra>
